<compile_context>
chip_gen: v7x
topology: tpu7x:2x2x1
jax: 0.10.0
libtpu: 0.0.40
codegen_flags: <defaults>
</compile_context>

<pallas_src>
import functools

import jax
import jax.numpy as jnp
from jax import lax
from jax.experimental import pallas as pl
from jax.experimental.pallas import tpu as pltpu

CP = 128  # lane width; all channel dims are zero padded to this


# ---------------------------------------------------------------------------
# Fused per-stage kernel
# ---------------------------------------------------------------------------
def _stage_kernel(xs_ref, m_ref, wd_ref, bd_ref, w1_ref, b1_ref, w2_ref, b2_ref,
                  o_ref, xbuf, hbuf, *, Ho, Wo):
    """One encoder stage for one batch element.

    Activations live on a flattened, spatially padded grid of shape
    (P, CP) with P = (Ho+2)*(Wo+2); border rows are kept at zero (they are the
    conv padding ring) via `mask`.  Every conv tap is a static row-shifted
    slice followed by a (P, K) x (K, CP) MXU matmul with f32 accumulation.
    """
    Wp = Wo + 2
    P = (Ho + 2) * Wp
    OFF = Wp + 1                      # head slack inside the scratch buffers
    mask = m_ref[...]                 # (P, 1) f32; 1.0 at valid positions

    # ---- downsample conv: 3x3 stride-2 == 2x2 taps over space-to-depth input
    acc = jnp.zeros((P, CP), jnp.float32)
    for bi in range(2):
        for bj in range(2):
            shift = bi * Wp + bj
            patch = xs_ref[shift:shift + P, :]                   # (P, 4*CP) bf16
            acc = acc + jnp.dot(patch, wd_ref[bi * 2 + bj],
                                preferred_element_type=jnp.float32)
    x0 = (jnp.maximum(acc + bd_ref[...], 0.0) * mask).astype(jnp.bfloat16)

    xbuf[...] = jnp.zeros_like(xbuf)
    xbuf[OFF:OFF + P, :] = x0

    # ---- ResNet conv1: 3x3 stride-1 + bias + ReLU
    acc = jnp.zeros((P, CP), jnp.float32)
    for dh in range(3):
        for dw in range(3):
            s = OFF + (dh - 1) * Wp + (dw - 1)
            acc = acc + jnp.dot(xbuf[s:s + P, :], w1_ref[dh * 3 + dw],
                                preferred_element_type=jnp.float32)
    h = (jnp.maximum(acc + b1_ref[...], 0.0) * mask).astype(jnp.bfloat16)

    hbuf[...] = jnp.zeros_like(hbuf)
    hbuf[OFF:OFF + P, :] = h

    # ---- ResNet conv2 + residual + ReLU
    acc = jnp.zeros((P, CP), jnp.float32)
    for dh in range(3):
        for dw in range(3):
            s = OFF + (dh - 1) * Wp + (dw - 1)
            acc = acc + jnp.dot(hbuf[s:s + P, :], w2_ref[dh * 3 + dw],
                                preferred_element_type=jnp.float32)
    y = jnp.maximum(acc + b2_ref[...] + x0.astype(jnp.float32), 0.0) * mask
    o_ref[...] = y.astype(o_ref.dtype)


def run_stage(xs_flat, mask, wd, bd, w1, b1, w2, b2, *, Ho, Wo):
    N, PIN, _ = xs_flat.shape
    Wp = Wo + 2
    P = (Ho + 2) * Wp
    PB = P + 2 * (Wp + 1)
    kernel = functools.partial(_stage_kernel, Ho=Ho, Wo=Wo)
    return pl.pallas_call(
        kernel,
        out_shape=jax.ShapeDtypeStruct((N, P, CP), jnp.bfloat16),
        grid=(N,),
        in_specs=[
            pl.BlockSpec((None, PIN, 4 * CP), lambda n: (n, 0, 0)),  # s2d input
            pl.BlockSpec((P, 1), lambda n: (0, 0)),                  # valid mask
            pl.BlockSpec((4, 4 * CP, CP), lambda n: (0, 0, 0)),      # down conv W
            pl.BlockSpec((1, CP), lambda n: (0, 0)),                 # down conv b
            pl.BlockSpec((9, CP, CP), lambda n: (0, 0, 0)),          # res conv1 W
            pl.BlockSpec((1, CP), lambda n: (0, 0)),                 # res conv1 b
            pl.BlockSpec((9, CP, CP), lambda n: (0, 0, 0)),          # res conv2 W
            pl.BlockSpec((1, CP), lambda n: (0, 0)),                 # res conv2 b
        ],
        out_specs=pl.BlockSpec((None, P, CP), lambda n: (n, 0, 0)),
        scratch_shapes=[pltpu.VMEM((PB, CP), jnp.bfloat16),
                        pltpu.VMEM((PB, CP), jnp.bfloat16)],
        compiler_params=pltpu.CompilerParams(
            dimension_semantics=("parallel",)),   # batch axis -> 2 TCs on v7x
    )(xs_flat, mask, wd, bd, w1, b1, w2, b2)


# ---------------------------------------------------------------------------
# Final Linear: canonical K-tiled matmul with VMEM accumulator
# ---------------------------------------------------------------------------
def _linear_kernel(x_ref, w_ref, b_ref, o_ref, acc_ref):
    @pl.when(pl.program_id(0) == 0)
    def _init():
        acc_ref[...] = jnp.zeros_like(acc_ref)

    acc_ref[...] += jnp.dot(x_ref[...], w_ref[...],
                            preferred_element_type=jnp.float32)

    @pl.when(pl.program_id(0) == pl.num_programs(0) - 1)
    def _fin():
        o_ref[...] = acc_ref[...] + b_ref[...]


def _pick_k_tile(K, max_tile=1024):
    if K <= max_tile:
        return K
    best = K
    for t in range(CP, max_tile + 1, CP):
        if K % t == 0:
            best = t
    return best


def run_linear(x_flat, w, b):
    N, K = x_flat.shape
    _, LP = w.shape
    tk = _pick_k_tile(K)
    assert K % tk == 0
    return pl.pallas_call(
        _linear_kernel,
        out_shape=jax.ShapeDtypeStruct((N, LP), jnp.float32),
        grid=(K // tk,),
        in_specs=[pl.BlockSpec((N, tk), lambda k: (0, k)),
                  pl.BlockSpec((tk, LP), lambda k: (k, 0)),
                  pl.BlockSpec((1, LP), lambda k: (0, 0))],
        out_specs=pl.BlockSpec((N, LP), lambda k: (0, 0)),
        scratch_shapes=[pltpu.VMEM((N, LP), jnp.float32)],
        compiler_params=pltpu.CompilerParams(
            dimension_semantics=("arbitrary",)),
    )(x_flat, w, b)


# ---------------------------------------------------------------------------
# Host-side glue (tiny, 1x-volume permutations — no im2col blow-up)
# ---------------------------------------------------------------------------
def _prep_stage_input(x):
    """(N, H, W, CP) bf16 -> flattened, padded space-to-depth input for the
    stride-2 conv: (N, (Ho+2)*(Wo+2) + Wo+3, 4*CP)."""
    N, H, W, Cp = x.shape
    Ho, Wo = H // 2, W // 2
    Hp, Wp = Ho + 2, Wo + 2
    s2d = x.reshape(N, Ho, 2, Wo, 2, Cp)
    s2d = jnp.transpose(s2d, (0, 1, 3, 2, 4, 5)).reshape(N, Ho, Wo, 4 * Cp)
    grid_ = jnp.zeros((N, Hp, Wp, 4 * Cp), x.dtype)
    grid_ = grid_.at[:, 2:, 2:, :].set(s2d)
    flat = grid_.reshape(N, Hp * Wp, 4 * Cp)
    flat = jnp.pad(flat, ((0, 0), (0, Wp + 1), (0, 0)))  # tail slack for shifts
    return flat


def _make_mask(Ho, Wo):
    Hp, Wp = Ho + 2, Wo + 2
    m = jnp.zeros((Hp, Wp), jnp.float32).at[1:1 + Ho, 1:1 + Wo].set(1.0)
    return m.reshape(Hp * Wp, 1)


def _round_up(n, m):
    return ((n + m - 1) // m) * m


# ---------------------------------------------------------------------------
# Parameter init (torch-like layout) and one-time packing into kernel layout
# ---------------------------------------------------------------------------
def init_raw_params(key, channels, input_dim, latent_dim):
    raw = {"stages": []}
    conv_dim = input_dim
    for i in range(1, len(channels)):
        cin, cout = channels[i - 1], channels[i]
        key, k1, k2, k3, k4, k5, k6 = jax.random.split(key, 7)
        s_in = 1.0 / jnp.sqrt(cin * 9.0)
        s_out = 1.0 / jnp.sqrt(cout * 9.0)
        raw["stages"].append(dict(
            down_w=jax.random.normal(k1, (cout, cin, 3, 3), jnp.float32) * s_in,
            down_b=jax.random.normal(k2, (cout,), jnp.float32) * 0.01,
            r1_w=jax.random.normal(k3, (cout, cout, 3, 3), jnp.float32) * s_out,
            r1_b=jax.random.normal(k4, (cout,), jnp.float32) * 0.01,
            r2_w=jax.random.normal(k5, (cout, cout, 3, 3), jnp.float32) * s_out,
            r2_b=jax.random.normal(k6, (cout,), jnp.float32) * 0.01,
        ))
        conv_dim //= 2
    in_feat = channels[-1] * conv_dim * conv_dim
    key, kw, kb = jax.random.split(key, 3)
    raw["latent_w"] = jax.random.normal(
        kw, (latent_dim, in_feat), jnp.float32) * (1.0 / jnp.sqrt(float(in_feat)))
    raw["latent_b"] = jax.random.normal(kb, (latent_dim,), jnp.float32) * 0.01
    return raw


def _pack_conv3x3(w_oihw, cin, cout):
    wt = jnp.transpose(w_oihw, (2, 3, 1, 0))            # (3,3,cin,cout)
    w = jnp.zeros((9, CP, CP), jnp.float32)
    w = w.at[:, :cin, :cout].set(wt.reshape(9, cin, cout))
    return w.astype(jnp.bfloat16)


def _pack_down_conv(w_oihw, cin, cout):
    # 3x3 stride-2 conv == 2x2 taps over a space-to-depth input (4*CP channels)
    wt = jnp.transpose(w_oihw, (2, 3, 1, 0))            # [dh, dw, cin, cout]
    w = jnp.zeros((4, 4 * CP, CP), jnp.float32)
    for bi in range(2):
        for bj in range(2):
            for i in range(2):
                for j in range(2):
                    dh, dw = 2 * bi + i - 1, 2 * bj + j - 1
                    if 0 <= dh < 3 and 0 <= dw < 3:
                        base = (i * 2 + j) * CP
                        w = w.at[bi * 2 + bj, base:base + cin, :cout].set(wt[dh, dw])
    return w.astype(jnp.bfloat16)


def _pack_bias(b, cout):
    return jnp.zeros((1, CP), jnp.float32).at[0, :cout].set(b)


def _pack_latent(w_lat, b_lat, cf, hf, wf, latent_dim):
    # Bake the NCHW flatten order + channel padding into the Linear weight so
    # the forward pass needs no transpose before the final GEMM.
    LP = _round_up(latent_dim, CP)
    wl = jnp.transpose(w_lat.reshape(latent_dim, cf, hf, wf), (2, 3, 1, 0))
    big = jnp.zeros((hf, wf, CP, LP), jnp.float32)
    big = big.at[:, :, :cf, :latent_dim].set(wl)
    W = big.reshape(hf * wf * CP, LP).astype(jnp.bfloat16)
    b = jnp.zeros((1, LP), jnp.float32).at[0, :latent_dim].set(b_lat)
    return W, b


def pack_params(raw, channels, input_dim, latent_dim):
    assert all(c <= CP for c in channels), "channel tiling not implemented"
    assert input_dim % (2 ** (len(channels) - 1)) == 0
    packed = {"stages": []}
    conv_dim = input_dim
    for i, st in enumerate(raw["stages"]):
        cin, cout = channels[i], channels[i + 1]
        Ho = Wo = conv_dim // 2
        packed["stages"].append(dict(
            mask=_make_mask(Ho, Wo),
            wd=_pack_down_conv(st["down_w"], cin, cout),
            bd=_pack_bias(st["down_b"], cout),
            w1=_pack_conv3x3(st["r1_w"], cout, cout),
            b1=_pack_bias(st["r1_b"], cout),
            w2=_pack_conv3x3(st["r2_w"], cout, cout),
            b2=_pack_bias(st["r2_b"], cout),
        ))
        conv_dim //= 2
    W, b = _pack_latent(raw["latent_w"], raw["latent_b"],
                        channels[-1], conv_dim, conv_dim, latent_dim)
    packed["latent_w"] = W
    packed["latent_b"] = b
    return packed


# ---------------------------------------------------------------------------
# Encoder forward (mirrors the PyTorch module)
# ---------------------------------------------------------------------------
def encoder_forward(packed, x_nchw, *, latent_dim):
    N, C0, _, _ = x_nchw.shape
    # One-time layout glue: NCHW -> NHWC, pad channels to the lane width, bf16.
    x = jnp.transpose(x_nchw, (0, 2, 3, 1))
    x = jnp.pad(x, ((0, 0), (0, 0), (0, 0), (0, CP - C0))).astype(jnp.bfloat16)
    for st in packed["stages"]:
        Hi, Wi = x.shape[1], x.shape[2]
        Ho, Wo = Hi // 2, Wi // 2
        xs = _prep_stage_input(x)
        y = run_stage(xs, st["mask"], st["wd"], st["bd"],
                      st["w1"], st["b1"], st["w2"], st["b2"], Ho=Ho, Wo=Wo)
        # Drop the zero border ring; valid region feeds the next stage / flatten.
        x = y.reshape(N, Ho + 2, Wo + 2, CP)[:, 1:1 + Ho, 1:1 + Wo, :]
    flat = x.reshape(N, -1)          # row-major NHWC(+pad) flatten, no transpose
    out = run_linear(flat, packed["latent_w"], packed["latent_b"])
    return out[:, :latent_dim]


# ---------------------------------------------------------------------------
# Pure-JAX reference (same assumed block structure, bf16 ops / f32 accum)
# ---------------------------------------------------------------------------
def reference_forward(raw, x_nchw):
    def conv(x, w_oihw, b, stride):
        w = jnp.transpose(w_oihw, (2, 3, 1, 0)).astype(jnp.bfloat16)  # HWIO
        y = lax.conv_general_dilated(
            x, w, window_strides=(stride, stride), padding=((1, 1), (1, 1)),
            dimension_numbers=("NHWC", "HWIO", "NHWC"),
            preferred_element_type=jnp.float32)
        return y + b

    x = jnp.transpose(x_nchw, (0, 2, 3, 1)).astype(jnp.bfloat16)
    for st in raw["stages"]:
        x = jnp.maximum(conv(x, st["down_w"], st["down_b"], 2), 0.0).astype(jnp.bfloat16)
        h = jnp.maximum(conv(x, st["r1_w"], st["r1_b"], 1), 0.0).astype(jnp.bfloat16)
        x = jnp.maximum(conv(h, st["r2_w"], st["r2_b"], 1)
                        + x.astype(jnp.float32), 0.0).astype(jnp.bfloat16)
    xn = jnp.transpose(x, (0, 3, 1, 2))
    flat = xn.reshape(x.shape[0], -1)
    return jnp.dot(flat, raw["latent_w"].astype(jnp.bfloat16).T,
                   preferred_element_type=jnp.float32) + raw["latent_b"]


if __name__ == "__main__":
    channels = [4, 8, 16]
    input_dimension = 16
    latent_dimension = 32

    key = jax.random.PRNGKey(0)
    kp, kx = jax.random.split(key)
    raw = init_raw_params(kp, channels, input_dimension, latent_dimension)
    packed = pack_params(raw, channels, input_dimension, latent_dimension)
    x = jax.random.normal(
        kx, (2, channels[0], input_dimension, input_dimension), jnp.float32)

    fwd = jax.jit(functools.partial(encoder_forward, latent_dim=latent_dimension))
    out = jax.block_until_ready(fwd(packed, x))
    assert out.shape == (2, latent_dimension), out.shape
    assert bool(jnp.all(jnp.isfinite(out)))

    ref = jax.block_until_ready(jax.jit(reference_forward)(raw, x))
    max_err = float(jnp.max(jnp.abs(out - ref)))
    assert max_err < 2e-2, f"mismatch vs reference: {max_err}"

    print("KERNEL_OK")
</pallas_src>

<mosaic_0001>
module attributes {stable_mosaic.version = 11 : i64} {
  func.func @_stage_kernel(%arg0: i32, %arg1: memref<1x111x512xbf16, #tpu.memory_space<vmem>>, %arg2: memref<100x1xf32, #tpu.memory_space<vmem>>, %arg3: memref<4x512x128xbf16, #tpu.memory_space<vmem>>, %arg4: memref<1x128xf32, #tpu.memory_space<vmem>>, %arg5: memref<9x128x128xbf16, #tpu.memory_space<vmem>>, %arg6: memref<1x128xf32, #tpu.memory_space<vmem>>, %arg7: memref<9x128x128xbf16, #tpu.memory_space<vmem>>, %arg8: memref<1x128xf32, #tpu.memory_space<vmem>>, %arg9: memref<1x100x128xbf16, #tpu.memory_space<vmem>>, %arg10: memref<122x128xbf16, #tpu.memory_space<vmem>>, %arg11: memref<122x128xbf16, #tpu.memory_space<vmem>>) attributes {dimension_semantics = [#tpu.dimension_semantics<parallel>], iteration_bounds = array<i64: 2>, scalar_prefetch = 0 : i64, scratch_operands = 2 : i64, tpu.core_type = #tpu.core_type<tc>, window_params = [{transform_indices = @transform_0, window_bounds = array<i64: 1, 111, 512>}, {pipeline_mode = #tpu.pipeline_mode<synchronous>, transform_indices = @transform_1, window_bounds = array<i64: 100, 1>}, {pipeline_mode = #tpu.pipeline_mode<synchronous>, transform_indices = @transform_2, window_bounds = array<i64: 4, 512, 128>}, {pipeline_mode = #tpu.pipeline_mode<synchronous>, transform_indices = @transform_3, window_bounds = array<i64: 1, 128>}, {pipeline_mode = #tpu.pipeline_mode<synchronous>, transform_indices = @transform_4, window_bounds = array<i64: 9, 128, 128>}, {pipeline_mode = #tpu.pipeline_mode<synchronous>, transform_indices = @transform_5, window_bounds = array<i64: 1, 128>}, {pipeline_mode = #tpu.pipeline_mode<synchronous>, transform_indices = @transform_6, window_bounds = array<i64: 9, 128, 128>}, {pipeline_mode = #tpu.pipeline_mode<synchronous>, transform_indices = @transform_7, window_bounds = array<i64: 1, 128>}, {transform_indices = @transform_8, window_bounds = array<i64: 1, 100, 128>}]} {
    %c0 = arith.constant 0 : index
    %c0_0 = arith.constant 0 : index
    %0 = vector.load %arg2[%c0, %c0_0] : memref<100x1xf32, #tpu.memory_space<vmem>>, vector<100x1xf32>
    %cst = arith.constant 0.000000e+00 : f32
    %1 = vector.broadcast %cst : f32 to vector<100x128xf32>
    %c0_1 = arith.constant 0 : index
    %c0_2 = arith.constant 0 : index
    %c0_3 = arith.constant 0 : index
    %2 = vector.load %arg1[%c0_1, %c0_2, %c0_3] : memref<1x111x512xbf16, #tpu.memory_space<vmem>>, vector<1x100x512xbf16>
    %3 = vector.shape_cast %2 : vector<1x100x512xbf16> to vector<100x512xbf16>
    %c0_4 = arith.constant 0 : index
    %c0_5 = arith.constant 0 : index
    %c0_6 = arith.constant 0 : index
    %4 = vector.load %arg3[%c0_4, %c0_5, %c0_6] : memref<4x512x128xbf16, #tpu.memory_space<vmem>>, vector<1x512x128xbf16>
    %5 = vector.shape_cast %4 : vector<1x512x128xbf16> to vector<512x128xbf16>
    %cst_7 = arith.constant dense<0.000000e+00> : vector<100x128xf32>
    %6 = tpu.matmul %3, %5, %cst_7 {dimension_numbers = #tpu.dot_dimension_numbers<[1], [0], [0], [1], [0, 0, 1, 1], [], []>} : vector<100x512xbf16>, vector<512x128xbf16>, vector<100x128xf32> -> vector<100x128xf32>
    %7 = arith.addf %1, %6 : vector<100x128xf32>
    %c0_8 = arith.constant 0 : index
    %c1 = arith.constant 1 : index
    %c0_9 = arith.constant 0 : index
    %8 = vector.load %arg1[%c0_8, %c1, %c0_9] : memref<1x111x512xbf16, #tpu.memory_space<vmem>>, vector<1x100x512xbf16>
    %9 = vector.shape_cast %8 : vector<1x100x512xbf16> to vector<100x512xbf16>
    %c1_10 = arith.constant 1 : index
    %c0_11 = arith.constant 0 : index
    %c0_12 = arith.constant 0 : index
    %10 = vector.load %arg3[%c1_10, %c0_11, %c0_12] : memref<4x512x128xbf16, #tpu.memory_space<vmem>>, vector<1x512x128xbf16>
    %11 = vector.shape_cast %10 : vector<1x512x128xbf16> to vector<512x128xbf16>
    %cst_13 = arith.constant dense<0.000000e+00> : vector<100x128xf32>
    %12 = tpu.matmul %9, %11, %cst_13 {dimension_numbers = #tpu.dot_dimension_numbers<[1], [0], [0], [1], [0, 0, 1, 1], [], []>} : vector<100x512xbf16>, vector<512x128xbf16>, vector<100x128xf32> -> vector<100x128xf32>
    %13 = arith.addf %7, %12 : vector<100x128xf32>
    %c0_14 = arith.constant 0 : index
    %c10 = arith.constant 10 : index
    %c0_15 = arith.constant 0 : index
    %14 = vector.load %arg1[%c0_14, %c10, %c0_15] : memref<1x111x512xbf16, #tpu.memory_space<vmem>>, vector<1x100x512xbf16>
    %15 = vector.shape_cast %14 : vector<1x100x512xbf16> to vector<100x512xbf16>
    %c2 = arith.constant 2 : index
    %c0_16 = arith.constant 0 : index
    %c0_17 = arith.constant 0 : index
    %16 = vector.load %arg3[%c2, %c0_16, %c0_17] : memref<4x512x128xbf16, #tpu.memory_space<vmem>>, vector<1x512x128xbf16>
    %17 = vector.shape_cast %16 : vector<1x512x128xbf16> to vector<512x128xbf16>
    %cst_18 = arith.constant dense<0.000000e+00> : vector<100x128xf32>
    %18 = tpu.matmul %15, %17, %cst_18 {dimension_numbers = #tpu.dot_dimension_numbers<[1], [0], [0], [1], [0, 0, 1, 1], [], []>} : vector<100x512xbf16>, vector<512x128xbf16>, vector<100x128xf32> -> vector<100x128xf32>
    %19 = arith.addf %13, %18 : vector<100x128xf32>
    %c0_19 = arith.constant 0 : index
    %c11 = arith.constant 11 : index
    %c0_20 = arith.constant 0 : index
    %20 = vector.load %arg1[%c0_19, %c11, %c0_20] : memref<1x111x512xbf16, #tpu.memory_space<vmem>>, vector<1x100x512xbf16>
    %21 = vector.shape_cast %20 : vector<1x100x512xbf16> to vector<100x512xbf16>
    %c3 = arith.constant 3 : index
    %c0_21 = arith.constant 0 : index
    %c0_22 = arith.constant 0 : index
    %22 = vector.load %arg3[%c3, %c0_21, %c0_22] : memref<4x512x128xbf16, #tpu.memory_space<vmem>>, vector<1x512x128xbf16>
    %23 = vector.shape_cast %22 : vector<1x512x128xbf16> to vector<512x128xbf16>
    %cst_23 = arith.constant dense<0.000000e+00> : vector<100x128xf32>
    %24 = tpu.matmul %21, %23, %cst_23 {dimension_numbers = #tpu.dot_dimension_numbers<[1], [0], [0], [1], [0, 0, 1, 1], [], []>} : vector<100x512xbf16>, vector<512x128xbf16>, vector<100x128xf32> -> vector<100x128xf32>
    %25 = arith.addf %19, %24 : vector<100x128xf32>
    %c0_24 = arith.constant 0 : index
    %c0_25 = arith.constant 0 : index
    %26 = vector.load %arg4[%c0_24, %c0_25] : memref<1x128xf32, #tpu.memory_space<vmem>>, vector<1x128xf32>
    %27 = vector.broadcast %26 : vector<1x128xf32> to vector<100x128xf32>
    %28 = arith.addf %25, %27 : vector<100x128xf32>
    %cst_26 = arith.constant 0.000000e+00 : f32
    %29 = vector.broadcast %cst_26 : f32 to vector<100x128xf32>
    %30 = arith.maximumf %28, %29 : vector<100x128xf32>
    %31 = vector.broadcast %0 : vector<100x1xf32> to vector<100x128xf32>
    %32 = arith.mulf %30, %31 : vector<100x128xf32>
    %33 = arith.truncf %32 : vector<100x128xf32> to vector<100x128xbf16>
    %cst_27 = arith.constant 0.000000e+00 : bf16
    %34 = vector.broadcast %cst_27 : bf16 to vector<122x128xbf16>
    %c0_28 = arith.constant 0 : index
    %c0_29 = arith.constant 0 : index
    %35 = vector.load %arg10[%c0_28, %c0_29] : memref<122x128xbf16, #tpu.memory_space<vmem>>, vector<122x128xbf16>
    tpu.vector_store %arg10[%c0_28, %c0_29], %34 {strides = array<i32>} : memref<122x128xbf16, #tpu.memory_space<vmem>>, vector<122x128xbf16>,
    %c11_30 = arith.constant 11 : index
    %c0_31 = arith.constant 0 : index
    %36 = vector.load %arg10[%c11_30, %c0_31] : memref<122x128xbf16, #tpu.memory_space<vmem>>, vector<100x128xbf16>
    tpu.vector_store %arg10[%c11_30, %c0_31], %33 {strides = array<i32>} : memref<122x128xbf16, #tpu.memory_space<vmem>>, vector<100x128xbf16>,
    %cst_32 = arith.constant 0.000000e+00 : f32
    %37 = vector.broadcast %cst_32 : f32 to vector<100x128xf32>
    %c0_33 = arith.constant 0 : index
    %c0_34 = arith.constant 0 : index
    %38 = vector.load %arg10[%c0_33, %c0_34] : memref<122x128xbf16, #tpu.memory_space<vmem>>, vector<100x128xbf16>
    %c0_35 = arith.constant 0 : index
    %c0_36 = arith.constant 0 : index
    %c0_37 = arith.constant 0 : index
    %39 = vector.load %arg5[%c0_35, %c0_36, %c0_37] : memref<9x128x128xbf16, #tpu.memory_space<vmem>>, vector<1x128x128xbf16>
    %40 = vector.shape_cast %39 : vector<1x128x128xbf16> to vector<128x128xbf16>
    %cst_38 = arith.constant dense<0.000000e+00> : vector<100x128xf32>
    %41 = tpu.matmul %38, %40, %cst_38 {dimension_numbers = #tpu.dot_dimension_numbers<[1], [0], [0], [1], [0, 0, 1, 1], [], []>} : vector<100x128xbf16>, vector<128x128xbf16>, vector<100x128xf32> -> vector<100x128xf32>
    %42 = arith.addf %37, %41 : vector<100x128xf32>
    %c1_39 = arith.constant 1 : index
    %c0_40 = arith.constant 0 : index
    %43 = vector.load %arg10[%c1_39, %c0_40] : memref<122x128xbf16, #tpu.memory_space<vmem>>, vector<100x128xbf16>
    %c1_41 = arith.constant 1 : index
    %c0_42 = arith.constant 0 : index
    %c0_43 = arith.constant 0 : index
    %44 = vector.load %arg5[%c1_41, %c0_42, %c0_43] : memref<9x128x128xbf16, #tpu.memory_space<vmem>>, vector<1x128x128xbf16>
    %45 = vector.shape_cast %44 : vector<1x128x128xbf16> to vector<128x128xbf16>
    %cst_44 = arith.constant dense<0.000000e+00> : vector<100x128xf32>
    %46 = tpu.matmul %43, %45, %cst_44 {dimension_numbers = #tpu.dot_dimension_numbers<[1], [0], [0], [1], [0, 0, 1, 1], [], []>} : vector<100x128xbf16>, vector<128x128xbf16>, vector<100x128xf32> -> vector<100x128xf32>
    %47 = arith.addf %42, %46 : vector<100x128xf32>
    %c2_45 = arith.constant 2 : index
    %c0_46 = arith.constant 0 : index
    %48 = vector.load %arg10[%c2_45, %c0_46] : memref<122x128xbf16, #tpu.memory_space<vmem>>, vector<100x128xbf16>
    %c2_47 = arith.constant 2 : index
    %c0_48 = arith.constant 0 : index
    %c0_49 = arith.constant 0 : index
    %49 = vector.load %arg5[%c2_47, %c0_48, %c0_49] : memref<9x128x128xbf16, #tpu.memory_space<vmem>>, vector<1x128x128xbf16>
    %50 = vector.shape_cast %49 : vector<1x128x128xbf16> to vector<128x128xbf16>
    %cst_50 = arith.constant dense<0.000000e+00> : vector<100x128xf32>
    %51 = tpu.matmul %48, %50, %cst_50 {dimension_numbers = #tpu.dot_dimension_numbers<[1], [0], [0], [1], [0, 0, 1, 1], [], []>} : vector<100x128xbf16>, vector<128x128xbf16>, vector<100x128xf32> -> vector<100x128xf32>
    %52 = arith.addf %47, %51 : vector<100x128xf32>
    %c10_51 = arith.constant 10 : index
    %c0_52 = arith.constant 0 : index
    %53 = vector.load %arg10[%c10_51, %c0_52] : memref<122x128xbf16, #tpu.memory_space<vmem>>, vector<100x128xbf16>
    %c3_53 = arith.constant 3 : index
    %c0_54 = arith.constant 0 : index
    %c0_55 = arith.constant 0 : index
    %54 = vector.load %arg5[%c3_53, %c0_54, %c0_55] : memref<9x128x128xbf16, #tpu.memory_space<vmem>>, vector<1x128x128xbf16>
    %55 = vector.shape_cast %54 : vector<1x128x128xbf16> to vector<128x128xbf16>
    %cst_56 = arith.constant dense<0.000000e+00> : vector<100x128xf32>
    %56 = tpu.matmul %53, %55, %cst_56 {dimension_numbers = #tpu.dot_dimension_numbers<[1], [0], [0], [1], [0, 0, 1, 1], [], []>} : vector<100x128xbf16>, vector<128x128xbf16>, vector<100x128xf32> -> vector<100x128xf32>
    %57 = arith.addf %52, %56 : vector<100x128xf32>
    %c11_57 = arith.constant 11 : index
    %c0_58 = arith.constant 0 : index
    %58 = vector.load %arg10[%c11_57, %c0_58] : memref<122x128xbf16, #tpu.memory_space<vmem>>, vector<100x128xbf16>
    %c4 = arith.constant 4 : index
    %c0_59 = arith.constant 0 : index
    %c0_60 = arith.constant 0 : index
    %59 = vector.load %arg5[%c4, %c0_59, %c0_60] : memref<9x128x128xbf16, #tpu.memory_space<vmem>>, vector<1x128x128xbf16>
    %60 = vector.shape_cast %59 : vector<1x128x128xbf16> to vector<128x128xbf16>
    %cst_61 = arith.constant dense<0.000000e+00> : vector<100x128xf32>
    %61 = tpu.matmul %58, %60, %cst_61 {dimension_numbers = #tpu.dot_dimension_numbers<[1], [0], [0], [1], [0, 0, 1, 1], [], []>} : vector<100x128xbf16>, vector<128x128xbf16>, vector<100x128xf32> -> vector<100x128xf32>
    %62 = arith.addf %57, %61 : vector<100x128xf32>
    %c12 = arith.constant 12 : index
    %c0_62 = arith.constant 0 : index
    %63 = vector.load %arg10[%c12, %c0_62] : memref<122x128xbf16, #tpu.memory_space<vmem>>, vector<100x128xbf16>
    %c5 = arith.constant 5 : index
    %c0_63 = arith.constant 0 : index
    %c0_64 = arith.constant 0 : index
    %64 = vector.load %arg5[%c5, %c0_63, %c0_64] : memref<9x128x128xbf16, #tpu.memory_space<vmem>>, vector<1x128x128xbf16>
    %65 = vector.shape_cast %64 : vector<1x128x128xbf16> to vector<128x128xbf16>
    %cst_65 = arith.constant dense<0.000000e+00> : vector<100x128xf32>
    %66 = tpu.matmul %63, %65, %cst_65 {dimension_numbers = #tpu.dot_dimension_numbers<[1], [0], [0], [1], [0, 0, 1, 1], [], []>} : vector<100x128xbf16>, vector<128x128xbf16>, vector<100x128xf32> -> vector<100x128xf32>
    %67 = arith.addf %62, %66 : vector<100x128xf32>
    %c20 = arith.constant 20 : index
    %c0_66 = arith.constant 0 : index
    %68 = vector.load %arg10[%c20, %c0_66] : memref<122x128xbf16, #tpu.memory_space<vmem>>, vector<100x128xbf16>
    %c6 = arith.constant 6 : index
    %c0_67 = arith.constant 0 : index
    %c0_68 = arith.constant 0 : index
    %69 = vector.load %arg5[%c6, %c0_67, %c0_68] : memref<9x128x128xbf16, #tpu.memory_space<vmem>>, vector<1x128x128xbf16>
    %70 = vector.shape_cast %69 : vector<1x128x128xbf16> to vector<128x128xbf16>
    %cst_69 = arith.constant dense<0.000000e+00> : vector<100x128xf32>
    %71 = tpu.matmul %68, %70, %cst_69 {dimension_numbers = #tpu.dot_dimension_numbers<[1], [0], [0], [1], [0, 0, 1, 1], [], []>} : vector<100x128xbf16>, vector<128x128xbf16>, vector<100x128xf32> -> vector<100x128xf32>
    %72 = arith.addf %67, %71 : vector<100x128xf32>
    %c21 = arith.constant 21 : index
    %c0_70 = arith.constant 0 : index
    %73 = vector.load %arg10[%c21, %c0_70] : memref<122x128xbf16, #tpu.memory_space<vmem>>, vector<100x128xbf16>
    %c7 = arith.constant 7 : index
    %c0_71 = arith.constant 0 : index
    %c0_72 = arith.constant 0 : index
    %74 = vector.load %arg5[%c7, %c0_71, %c0_72] : memref<9x128x128xbf16, #tpu.memory_space<vmem>>, vector<1x128x128xbf16>
    %75 = vector.shape_cast %74 : vector<1x128x128xbf16> to vector<128x128xbf16>
    %cst_73 = arith.constant dense<0.000000e+00> : vector<100x128xf32>
    %76 = tpu.matmul %73, %75, %cst_73 {dimension_numbers = #tpu.dot_dimension_numbers<[1], [0], [0], [1], [0, 0, 1, 1], [], []>} : vector<100x128xbf16>, vector<128x128xbf16>, vector<100x128xf32> -> vector<100x128xf32>
    %77 = arith.addf %72, %76 : vector<100x128xf32>
    %c22 = arith.constant 22 : index
    %c0_74 = arith.constant 0 : index
    %78 = vector.load %arg10[%c22, %c0_74] : memref<122x128xbf16, #tpu.memory_space<vmem>>, vector<100x128xbf16>
    %c8 = arith.constant 8 : index
    %c0_75 = arith.constant 0 : index
    %c0_76 = arith.constant 0 : index
    %79 = vector.load %arg5[%c8, %c0_75, %c0_76] : memref<9x128x128xbf16, #tpu.memory_space<vmem>>, vector<1x128x128xbf16>
    %80 = vector.shape_cast %79 : vector<1x128x128xbf16> to vector<128x128xbf16>
    %cst_77 = arith.constant dense<0.000000e+00> : vector<100x128xf32>
    %81 = tpu.matmul %78, %80, %cst_77 {dimension_numbers = #tpu.dot_dimension_numbers<[1], [0], [0], [1], [0, 0, 1, 1], [], []>} : vector<100x128xbf16>, vector<128x128xbf16>, vector<100x128xf32> -> vector<100x128xf32>
    %82 = arith.addf %77, %81 : vector<100x128xf32>
    %c0_78 = arith.constant 0 : index
    %c0_79 = arith.constant 0 : index
    %83 = vector.load %arg6[%c0_78, %c0_79] : memref<1x128xf32, #tpu.memory_space<vmem>>, vector<1x128xf32>
    %84 = vector.broadcast %83 : vector<1x128xf32> to vector<100x128xf32>
    %85 = arith.addf %82, %84 : vector<100x128xf32>
    %cst_80 = arith.constant 0.000000e+00 : f32
    %86 = vector.broadcast %cst_80 : f32 to vector<100x128xf32>
    %87 = arith.maximumf %85, %86 : vector<100x128xf32>
    %88 = vector.broadcast %0 : vector<100x1xf32> to vector<100x128xf32>
    %89 = arith.mulf %87, %88 : vector<100x128xf32>
    %90 = arith.truncf %89 : vector<100x128xf32> to vector<100x128xbf16>
    %cst_81 = arith.constant 0.000000e+00 : bf16
    %91 = vector.broadcast %cst_81 : bf16 to vector<122x128xbf16>
    %c0_82 = arith.constant 0 : index
    %c0_83 = arith.constant 0 : index
    %92 = vector.load %arg11[%c0_82, %c0_83] : memref<122x128xbf16, #tpu.memory_space<vmem>>, vector<122x128xbf16>
    tpu.vector_store %arg11[%c0_82, %c0_83], %91 {strides = array<i32>} : memref<122x128xbf16, #tpu.memory_space<vmem>>, vector<122x128xbf16>,
    %c11_84 = arith.constant 11 : index
    %c0_85 = arith.constant 0 : index
    %93 = vector.load %arg11[%c11_84, %c0_85] : memref<122x128xbf16, #tpu.memory_space<vmem>>, vector<100x128xbf16>
    tpu.vector_store %arg11[%c11_84, %c0_85], %90 {strides = array<i32>} : memref<122x128xbf16, #tpu.memory_space<vmem>>, vector<100x128xbf16>,
    %cst_86 = arith.constant 0.000000e+00 : f32
    %94 = vector.broadcast %cst_86 : f32 to vector<100x128xf32>
    %c0_87 = arith.constant 0 : index
    %c0_88 = arith.constant 0 : index
    %95 = vector.load %arg11[%c0_87, %c0_88] : memref<122x128xbf16, #tpu.memory_space<vmem>>, vector<100x128xbf16>
    %c0_89 = arith.constant 0 : index
    %c0_90 = arith.constant 0 : index
    %c0_91 = arith.constant 0 : index
    %96 = vector.load %arg7[%c0_89, %c0_90, %c0_91] : memref<9x128x128xbf16, #tpu.memory_space<vmem>>, vector<1x128x128xbf16>
    %97 = vector.shape_cast %96 : vector<1x128x128xbf16> to vector<128x128xbf16>
    %cst_92 = arith.constant dense<0.000000e+00> : vector<100x128xf32>
    %98 = tpu.matmul %95, %97, %cst_92 {dimension_numbers = #tpu.dot_dimension_numbers<[1], [0], [0], [1], [0, 0, 1, 1], [], []>} : vector<100x128xbf16>, vector<128x128xbf16>, vector<100x128xf32> -> vector<100x128xf32>
    %99 = arith.addf %94, %98 : vector<100x128xf32>
    %c1_93 = arith.constant 1 : index
    %c0_94 = arith.constant 0 : index
    %100 = vector.load %arg11[%c1_93, %c0_94] : memref<122x128xbf16, #tpu.memory_space<vmem>>, vector<100x128xbf16>
    %c1_95 = arith.constant 1 : index
    %c0_96 = arith.constant 0 : index
    %c0_97 = arith.constant 0 : index
    %101 = vector.load %arg7[%c1_95, %c0_96, %c0_97] : memref<9x128x128xbf16, #tpu.memory_space<vmem>>, vector<1x128x128xbf16>
    %102 = vector.shape_cast %101 : vector<1x128x128xbf16> to vector<128x128xbf16>
    %cst_98 = arith.constant dense<0.000000e+00> : vector<100x128xf32>
    %103 = tpu.matmul %100, %102, %cst_98 {dimension_numbers = #tpu.dot_dimension_numbers<[1], [0], [0], [1], [0, 0, 1, 1], [], []>} : vector<100x128xbf16>, vector<128x128xbf16>, vector<100x128xf32> -> vector<100x128xf32>
    %104 = arith.addf %99, %103 : vector<100x128xf32>
    %c2_99 = arith.constant 2 : index
    %c0_100 = arith.constant 0 : index
    %105 = vector.load %arg11[%c2_99, %c0_100] : memref<122x128xbf16, #tpu.memory_space<vmem>>, vector<100x128xbf16>
    %c2_101 = arith.constant 2 : index
    %c0_102 = arith.constant 0 : index
    %c0_103 = arith.constant 0 : index
    %106 = vector.load %arg7[%c2_101, %c0_102, %c0_103] : memref<9x128x128xbf16, #tpu.memory_space<vmem>>, vector<1x128x128xbf16>
    %107 = vector.shape_cast %106 : vector<1x128x128xbf16> to vector<128x128xbf16>
    %cst_104 = arith.constant dense<0.000000e+00> : vector<100x128xf32>
    %108 = tpu.matmul %105, %107, %cst_104 {dimension_numbers = #tpu.dot_dimension_numbers<[1], [0], [0], [1], [0, 0, 1, 1], [], []>} : vector<100x128xbf16>, vector<128x128xbf16>, vector<100x128xf32> -> vector<100x128xf32>
    %109 = arith.addf %104, %108 : vector<100x128xf32>
    %c10_105 = arith.constant 10 : index
    %c0_106 = arith.constant 0 : index
    %110 = vector.load %arg11[%c10_105, %c0_106] : memref<122x128xbf16, #tpu.memory_space<vmem>>, vector<100x128xbf16>
    %c3_107 = arith.constant 3 : index
    %c0_108 = arith.constant 0 : index
    %c0_109 = arith.constant 0 : index
    %111 = vector.load %arg7[%c3_107, %c0_108, %c0_109] : memref<9x128x128xbf16, #tpu.memory_space<vmem>>, vector<1x128x128xbf16>
    %112 = vector.shape_cast %111 : vector<1x128x128xbf16> to vector<128x128xbf16>
    %cst_110 = arith.constant dense<0.000000e+00> : vector<100x128xf32>
    %113 = tpu.matmul %110, %112, %cst_110 {dimension_numbers = #tpu.dot_dimension_numbers<[1], [0], [0], [1], [0, 0, 1, 1], [], []>} : vector<100x128xbf16>, vector<128x128xbf16>, vector<100x128xf32> -> vector<100x128xf32>
    %114 = arith.addf %109, %113 : vector<100x128xf32>
    %c11_111 = arith.constant 11 : index
    %c0_112 = arith.constant 0 : index
    %115 = vector.load %arg11[%c11_111, %c0_112] : memref<122x128xbf16, #tpu.memory_space<vmem>>, vector<100x128xbf16>
    %c4_113 = arith.constant 4 : index
    %c0_114 = arith.constant 0 : index
    %c0_115 = arith.constant 0 : index
    %116 = vector.load %arg7[%c4_113, %c0_114, %c0_115] : memref<9x128x128xbf16, #tpu.memory_space<vmem>>, vector<1x128x128xbf16>
    %117 = vector.shape_cast %116 : vector<1x128x128xbf16> to vector<128x128xbf16>
    %cst_116 = arith.constant dense<0.000000e+00> : vector<100x128xf32>
    %118 = tpu.matmul %115, %117, %cst_116 {dimension_numbers = #tpu.dot_dimension_numbers<[1], [0], [0], [1], [0, 0, 1, 1], [], []>} : vector<100x128xbf16>, vector<128x128xbf16>, vector<100x128xf32> -> vector<100x128xf32>
    %119 = arith.addf %114, %118 : vector<100x128xf32>
    %c12_117 = arith.constant 12 : index
    %c0_118 = arith.constant 0 : index
    %120 = vector.load %arg11[%c12_117, %c0_118] : memref<122x128xbf16, #tpu.memory_space<vmem>>, vector<100x128xbf16>
    %c5_119 = arith.constant 5 : index
    %c0_120 = arith.constant 0 : index
    %c0_121 = arith.constant 0 : index
    %121 = vector.load %arg7[%c5_119, %c0_120, %c0_121] : memref<9x128x128xbf16, #tpu.memory_space<vmem>>, vector<1x128x128xbf16>
    %122 = vector.shape_cast %121 : vector<1x128x128xbf16> to vector<128x128xbf16>
    %cst_122 = arith.constant dense<0.000000e+00> : vector<100x128xf32>
    %123 = tpu.matmul %120, %122, %cst_122 {dimension_numbers = #tpu.dot_dimension_numbers<[1], [0], [0], [1], [0, 0, 1, 1], [], []>} : vector<100x128xbf16>, vector<128x128xbf16>, vector<100x128xf32> -> vector<100x128xf32>
    %124 = arith.addf %119, %123 : vector<100x128xf32>
    %c20_123 = arith.constant 20 : index
    %c0_124 = arith.constant 0 : index
    %125 = vector.load %arg11[%c20_123, %c0_124] : memref<122x128xbf16, #tpu.memory_space<vmem>>, vector<100x128xbf16>
    %c6_125 = arith.constant 6 : index
    %c0_126 = arith.constant 0 : index
    %c0_127 = arith.constant 0 : index
    %126 = vector.load %arg7[%c6_125, %c0_126, %c0_127] : memref<9x128x128xbf16, #tpu.memory_space<vmem>>, vector<1x128x128xbf16>
    %127 = vector.shape_cast %126 : vector<1x128x128xbf16> to vector<128x128xbf16>
    %cst_128 = arith.constant dense<0.000000e+00> : vector<100x128xf32>
    %128 = tpu.matmul %125, %127, %cst_128 {dimension_numbers = #tpu.dot_dimension_numbers<[1], [0], [0], [1], [0, 0, 1, 1], [], []>} : vector<100x128xbf16>, vector<128x128xbf16>, vector<100x128xf32> -> vector<100x128xf32>
    %129 = arith.addf %124, %128 : vector<100x128xf32>
    %c21_129 = arith.constant 21 : index
    %c0_130 = arith.constant 0 : index
    %130 = vector.load %arg11[%c21_129, %c0_130] : memref<122x128xbf16, #tpu.memory_space<vmem>>, vector<100x128xbf16>
    %c7_131 = arith.constant 7 : index
    %c0_132 = arith.constant 0 : index
    %c0_133 = arith.constant 0 : index
    %131 = vector.load %arg7[%c7_131, %c0_132, %c0_133] : memref<9x128x128xbf16, #tpu.memory_space<vmem>>, vector<1x128x128xbf16>
    %132 = vector.shape_cast %131 : vector<1x128x128xbf16> to vector<128x128xbf16>
    %cst_134 = arith.constant dense<0.000000e+00> : vector<100x128xf32>
    %133 = tpu.matmul %130, %132, %cst_134 {dimension_numbers = #tpu.dot_dimension_numbers<[1], [0], [0], [1], [0, 0, 1, 1], [], []>} : vector<100x128xbf16>, vector<128x128xbf16>, vector<100x128xf32> -> vector<100x128xf32>
    %134 = arith.addf %129, %133 : vector<100x128xf32>
    %c22_135 = arith.constant 22 : index
    %c0_136 = arith.constant 0 : index
    %135 = vector.load %arg11[%c22_135, %c0_136] : memref<122x128xbf16, #tpu.memory_space<vmem>>, vector<100x128xbf16>
    %c8_137 = arith.constant 8 : index
    %c0_138 = arith.constant 0 : index
    %c0_139 = arith.constant 0 : index
    %136 = vector.load %arg7[%c8_137, %c0_138, %c0_139] : memref<9x128x128xbf16, #tpu.memory_space<vmem>>, vector<1x128x128xbf16>
    %137 = vector.shape_cast %136 : vector<1x128x128xbf16> to vector<128x128xbf16>
    %cst_140 = arith.constant dense<0.000000e+00> : vector<100x128xf32>
    %138 = tpu.matmul %135, %137, %cst_140 {dimension_numbers = #tpu.dot_dimension_numbers<[1], [0], [0], [1], [0, 0, 1, 1], [], []>} : vector<100x128xbf16>, vector<128x128xbf16>, vector<100x128xf32> -> vector<100x128xf32>
    %139 = arith.addf %134, %138 : vector<100x128xf32>
    %c0_141 = arith.constant 0 : index
    %c0_142 = arith.constant 0 : index
    %140 = vector.load %arg8[%c0_141, %c0_142] : memref<1x128xf32, #tpu.memory_space<vmem>>, vector<1x128xf32>
    %141 = vector.broadcast %140 : vector<1x128xf32> to vector<100x128xf32>
    %142 = arith.addf %139, %141 : vector<100x128xf32>
    %143 = arith.extf %33 : vector<100x128xbf16> to vector<100x128xf32>
    %144 = arith.addf %142, %143 : vector<100x128xf32>
    %cst_143 = arith.constant 0.000000e+00 : f32
    %145 = vector.broadcast %cst_143 : f32 to vector<100x128xf32>
    %146 = arith.maximumf %144, %145 : vector<100x128xf32>
    %147 = vector.broadcast %0 : vector<100x1xf32> to vector<100x128xf32>
    %148 = arith.mulf %146, %147 : vector<100x128xf32>
    %149 = arith.truncf %148 : vector<100x128xf32> to vector<100x128xbf16>
    %c0_144 = arith.constant 0 : index
    %c0_145 = arith.constant 0 : index
    %c0_146 = arith.constant 0 : index
    %150 = vector.load %arg9[%c0_144, %c0_145, %c0_146] : memref<1x100x128xbf16, #tpu.memory_space<vmem>>, vector<1x100x128xbf16>
    %151 = vector.shape_cast %150 : vector<1x100x128xbf16> to vector<100x128xbf16>
    %152 = vector.shape_cast %149 : vector<100x128xbf16> to vector<1x100x128xbf16>
    tpu.vector_store %arg9[%c0_144, %c0_145, %c0_146], %152 {strides = array<i32>} : memref<1x100x128xbf16, #tpu.memory_space<vmem>>, vector<1x100x128xbf16>,
    return
  }
  func.func @transform_0(%arg0: i32) -> (i32, i32, i32) {
    %c0_i32 = arith.constant 0 : i32
    %c0_i32_0 = arith.constant 0 : i32
    %c0_i32_1 = arith.constant 0 : i32
    return %arg0, %c0_i32, %c0_i32_0 : i32, i32, i32
  }
  func.func @transform_1(%arg0: i32) -> (i32, i32) {
    %c0_i32 = arith.constant 0 : i32
    %c0_i32_0 = arith.constant 0 : i32
    %c0_i32_1 = arith.constant 0 : i32
    return %c0_i32, %c0_i32_0 : i32, i32
  }
  func.func @transform_2(%arg0: i32) -> (i32, i32, i32) {
    %c0_i32 = arith.constant 0 : i32
    %c0_i32_0 = arith.constant 0 : i32
    %c0_i32_1 = arith.constant 0 : i32
    %c0_i32_2 = arith.constant 0 : i32
    return %c0_i32, %c0_i32_0, %c0_i32_1 : i32, i32, i32
  }
  func.func @transform_3(%arg0: i32) -> (i32, i32) {
    %c0_i32 = arith.constant 0 : i32
    %c0_i32_0 = arith.constant 0 : i32
    %c0_i32_1 = arith.constant 0 : i32
    return %c0_i32, %c0_i32_0 : i32, i32
  }
  func.func @transform_4(%arg0: i32) -> (i32, i32, i32) {
    %c0_i32 = arith.constant 0 : i32
    %c0_i32_0 = arith.constant 0 : i32
    %c0_i32_1 = arith.constant 0 : i32
    %c0_i32_2 = arith.constant 0 : i32
    return %c0_i32, %c0_i32_0, %c0_i32_1 : i32, i32, i32
  }
  func.func @transform_5(%arg0: i32) -> (i32, i32) {
    %c0_i32 = arith.constant 0 : i32
    %c0_i32_0 = arith.constant 0 : i32
    %c0_i32_1 = arith.constant 0 : i32
    return %c0_i32, %c0_i32_0 : i32, i32
  }
  func.func @transform_6(%arg0: i32) -> (i32, i32, i32) {
    %c0_i32 = arith.constant 0 : i32
    %c0_i32_0 = arith.constant 0 : i32
    %c0_i32_1 = arith.constant 0 : i32
    %c0_i32_2 = arith.constant 0 : i32
    return %c0_i32, %c0_i32_0, %c0_i32_1 : i32, i32, i32
  }
  func.func @transform_7(%arg0: i32) -> (i32, i32) {
    %c0_i32 = arith.constant 0 : i32
    %c0_i32_0 = arith.constant 0 : i32
    %c0_i32_1 = arith.constant 0 : i32
    return %c0_i32, %c0_i32_0 : i32, i32
  }
  func.func @transform_8(%arg0: i32) -> (i32, i32, i32) {
    %c0_i32 = arith.constant 0 : i32
    %c0_i32_0 = arith.constant 0 : i32
    %c0_i32_1 = arith.constant 0 : i32
    return %arg0, %c0_i32, %c0_i32_0 : i32, i32, i32
  }
}

module attributes {stable_mosaic.version = 11 : i64} {
  func.func @_stage_kernel(%arg0: i32, %arg1: memref<1x43x512xbf16, #tpu.memory_space<vmem>>, %arg2: memref<36x1xf32, #tpu.memory_space<vmem>>, %arg3: memref<4x512x128xbf16, #tpu.memory_space<vmem>>, %arg4: memref<1x128xf32, #tpu.memory_space<vmem>>, %arg5: memref<9x128x128xbf16, #tpu.memory_space<vmem>>, %arg6: memref<1x128xf32, #tpu.memory_space<vmem>>, %arg7: memref<9x128x128xbf16, #tpu.memory_space<vmem>>, %arg8: memref<1x128xf32, #tpu.memory_space<vmem>>, %arg9: memref<1x36x128xbf16, #tpu.memory_space<vmem>>, %arg10: memref<50x128xbf16, #tpu.memory_space<vmem>>, %arg11: memref<50x128xbf16, #tpu.memory_space<vmem>>) attributes {dimension_semantics = [#tpu.dimension_semantics<parallel>], iteration_bounds = array<i64: 2>, scalar_prefetch = 0 : i64, scratch_operands = 2 : i64, tpu.core_type = #tpu.core_type<tc>, window_params = [{transform_indices = @transform_0, window_bounds = array<i64: 1, 43, 512>}, {pipeline_mode = #tpu.pipeline_mode<synchronous>, transform_indices = @transform_1, window_bounds = array<i64: 36, 1>}, {pipeline_mode = #tpu.pipeline_mode<synchronous>, transform_indices = @transform_2, window_bounds = array<i64: 4, 512, 128>}, {pipeline_mode = #tpu.pipeline_mode<synchronous>, transform_indices = @transform_3, window_bounds = array<i64: 1, 128>}, {pipeline_mode = #tpu.pipeline_mode<synchronous>, transform_indices = @transform_4, window_bounds = array<i64: 9, 128, 128>}, {pipeline_mode = #tpu.pipeline_mode<synchronous>, transform_indices = @transform_5, window_bounds = array<i64: 1, 128>}, {pipeline_mode = #tpu.pipeline_mode<synchronous>, transform_indices = @transform_6, window_bounds = array<i64: 9, 128, 128>}, {pipeline_mode = #tpu.pipeline_mode<synchronous>, transform_indices = @transform_7, window_bounds = array<i64: 1, 128>}, {transform_indices = @transform_8, window_bounds = array<i64: 1, 36, 128>}]} {
    %c0 = arith.constant 0 : index
    %c0_0 = arith.constant 0 : index
    %0 = vector.load %arg2[%c0, %c0_0] : memref<36x1xf32, #tpu.memory_space<vmem>>, vector<36x1xf32>
    %cst = arith.constant 0.000000e+00 : f32
    %1 = vector.broadcast %cst : f32 to vector<36x128xf32>
    %c0_1 = arith.constant 0 : index
    %c0_2 = arith.constant 0 : index
    %c0_3 = arith.constant 0 : index
    %2 = vector.load %arg1[%c0_1, %c0_2, %c0_3] : memref<1x43x512xbf16, #tpu.memory_space<vmem>>, vector<1x36x512xbf16>
    %3 = vector.shape_cast %2 : vector<1x36x512xbf16> to vector<36x512xbf16>
    %c0_4 = arith.constant 0 : index
    %c0_5 = arith.constant 0 : index
    %c0_6 = arith.constant 0 : index
    %4 = vector.load %arg3[%c0_4, %c0_5, %c0_6] : memref<4x512x128xbf16, #tpu.memory_space<vmem>>, vector<1x512x128xbf16>
    %5 = vector.shape_cast %4 : vector<1x512x128xbf16> to vector<512x128xbf16>
    %cst_7 = arith.constant dense<0.000000e+00> : vector<36x128xf32>
    %6 = tpu.matmul %3, %5, %cst_7 {dimension_numbers = #tpu.dot_dimension_numbers<[1], [0], [0], [1], [0, 0, 1, 1], [], []>} : vector<36x512xbf16>, vector<512x128xbf16>, vector<36x128xf32> -> vector<36x128xf32>
    %7 = arith.addf %1, %6 : vector<36x128xf32>
    %c0_8 = arith.constant 0 : index
    %c1 = arith.constant 1 : index
    %c0_9 = arith.constant 0 : index
    %8 = vector.load %arg1[%c0_8, %c1, %c0_9] : memref<1x43x512xbf16, #tpu.memory_space<vmem>>, vector<1x36x512xbf16>
    %9 = vector.shape_cast %8 : vector<1x36x512xbf16> to vector<36x512xbf16>
    %c1_10 = arith.constant 1 : index
    %c0_11 = arith.constant 0 : index
    %c0_12 = arith.constant 0 : index
    %10 = vector.load %arg3[%c1_10, %c0_11, %c0_12] : memref<4x512x128xbf16, #tpu.memory_space<vmem>>, vector<1x512x128xbf16>
    %11 = vector.shape_cast %10 : vector<1x512x128xbf16> to vector<512x128xbf16>
    %cst_13 = arith.constant dense<0.000000e+00> : vector<36x128xf32>
    %12 = tpu.matmul %9, %11, %cst_13 {dimension_numbers = #tpu.dot_dimension_numbers<[1], [0], [0], [1], [0, 0, 1, 1], [], []>} : vector<36x512xbf16>, vector<512x128xbf16>, vector<36x128xf32> -> vector<36x128xf32>
    %13 = arith.addf %7, %12 : vector<36x128xf32>
    %c0_14 = arith.constant 0 : index
    %c6 = arith.constant 6 : index
    %c0_15 = arith.constant 0 : index
    %14 = vector.load %arg1[%c0_14, %c6, %c0_15] : memref<1x43x512xbf16, #tpu.memory_space<vmem>>, vector<1x36x512xbf16>
    %15 = vector.shape_cast %14 : vector<1x36x512xbf16> to vector<36x512xbf16>
    %c2 = arith.constant 2 : index
    %c0_16 = arith.constant 0 : index
    %c0_17 = arith.constant 0 : index
    %16 = vector.load %arg3[%c2, %c0_16, %c0_17] : memref<4x512x128xbf16, #tpu.memory_space<vmem>>, vector<1x512x128xbf16>
    %17 = vector.shape_cast %16 : vector<1x512x128xbf16> to vector<512x128xbf16>
    %cst_18 = arith.constant dense<0.000000e+00> : vector<36x128xf32>
    %18 = tpu.matmul %15, %17, %cst_18 {dimension_numbers = #tpu.dot_dimension_numbers<[1], [0], [0], [1], [0, 0, 1, 1], [], []>} : vector<36x512xbf16>, vector<512x128xbf16>, vector<36x128xf32> -> vector<36x128xf32>
    %19 = arith.addf %13, %18 : vector<36x128xf32>
    %c0_19 = arith.constant 0 : index
    %c7 = arith.constant 7 : index
    %c0_20 = arith.constant 0 : index
    %20 = vector.load %arg1[%c0_19, %c7, %c0_20] : memref<1x43x512xbf16, #tpu.memory_space<vmem>>, vector<1x36x512xbf16>
    %21 = vector.shape_cast %20 : vector<1x36x512xbf16> to vector<36x512xbf16>
    %c3 = arith.constant 3 : index
    %c0_21 = arith.constant 0 : index
    %c0_22 = arith.constant 0 : index
    %22 = vector.load %arg3[%c3, %c0_21, %c0_22] : memref<4x512x128xbf16, #tpu.memory_space<vmem>>, vector<1x512x128xbf16>
    %23 = vector.shape_cast %22 : vector<1x512x128xbf16> to vector<512x128xbf16>
    %cst_23 = arith.constant dense<0.000000e+00> : vector<36x128xf32>
    %24 = tpu.matmul %21, %23, %cst_23 {dimension_numbers = #tpu.dot_dimension_numbers<[1], [0], [0], [1], [0, 0, 1, 1], [], []>} : vector<36x512xbf16>, vector<512x128xbf16>, vector<36x128xf32> -> vector<36x128xf32>
    %25 = arith.addf %19, %24 : vector<36x128xf32>
    %c0_24 = arith.constant 0 : index
    %c0_25 = arith.constant 0 : index
    %26 = vector.load %arg4[%c0_24, %c0_25] : memref<1x128xf32, #tpu.memory_space<vmem>>, vector<1x128xf32>
    %27 = vector.broadcast %26 : vector<1x128xf32> to vector<36x128xf32>
    %28 = arith.addf %25, %27 : vector<36x128xf32>
    %cst_26 = arith.constant 0.000000e+00 : f32
    %29 = vector.broadcast %cst_26 : f32 to vector<36x128xf32>
    %30 = arith.maximumf %28, %29 : vector<36x128xf32>
    %31 = vector.broadcast %0 : vector<36x1xf32> to vector<36x128xf32>
    %32 = arith.mulf %30, %31 : vector<36x128xf32>
    %33 = arith.truncf %32 : vector<36x128xf32> to vector<36x128xbf16>
    %cst_27 = arith.constant 0.000000e+00 : bf16
    %34 = vector.broadcast %cst_27 : bf16 to vector<50x128xbf16>
    %c0_28 = arith.constant 0 : index
    %c0_29 = arith.constant 0 : index
    %35 = vector.load %arg10[%c0_28, %c0_29] : memref<50x128xbf16, #tpu.memory_space<vmem>>, vector<50x128xbf16>
    tpu.vector_store %arg10[%c0_28, %c0_29], %34 {strides = array<i32>} : memref<50x128xbf16, #tpu.memory_space<vmem>>, vector<50x128xbf16>,
    %c7_30 = arith.constant 7 : index
    %c0_31 = arith.constant 0 : index
    %36 = vector.load %arg10[%c7_30, %c0_31] : memref<50x128xbf16, #tpu.memory_space<vmem>>, vector<36x128xbf16>
    tpu.vector_store %arg10[%c7_30, %c0_31], %33 {strides = array<i32>} : memref<50x128xbf16, #tpu.memory_space<vmem>>, vector<36x128xbf16>,
    %cst_32 = arith.constant 0.000000e+00 : f32
    %37 = vector.broadcast %cst_32 : f32 to vector<36x128xf32>
    %c0_33 = arith.constant 0 : index
    %c0_34 = arith.constant 0 : index
    %38 = vector.load %arg10[%c0_33, %c0_34] : memref<50x128xbf16, #tpu.memory_space<vmem>>, vector<36x128xbf16>
    %c0_35 = arith.constant 0 : index
    %c0_36 = arith.constant 0 : index
    %c0_37 = arith.constant 0 : index
    %39 = vector.load %arg5[%c0_35, %c0_36, %c0_37] : memref<9x128x128xbf16, #tpu.memory_space<vmem>>, vector<1x128x128xbf16>
    %40 = vector.shape_cast %39 : vector<1x128x128xbf16> to vector<128x128xbf16>
    %cst_38 = arith.constant dense<0.000000e+00> : vector<36x128xf32>
    %41 = tpu.matmul %38, %40, %cst_38 {dimension_numbers = #tpu.dot_dimension_numbers<[1], [0], [0], [1], [0, 0, 1, 1], [], []>} : vector<36x128xbf16>, vector<128x128xbf16>, vector<36x128xf32> -> vector<36x128xf32>
    %42 = arith.addf %37, %41 : vector<36x128xf32>
    %c1_39 = arith.constant 1 : index
    %c0_40 = arith.constant 0 : index
    %43 = vector.load %arg10[%c1_39, %c0_40] : memref<50x128xbf16, #tpu.memory_space<vmem>>, vector<36x128xbf16>
    %c1_41 = arith.constant 1 : index
    %c0_42 = arith.constant 0 : index
    %c0_43 = arith.constant 0 : index
    %44 = vector.load %arg5[%c1_41, %c0_42, %c0_43] : memref<9x128x128xbf16, #tpu.memory_space<vmem>>, vector<1x128x128xbf16>
    %45 = vector.shape_cast %44 : vector<1x128x128xbf16> to vector<128x128xbf16>
    %cst_44 = arith.constant dense<0.000000e+00> : vector<36x128xf32>
    %46 = tpu.matmul %43, %45, %cst_44 {dimension_numbers = #tpu.dot_dimension_numbers<[1], [0], [0], [1], [0, 0, 1, 1], [], []>} : vector<36x128xbf16>, vector<128x128xbf16>, vector<36x128xf32> -> vector<36x128xf32>
    %47 = arith.addf %42, %46 : vector<36x128xf32>
    %c2_45 = arith.constant 2 : index
    %c0_46 = arith.constant 0 : index
    %48 = vector.load %arg10[%c2_45, %c0_46] : memref<50x128xbf16, #tpu.memory_space<vmem>>, vector<36x128xbf16>
    %c2_47 = arith.constant 2 : index
    %c0_48 = arith.constant 0 : index
    %c0_49 = arith.constant 0 : index
    %49 = vector.load %arg5[%c2_47, %c0_48, %c0_49] : memref<9x128x128xbf16, #tpu.memory_space<vmem>>, vector<1x128x128xbf16>
    %50 = vector.shape_cast %49 : vector<1x128x128xbf16> to vector<128x128xbf16>
    %cst_50 = arith.constant dense<0.000000e+00> : vector<36x128xf32>
    %51 = tpu.matmul %48, %50, %cst_50 {dimension_numbers = #tpu.dot_dimension_numbers<[1], [0], [0], [1], [0, 0, 1, 1], [], []>} : vector<36x128xbf16>, vector<128x128xbf16>, vector<36x128xf32> -> vector<36x128xf32>
    %52 = arith.addf %47, %51 : vector<36x128xf32>
    %c6_51 = arith.constant 6 : index
    %c0_52 = arith.constant 0 : index
    %53 = vector.load %arg10[%c6_51, %c0_52] : memref<50x128xbf16, #tpu.memory_space<vmem>>, vector<36x128xbf16>
    %c3_53 = arith.constant 3 : index
    %c0_54 = arith.constant 0 : index
    %c0_55 = arith.constant 0 : index
    %54 = vector.load %arg5[%c3_53, %c0_54, %c0_55] : memref<9x128x128xbf16, #tpu.memory_space<vmem>>, vector<1x128x128xbf16>
    %55 = vector.shape_cast %54 : vector<1x128x128xbf16> to vector<128x128xbf16>
    %cst_56 = arith.constant dense<0.000000e+00> : vector<36x128xf32>
    %56 = tpu.matmul %53, %55, %cst_56 {dimension_numbers = #tpu.dot_dimension_numbers<[1], [0], [0], [1], [0, 0, 1, 1], [], []>} : vector<36x128xbf16>, vector<128x128xbf16>, vector<36x128xf32> -> vector<36x128xf32>
    %57 = arith.addf %52, %56 : vector<36x128xf32>
    %c7_57 = arith.constant 7 : index
    %c0_58 = arith.constant 0 : index
    %58 = vector.load %arg10[%c7_57, %c0_58] : memref<50x128xbf16, #tpu.memory_space<vmem>>, vector<36x128xbf16>
    %c4 = arith.constant 4 : index
    %c0_59 = arith.constant 0 : index
    %c0_60 = arith.constant 0 : index
    %59 = vector.load %arg5[%c4, %c0_59, %c0_60] : memref<9x128x128xbf16, #tpu.memory_space<vmem>>, vector<1x128x128xbf16>
    %60 = vector.shape_cast %59 : vector<1x128x128xbf16> to vector<128x128xbf16>
    %cst_61 = arith.constant dense<0.000000e+00> : vector<36x128xf32>
    %61 = tpu.matmul %58, %60, %cst_61 {dimension_numbers = #tpu.dot_dimension_numbers<[1], [0], [0], [1], [0, 0, 1, 1], [], []>} : vector<36x128xbf16>, vector<128x128xbf16>, vector<36x128xf32> -> vector<36x128xf32>
    %62 = arith.addf %57, %61 : vector<36x128xf32>
    %c8 = arith.constant 8 : index
    %c0_62 = arith.constant 0 : index
    %63 = vector.load %arg10[%c8, %c0_62] : memref<50x128xbf16, #tpu.memory_space<vmem>>, vector<36x128xbf16>
    %c5 = arith.constant 5 : index
    %c0_63 = arith.constant 0 : index
    %c0_64 = arith.constant 0 : index
    %64 = vector.load %arg5[%c5, %c0_63, %c0_64] : memref<9x128x128xbf16, #tpu.memory_space<vmem>>, vector<1x128x128xbf16>
    %65 = vector.shape_cast %64 : vector<1x128x128xbf16> to vector<128x128xbf16>
    %cst_65 = arith.constant dense<0.000000e+00> : vector<36x128xf32>
    %66 = tpu.matmul %63, %65, %cst_65 {dimension_numbers = #tpu.dot_dimension_numbers<[1], [0], [0], [1], [0, 0, 1, 1], [], []>} : vector<36x128xbf16>, vector<128x128xbf16>, vector<36x128xf32> -> vector<36x128xf32>
    %67 = arith.addf %62, %66 : vector<36x128xf32>
    %c12 = arith.constant 12 : index
    %c0_66 = arith.constant 0 : index
    %68 = vector.load %arg10[%c12, %c0_66] : memref<50x128xbf16, #tpu.memory_space<vmem>>, vector<36x128xbf16>
    %c6_67 = arith.constant 6 : index
    %c0_68 = arith.constant 0 : index
    %c0_69 = arith.constant 0 : index
    %69 = vector.load %arg5[%c6_67, %c0_68, %c0_69] : memref<9x128x128xbf16, #tpu.memory_space<vmem>>, vector<1x128x128xbf16>
    %70 = vector.shape_cast %69 : vector<1x128x128xbf16> to vector<128x128xbf16>
    %cst_70 = arith.constant dense<0.000000e+00> : vector<36x128xf32>
    %71 = tpu.matmul %68, %70, %cst_70 {dimension_numbers = #tpu.dot_dimension_numbers<[1], [0], [0], [1], [0, 0, 1, 1], [], []>} : vector<36x128xbf16>, vector<128x128xbf16>, vector<36x128xf32> -> vector<36x128xf32>
    %72 = arith.addf %67, %71 : vector<36x128xf32>
    %c13 = arith.constant 13 : index
    %c0_71 = arith.constant 0 : index
    %73 = vector.load %arg10[%c13, %c0_71] : memref<50x128xbf16, #tpu.memory_space<vmem>>, vector<36x128xbf16>
    %c7_72 = arith.constant 7 : index
    %c0_73 = arith.constant 0 : index
    %c0_74 = arith.constant 0 : index
    %74 = vector.load %arg5[%c7_72, %c0_73, %c0_74] : memref<9x128x128xbf16, #tpu.memory_space<vmem>>, vector<1x128x128xbf16>
    %75 = vector.shape_cast %74 : vector<1x128x128xbf16> to vector<128x128xbf16>
    %cst_75 = arith.constant dense<0.000000e+00> : vector<36x128xf32>
    %76 = tpu.matmul %73, %75, %cst_75 {dimension_numbers = #tpu.dot_dimension_numbers<[1], [0], [0], [1], [0, 0, 1, 1], [], []>} : vector<36x128xbf16>, vector<128x128xbf16>, vector<36x128xf32> -> vector<36x128xf32>
    %77 = arith.addf %72, %76 : vector<36x128xf32>
    %c14 = arith.constant 14 : index
    %c0_76 = arith.constant 0 : index
    %78 = vector.load %arg10[%c14, %c0_76] : memref<50x128xbf16, #tpu.memory_space<vmem>>, vector<36x128xbf16>
    %c8_77 = arith.constant 8 : index
    %c0_78 = arith.constant 0 : index
    %c0_79 = arith.constant 0 : index
    %79 = vector.load %arg5[%c8_77, %c0_78, %c0_79] : memref<9x128x128xbf16, #tpu.memory_space<vmem>>, vector<1x128x128xbf16>
    %80 = vector.shape_cast %79 : vector<1x128x128xbf16> to vector<128x128xbf16>
    %cst_80 = arith.constant dense<0.000000e+00> : vector<36x128xf32>
    %81 = tpu.matmul %78, %80, %cst_80 {dimension_numbers = #tpu.dot_dimension_numbers<[1], [0], [0], [1], [0, 0, 1, 1], [], []>} : vector<36x128xbf16>, vector<128x128xbf16>, vector<36x128xf32> -> vector<36x128xf32>
    %82 = arith.addf %77, %81 : vector<36x128xf32>
    %c0_81 = arith.constant 0 : index
    %c0_82 = arith.constant 0 : index
    %83 = vector.load %arg6[%c0_81, %c0_82] : memref<1x128xf32, #tpu.memory_space<vmem>>, vector<1x128xf32>
    %84 = vector.broadcast %83 : vector<1x128xf32> to vector<36x128xf32>
    %85 = arith.addf %82, %84 : vector<36x128xf32>
    %cst_83 = arith.constant 0.000000e+00 : f32
    %86 = vector.broadcast %cst_83 : f32 to vector<36x128xf32>
    %87 = arith.maximumf %85, %86 : vector<36x128xf32>
    %88 = vector.broadcast %0 : vector<36x1xf32> to vector<36x128xf32>
    %89 = arith.mulf %87, %88 : vector<36x128xf32>
    %90 = arith.truncf %89 : vector<36x128xf32> to vector<36x128xbf16>
    %cst_84 = arith.constant 0.000000e+00 : bf16
    %91 = vector.broadcast %cst_84 : bf16 to vector<50x128xbf16>
    %c0_85 = arith.constant 0 : index
    %c0_86 = arith.constant 0 : index
    %92 = vector.load %arg11[%c0_85, %c0_86] : memref<50x128xbf16, #tpu.memory_space<vmem>>, vector<50x128xbf16>
    tpu.vector_store %arg11[%c0_85, %c0_86], %91 {strides = array<i32>} : memref<50x128xbf16, #tpu.memory_space<vmem>>, vector<50x128xbf16>,
    %c7_87 = arith.constant 7 : index
    %c0_88 = arith.constant 0 : index
    %93 = vector.load %arg11[%c7_87, %c0_88] : memref<50x128xbf16, #tpu.memory_space<vmem>>, vector<36x128xbf16>
    tpu.vector_store %arg11[%c7_87, %c0_88], %90 {strides = array<i32>} : memref<50x128xbf16, #tpu.memory_space<vmem>>, vector<36x128xbf16>,
    %cst_89 = arith.constant 0.000000e+00 : f32
    %94 = vector.broadcast %cst_89 : f32 to vector<36x128xf32>
    %c0_90 = arith.constant 0 : index
    %c0_91 = arith.constant 0 : index
    %95 = vector.load %arg11[%c0_90, %c0_91] : memref<50x128xbf16, #tpu.memory_space<vmem>>, vector<36x128xbf16>
    %c0_92 = arith.constant 0 : index
    %c0_93 = arith.constant 0 : index
    %c0_94 = arith.constant 0 : index
    %96 = vector.load %arg7[%c0_92, %c0_93, %c0_94] : memref<9x128x128xbf16, #tpu.memory_space<vmem>>, vector<1x128x128xbf16>
    %97 = vector.shape_cast %96 : vector<1x128x128xbf16> to vector<128x128xbf16>
    %cst_95 = arith.constant dense<0.000000e+00> : vector<36x128xf32>
    %98 = tpu.matmul %95, %97, %cst_95 {dimension_numbers = #tpu.dot_dimension_numbers<[1], [0], [0], [1], [0, 0, 1, 1], [], []>} : vector<36x128xbf16>, vector<128x128xbf16>, vector<36x128xf32> -> vector<36x128xf32>
    %99 = arith.addf %94, %98 : vector<36x128xf32>
    %c1_96 = arith.constant 1 : index
    %c0_97 = arith.constant 0 : index
    %100 = vector.load %arg11[%c1_96, %c0_97] : memref<50x128xbf16, #tpu.memory_space<vmem>>, vector<36x128xbf16>
    %c1_98 = arith.constant 1 : index
    %c0_99 = arith.constant 0 : index
    %c0_100 = arith.constant 0 : index
    %101 = vector.load %arg7[%c1_98, %c0_99, %c0_100] : memref<9x128x128xbf16, #tpu.memory_space<vmem>>, vector<1x128x128xbf16>
    %102 = vector.shape_cast %101 : vector<1x128x128xbf16> to vector<128x128xbf16>
    %cst_101 = arith.constant dense<0.000000e+00> : vector<36x128xf32>
    %103 = tpu.matmul %100, %102, %cst_101 {dimension_numbers = #tpu.dot_dimension_numbers<[1], [0], [0], [1], [0, 0, 1, 1], [], []>} : vector<36x128xbf16>, vector<128x128xbf16>, vector<36x128xf32> -> vector<36x128xf32>
    %104 = arith.addf %99, %103 : vector<36x128xf32>
    %c2_102 = arith.constant 2 : index
    %c0_103 = arith.constant 0 : index
    %105 = vector.load %arg11[%c2_102, %c0_103] : memref<50x128xbf16, #tpu.memory_space<vmem>>, vector<36x128xbf16>
    %c2_104 = arith.constant 2 : index
    %c0_105 = arith.constant 0 : index
    %c0_106 = arith.constant 0 : index
    %106 = vector.load %arg7[%c2_104, %c0_105, %c0_106] : memref<9x128x128xbf16, #tpu.memory_space<vmem>>, vector<1x128x128xbf16>
    %107 = vector.shape_cast %106 : vector<1x128x128xbf16> to vector<128x128xbf16>
    %cst_107 = arith.constant dense<0.000000e+00> : vector<36x128xf32>
    %108 = tpu.matmul %105, %107, %cst_107 {dimension_numbers = #tpu.dot_dimension_numbers<[1], [0], [0], [1], [0, 0, 1, 1], [], []>} : vector<36x128xbf16>, vector<128x128xbf16>, vector<36x128xf32> -> vector<36x128xf32>
    %109 = arith.addf %104, %108 : vector<36x128xf32>
    %c6_108 = arith.constant 6 : index
    %c0_109 = arith.constant 0 : index
    %110 = vector.load %arg11[%c6_108, %c0_109] : memref<50x128xbf16, #tpu.memory_space<vmem>>, vector<36x128xbf16>
    %c3_110 = arith.constant 3 : index
    %c0_111 = arith.constant 0 : index
    %c0_112 = arith.constant 0 : index
    %111 = vector.load %arg7[%c3_110, %c0_111, %c0_112] : memref<9x128x128xbf16, #tpu.memory_space<vmem>>, vector<1x128x128xbf16>
    %112 = vector.shape_cast %111 : vector<1x128x128xbf16> to vector<128x128xbf16>
    %cst_113 = arith.constant dense<0.000000e+00> : vector<36x128xf32>
    %113 = tpu.matmul %110, %112, %cst_113 {dimension_numbers = #tpu.dot_dimension_numbers<[1], [0], [0], [1], [0, 0, 1, 1], [], []>} : vector<36x128xbf16>, vector<128x128xbf16>, vector<36x128xf32> -> vector<36x128xf32>
    %114 = arith.addf %109, %113 : vector<36x128xf32>
    %c7_114 = arith.constant 7 : index
    %c0_115 = arith.constant 0 : index
    %115 = vector.load %arg11[%c7_114, %c0_115] : memref<50x128xbf16, #tpu.memory_space<vmem>>, vector<36x128xbf16>
    %c4_116 = arith.constant 4 : index
    %c0_117 = arith.constant 0 : index
    %c0_118 = arith.constant 0 : index
    %116 = vector.load %arg7[%c4_116, %c0_117, %c0_118] : memref<9x128x128xbf16, #tpu.memory_space<vmem>>, vector<1x128x128xbf16>
    %117 = vector.shape_cast %116 : vector<1x128x128xbf16> to vector<128x128xbf16>
    %cst_119 = arith.constant dense<0.000000e+00> : vector<36x128xf32>
    %118 = tpu.matmul %115, %117, %cst_119 {dimension_numbers = #tpu.dot_dimension_numbers<[1], [0], [0], [1], [0, 0, 1, 1], [], []>} : vector<36x128xbf16>, vector<128x128xbf16>, vector<36x128xf32> -> vector<36x128xf32>
    %119 = arith.addf %114, %118 : vector<36x128xf32>
    %c8_120 = arith.constant 8 : index
    %c0_121 = arith.constant 0 : index
    %120 = vector.load %arg11[%c8_120, %c0_121] : memref<50x128xbf16, #tpu.memory_space<vmem>>, vector<36x128xbf16>
    %c5_122 = arith.constant 5 : index
    %c0_123 = arith.constant 0 : index
    %c0_124 = arith.constant 0 : index
    %121 = vector.load %arg7[%c5_122, %c0_123, %c0_124] : memref<9x128x128xbf16, #tpu.memory_space<vmem>>, vector<1x128x128xbf16>
    %122 = vector.shape_cast %121 : vector<1x128x128xbf16> to vector<128x128xbf16>
    %cst_125 = arith.constant dense<0.000000e+00> : vector<36x128xf32>
    %123 = tpu.matmul %120, %122, %cst_125 {dimension_numbers = #tpu.dot_dimension_numbers<[1], [0], [0], [1], [0, 0, 1, 1], [], []>} : vector<36x128xbf16>, vector<128x128xbf16>, vector<36x128xf32> -> vector<36x128xf32>
    %124 = arith.addf %119, %123 : vector<36x128xf32>
    %c12_126 = arith.constant 12 : index
    %c0_127 = arith.constant 0 : index
    %125 = vector.load %arg11[%c12_126, %c0_127] : memref<50x128xbf16, #tpu.memory_space<vmem>>, vector<36x128xbf16>
    %c6_128 = arith.constant 6 : index
    %c0_129 = arith.constant 0 : index
    %c0_130 = arith.constant 0 : index
    %126 = vector.load %arg7[%c6_128, %c0_129, %c0_130] : memref<9x128x128xbf16, #tpu.memory_space<vmem>>, vector<1x128x128xbf16>
    %127 = vector.shape_cast %126 : vector<1x128x128xbf16> to vector<128x128xbf16>
    %cst_131 = arith.constant dense<0.000000e+00> : vector<36x128xf32>
    %128 = tpu.matmul %125, %127, %cst_131 {dimension_numbers = #tpu.dot_dimension_numbers<[1], [0], [0], [1], [0, 0, 1, 1], [], []>} : vector<36x128xbf16>, vector<128x128xbf16>, vector<36x128xf32> -> vector<36x128xf32>
    %129 = arith.addf %124, %128 : vector<36x128xf32>
    %c13_132 = arith.constant 13 : index
    %c0_133 = arith.constant 0 : index
    %130 = vector.load %arg11[%c13_132, %c0_133] : memref<50x128xbf16, #tpu.memory_space<vmem>>, vector<36x128xbf16>
    %c7_134 = arith.constant 7 : index
    %c0_135 = arith.constant 0 : index
    %c0_136 = arith.constant 0 : index
    %131 = vector.load %arg7[%c7_134, %c0_135, %c0_136] : memref<9x128x128xbf16, #tpu.memory_space<vmem>>, vector<1x128x128xbf16>
    %132 = vector.shape_cast %131 : vector<1x128x128xbf16> to vector<128x128xbf16>
    %cst_137 = arith.constant dense<0.000000e+00> : vector<36x128xf32>
    %133 = tpu.matmul %130, %132, %cst_137 {dimension_numbers = #tpu.dot_dimension_numbers<[1], [0], [0], [1], [0, 0, 1, 1], [], []>} : vector<36x128xbf16>, vector<128x128xbf16>, vector<36x128xf32> -> vector<36x128xf32>
    %134 = arith.addf %129, %133 : vector<36x128xf32>
    %c14_138 = arith.constant 14 : index
    %c0_139 = arith.constant 0 : index
    %135 = vector.load %arg11[%c14_138, %c0_139] : memref<50x128xbf16, #tpu.memory_space<vmem>>, vector<36x128xbf16>
    %c8_140 = arith.constant 8 : index
    %c0_141 = arith.constant 0 : index
    %c0_142 = arith.constant 0 : index
    %136 = vector.load %arg7[%c8_140, %c0_141, %c0_142] : memref<9x128x128xbf16, #tpu.memory_space<vmem>>, vector<1x128x128xbf16>
    %137 = vector.shape_cast %136 : vector<1x128x128xbf16> to vector<128x128xbf16>
    %cst_143 = arith.constant dense<0.000000e+00> : vector<36x128xf32>
    %138 = tpu.matmul %135, %137, %cst_143 {dimension_numbers = #tpu.dot_dimension_numbers<[1], [0], [0], [1], [0, 0, 1, 1], [], []>} : vector<36x128xbf16>, vector<128x128xbf16>, vector<36x128xf32> -> vector<36x128xf32>
    %139 = arith.addf %134, %138 : vector<36x128xf32>
    %c0_144 = arith.constant 0 : index
    %c0_145 = arith.constant 0 : index
    %140 = vector.load %arg8[%c0_144, %c0_145] : memref<1x128xf32, #tpu.memory_space<vmem>>, vector<1x128xf32>
    %141 = vector.broadcast %140 : vector<1x128xf32> to vector<36x128xf32>
    %142 = arith.addf %139, %141 : vector<36x128xf32>
    %143 = arith.extf %33 : vector<36x128xbf16> to vector<36x128xf32>
    %144 = arith.addf %142, %143 : vector<36x128xf32>
    %cst_146 = arith.constant 0.000000e+00 : f32
    %145 = vector.broadcast %cst_146 : f32 to vector<36x128xf32>
    %146 = arith.maximumf %144, %145 : vector<36x128xf32>
    %147 = vector.broadcast %0 : vector<36x1xf32> to vector<36x128xf32>
    %148 = arith.mulf %146, %147 : vector<36x128xf32>
    %149 = arith.truncf %148 : vector<36x128xf32> to vector<36x128xbf16>
    %c0_147 = arith.constant 0 : index
    %c0_148 = arith.constant 0 : index
    %c0_149 = arith.constant 0 : index
    %150 = vector.load %arg9[%c0_147, %c0_148, %c0_149] : memref<1x36x128xbf16, #tpu.memory_space<vmem>>, vector<1x36x128xbf16>
    %151 = vector.shape_cast %150 : vector<1x36x128xbf16> to vector<36x128xbf16>
    %152 = vector.shape_cast %149 : vector<36x128xbf16> to vector<1x36x128xbf16>
    tpu.vector_store %arg9[%c0_147, %c0_148, %c0_149], %152 {strides = array<i32>} : memref<1x36x128xbf16, #tpu.memory_space<vmem>>, vector<1x36x128xbf16>,
    return
  }
  func.func @transform_0(%arg0: i32) -> (i32, i32, i32) {
    %c0_i32 = arith.constant 0 : i32
    %c0_i32_0 = arith.constant 0 : i32
    %c0_i32_1 = arith.constant 0 : i32
    return %arg0, %c0_i32, %c0_i32_0 : i32, i32, i32
  }
  func.func @transform_1(%arg0: i32) -> (i32, i32) {
    %c0_i32 = arith.constant 0 : i32
    %c0_i32_0 = arith.constant 0 : i32
    %c0_i32_1 = arith.constant 0 : i32
    return %c0_i32, %c0_i32_0 : i32, i32
  }
  func.func @transform_2(%arg0: i32) -> (i32, i32, i32) {
    %c0_i32 = arith.constant 0 : i32
    %c0_i32_0 = arith.constant 0 : i32
    %c0_i32_1 = arith.constant 0 : i32
    %c0_i32_2 = arith.constant 0 : i32
    return %c0_i32, %c0_i32_0, %c0_i32_1 : i32, i32, i32
  }
  func.func @transform_3(%arg0: i32) -> (i32, i32) {
    %c0_i32 = arith.constant 0 : i32
    %c0_i32_0 = arith.constant 0 : i32
    %c0_i32_1 = arith.constant 0 : i32
    return %c0_i32, %c0_i32_0 : i32, i32
  }
  func.func @transform_4(%arg0: i32) -> (i32, i32, i32) {
    %c0_i32 = arith.constant 0 : i32
    %c0_i32_0 = arith.constant 0 : i32
    %c0_i32_1 = arith.constant 0 : i32
    %c0_i32_2 = arith.constant 0 : i32
    return %c0_i32, %c0_i32_0, %c0_i32_1 : i32, i32, i32
  }
  func.func @transform_5(%arg0: i32) -> (i32, i32) {
    %c0_i32 = arith.constant 0 : i32
    %c0_i32_0 = arith.constant 0 : i32
    %c0_i32_1 = arith.constant 0 : i32
    return %c0_i32, %c0_i32_0 : i32, i32
  }
  func.func @transform_6(%arg0: i32) -> (i32, i32, i32) {
    %c0_i32 = arith.constant 0 : i32
    %c0_i32_0 = arith.constant 0 : i32
    %c0_i32_1 = arith.constant 0 : i32
    %c0_i32_2 = arith.constant 0 : i32
    return %c0_i32, %c0_i32_0, %c0_i32_1 : i32, i32, i32
  }
  func.func @transform_7(%arg0: i32) -> (i32, i32) {
    %c0_i32 = arith.constant 0 : i32
    %c0_i32_0 = arith.constant 0 : i32
    %c0_i32_1 = arith.constant 0 : i32
    return %c0_i32, %c0_i32_0 : i32, i32
  }
  func.func @transform_8(%arg0: i32) -> (i32, i32, i32) {
    %c0_i32 = arith.constant 0 : i32
    %c0_i32_0 = arith.constant 0 : i32
    %c0_i32_1 = arith.constant 0 : i32
    return %arg0, %c0_i32, %c0_i32_0 : i32, i32, i32
  }
}

module attributes {stable_mosaic.version = 11 : i64} {
  func.func @_linear_kernel(%arg0: i32, %arg1: memref<2x1024xbf16, #tpu.memory_space<vmem>>, %arg2: memref<1024x128xbf16, #tpu.memory_space<vmem>>, %arg3: memref<1x128xf32, #tpu.memory_space<vmem>>, %arg4: memref<2x128xf32, #tpu.memory_space<vmem>>, %arg5: memref<2x128xf32, #tpu.memory_space<vmem>>) attributes {dimension_semantics = [#tpu.dimension_semantics<arbitrary>], iteration_bounds = array<i64: 2>, scalar_prefetch = 0 : i64, scratch_operands = 1 : i64, tpu.core_type = #tpu.core_type<tc>, window_params = [{transform_indices = @transform_0, window_bounds = array<i64: 2, 1024>}, {transform_indices = @transform_1, window_bounds = array<i64: 1024, 128>}, {pipeline_mode = #tpu.pipeline_mode<synchronous>, transform_indices = @transform_2, window_bounds = array<i64: 1, 128>}, {pipeline_mode = #tpu.pipeline_mode<synchronous>, transform_indices = @transform_3, window_bounds = array<i64: 2, 128>}]} {
    %c0_i32 = arith.constant 0 : i32
    %0 = arith.cmpi eq, %arg0, %c0_i32 : i32
    %1 = arith.extui %0 : i1 to i32
    %c0_i32_0 = arith.constant 0 : i32
    %2 = arith.cmpi ne, %1, %c0_i32_0 : i32
    scf.if %2 {
      %cst_9 = arith.constant 0.000000e+00 : f32
      %12 = vector.broadcast %cst_9 : f32 to vector<2x128xf32>
      %c0_10 = arith.constant 0 : index
      %c0_11 = arith.constant 0 : index
      %13 = vector.load %arg5[%c0_10, %c0_11] : memref<2x128xf32, #tpu.memory_space<vmem>>, vector<2x128xf32>
      tpu.vector_store %arg5[%c0_10, %c0_11], %12 {strides = array<i32>} : memref<2x128xf32, #tpu.memory_space<vmem>>, vector<2x128xf32>,
    } else {
    }
    %c0 = arith.constant 0 : index
    %c0_1 = arith.constant 0 : index
    %3 = vector.load %arg5[%c0, %c0_1] : memref<2x128xf32, #tpu.memory_space<vmem>>, vector<2x128xf32>
    %c0_2 = arith.constant 0 : index
    %c0_3 = arith.constant 0 : index
    %4 = vector.load %arg1[%c0_2, %c0_3] : memref<2x1024xbf16, #tpu.memory_space<vmem>>, vector<2x1024xbf16>
    %c0_4 = arith.constant 0 : index
    %c0_5 = arith.constant 0 : index
    %5 = vector.load %arg2[%c0_4, %c0_5] : memref<1024x128xbf16, #tpu.memory_space<vmem>>, vector<1024x128xbf16>
    %cst = arith.constant dense<0.000000e+00> : vector<2x128xf32>
    %6 = tpu.matmul %4, %5, %cst {dimension_numbers = #tpu.dot_dimension_numbers<[1], [0], [0], [1], [0, 0, 1, 1], [], []>} : vector<2x1024xbf16>, vector<1024x128xbf16>, vector<2x128xf32> -> vector<2x128xf32>
    %7 = arith.addf %3, %6 : vector<2x128xf32>
    %c0_6 = arith.constant 0 : index
    %c0_7 = arith.constant 0 : index
    %8 = vector.load %arg5[%c0_6, %c0_7] : memref<2x128xf32, #tpu.memory_space<vmem>>, vector<2x128xf32>
    tpu.vector_store %arg5[%c0_6, %c0_7], %7 {strides = array<i32>} : memref<2x128xf32, #tpu.memory_space<vmem>>, vector<2x128xf32>,
    %c1_i32 = arith.constant 1 : i32
    %9 = arith.cmpi eq, %arg0, %c1_i32 : i32
    %10 = arith.extui %9 : i1 to i32
    %c0_i32_8 = arith.constant 0 : i32
    %11 = arith.cmpi ne, %10, %c0_i32_8 : i32
    scf.if %11 {
      %c0_9 = arith.constant 0 : index
      %c0_10 = arith.constant 0 : index
      %12 = vector.load %arg5[%c0_9, %c0_10] : memref<2x128xf32, #tpu.memory_space<vmem>>, vector<2x128xf32>
      %c0_11 = arith.constant 0 : index
      %c0_12 = arith.constant 0 : index
      %13 = vector.load %arg3[%c0_11, %c0_12] : memref<1x128xf32, #tpu.memory_space<vmem>>, vector<1x128xf32>
      %14 = vector.broadcast %13 : vector<1x128xf32> to vector<2x128xf32>
      %15 = arith.addf %12, %14 : vector<2x128xf32>
      %c0_13 = arith.constant 0 : index
      %c0_14 = arith.constant 0 : index
      %16 = vector.load %arg4[%c0_13, %c0_14] : memref<2x128xf32, #tpu.memory_space<vmem>>, vector<2x128xf32>
      tpu.vector_store %arg4[%c0_13, %c0_14], %15 {strides = array<i32>} : memref<2x128xf32, #tpu.memory_space<vmem>>, vector<2x128xf32>,
    } else {
    }
    return
  }
  func.func @transform_0(%arg0: i32) -> (i32, i32) {
    %c0_i32 = arith.constant 0 : i32
    %c0_i32_0 = arith.constant 0 : i32
    return %c0_i32, %arg0 : i32, i32
  }
  func.func @transform_1(%arg0: i32) -> (i32, i32) {
    %c0_i32 = arith.constant 0 : i32
    %c0_i32_0 = arith.constant 0 : i32
    return %arg0, %c0_i32 : i32, i32
  }
  func.func @transform_2(%arg0: i32) -> (i32, i32) {
    %c0_i32 = arith.constant 0 : i32
    %c0_i32_0 = arith.constant 0 : i32
    %c0_i32_1 = arith.constant 0 : i32
    return %c0_i32, %c0_i32_0 : i32, i32
  }
  func.func @transform_3(%arg0: i32) -> (i32, i32) {
    %c0_i32 = arith.constant 0 : i32
    %c0_i32_0 = arith.constant 0 : i32
    %c0_i32_1 = arith.constant 0 : i32
    return %c0_i32, %c0_i32_0 : i32, i32
  }
}

</mosaic_0001>

<bundles_post_ra>
// kernel: encoder_forward.5
= control target key start
LH: loop header
LB: loop body
LE: loop exit
PB: predicated region body
PF: predicated region fallthrough
CT: control target
= control target key end

     0   :  { %8 = vsyncpa [#allocation4], 0  ;;  %s1296_s12 = smov 0   ;;  %s1432_s0 = inlined_call_operand.vmem [shape: bf16[2,2048], index: 0, kind: input, shape index: {}]   ;;  %s1433_s1 = inlined_call_operand.vmem [shape: bf16[2048,128], index: 1, kind: input, shape index: {}]   ;;  %s1434_s2 = inlined_call_operand.vmem [shape: f32[1,128], index: 2, kind: input, shape index: {}]   ;;  %s1435_s3 = inlined_call_operand.hbm [shape: f32[2,128], index: 3, kind: output, shape index: {}]  }
   0x1 LB: > { %s1302_s13 = sadd.s32 4294967295, %s1271_s12   ;;  %p990_p0 = scmp.ge.s32.totalorder %s1271_s12, 1  ;;  %s1271_s12 = sphi %s1296_s12, %s14_s12  }
   0x2   : > { %p144_p1 = scmp.lt.s32.totalorder %s1271_s12, 3 }
   0x4   : > { %p145_p2 = pnand %p990_p0, %p144_p1 }
   0x5   : > { %s991_s14 = sshll.u32 (!%p145_p2), %s1302_s13, 3  ;;  %s992_s15 = sshll.u32 (!%p145_p2), %s1302_s13, 7 }
   0x6   : > { %148 = sbr.rel (%p145_p2) target bundleno = 345 (0x159), region = 32  ;;  %p168_p3 = scmp.lt.s32.totalorder (!%p145_p2), %s991_s14, 15 }
   0x7   : > { %p173_p4 = scmp.lt.s32.totalorder (!%p145_p2), %s992_s15, 255  ;;  %p994_p5 = scmp.ne.s32.totalorder (!%p145_p2), %s1302_s13, 0 }
   0xd   : > { %s1437_s14 = smov (!%p168_p3, %s991_s14), 15  ;;  %s1439_s15 = smov (!%p173_p4, %s992_s15), 255 }
   0xe   : > { %s170_s18 = scalar_lea.vmem %s1432_s0, %s1437_s14  ;;  %s993_s19 = sshll.u32 %s1439_s15, 2  ;;  %v1273_v0 = vmov (!%p994_p5), 0.0  }
   0xf   : > { %s1317_s22 = scalar_lea.vmem %s1433_s1, %s993_s19  ;;  %182 = sbr.rel (%p994_p5) target bundleno = 22 (0x16), region = 36  ;;  %183 = vst [vmem:[#allocation2] sm:$0x3] (!%p994_p5), %v1273_v0 }
  0x16 PF: > { %v1170_v1 = vld [vmem:[%s1317_s22 + $0x40] sm:$0xff]   ;;  %v1174_v5 = vld [vmem:[%s1317_s22 + $0x48] sm:$0xff]   ;;  %v1178_v9 = vld [vmem:[%s1317_s22 + $0x50] sm:$0xff]   ;;  %v319_v29 = vlaneseq  ;;  %v1274_v37 = vmov 1966171168   ;;  %p1059_p6 = scmp.ne.s32.totalorder %s1302_s13, 1 }
  0x17   : > { %v1171_v2 = vld [vmem:[%s1317_s22 + $0xc0] sm:$0xff]   ;;  %1065 = vmatprep.subr.bf16.mxu0 %v1170_v1  ;;  %v1175_v6 = vld [vmem:[%s1317_s22 + $0xc8] sm:$0xff]   ;;  %v1179_v10 = vld [vmem:[%s1317_s22 + $0xd0] sm:$0xff]   ;;  %v317_v38 = vunpack.c.l.s4 %v1274_v37 }
  0x18   : > { %v1172_v3 = vld [vmem:[%s1317_s22] sm:$0xff]   ;;  %1087 = vmatprep.subr.bf16.mxu1 %v1171_v2  ;;  %v1176_v7 = vld [vmem:[%s1317_s22 + $0x8] sm:$0xff]   ;;  %v1180_v11 = vld [vmem:[%s1317_s22 + $0x10] sm:$0xff]   ;;  %v320_v34 = vshrl.u32 %v319_v29, 7 }
  0x19   : > { %v1173_v4 = vld [vmem:[%s1317_s22 + $0x80] sm:$0xff]   ;;  %1066 = vmatpush3.bf16.msra.mxu0 %v1172_v3  ;;  %v1177_v8 = vld [vmem:[%s1317_s22 + $0x88] sm:$0xff]   ;;  %v1181_v12 = vld [vmem:[%s1317_s22 + $0x90] sm:$0xff]   ;;  %v318_v41 = vunpack.c.0.s8 %v317_v38 }
  0x1a   : > { %1088 = vmatpush3.bf16.msra.mxu1 %v1173_v4  ;;  %1067 = vmatprep.subr.bf16.mxu0 %v1174_v5  ;;  %v1182_v13 = vld [vmem:[%s1317_s22 + $0x58] sm:$0xff]   ;;  %v1186_v17 = vld [vmem:[%s1317_s22 + $0x60] sm:$0xff]   ;;  %v1190_v21 = vld [vmem:[%s1317_s22 + $0x68] sm:$0xff]  }
  0x1b   : > { %1089 = vmatprep.subr.bf16.mxu1 %v1175_v6  ;;  %v1183_v14 = vld [vmem:[%s1317_s22 + $0xd8] sm:$0xff]   ;;  %v1187_v18 = vld [vmem:[%s1317_s22 + $0xe0] sm:$0xff]   ;;  %v1191_v22 = vld [vmem:[%s1317_s22 + $0xe8] sm:$0xff]   ;;  %v1359_v42 = vsub.s32 %v318_v41, %v320_v34 }
  0x1c   : > { %v1184_v15 = vld [vmem:[%s1317_s22 + $0x18] sm:$0xff]   ;;  %v1188_v19 = vld [vmem:[%s1317_s22 + $0x20] sm:$0xff]   ;;  %v1192_v23 = vld [vmem:[%s1317_s22 + $0x28] sm:$0xff]  }
  0x1d   : > { %1068 = vmatpush3.bf16.msra.mxu0 %v1176_v7  ;;  %v1185_v16 = vld [vmem:[%s1317_s22 + $0x98] sm:$0xff]   ;;  %v1189_v20 = vld [vmem:[%s1317_s22 + $0xa0] sm:$0xff]   ;;  %v1193_v24 = vld [vmem:[%s1317_s22 + $0xa8] sm:$0xff]  }
  0x1e   : > { %1090 = vmatpush3.bf16.msra.mxu1 %v1177_v8  ;;  %1069 = vmatprep.subr.bf16.mxu0 %v1178_v9  ;;  %v1194_v25 = vld [vmem:[%s1317_s22 + $0x70] sm:$0xff]   ;;  %v1198_v30 = vld [vmem:[%s1317_s22 + $0x78] sm:$0xff]   ;;  %v185_v35 = vld [vmem:[%s170_s18] sm:$0xff] }
  0x1f   : > { %1091 = vmatprep.subr.bf16.mxu1 %v1179_v10  ;;  %v1195_v26 = vld [vmem:[%s1317_s22 + $0xf0] sm:$0xff]   ;;  %v1199_v31 = vld [vmem:[%s1317_s22 + $0xf8] sm:$0xff]   ;;  %v1203_v36 = vld [vmem:[%s1317_s22 + $0x140] sm:$0xff]   ;;  %v315_v40 = vcombine.high %v185_v35, %v185_v35  ;;  %v322_v43 = vrot.slane %v185_v35, %v1359_v42 }
  0x20   : > { %v1196_v27 = vld [vmem:[%s1317_s22 + $0x30] sm:$0xff]   ;;  %v1200_v32 = vld [vmem:[%s1317_s22 + $0x38] sm:$0xff]   ;;  %v1204_v39 = vld [vmem:[%s1317_s22 + $0x1c0] sm:$0xff]  }
  0x21   : > { %1070 = vmatpush3.bf16.msra.mxu0 %v1180_v11  ;;  %v1197_v28 = vld [vmem:[%s1317_s22 + $0xb0] sm:$0xff]   ;;  %v1201_v33 = vld [vmem:[%s1317_s22 + $0xb8] sm:$0xff]   ;;  %v1363_v44 = vrot.slane %v315_v40, %v1359_v42  ;;  %v330_v45 = vcombine.high %v322_v43, %v322_v43  ;;  %v338_v46 = vrot.slane %v322_v43, %v1359_v42  ;;  %v1205_v49 = vld [vmem:[%s1317_s22 + $0x100] sm:$0xff]  }
  0x22   : > { %1092 = vmatpush3.bf16.msra.mxu1 %v1181_v12  ;;  %1071 = vmatprep.subr.bf16.mxu0 %v1182_v13  ;;  %v1207_v52 = vld [vmem:[%s1317_s22 + $0x148] sm:$0xff]   ;;  %v1206_v54 = vld [vmem:[%s1317_s22 + $0x180] sm:$0xff]   ;;  %v1211_v58 = vld [vmem:[%s1317_s22 + $0x150] sm:$0xff]  }
  0x23   : > { %1093 = vmatprep.subr.bf16.mxu1 %v1183_v14  ;;  %v331_v47 = vcombine.high %v1363_v44, %v1363_v44  ;;  %v352_v48 = vrot.slane %v330_v45, %v1359_v42  ;;  %v360_v51 = vcombine.high %v338_v46, %v338_v46  ;;  %v1208_v55 = vld [vmem:[%s1317_s22 + $0x1c8] sm:$0xff]   ;;  %v1212_v60 = vld [vmem:[%s1317_s22 + $0x1d0] sm:$0xff]   ;;  %v1215_v62 = vld [vmem:[%s1317_s22 + $0x158] sm:$0xff]  }
  0x24   : > { %v1209_v57 = vld [vmem:[%s1317_s22 + $0x108] sm:$0xff]   ;;  %v1213_v61 = vld [vmem:[%s1317_s22 + $0x110] sm:$0xff]   ;;  %v1216_v0 = vld [vmem:[%s1317_s22 + $0x1d8] sm:$0xff]  }
  0x25   : > { %1072 = vmatpush3.bf16.msra.mxu0 %v1184_v15  ;;  %v359_v50 = vrot.slane %v331_v47, %v1359_v42  ;;  %788 = vmatprep.mubr.bf16.mxu0 %v352_v48  ;;  %v362_v53 = vcombine.high %v352_v48, %v352_v48  ;;  %v1210_v59 = vld [vmem:[%s1317_s22 + $0x188] sm:$0xff]   ;;  %v1214_v63 = vld [vmem:[%s1317_s22 + $0x190] sm:$0xff]   ;;  %v1217_v1 = vld [vmem:[%s1317_s22 + $0x118] sm:$0xff]  }
  0x26   : > { %1094 = vmatpush3.bf16.msra.mxu1 %v1185_v16  ;;  %1073 = vmatprep.subr.bf16.mxu0 %v1186_v17  ;;  %v1219_v2 = vld [vmem:[%s1317_s22 + $0x160] sm:$0xff]   ;;  %v1218_v3 = vld [vmem:[%s1317_s22 + $0x198] sm:$0xff]   ;;  %v1223_v6 = vld [vmem:[%s1317_s22 + $0x168] sm:$0xff]  }
  0x27   : > { %1095 = vmatprep.subr.bf16.mxu1 %v1187_v18  ;;  %v363_v56 = vcombine.high %v359_v50, %v359_v50  ;;  %828 = vmatprep.mubr.bf16.mxu1 %v362_v53  ;;  %v1220_v4 = vld [vmem:[%s1317_s22 + $0x1e0] sm:$0xff]   ;;  %v1224_v8 = vld [vmem:[%s1317_s22 + $0x1e8] sm:$0xff]   ;;  %v1227_v10 = vld [vmem:[%s1317_s22 + $0x170] sm:$0xff]   ;;  %v345_v18 = vrot.slane %v1363_v44, %v1359_v42 }
  0x28   : > { %v1221_v5 = vld [vmem:[%s1317_s22 + $0x120] sm:$0xff]   ;;  %v1225_v9 = vld [vmem:[%s1317_s22 + $0x128] sm:$0xff]   ;;  %v1228_v12 = vld [vmem:[%s1317_s22 + $0x1f0] sm:$0xff]  }
  0x29   : > { %1074 = vmatpush3.bf16.msra.mxu0 %v1188_v19  ;;  %v1222_v7 = vld [vmem:[%s1317_s22 + $0x1a0] sm:$0xff]   ;;  %v1226_v11 = vld [vmem:[%s1317_s22 + $0x1a8] sm:$0xff]   ;;  %v1229_v13 = vld [vmem:[%s1317_s22 + $0x130] sm:$0xff]  }
  0x2a   : > { %1096 = vmatpush3.bf16.msra.mxu1 %v1189_v20  ;;  %1075 = vmatprep.subr.bf16.mxu0 %v1190_v21  ;;  %v1231_v14 = vld [vmem:[%s1317_s22 + $0x178] sm:$0xff]   ;;  %v1230_v15 = vld [vmem:[%s1317_s22 + $0x1b0] sm:$0xff]   ;;  %v361_v20 = vcombine.high %v345_v18, %v345_v18  ;;  %v184_v42 = vld [vmem:[#allocation2] sm:$0x3] }
  0x2b   : > { %1097 = vmatprep.subr.bf16.mxu1 %v1191_v22  ;;  %v1232_v16 = vld [vmem:[%s1317_s22 + $0x1f8] sm:$0xff]   ;;  %v1060_v47 = vld [vmem:[%s1434_s2] ss:$0 sm:$0xff] (!%p1059_p6) }
  0x2c   : > { %v1233_v17 = vld [vmem:[%s1317_s22 + $0x138] sm:$0xff]  }
  0x2d   : > { %1076 = vmatpush3.bf16.msra.mxu0 %v1192_v23  ;;  %v1234_v19 = vld [vmem:[%s1317_s22 + $0x1b8] sm:$0xff]  }
  0x2e   : > { %1098 = vmatpush3.bf16.msra.mxu1 %v1193_v24  ;;  %1077 = vmatprep.subr.bf16.mxu0 %v1194_v25 }
  0x2f   : > { %1099 = vmatprep.subr.bf16.mxu1 %v1195_v26 }
  0x31   : > { %1078 = vmatpush3.bf16.msra.mxu0 %v1196_v27 }
  0x32   : > { %1100 = vmatpush3.bf16.msra.mxu1 %v1197_v28  ;;  %1079 = vmatprep.subr.bf16.mxu0 %v1198_v30 }
  0x33   : > { %1101 = vmatprep.subr.bf16.mxu1 %v1199_v31 }
  0x35   : > { %1080 = vmatpush3.bf16.msra.mxu0 %v1200_v32 }
  0x36   : > { %1102 = vmatpush3.bf16.msra.mxu1 %v1201_v33  ;;  %1109 = vmatprep.subr.bf16.mxu0 %v1203_v36 }
  0x37   : > { %1131 = vmatprep.subr.bf16.mxu1 %v1204_v39 }
  0x38   : > { %789 = vmatmul.mubr.bf16.vlgmr.msra.gmra.mrb[0].mxu0 %v338_v46 }
  0x39   : > { %1110 = vmatpush3.bf16.msra.mxu0 %v1205_v49  ;;  %829 = vmatmul.mubr.bf16.vlgmr.msra.gmra.mrb[0].mxu1 %v360_v51 }
  0x3a   : > { %1111 = vmatprep.subr.bf16.mxu0 %v1207_v52  ;;  %1132 = vmatpush3.bf16.msra.mxu1 %v1206_v54 }
  0x3b   : > { %868 = vmatprep.mubr.bf16.mxu0 %v359_v50  ;;  %1133 = vmatprep.subr.bf16.mxu1 %v1208_v55 }
  0x3c   : > { %908 = vmatprep.mubr.bf16.mxu1 %v363_v56 }
  0x3d   : > { %1112 = vmatpush3.bf16.msra.mxu0 %v1209_v57 }
  0x3e   : > { %1113 = vmatprep.subr.bf16.mxu0 %v1211_v58  ;;  %1134 = vmatpush3.bf16.msra.mxu1 %v1210_v59 }
  0x3f   : > { %1135 = vmatprep.subr.bf16.mxu1 %v1212_v60 }
  0x41   : > { %1114 = vmatpush3.bf16.msra.mxu0 %v1213_v61 }
  0x42   : > { %1115 = vmatprep.subr.bf16.mxu0 %v1215_v62  ;;  %1136 = vmatpush3.bf16.msra.mxu1 %v1214_v63 }
  0x43   : > { %1137 = vmatprep.subr.bf16.mxu1 %v1216_v0 }
  0x45   : > { %1116 = vmatpush3.bf16.msra.mxu0 %v1217_v1 }
  0x46   : > { %1117 = vmatprep.subr.bf16.mxu0 %v1219_v2  ;;  %1138 = vmatpush3.bf16.msra.mxu1 %v1218_v3 }
  0x47   : > { %1139 = vmatprep.subr.bf16.mxu1 %v1220_v4 }
  0x49   : > { %1118 = vmatpush3.bf16.msra.mxu0 %v1221_v5 }
  0x4a   : > { %1119 = vmatprep.subr.bf16.mxu0 %v1223_v6  ;;  %1140 = vmatpush3.bf16.msra.mxu1 %v1222_v7 }
  0x4b   : > { %1141 = vmatprep.subr.bf16.mxu1 %v1224_v8 }
  0x4d   : > { %1120 = vmatpush3.bf16.msra.mxu0 %v1225_v9 }
  0x4e   : > { %1121 = vmatprep.subr.bf16.mxu0 %v1227_v10  ;;  %1142 = vmatpush3.bf16.msra.mxu1 %v1226_v11 }
  0x4f   : > { %1143 = vmatprep.subr.bf16.mxu1 %v1228_v12 }
  0x51   : > { %1122 = vmatpush3.bf16.msra.mxu0 %v1229_v13 }
  0x52   : > { %1123 = vmatprep.subr.bf16.mxu0 %v1231_v14  ;;  %1144 = vmatpush3.bf16.msra.mxu1 %v1230_v15 }
  0x53   : > { %1145 = vmatprep.subr.bf16.mxu1 %v1232_v16 }
  0x55   : > { %1124 = vmatpush3.bf16.msra.mxu0 %v1233_v17 }
  0x56   : > { %1146 = vmatpush3.bf16.msra.mxu1 %v1234_v19 }
  0x58   : > { %869 = vmatmul.mubr.bf16.vlgmr.msra.gmra.mrb[4].mxu0 %v345_v18 }
  0x59   : > { %909 = vmatmul.mubr.bf16.vlgmr.msra.gmra.mrb[4].mxu1 %v361_v20 }
 0x10b   : > { %v1081_v21 = vpop.f32.mrb[0].mxu0 }
 0x10c   : > { %v1082_v22 = vpop.f32.mrb[1].mxu0  ;;  %v1103_v23 = vpop.f32.mrb[0].mxu1 }
 0x10d   : > { %v1083_v24 = vadd.f32 %v1082_v22, %v1081_v21  ;;  %v1084_v25 = vpop.f32.mrb[2].mxu0  ;;  %v1104_v26 = vpop.f32.mrb[1].mxu1 }
 0x10e   : > { %v1085_v27 = vpop.f32.mrb[3].mxu0  ;;  %v1105_v28 = vadd.f32 %v1104_v26, %v1103_v23  ;;  %v1106_v29 = vpop.f32.mrb[2].mxu1 }
 0x10f   : > { %v1107_v30 = vpop.f32.mrb[3].mxu1 }
 0x110   : > { %v831_v31 = vadd.f32 %v1105_v28, %v1083_v24 }
 0x12b   : > { %v1125_v32 = vpop.f32.mrb[4].mxu0 }
 0x12c   : > { %v1126_v33 = vpop.f32.mrb[5].mxu0  ;;  %v1147_v34 = vpop.f32.mrb[4].mxu1 }
 0x12d   : > { %v1127_v35 = vadd.f32 %v1126_v33, %v1125_v32  ;;  %v1128_v36 = vpop.f32.mrb[6].mxu0  ;;  %v1148_v37 = vpop.f32.mrb[5].mxu1 }
 0x12e   : > { %v1129_v38 = vpop.f32.mrb[7].mxu0  ;;  %v1149_v40 = vadd.f32 %v1148_v37, %v1147_v34  ;;  %v1150_v41 = vpop.f32.mrb[6].mxu1 }
 0x12f   : > { %v871_v39 = vadd.f32 %v1127_v35, %v831_v31  ;;  %v1151_v43 = vpop.f32.mrb[7].mxu1  ;;  %921 = sbr.rel (%p1059_p6) target bundleno = 320 (0x140), region = 40 }
 0x131   : > { %v911_v44 = vadd.f32 %v1149_v40, %v871_v39 }
 0x133   : > { %v916_v45 = vadd.f32 %v911_v44, %v184_v42 }
 0x135   : > { %917 = vst [vmem:[#allocation2] sm:$0x3] %v916_v45 }
 0x13c   : > { %v922_v46 = vld [vmem:[#allocation2] sm:$0x3] }
 0x13d   : > { %v930_v48 = vadd.f32 %v1060_v47, %v922_v46 }
 0x13f   : > { %931 = vst [vmem:[#allocation3] sm:$0x3] %v930_v48 }
 0x140 PF: > { %p1157_p7 = scmp.eq.s32.totalorder %s1302_s13, 1  ;;  %s1275_s27 = smov [#allocation3]  }
 0x141   : > { %s939_s28 = sshll.u32 %s1275_s27, 4  ;;  %s940_s28 = int_to_ptr.vmem [resolvable:$true] %s939_s28 }
 0x142   : > { %s1235_s29 = scalar_lea.vmem %s940_s28, 32  ;;  %p1242_p11 = scmp.lt.s32.totalorder %s940_s28, %s940_s28 }
 0x143   : > { %p1236_p8 = scmp.ne.s32.totalorder %s940_s28, %s1235_s29  ;;  %p1243_p12 = scmp.lt.s32.totalorder %s1235_s29, %s1235_s29 }
 0x145   : > { %p1237_p9 = pnand %p1236_p8, %p1157_p7  ;;  %p1244_p13 = por %p1243_p12, %p1242_p11 }
 0x147   : > { %p1238_p10 = pneg %p1237_p9 }
 0x149   : > { %p1245_p0 = pnand %p1244_p13, %p1238_p10 }
 0x14b   : > { %1248 = shalt.err (!%p1245_p0)
}
 0x14c   : > { %s1249_s5 = scalar_lea.hbm %s1435_s3, 32 }
 0x14d   : > { %p1250_p1 = scmp.ne.s32.totalorder %s1435_s3, %s1249_s5  ;;  %p1255_p4 = scmp.lt.u32.totalorder %s1249_s5, %s1435_s3 }
 0x14f   : > { %p1251_p2 = pnand %p1250_p1, %p1157_p7 }
 0x151   : > { %p1252_p3 = pneg %p1251_p2 }
 0x153   : > { %p1257_p5 = pnand %p1255_p4, %p1252_p3 }
 0x155   : > { %1260 = shalt.err (!%p1257_p5)
}
 0x156   : > { %1154 = dma.vmem_to_hbm [thread:$0]  (%p1157_p7), %s940_s28, 32, %s1435_s3, [#allocation4]  }
 0x157   : > { %1266 = dma.done.wait (%p1157_p7), [#allocation4], 32  }
 0x158   : > { %1268 = vsyncadd (%p1157_p7), [#allocation4], 4294967264 }
 0x159 PF: > { %s14_s12 = sadd.s32 1, %s1271_s12  }
 0x15a   : > { %p11_p6 = scmp.ge.s32.totalorder %s14_s12, 4  }
 0x15c   :  { %13 = sbr.rel (!%p11_p6) target bundleno = 1 (0x1), region = 70 }
 0x163   :  { %952 = vsyncpa [#allocation4], 1 }
 0x164   :  { %954 = vsyncpa [#allocation4 + $0x1], 1 }

// kernel: encoder_forward.4
= control target key start
LH: loop header
LB: loop body
LE: loop exit
PB: predicated region body
PF: predicated region fallthrough
CT: control target
= control target key end

     0   :  { %s7458_s27 = smov 0   ;;  %s9015_s0 = inlined_call_operand.vmem [shape: bf16[2,43,512], index: 0, kind: input, shape index: {}]   ;;  %s9016_s1 = inlined_call_operand.vmem [shape: f32[36,1], index: 1, kind: input, shape index: {}]   ;;  %s9017_s2 = inlined_call_operand.vmem [shape: bf16[4,512,128], index: 2, kind: input, shape index: {}]   ;;  %s9018_s3 = inlined_call_operand.vmem [shape: f32[1,128], index: 3, kind: input, shape index: {}]   ;;  %s9019_s4 = inlined_call_operand.vmem [shape: bf16[9,128,128], index: 4, kind: input, shape index: {}]   ;;  %s9020_s5 = inlined_call_operand.vmem [shape: f32[1,128], index: 5, kind: input, shape index: {}]   ;;  %s9021_s6 = inlined_call_operand.vmem [shape: bf16[9,128,128], index: 6, kind: input, shape index: {}]   ;;  %s9022_s7 = inlined_call_operand.vmem [shape: f32[1,128], index: 7, kind: input, shape index: {}]   ;;  %s9023_s8 = inlined_call_operand.vmem [shape: bf16[2,36,128], index: 8, kind: output, shape index: {}]  }
   0x1 LB: > { %s5234_s28 = sadd.s32 4294967295, %s7408_s27   ;;  %p5238_p0 = scmp.ge.s32.totalorder %s7408_s27, 1  ;;  %s7408_s27 = sphi %s7458_s27, %s18_s27  }
   0x2   : > { %p262_p1 = scmp.lt.s32.totalorder %s7408_s27, 3 }
   0x4   : > { %p263_p2 = pnand %p5238_p0, %p262_p1 }
   0x5   : > { %v7064_v0 = vld [vmem:[%s9017_s2 + $0x140] sm:$0xff] (!%p263_p2)   ;;  %v7068_v4 = vld [vmem:[%s9017_s2 + $0x148] sm:$0xff] (!%p263_p2)   ;;  %v7072_v8 = vld [vmem:[%s9017_s2 + $0x150] sm:$0xff] (!%p263_p2)   ;;  %p296_p3 = scmp.lt.s32.totalorder (!%p263_p2), %s5234_s28, 1  ;;  %vm495_vm0 = vsmask.f32 (!%p263_p2), 7424 }
   0x6   : > { %266 = sbr.rel (%p263_p2) target bundleno = 1146 (0x47a), region = 52  ;;  %v7065_v1 = vld [vmem:[%s9017_s2 + $0x1c0] sm:$0xff] (!%p263_p2)   ;;  %6075 = vmatprep.subr.bf16.mxu0 (!%p263_p2), %v7064_v0  ;;  %v7069_v5 = vld [vmem:[%s9017_s2 + $0x1c8] sm:$0xff] (!%p263_p2)   ;;  %v7073_v9 = vld [vmem:[%s9017_s2 + $0x1d0] sm:$0xff] (!%p263_p2)   ;;  %v7410_v45 = vmov (!%p263_p2), 0   ;;  %vm1355_vm1 = vcmask (!%p263_p2), 1044480  }
   0x7   : > { %v7066_v2 = vld [vmem:[%s9017_s2 + $0x100] sm:$0xff] (!%p263_p2)   ;;  %6109 = vmatprep.subr.bf16.mxu1 (!%p263_p2), %v7065_v1  ;;  %v7070_v6 = vld [vmem:[%s9017_s2 + $0x108] sm:$0xff] (!%p263_p2)   ;;  %v7074_v10 = vld [vmem:[%s9017_s2 + $0x110] sm:$0xff] (!%p263_p2)   ;;  %7062 = vset.pattern.permute.xlu0 (!%p263_p2), %v7410_v45  ;;  %2250 = vst [vmem:[#allocation2] sm:$0xf] (!%p263_p2), %v7410_v45  ;;  %vm7412_vm3 = vmmov (!%p263_p2), 0  }
   0x8   : > { %v7067_v3 = vld [vmem:[%s9017_s2 + $0x180] sm:$0xff] (!%p263_p2)   ;;  %6076 = vmatpush3.bf16.msra.mxu0 (!%p263_p2), %v7066_v2  ;;  %v7071_v7 = vld [vmem:[%s9017_s2 + $0x188] sm:$0xff] (!%p263_p2)   ;;  %v7075_v11 = vld [vmem:[%s9017_s2 + $0x190] sm:$0xff] (!%p263_p2)   ;;  %2251 = vst [vmem:[#allocation2 + $0x4] sm:$0xf] (!%p263_p2), %v7410_v45  ;;  %7063 = vset.pattern.permute.xlu1 (!%p263_p2), %v7410_v45  ;;  %vm2328_vm4 = vcmask (!%p263_p2), 1043459  }
   0x9   : > { %6110 = vmatpush3.bf16.msra.mxu1 (!%p263_p2), %v7067_v3  ;;  %6077 = vmatprep.subr.bf16.mxu0 (!%p263_p2), %v7068_v4  ;;  %v7076_v12 = vld [vmem:[%s9017_s2 + $0x158] sm:$0xff] (!%p263_p2)   ;;  %v7080_v16 = vld [vmem:[%s9017_s2 + $0x160] sm:$0xff] (!%p263_p2)   ;;  %v7084_v20 = vld [vmem:[%s9017_s2 + $0x168] sm:$0xff] (!%p263_p2)   ;;  %2252 = vst [vmem:[#allocation2 + $0x8] sm:$0xf] (!%p263_p2), %v7410_v45  ;;  %vm2338_vm10 = vcmask (!%p263_p2), 1041408  }
   0xa   : > { %6111 = vmatprep.subr.bf16.mxu1 (!%p263_p2), %v7069_v5  ;;  %v7077_v13 = vld [vmem:[%s9017_s2 + $0x1d8] sm:$0xff] (!%p263_p2)   ;;  %v7081_v17 = vld [vmem:[%s9017_s2 + $0x1e0] sm:$0xff] (!%p263_p2)   ;;  %v7085_v21 = vld [vmem:[%s9017_s2 + $0x1e8] sm:$0xff] (!%p263_p2)   ;;  %2253 = vst [vmem:[#allocation2 + $0xc] sm:$0xf] (!%p263_p2), %v7410_v45  ;;  %vm2657_vm13 = vcmask (!%p263_p2), 1046528  }
   0xb   : > { %v7078_v14 = vld [vmem:[%s9017_s2 + $0x118] sm:$0xff] (!%p263_p2)   ;;  %v7082_v18 = vld [vmem:[%s9017_s2 + $0x120] sm:$0xff] (!%p263_p2)   ;;  %v7086_v22 = vld [vmem:[%s9017_s2 + $0x128] sm:$0xff] (!%p263_p2)   ;;  %2254 = vst [vmem:[#allocation2 + $0x10] sm:$0xf] (!%p263_p2), %v7410_v45  ;;  %vm3246_vm15 = vcmask (!%p263_p2), 1045504  }
   0xc   : > { %6078 = vmatpush3.bf16.msra.mxu0 (!%p263_p2), %v7070_v6  ;;  %v7079_v15 = vld [vmem:[%s9017_s2 + $0x198] sm:$0xff] (!%p263_p2)   ;;  %v7083_v19 = vld [vmem:[%s9017_s2 + $0x1a0] sm:$0xff] (!%p263_p2)   ;;  %v7087_v23 = vld [vmem:[%s9017_s2 + $0x1a8] sm:$0xff] (!%p263_p2)   ;;  %2255 = vst [vmem:[#allocation2 + $0x14] sm:$0xf] (!%p263_p2), %v7410_v45 }
   0xd   : > { %6112 = vmatpush3.bf16.msra.mxu1 %v7071_v7  ;;  %6079 = vmatprep.subr.bf16.mxu0 %v7072_v8  ;;  %s9031_s28 = smov (!%p296_p3, %s5234_s28), 1  ;;  %v7088_v24 = vld [vmem:[%s9017_s2 + $0x170] sm:$0xff]   ;;  %v7092_v28 = vld [vmem:[%s9017_s2 + $0x178] sm:$0xff]   ;;  %v7106_v44 = vld [vmem:[%s9017_s2 + $0x40] sm:$0xff]   ;;  %2256 = vst [vmem:[#allocation2 + $0x18] sm:$0x1] %v7410_v45 }
   0xe   : > { %6113 = vmatprep.subr.bf16.mxu1 %v7073_v9  ;;  %v7089_v25 = vld [vmem:[%s9017_s2 + $0x1f0] sm:$0xff]   ;;  %s7049_s19 = smul.u32 96, %s9031_s28  ;;  %v7093_v29 = vld [vmem:[%s9017_s2 + $0x1f8] sm:$0xff]   ;;  %3704 = vst [vmem:[#allocation3] sm:$0xf] %v7410_v45  ;;  %v7107_v63 = vld [vmem:[%s9017_s2 + $0xc0] sm:$0xff]  }
   0xf   : > { %v7090_v26 = vld [vmem:[%s9017_s2 + $0x130] sm:$0xff]   ;;  %v7094_v30 = vld [vmem:[%s9017_s2 + $0x138] sm:$0xff]   ;;  %3705 = vst [vmem:[#allocation3 + $0x4] sm:$0xf] %v7410_v45  ;;  %3706 = vst [vmem:[#allocation3 + $0x8] sm:$0xf] %v7410_v45 }
  0x10   : > { %6080 = vmatpush3.bf16.msra.mxu0 %v7074_v10  ;;  %v7091_v27 = vld [vmem:[%s9017_s2 + $0x1b0] sm:$0xff]   ;;  %s7566_s10 = scalar_lea.vmem %s9015_s0, %s7049_s19  ;;  %v7095_v31 = vld [vmem:[%s9017_s2 + $0x1b8] sm:$0xff]   ;;  %3707 = vst [vmem:[#allocation3 + $0xc] sm:$0xf] %v7410_v45  ;;  %3708 = vst [vmem:[#allocation3 + $0x10] sm:$0xf] %v7410_v45 }
  0x11   : > { %6114 = vmatpush3.bf16.msra.mxu1 %v7075_v11  ;;  %6081 = vmatprep.subr.bf16.mxu0 %v7076_v12  ;;  %v312_v32 = vld [vmem:[%s7566_s10] sm:$0xff]  ;;  %v7576_v33 = vld [vmem:[%s7566_s10 + $0x10] sm:$0xff]  ;;  %v313_v36 = vld [vmem:[%s7566_s10 + $0x8] sm:$0xff]  ;;  %3709 = vst [vmem:[#allocation3 + $0x14] sm:$0xf] %v7410_v45 }
  0x12   : > { %6115 = vmatprep.subr.bf16.mxu1 %v7077_v13  ;;  %v7579_v34 = vcombine.high %v312_v32, %v7576_v33  ;;  %v7582_v35 = vld [vmem:[%s7566_s10 + $0x24] ss:$16 sps:$4 sm:$0xff]   ;;  %v7586_v37 = vcombine.low %v312_v32, %v7576_v33  ;;  %v7589_v38 = vld [vmem:[%s7566_s10 + $0x18] sm:$0xff]  ;;  %3710 = vst [vmem:[#allocation3 + $0x18] sm:$0x1] %v7410_v45  ;;  %v7110_v12 = vld [vmem:[%s9017_s2 + $0x48] sm:$0xff]  }
  0x13   : > { %v516_v41 = vshll.u32 %v7582_v35, 16  ;;  %v7595_v42 = vcombine.high %v313_v36, %v7589_v38  ;;  %v7598_v43 = vld [vmem:[%s7566_s10 + $0x2c] ss:$16 sps:$4 sm:$0xff]   ;;  %v7604_v46 = vld [vmem:[%s7566_s10 + $0x20] ss:$16 sps:$4 sm:$0xff]   ;;  %v7609_v49 = vcombine.low %v313_v36, %v7589_v38 }
  0x14   : > { %6082 = vmatpush3.bf16.msra.mxu0 %v7078_v14  ;;  %v509_v39 = vshrl.u32 %v7579_v34, 16  ;;  %v511_v40 = vshll.u32 %v7579_v34, 16  ;;  %v497_v47 = vshrl.u32 %v7586_v37, 16  ;;  %v499_v48 = vshll.u32 %v7586_v37, 16  ;;  %v7612_v50 = vld [vmem:[%s7566_s10 + $0x28] ss:$16 sps:$4 sm:$0xff]  }
  0x15   : > { %6116 = vmatpush3.bf16.msra.mxu1 %v7079_v15  ;;  %6083 = vmatprep.subr.bf16.mxu0 %v7080_v16  ;;  %v518_v52 = vrot.slane %v516_v41, 1  ;;  %v533_v53 = vshrl.u32 %v7595_v42, 16  ;;  %v535_v54 = vshll.u32 %v7595_v42, 16  ;;  %v540_v55 = vshll.u32 %v7598_v43, 16  ;;  %v7108_v7 = vld [vmem:[%s9017_s2] sm:$0xff]   ;;  %v7111_v13 = vld [vmem:[%s9017_s2 + $0xc8] sm:$0xff]  }
  0x16   : > { %6117 = vmatprep.subr.bf16.mxu1 %v7081_v17  ;;  %v513_v51 = vrot.slane %v511_v40, 1  ;;  %v501_v56 = vrot.slane %v499_v48, 1  ;;  %v504_v57 = vshll.u32 %v7604_v46, 16  ;;  %v521_v58 = vshrl.u32 %v7609_v49, 16  ;;  %v7109_v8 = vld [vmem:[%s9017_s2 + $0x80] sm:$0xff]   ;;  %v7112_v15 = vld [vmem:[%s9017_s2 + $0x8] sm:$0xff]  }
  0x17   : > { %v537_v60 = vrot.slane %v535_v54, 1  ;;  %v523_v61 = vshll.u32 %v7609_v49, 16  ;;  %v528_v62 = vshll.u32 %v7612_v50, 16  ;;  %v542_v0 = vrot.slane %v540_v55, 1  ;;  %v7113_v16 = vld [vmem:[%s9017_s2 + $0x88] sm:$0xff]   ;;  %v7114_v17 = vld [vmem:[%s9017_s2 + $0x50] sm:$0xff]  }
  0x18   : > { %6084 = vmatpush3.bf16.msra.mxu0 %v7082_v18  ;;  %v514_v59 = vor.u32 %v513_v51, %v509_v39  ;;  %v502_v1 = vor.u32 %v501_v56, %v497_v47  ;;  %v506_v2 = vrot.slane %v504_v57, 1  ;;  %v552_v18 = vshrl.u32 %v7582_v35, 16  ;;  %v7122_v39 = vld [vmem:[%s9017_s2 + $0x18] sm:$0xff]  }
  0x19   : > { %6118 = vmatpush3.bf16.msra.mxu1 %v7083_v19  ;;  %6085 = vmatprep.subr.bf16.mxu0 %v7084_v20  ;;  %v538_v4 = vor.u32 %v537_v60, %v533_v53  ;;  %v525_v5 = vrot.slane %v523_v61, 1  ;;  %v530_v6 = vrot.slane %v528_v62, 1  ;;  %v7115_v19 = vld [vmem:[%s9017_s2 + $0xd0] sm:$0xff]   ;;  %v568_v20 = vshrl.u32 %v7598_v43, 16  ;;  %v7123_v48 = vld [vmem:[%s9017_s2 + $0x98] sm:$0xff]   ;;  %v7126_v53 = vld [vmem:[%s9017_s2 + $0x60] sm:$0xff]  }
  0x1a   : > { %6119 = vmatprep.subr.bf16.mxu1 %v7085_v21  ;;  %v519_v3 = vsel %vm495_vm0, %v514_v59, %v518_v52  ;;  %v507_v9 = vsel %vm495_vm0, %v502_v1, %v506_v2  ;;  %v7116_v21 = vld [vmem:[%s9017_s2 + $0x10] sm:$0xff]   ;;  %v554_v32 = vor.u32 %v552_v18, %v518_v52  ;;  %v7127_v61 = vld [vmem:[%s9017_s2 + $0xe0] sm:$0xff]   ;;  %vm1774_vm2 = vsmask.f32 4352 }
  0x1b   : > { %824 = vmatprep.mubr.bf16.mxu0 %v519_v3  ;;  %v543_v10 = vsel %vm495_vm0, %v538_v4, %v542_v0  ;;  %v526_v11 = vor.u32 %v525_v5, %v521_v58  ;;  %v570_v47 = vor.u32 %v568_v20, %v542_v0  ;;  %v7129_v4 = vld [vmem:[%s9017_s2 + $0xa0] sm:$0xff]   ;;  %vm2329_vm5 = vsmask.f32 7950 }
  0x1c   : > { %6086 = vmatpush3.bf16.msra.mxu0 %v7086_v22  ;;  %880 = vmatprep.mubr.bf16.mxu1 %v543_v10  ;;  %v544_v22 = vshrl.u32 %v7604_v46, 16  ;;  %v7131_v10 = vld [vmem:[%s9017_s2 + $0xe8] sm:$0xff]   ;;  %vm8155_vm6 = vmand %vm2328_vm4, %vm2329_vm5  ;;  %vm2270_vm7 = vsmask.f32 3328  ;;  %vm2271_vm8 = vsmask.f32 7440 }
  0x1d   : > { %6120 = vmatpush3.bf16.msra.mxu1 %v7087_v23  ;;  %6087 = vmatprep.subr.bf16.mxu0 %v7088_v24  ;;  %v531_v14 = vsel %vm495_vm0, %v526_v11, %v530_v6  ;;  %v7117_v23 = vld [vmem:[%s9017_s2 + $0x90] sm:$0xff]   ;;  %v560_v24 = vshrl.u32 %v7612_v50, 16  ;;  %vm8166_vm9 = vmor %vm2270_vm7, %vm2271_vm8  ;;  %vm2339_vm11 = vsmask.f32 1280  ;;  %vm3402_vm14 = vsmask.f32 5376 }
  0x1e   : > { %6121 = vmatprep.subr.bf16.mxu1 %v7089_v25  ;;  %v7118_v25 = vld [vmem:[%s9017_s2 + $0x58] sm:$0xff]   ;;  %v546_v51 = vor.u32 %v544_v22, %v506_v2  ;;  %vm8205_vm12 = vmand %vm2338_vm10, %vm2339_vm11 }
  0x20   : > { %6088 = vmatpush3.bf16.msra.mxu0 %v7090_v26  ;;  %v1803_v26 = vrot.slane %v552_v18, 3  ;;  %v7134_v18 = vld [vmem:[%s9017_s2 + $0x70] sm:$0xff]  }
  0x21   : > { %6122 = vmatpush3.bf16.msra.mxu1 %v7091_v27  ;;  %6089 = vmatprep.subr.bf16.mxu0 %v7092_v28  ;;  %v7119_v27 = vld [vmem:[%s9017_s2 + $0xd8] sm:$0xff]   ;;  %v386_v28 = vld [vmem:[%s7566_s10 + $0x40] sm:$0x77] }
  0x22   : > { %6123 = vmatprep.subr.bf16.mxu1 %v7093_v29  ;;  %v5314_v29 = vcombine.high %v386_v28, %v386_v28 }
  0x24   : > { %6090 = vmatpush3.bf16.msra.mxu0 %v7094_v30  ;;  %v387_v30 = vld [vmem:[%s7566_s10 + $0x48] sm:$0x77]  ;;  %v556_v45 = vshll.u32 %v5314_v29, 16  ;;  %v579_v5 = vshrl.u32 %v5314_v29, 16  ;;  %v1820_v29 = vrot.slane %v560_v24, 3 }
  0x25   : > { %6124 = vmatpush3.bf16.msra.mxu1 %v7095_v31  ;;  %6143 = vmatprep.subr.bf16.mxu0 %v7106_v44  ;;  %v5313_v31 = vcombine.low %v386_v28, %v386_v28  ;;  %v5316_v36 = vcombine.high %v387_v30, %v387_v30  ;;  %v5315_v40 = vcombine.low %v387_v30, %v387_v30  ;;  %v1806_v44 = vrot.slane %v516_v41, 4 }
  0x26   : > { %6177 = vmatprep.subr.bf16.mxu1 %v7107_v63  ;;  %v562_v41 = vor.u32 %v560_v24, %v530_v6  ;;  %v558_v59 = vrot.slane %v556_v45, 1  ;;  %v7128_v63 = vld [vmem:[%s9017_s2 + $0x20] sm:$0xff]   ;;  %v1789_v30 = vrot.slane %v504_v57, 4  ;;  %v7141_v24 = vld [vmem:[%s9017_s2 + $0xb8] sm:$0xff]   ;;  %v7148_v45 = vld [vmem:[%s9017_s2 + $0x208] sm:$0xff]  }
  0x27   : > { %825 = vmatmul.mubr.bf16.vlgmr.msra.gmra.mrb[0].mxu0 %v507_v9  ;;  %v548_v52 = vshll.u32 %v5313_v31, 16  ;;  %v572_v54 = vshll.u32 %v5316_v36, 16  ;;  %v564_v56 = vshll.u32 %v5315_v40, 16  ;;  %v7695_v58 = vor.u32 %v1806_v44, %v1803_v26  ;;  %v7142_v57 = vld [vmem:[%s9017_s2 + $0x240] sm:$0xff]  }
  0x28   : > { %6144 = vmatpush3.bf16.msra.mxu0 %v7108_v7  ;;  %881 = vmatmul.mubr.bf16.vlgmr.msra.gmra.mrb[0].mxu1 %v531_v14  ;;  %v559_v2 = vsel %vm495_vm0, %v554_v32, %v558_v59  ;;  %v585_v9 = vshrl.u32 %v5316_v36, 16  ;;  %v581_v11 = vor.u32 %v579_v5, %v558_v59  ;;  %v7132_v14 = vld [vmem:[%s9017_s2 + $0x28] sm:$0xff]   ;;  %v1840_v26 = vrot.slane %v540_v55, 4  ;;  %v7139_v55 = vld [vmem:[%s9017_s2 + $0xf8] sm:$0xff]  }
  0x29   : > { %6145 = vmatprep.subr.bf16.mxu0 %v7110_v12  ;;  %6178 = vmatpush3.bf16.msra.mxu1 %v7109_v8  ;;  %v550_v60 = vrot.slane %v548_v52, 1  ;;  %v574_v0 = vrot.slane %v572_v54, 1  ;;  %v566_v1 = vrot.slane %v564_v56, 1  ;;  %v7130_v8 = vld [vmem:[%s9017_s2 + $0x68] sm:$0xff]   ;;  %v576_v12 = vshrl.u32 %v5313_v31, 16  ;;  %v7140_v31 = vld [vmem:[%s9017_s2 + $0x38] sm:$0xff]  }
  0x2a   : > { %6179 = vmatprep.subr.bf16.mxu1 %v7111_v13  ;;  %832 = vmatprep.mubr.bf16.mxu0 %v559_v2  ;;  %v1823_v36 = vrot.slane %v528_v62, 4  ;;  %v7147_v62 = vld [vmem:[%s9017_s2 + $0x2c8] sm:$0xff]   ;;  %v7154_v52 = vld [vmem:[%s9017_s2 + $0x258] sm:$0xff]   ;;  %v320_v56 = vld [vmem:[%s7566_s10 + $0x40] sm:$0x33] }
  0x2b   : > { %v551_v3 = vsel %vm495_vm0, %v546_v51, %v550_v60  ;;  %v575_v6 = vsel %vm495_vm0, %v570_v47, %v574_v0  ;;  %v567_v7 = vsel %vm495_vm0, %v562_v41, %v566_v1  ;;  %v587_v13 = vor.u32 %v585_v9, %v574_v0  ;;  %v7149_v47 = vld [vmem:[%s9017_s2 + $0x288] sm:$0xff]   ;;  %v7153_v51 = vld [vmem:[%s9017_s2 + $0x290] sm:$0xff]   ;;  %v7156_v54 = vld [vmem:[%s9017_s2 + $0x218] sm:$0xff]  }
  0x2c   : > { %6146 = vmatpush3.bf16.msra.mxu0 %v7112_v15  ;;  %888 = vmatprep.mubr.bf16.mxu1 %v575_v6  ;;  %v582_v15 = vshrl.u32 %v5315_v40, 16  ;;  %v7144_v40 = vld [vmem:[%s9017_s2 + $0x200] sm:$0xff]   ;;  %v7773_v44 = vor.u32 %v1823_v36, %v1820_v29  ;;  %v7157_v41 = vld [vmem:[%s9017_s2 + $0x298] sm:$0xff]   ;;  %v5350_v59 = vcombine.high %v320_v56, %v320_v56  ;;  %v321_v0 = vld [vmem:[%s7566_s10 + $0x48] sm:$0x33] }
  0x2d   : > { %6147 = vmatprep.subr.bf16.mxu0 %v7114_v17  ;;  %6180 = vmatpush3.bf16.msra.mxu1 %v7113_v16  ;;  %v7133_v16 = vld [vmem:[%s9017_s2 + $0xa8] sm:$0xff]   ;;  %v1837_v17 = vrot.slane %v568_v20, 3  ;;  %v7136_v20 = vld [vmem:[%s9017_s2 + $0x30] sm:$0xff]   ;;  %v7163_v2 = vld [vmem:[%s9017_s2 + $0x220] sm:$0xff]  }
  0x2e   : > { %6181 = vmatprep.subr.bf16.mxu1 %v7115_v19  ;;  %v578_v19 = vor.u32 %v576_v12, %v550_v60  ;;  %v5349_v60 = vcombine.low %v320_v56, %v320_v56  ;;  %v7166_v5 = vld [vmem:[%s9017_s2 + $0x268] sm:$0xff]   ;;  %v7170_v9 = vld [vmem:[%s9017_s2 + $0x270] sm:$0xff]   ;;  %v7182_v29 = vld [vmem:[%s9017_s2 + $0x340] sm:$0xff]  }
  0x2f   : > { %833 = vmatmul.mubr.bf16.gmra.mrb[4].mxu0 %v551_v3  ;;  %v7743_v28 = vor.u32 %v1840_v26, %v1837_v17  ;;  %v5351_v3 = vcombine.low %v321_v0, %v321_v0  ;;  %v7167_v6 = vld [vmem:[%s9017_s2 + $0x2e8] sm:$0xff]   ;;  %v7173_v12 = vld [vmem:[%s9017_s2 + $0x2b0] sm:$0xff]   ;;  %v1366_v17 = vrot.slane %v7598_v43, 3  ;;  %v7185_v36 = vld [vmem:[%s9017_s2 + $0x380] sm:$0xff]  }
  0x30   : > { %6148 = vmatpush3.bf16.msra.mxu0 %v7116_v21  ;;  %889 = vmatmul.mubr.bf16.gmra.mrb[4].mxu1 %v567_v7  ;;  %v7135_v21 = vld [vmem:[%s9017_s2 + $0xf0] sm:$0xff]   ;;  %v7168_v7 = vld [vmem:[%s9017_s2 + $0x228] sm:$0xff]  }
  0x31   : > { %6149 = vmatprep.subr.bf16.mxu0 %v7118_v25  ;;  %6182 = vmatpush3.bf16.msra.mxu1 %v7117_v23  ;;  %v1786_v23 = vrot.slane %v544_v22, 3  ;;  %v584_v25 = vor.u32 %v582_v15, %v566_v1  ;;  %v7138_v22 = vld [vmem:[%s9017_s2 + $0x78] sm:$0xff]   ;;  %v5352_v1 = vcombine.high %v321_v0, %v321_v0  ;;  %v1360_v15 = vrot.slane %v7582_v35, 3 }
  0x32   : > { %6183 = vmatprep.subr.bf16.mxu1 %v7119_v27  ;;  %840 = vmatprep.mubr.bf16.mxu0 %v581_v11  ;;  %v7137_v27 = vld [vmem:[%s9017_s2 + $0xb0] sm:$0xff]  }
  0x33   : > { %896 = vmatprep.mubr.bf16.mxu1 %v587_v13  ;;  %v7758_v32 = vor.u32 %v1789_v30, %v1786_v23  ;;  %v7172_v11 = vld [vmem:[%s9017_s2 + $0x230] sm:$0xff]   ;;  %v7174_v13 = vld [vmem:[%s9017_s2 + $0x278] sm:$0xff]  }
  0x34   : > { %6150 = vmatpush3.bf16.msra.mxu0 %v7122_v39  ;;  %v7143_v39 = vld [vmem:[%s9017_s2 + $0x2c0] sm:$0xff]  }
  0x35   : > { %6151 = vmatprep.subr.bf16.mxu0 %v7126_v53  ;;  %6184 = vmatpush3.bf16.msra.mxu1 %v7123_v48  ;;  %v7152_v48 = vld [vmem:[%s9017_s2 + $0x210] sm:$0xff]   ;;  %v7155_v53 = vld [vmem:[%s9017_s2 + $0x2d8] sm:$0xff]  }
  0x36   : > { %6185 = vmatprep.subr.bf16.mxu1 %v7127_v61  ;;  %v7160_v61 = vld [vmem:[%s9017_s2 + $0x260] sm:$0xff]  }
  0x37   : > { %841 = vmatmul.mubr.bf16.gmra.mrb[8].mxu0 %v578_v19  ;;  %v1230_v19 = vld [vmem:[%s7566_s10] sm:$0x88] }
  0x38   : > { %6152 = vmatpush3.bf16.msra.mxu0 %v7128_v63  ;;  %897 = vmatmul.mubr.bf16.gmra.mrb[8].mxu1 %v584_v25  ;;  %v7161_v63 = vld [vmem:[%s9017_s2 + $0x2e0] sm:$0xff]   ;;  %v7875_v23 = vcombine.low %v1230_v19, %v7576_v33  ;;  %v5450_v25 = vcombine.high %v1230_v19, %v7576_v33 }
  0x39   : > { %6186 = vmatpush3.bf16.msra.mxu1 %v7129_v4  ;;  %6153 = vmatprep.subr.bf16.mxu0 %v7130_v8  ;;  %v7164_v4 = vld [vmem:[%s9017_s2 + $0x2a0] sm:$0xff]   ;;  %v7169_v8 = vld [vmem:[%s9017_s2 + $0x2a8] sm:$0xff]  }
  0x3a   : > { %6187 = vmatprep.subr.bf16.mxu1 %v7131_v10  ;;  %1150 = vmatprep.mubr.bf16.mxu0 %v7579_v34  ;;  %v7145_v34 = vld [vmem:[%s9017_s2 + $0x280] sm:$0xff]   ;;  %v7171_v10 = vld [vmem:[%s9017_s2 + $0x2f0] sm:$0xff]   ;;  %v1356_v30 = vrot.slane %v7875_v23, 3 }
  0x3b   : > { %1206 = vmatprep.mubr.bf16.mxu1 %v7595_v42  ;;  %v7146_v42 = vld [vmem:[%s9017_s2 + $0x248] sm:$0xff]   ;;  %v7183_v33 = vld [vmem:[%s9017_s2 + $0x3c0] sm:$0xff]  }
  0x3c   : > { %6154 = vmatpush3.bf16.msra.mxu0 %v7132_v14  ;;  %v7175_v14 = vld [vmem:[%s9017_s2 + $0x2f8] sm:$0xff]   ;;  %v7204_v19 = vld [vmem:[%s9017_s2 + $0x320] sm:$0xff]  }
  0x3d   : > { %6188 = vmatpush3.bf16.msra.mxu1 %v7133_v16  ;;  %6155 = vmatprep.subr.bf16.mxu0 %v7134_v18  ;;  %v7176_v16 = vld [vmem:[%s9017_s2 + $0x238] sm:$0xff]  }
  0x3e   : > { %6189 = vmatprep.subr.bf16.mxu1 %v7135_v21  ;;  %v7177_v18 = vld [vmem:[%s9017_s2 + $0x2b8] sm:$0xff]   ;;  %v1357_v21 = vrot.slane %v7604_v46, 3 }
  0x40   : > { %6156 = vmatpush3.bf16.msra.mxu0 %v7136_v20  ;;  %v1231_v20 = vld [vmem:[%s7566_s10 + $0x8] sm:$0x88] }
  0x41   : > { %6190 = vmatpush3.bf16.msra.mxu1 %v7137_v27  ;;  %6157 = vmatprep.subr.bf16.mxu0 %v7138_v22  ;;  %v7880_v26 = vcombine.low %v1231_v20, %v7589_v38  ;;  %v7883_v27 = vcombine.high %v1231_v20, %v7589_v38  ;;  %v1363_v22 = vrot.slane %v7612_v50, 3  ;;  %v1779_v20 = vshll.u32 %v7875_v23, 16 }
  0x42   : > { %6191 = vmatprep.subr.bf16.mxu1 %v7139_v55  ;;  %v1359_v55 = vrot.slane %v5450_v25, 3 }
  0x43   : > { %v1365_v38 = vrot.slane %v7883_v27, 3  ;;  %v1830_v0 = vshll.u32 %v7883_v27, 16 }
  0x44   : > { %6158 = vmatpush3.bf16.msra.mxu0 %v7140_v31  ;;  %v7184_v31 = vld [vmem:[%s9017_s2 + $0x300] sm:$0xff]  }
  0x45   : > { %6192 = vmatpush3.bf16.msra.mxu1 %v7141_v24  ;;  %6211 = vmatprep.subr.bf16.mxu0 %v7142_v57  ;;  %v1361_v24 = vsel %vm1355_vm1, %v1359_v55, %v1360_v15  ;;  %v1358_v57 = vsel %vm1355_vm1, %v1356_v30, %v1357_v21 }
  0x46   : > { %6245 = vmatprep.subr.bf16.mxu1 %v7143_v39  ;;  %v1793_v39 = vshrl.u32 %v5450_v25, 16 }
  0x47   : > { %1151 = vmatmul.mubr.bf16.vlgmr.msra.gmra.mrb[12].mxu0 %v7586_v37  ;;  %v7150_v37 = vld [vmem:[%s9017_s2 + $0x250] sm:$0xff]  }
  0x48   : > { %1207 = vmatmul.mubr.bf16.vlgmr.msra.gmra.mrb[12].mxu1 %v7609_v49  ;;  %6212 = vmatpush3.bf16.msra.mxu0 %v7144_v40  ;;  %v7151_v49 = vld [vmem:[%s9017_s2 + $0x2d0] sm:$0xff]   ;;  %v1367_v40 = vsel %vm1355_vm1, %v1365_v38, %v1366_v17  ;;  %v7209_v38 = vld [vmem:[%s9017_s2 + $0x3a8] sm:$0xff]  }
  0x49   : > { %6246 = vmatpush3.bf16.msra.mxu1 %v7145_v34  ;;  %6213 = vmatprep.subr.bf16.mxu0 %v7146_v42  ;;  %v7186_v42 = vld [vmem:[%s9017_s2 + $0x348] sm:$0xff]  }
  0x4a   : > { %6247 = vmatprep.subr.bf16.mxu1 %v7147_v62  ;;  %1158 = vmatprep.mubr.bf16.mxu0 %v7582_v35  ;;  %v7187_v62 = vld [vmem:[%s9017_s2 + $0x3c8] sm:$0xff]   ;;  %v7198_v35 = vld [vmem:[%s9017_s2 + $0x358] sm:$0xff]  }
  0x4b   : > { %1214 = vmatprep.mubr.bf16.mxu1 %v7598_v43  ;;  %v7199_v43 = vld [vmem:[%s9017_s2 + $0x3d8] sm:$0xff]  }
  0x4c   : > { %6214 = vmatpush3.bf16.msra.mxu0 %v7148_v45  ;;  %v7188_v45 = vld [vmem:[%s9017_s2 + $0x308] sm:$0xff]  }
  0x4d   : > { %6248 = vmatpush3.bf16.msra.mxu1 %v7149_v47  ;;  %6215 = vmatprep.subr.bf16.mxu0 %v7150_v37  ;;  %v7189_v47 = vld [vmem:[%s9017_s2 + $0x388] sm:$0xff]   ;;  %v7924_v37 = vld [vmem:[%s7566_s10 + $0x40] sm:$0xff] }
  0x4e   : > { %6249 = vmatprep.subr.bf16.mxu1 %v7151_v49  ;;  %v7926_v49 = vrot.slane %v1793_v39, 3  ;;  %v7212_v39 = vld [vmem:[%s9017_s2 + $0x330] sm:$0xff]  }
  0x4f   : > { %1159 = vmatmul.mubr.bf16.gmra.mrb[16].mxu0 %v7604_v46  ;;  %v1832_v46 = vrot.slane %v1830_v0, 4 }
  0x50   : > { %6216 = vmatpush3.bf16.msra.mxu0 %v7152_v48  ;;  %1215 = vmatmul.mubr.bf16.gmra.mrb[16].mxu1 %v7612_v50  ;;  %v1362_v50 = vrot.slane %v7880_v26, 3  ;;  %v1796_v48 = vshll.u32 %v5450_v25, 16  ;;  %v7205_v25 = vld [vmem:[%s9017_s2 + $0x3a0] sm:$0xff]  }
  0x51   : > { %6250 = vmatpush3.bf16.msra.mxu1 %v7153_v51  ;;  %6217 = vmatprep.subr.bf16.mxu0 %v7154_v52  ;;  %v1240_v51 = vld [vmem:[%s7566_s10 + $0x50] sm:$0x11]  ;;  %v7930_v52 = vld [vmem:[%s7566_s10 + $0x48] sm:$0xff] }
  0x52   : > { %6251 = vmatprep.subr.bf16.mxu1 %v7155_v53  ;;  %1166 = vmatprep.mubr.bf16.mxu0 %v5350_v59  ;;  %v1364_v34 = vsel %vm1355_vm1, %v1362_v50, %v1363_v22  ;;  %v1241_v53 = vld [vmem:[%s7566_s10 + $0x58] sm:$0x11]  ;;  %v5457_v59 = vcombine.low %v7924_v37, %v1240_v51  ;;  %v1781_v50 = vrot.slane %v1779_v20, 4  ;;  %v7411_v20 = vmov 0.0  }
  0x53   : > { %1222 = vmatprep.mubr.bf16.mxu1 %v5352_v1  ;;  %v5460_v56 = vcombine.high %v7930_v52, %v1241_v53 }
  0x54   : > { %6218 = vmatpush3.bf16.msra.mxu0 %v7156_v54  ;;  %v1827_v54 = vshrl.u32 %v7883_v27, 16  ;;  %v7206_v27 = vld [vmem:[%s9017_s2 + $0x368] sm:$0xff]  }
  0x55   : > { %6252 = vmatpush3.bf16.msra.mxu1 %v7157_v41  ;;  %6219 = vmatprep.subr.bf16.mxu0 %v7160_v61  ;;  %v5458_v41 = vcombine.high %v7924_v37, %v1240_v51  ;;  %v7194_v61 = vld [vmem:[%s9017_s2 + $0x350] sm:$0xff]  }
  0x56   : > { %6253 = vmatprep.subr.bf16.mxu1 %v7161_v63  ;;  %v7195_v63 = vld [vmem:[%s9017_s2 + $0x3d0] sm:$0xff]  }
  0x57   : > { %1167 = vmatmul.mubr.bf16.gmra.mrb[20].mxu0 %v5349_v60  ;;  %v5459_v60 = vcombine.low %v7930_v52, %v1241_v53  ;;  %v1370_v1 = vrot.slane %v5458_v41, 3  ;;  %v1698_v53 = vld [vmem:[%s7566_s10 + $0x58] sm:$0x33]  ;;  %v307_v41 = vld [vmem:[%s9016_s1] sm:$0xff] }
  0x58   : > { %6220 = vmatpush3.bf16.msra.mxu0 %v7163_v2  ;;  %1223 = vmatmul.mubr.bf16.gmra.mrb[20].mxu1 %v5351_v3  ;;  %v1374_v2 = vrot.slane %v5460_v56, 3  ;;  %v1368_v3 = vrot.slane %v5457_v59, 3 }
  0x59   : > { %6254 = vmatpush3.bf16.msra.mxu1 %v7164_v4  ;;  %6221 = vmatprep.subr.bf16.mxu0 %v7166_v5  ;;  %v1372_v4 = vrot.slane %v5459_v60, 3  ;;  %v7196_v5 = vld [vmem:[%s9017_s2 + $0x310] sm:$0xff]   ;;  %v5560_v60 = vcombine.high %v7930_v52, %v1698_v53 }
  0x5a   : > { %6255 = vmatprep.subr.bf16.mxu1 %v7167_v6  ;;  %1612 = vmatprep.mubr.bf16.mxu0 %v1361_v24  ;;  %v1798_v6 = vrot.slane %v1796_v48, 4  ;;  %v7210_v24 = vld [vmem:[%s9017_s2 + $0x370] sm:$0xff]  }
  0x5b   : > { %1668 = vmatprep.mubr.bf16.mxu1 %v1367_v40  ;;  %v7213_v40 = vld [vmem:[%s9017_s2 + $0x3b0] sm:$0xff]   ;;  %2219 = vperm.xlu0 %7062, %v307_v41  }
  0x5c   : > { %6222 = vmatpush3.bf16.msra.mxu0 %v7168_v7  ;;  %v1371_v7 = vsel %vm1355_vm1, %v1360_v15, %v1370_v1  ;;  %v7202_v15 = vld [vmem:[%s9017_s2 + $0x360] sm:$0xff]   ;;  %v1697_v48 = vld [vmem:[%s7566_s10 + $0x50] sm:$0x33]  ;;  %s7050_s10 = smul.u32 20, %s9031_s28 }
  0x5d   : > { %6256 = vmatpush3.bf16.msra.mxu1 %v7169_v8  ;;  %6223 = vmatprep.subr.bf16.mxu0 %v7170_v9  ;;  %v1375_v8 = vsel %vm1355_vm1, %v1366_v17, %v1374_v2  ;;  %v1369_v9 = vsel %vm1355_vm1, %v1357_v21, %v1368_v3  ;;  %v1799_v17 = vor.u32 %v1798_v6, %v7926_v49  ;;  %v1776_v21 = vshrl.u32 %v7875_v23, 16  ;;  %v7217_v49 = vld [vmem:[%s9017_s2 + $0x3b8] sm:$0xff]  }
  0x5e   : > { %6257 = vmatprep.subr.bf16.mxu1 %v7171_v10  ;;  %v1373_v10 = vsel %vm1355_vm1, %v1363_v22, %v1372_v4  ;;  %v1810_v22 = vshrl.u32 %v7880_v26, 16  ;;  %v1813_v23 = vshll.u32 %v7880_v26, 16  ;;  %v5558_v51 = vcombine.high %v7924_v37, %v1697_v48  ;;  %s305_s23 = scalar_lea.vmem %s9023_s8, %s7050_s10 }
  0x5f   : > { %v1808_v55 = vsel %vm1774_vm2, %v1799_v17, %v7695_v58 }
  0x60   : > { %6224 = vmatpush3.bf16.msra.mxu0 %v7172_v11  ;;  %v7197_v11 = vld [vmem:[%s9017_s2 + $0x390] sm:$0xff]   ;;  %v1812_v26 = vrot.slane %v1810_v22, 3  ;;  %v1853_v0 = vshrl.u32 %v5558_v51, 16  ;;  %v7227_v22 = vld [vmem:[%s9019_s4 + $0x20] sm:$0xff]  }
  0x61   : > { %6258 = vmatpush3.bf16.msra.mxu1 %v7173_v12  ;;  %6225 = vmatprep.subr.bf16.mxu0 %v7174_v13  ;;  %v1829_v12 = vrot.slane %v1827_v54, 3  ;;  %v7200_v13 = vld [vmem:[%s9017_s2 + $0x318] sm:$0xff]   ;;  %v5557_v54 = vcombine.low %v7924_v37, %v1697_v48  ;;  %v309_v37 = vld [vmem:[%s9016_s1 + $0x10] sm:$0xff] }
  0x62   : > { %6259 = vmatprep.subr.bf16.mxu1 %v7175_v14  ;;  %v7201_v14 = vld [vmem:[%s9017_s2 + $0x398] sm:$0xff]   ;;  %2229 = vperm.xlu1 %7063, %v309_v37  }
  0x64   : > { %6226 = vmatpush3.bf16.msra.mxu0 %v7176_v16  ;;  %v7203_v16 = vld [vmem:[%s9017_s2 + $0x3e0] sm:$0xff]  }
  0x65   : > { %6260 = vmatpush3.bf16.msra.mxu1 %v7177_v18  ;;  %6279 = vmatprep.subr.bf16.mxu0 %v7182_v29  ;;  %v1833_v18 = vor.u32 %v1832_v46, %v1829_v12  ;;  %v7207_v29 = vld [vmem:[%s9017_s2 + $0x3e8] sm:$0xff]  }
  0x66   : > { %6313 = vmatprep.subr.bf16.mxu1 %v7183_v33  ;;  %v7208_v33 = vld [vmem:[%s9017_s2 + $0x328] sm:$0xff]  }
  0x67   : > { %1613 = vmatmul.mubr.bf16.vlgmr.msra.gmra.mrb[24].mxu0 %v1358_v57  ;;  %v1842_v30 = vsel %vm1774_vm2, %v1833_v18, %v7743_v28  ;;  %v7211_v57 = vld [vmem:[%s9017_s2 + $0x3f0] sm:$0xff]  }
  0x68   : > { %1669 = vmatmul.mubr.bf16.vlgmr.msra.gmra.mrb[24].mxu1 %v1364_v34  ;;  %6280 = vmatpush3.bf16.msra.mxu0 %v7184_v31  ;;  %v1778_v31 = vrot.slane %v1776_v21, 3  ;;  %v7214_v34 = vld [vmem:[%s9017_s2 + $0x378] sm:$0xff]  }
  0x69   : > { %6314 = vmatpush3.bf16.msra.mxu1 %v7185_v36  ;;  %6281 = vmatprep.subr.bf16.mxu0 %v7186_v42  ;;  %v1815_v36 = vrot.slane %v1813_v23, 4  ;;  %v7215_v42 = vld [vmem:[%s9017_s2 + $0x3f8] sm:$0xff]  }
  0x6a   : > { %6315 = vmatprep.subr.bf16.mxu1 %v7187_v62  ;;  %1620 = vmatprep.mubr.bf16.mxu0 %v1371_v7  ;;  %v1782_v62 = vor.u32 %v1781_v50, %v1778_v31  ;;  %v7231_v31 = vld [vmem:[%s9019_s4 + $0x30] sm:$0xff]  }
  0x6b   : > { %1676 = vmatprep.mubr.bf16.mxu1 %v1375_v8  ;;  %v1855_v8 = vrot.slane %v1853_v0, 3 }
  0x6c   : > { %6282 = vmatpush3.bf16.msra.mxu0 %v7188_v45  ;;  %v1816_v45 = vor.u32 %v1815_v36, %v1812_v26  ;;  %v1791_v56 = vsel %vm1774_vm2, %v1782_v62, %v7758_v32  ;;  %v7234_v62 = vld [vmem:[%s9019_s4 + $0x60] sm:$0xff]  }
  0x6d   : > { %6316 = vmatpush3.bf16.msra.mxu1 %v7189_v47  ;;  %6283 = vmatprep.subr.bf16.mxu0 %v7194_v61  ;;  %v7216_v47 = vld [vmem:[%s9017_s2 + $0x338] sm:$0xff]   ;;  %v5559_v61 = vcombine.low %v7930_v52, %v1698_v53  ;;  %v1871_v52 = vshrl.u32 %v5560_v60, 16  ;;  %v7239_v53 = vld [vmem:[%s9019_s4 + $0x70] sm:$0xff]  }
  0x6e   : > { %6317 = vmatprep.subr.bf16.mxu1 %v7195_v63  ;;  %v1825_v59 = vsel %vm1774_vm2, %v1816_v45, %v7773_v44  ;;  %v308_v63 = vld [vmem:[%s9016_s1 + $0x8] sm:$0xff] }
  0x6f   : > { %1621 = vmatmul.mubr.bf16.gmra.mrb[28].mxu0 %v1369_v9  ;;  %v1862_v6 = vshrl.u32 %v5559_v61, 16  ;;  %v1865_v7 = vshll.u32 %v5559_v61, 16  ;;  %2224 = vperm.xlu0 %7062, %v308_v63  }
  0x70   : > { %1677 = vmatmul.mubr.bf16.gmra.mrb[28].mxu1 %v1373_v10  ;;  %6284 = vmatpush3.bf16.msra.mxu0 %v7196_v5  ;;  %v1874_v5 = vshll.u32 %v5560_v60, 16 }
  0x71   : > { %6318 = vmatpush3.bf16.msra.mxu1 %v7197_v11  ;;  %6285 = vmatprep.subr.bf16.mxu0 %v7198_v35  ;;  %v1873_v35 = vrot.slane %v1871_v52, 3  ;;  %v1867_v46 = vrot.slane %v1865_v7, 4 }
  0x72   : > { %6319 = vmatprep.subr.bf16.mxu1 %v7199_v43  ;;  %1628 = vmatprep.mubr.bf16.mxu0 %v1370_v1  ;;  %v1856_v1 = vshll.u32 %v5558_v51, 16  ;;  %v1876_v12 = vrot.slane %v1874_v5, 4  ;;  %v1864_v43 = vrot.slane %v1862_v6, 3  ;;  %v7237_v51 = vld [vmem:[%s9019_s4 + $0x68] sm:$0xff]  }
  0x73   : > { %1684 = vmatprep.mubr.bf16.mxu1 %v1374_v2  ;;  %v1844_v2 = vshrl.u32 %v5557_v54, 16 }
  0x74   : > { %6286 = vmatpush3.bf16.msra.mxu0 %v7200_v13  ;;  %v1858_v9 = vrot.slane %v1856_v1, 4  ;;  %v311_v13 = vld [vmem:[%s9016_s1 + $0x20] sm:$0xf]  ;;  %v1868_v17 = vor.u32 %v1867_v46, %v1864_v43 }
  0x75   : > { %6320 = vmatpush3.bf16.msra.mxu1 %v7201_v14  ;;  %6287 = vmatprep.subr.bf16.mxu0 %v7202_v15  ;;  %v1846_v10 = vrot.slane %v1844_v2, 3 }
  0x76   : > { %6321 = vmatprep.subr.bf16.mxu1 %v7203_v16  ;;  %v1859_v14 = vor.u32 %v1858_v9, %v1855_v8  ;;  %v1877_v16 = vor.u32 %v1876_v12, %v1873_v35  ;;  %2239 = vperm.xlu0 %7062, %v311_v13  }
  0x77   : > { %1629 = vmatmul.mubr.bf16.gmra.mrb[32].mxu0 %v1368_v3  ;;  %v1847_v3 = vshll.u32 %v5557_v54, 16  ;;  %v7242_v54 = vld [vmem:[%s9019_s4 + $0x78] sm:$0xff]  }
  0x78   : > { %1685 = vmatmul.mubr.bf16.gmra.mrb[32].mxu1 %v1372_v4  ;;  %6288 = vmatpush3.bf16.msra.mxu0 %v7204_v19  ;;  %v310_v4 = vld [vmem:[%s9016_s1 + $0x18] sm:$0xff]  ;;  %v1860_v18 = vsel %vm1774_vm2, %v7695_v58, %v1859_v14  ;;  %v1878_v19 = vsel %vm1774_vm2, %v7743_v28, %v1877_v16  ;;  %v7222_v58 = vld [vmem:[%s9019_s4] sm:$0xff]   ;;  %v7223_v28 = vld [vmem:[%s9019_s4 + $0x8] sm:$0xff]  }
  0x79   : > { %6322 = vmatpush3.bf16.msra.mxu1 %v7205_v25  ;;  %6289 = vmatprep.subr.bf16.mxu0 %v7206_v27  ;;  %v1849_v11 = vrot.slane %v1847_v3, 4  ;;  %v1869_v25 = vsel %vm1774_vm2, %v7773_v44, %v1868_v17  ;;  %v7225_v44 = vld [vmem:[%s9019_s4 + $0x18] sm:$0xff]   ;;  %v7226_v27 = vld [vmem:[%s9019_s4 + $0x40] sm:$0xff]  }
  0x7a   : > { %6323 = vmatprep.subr.bf16.mxu1 %v7207_v29  ;;  %2115 = vmatprep.mubr.bf16.mxu0 %v1808_v55  ;;  %v7228_v29 = vld [vmem:[%s9019_s4 + $0x48] sm:$0xff]  }
  0x7b   : > { %2171 = vmatprep.mubr.bf16.mxu1 %v1842_v30  ;;  %v1850_v15 = vor.u32 %v1849_v11, %v1846_v10  ;;  %2234 = vperm.xlu1 %7063, %v310_v4   ;;  %v7229_v55 = vld [vmem:[%s9019_s4 + $0x28] sm:$0xff]   ;;  %v7230_v30 = vld [vmem:[%s9019_s4 + $0x50] sm:$0xff]  }
  0x7c   : > { %6290 = vmatpush3.bf16.msra.mxu0 %v7208_v33 }
  0x7d   : > { %6324 = vmatpush3.bf16.msra.mxu1 %v7209_v38  ;;  %6291 = vmatprep.subr.bf16.mxu0 %v7210_v24  ;;  %v1851_v21 = vsel %vm1774_vm2, %v7758_v32, %v1850_v15  ;;  %v7224_v32 = vld [vmem:[%s9019_s4 + $0x10] sm:$0xff]   ;;  %v7232_v38 = vld [vmem:[%s9019_s4 + $0x58] sm:$0xff]  }
  0x7e   : > { %6325 = vmatprep.subr.bf16.mxu1 %v7211_v57 }
  0x80   : > { %6292 = vmatpush3.bf16.msra.mxu0 %v7212_v39 }
  0x81   : > { %6326 = vmatpush3.bf16.msra.mxu1 %v7213_v40  ;;  %6293 = vmatprep.subr.bf16.mxu0 %v7214_v34 }
  0x82   : > { %6327 = vmatprep.subr.bf16.mxu1 %v7215_v42  ;;  %v7233_v42 = vld [vmem:[%s9019_s4 + $0x38] sm:$0xff]  }
  0x84   : > { %6294 = vmatpush3.bf16.msra.mxu0 %v7216_v47 }
  0x85   : > { %6328 = vmatpush3.bf16.msra.mxu1 %v7217_v49  ;;  %6545 = vmatprep.subr.bf16.mxu0 %v7411_v20 }
  0x86   : > { %6573 = vmatprep.subr.bf16.mxu1 %v7411_v20 }
  0x87   : > { %2116 = vmatmul.mubr.bf16.vlgmr.msra.gmra.mrb[36].mxu0 %v1791_v56 }
  0x88   : > { %2172 = vmatmul.mubr.bf16.vlgmr.msra.gmra.mrb[36].mxu1 %v1825_v59  ;;  %2123 = vmatprep.mubr.bf16.mxu0 %v1860_v18 }
  0x89   : > { %2179 = vmatprep.mubr.bf16.mxu1 %v1878_v19  ;;  %6574 = vmatpush3.bf16.msra.mxu1 %v7222_v58 }
  0x8a   : > { %6575 = vmatprep.subr.bf16.mxu1 %v7411_v20  ;;  %6546 = vmatpush3.bf16.msra.mxu0 %v7226_v27 }
  0x8b   : > { %6547 = vmatprep.subr.bf16.mxu0 %v7411_v20 }
  0x8d   : > { %6576 = vmatpush3.bf16.msra.mxu1 %v7223_v28 }
  0x8e   : > { %6577 = vmatprep.subr.bf16.mxu1 %v7411_v20  ;;  %6548 = vmatpush3.bf16.msra.mxu0 %v7228_v29 }
  0x8f   : > { %2124 = vmatmul.mubr.bf16.gmra.mrb[40].mxu0 %v1851_v21  ;;  %6549 = vmatprep.subr.bf16.mxu0 %v7411_v20 }
  0x90   : > { %2180 = vmatmul.mubr.bf16.gmra.mrb[40].mxu1 %v1869_v25  ;;  %2131 = vmatprep.mubr.bf16.mxu0 %v1859_v14 }
  0x91   : > { %2187 = vmatprep.mubr.bf16.mxu1 %v1877_v16  ;;  %6578 = vmatpush3.bf16.msra.mxu1 %v7224_v32 }
  0x92   : > { %6579 = vmatprep.subr.bf16.mxu1 %v7411_v20  ;;  %6550 = vmatpush3.bf16.msra.mxu0 %v7230_v30 }
  0x93   : > { %6551 = vmatprep.subr.bf16.mxu0 %v7411_v20 }
  0x95   : > { %6580 = vmatpush3.bf16.msra.mxu1 %v7225_v44 }
  0x96   : > { %6581 = vmatprep.subr.bf16.mxu1 %v7411_v20  ;;  %6552 = vmatpush3.bf16.msra.mxu0 %v7232_v38 }
  0x97   : > { %2132 = vmatmul.mubr.bf16.gmra.mrb[44].mxu0 %v1850_v15  ;;  %6553 = vmatprep.subr.bf16.mxu0 %v7411_v20 }
  0x98   : > { %2188 = vmatmul.mubr.bf16.gmra.mrb[44].mxu1 %v1868_v17  ;;  %6561 = vmatprep.mubr.msk.bf16.mxu0 %vm7412_vm3, %v7411_v20 }
  0x99   : > { %6582 = vmatpush3.bf16.msra.mxu1 %v7227_v22  ;;  %6589 = vmatprep.mubr.msk.bf16.mxu1 %vm7412_vm3, %v7411_v20 }
  0x9a   : > { %6583 = vmatprep.subr.bf16.mxu1 %v7411_v20  ;;  %6554 = vmatpush3.bf16.msra.mxu0 %v7234_v62 }
  0x9b   : > { %6555 = vmatprep.subr.bf16.mxu0 %v7411_v20 }
  0x9d   : > { %6584 = vmatpush3.bf16.msra.mxu1 %v7229_v55 }
  0x9e   : > { %6585 = vmatprep.subr.bf16.mxu1 %v7411_v20  ;;  %6556 = vmatpush3.bf16.msra.mxu0 %v7237_v51 }
  0x9f   : > { %6557 = vmatprep.subr.bf16.mxu0 %v7411_v20 }
  0xa1   : > { %6586 = vmatpush3.bf16.msra.mxu1 %v7231_v31 }
  0xa2   : > { %6587 = vmatprep.subr.bf16.mxu1 %v7411_v20  ;;  %6558 = vmatpush3.bf16.msra.mxu0 %v7239_v53 }
  0xa3   : > { %6559 = vmatprep.subr.bf16.mxu0 %v7411_v20 }
  0xa5   : > { %6588 = vmatpush3.bf16.msra.mxu1 %v7233_v42 }
  0xa6   : > { %6629 = vmatprep.subr.bf16.mxu1 %v7411_v20  ;;  %6560 = vmatpush3.bf16.msra.mxu0 %v7242_v54 }
  0xa7   : > { %6601 = vmatprep.subr.bf16.mxu0 %v7411_v20 }
  0xfa   : > { %v6091_v23 = vpop.f32.mrb[0].mxu0 }
  0xfb   : > { %v6092_v33 = vpop.f32.mrb[1].mxu0  ;;  %v6125_v26 = vpop.f32.mrb[0].mxu1 }
  0xfc   : > { %v6093_v50 = vadd.f32 %v6092_v33, %v6091_v23  ;;  %v6094_v24 = vpop.f32.mrb[2].mxu0  ;;  %v6126_v36 = vpop.f32.mrb[1].mxu1 }
  0xfd   : > { %v6095_v57 = vpop.f32.mrb[3].mxu0  ;;  %v6127_v40 = vadd.f32 %v6126_v36, %v6125_v26  ;;  %v6128_v34 = vpop.f32.mrb[2].mxu1 }
  0xfe   : > { %v6096_v39 = vadd.f32 %v6095_v57, %v6094_v24  ;;  %v6129_v45 = vpop.f32.mrb[3].mxu1 }
  0xff   : > { %v883_v47 = vadd.f32 %v6127_v40, %v6093_v50  ;;  %v6130_v49 = vadd.f32 %v6129_v45, %v6128_v34 }
 0x101   : > { %v886_v48 = vadd.f32 %v6130_v49, %v6096_v39 }
 0x102   : > { %v6097_v41 = vpop.f32.mrb[4].mxu0 }
 0x103   : > { %v6131_v56 = vpop.f32.mrb[4].mxu1  ;;  %v6098_v59 = vpop.f32.mrb[5].mxu0 }
 0x104   : > { %v6099_v60 = vadd.f32 %v6098_v59, %v6097_v41  ;;  %v6132_v61 = vpop.f32.mrb[5].mxu1  ;;  %v6100_v63 = vpop.f32.mrb[6].mxu0 }
 0x105   : > { %v6133_v37 = vadd.f32 %v6132_v61, %v6131_v56  ;;  %v6134_v0 = vpop.f32.mrb[6].mxu1  ;;  %v6101_v1 = vpop.f32.mrb[7].mxu0 }
 0x106   : > { %v6102_v2 = vadd.f32 %v6101_v1, %v6100_v63  ;;  %v6135_v3 = vpop.f32.mrb[7].mxu1 }
 0x107   : > { %v891_v4 = vadd.f32 %v6133_v37, %v6099_v60  ;;  %v6136_v52 = vadd.f32 %v6135_v3, %v6134_v0 }
 0x109   : > { %v894_v5 = vadd.f32 %v6136_v52, %v6102_v2 }
 0x10a   : > { %v6103_v6 = vpop.f32.mrb[8].mxu0 }
 0x10b   : > { %v6137_v7 = vpop.f32.mrb[8].mxu1  ;;  %v6104_v8 = vpop.f32.mrb[9].mxu0 }
 0x10c   : > { %v6105_v9 = vadd.f32 %v6104_v8, %v6103_v6  ;;  %v6138_v10 = vpop.f32.mrb[9].mxu1  ;;  %v6106_v11 = vpop.f32.mrb[10].mxu0 }
 0x10d   : > { %v6139_v35 = vadd.f32 %v6138_v10, %v6137_v7  ;;  %v6140_v12 = vpop.f32.mrb[10].mxu1  ;;  %v6107_v43 = vpop.f32.mrb[11].mxu0 }
 0x10e   : > { %v6141_v46 = vpop.f32.mrb[11].mxu1 }
 0x10f   : > { %v899_v13 = vadd.f32 %v6139_v35, %v6105_v9 }
 0x11a   : > { %v6159_v14 = vpop.f32.mrb[12].mxu0 }
 0x11b   : > { %v6193_v15 = vpop.f32.mrb[12].mxu1  ;;  %v6160_v16 = vpop.f32.mrb[13].mxu0 }
 0x11c   : > { %v6161_v17 = vadd.f32 %v6160_v16, %v6159_v14  ;;  %v6194_v18 = vpop.f32.mrb[13].mxu1  ;;  %v6162_v19 = vpop.f32.mrb[14].mxu0 }
 0x11d   : > { %v6195_v21 = vadd.f32 %v6194_v18, %v6193_v15  ;;  %v6196_v25 = vpop.f32.mrb[14].mxu1  ;;  %v6163_v58 = vpop.f32.mrb[15].mxu0 }
 0x11e   : > { %v1153_v28 = vadd.f32 %v6161_v17, %v883_v47  ;;  %v6164_v32 = vadd.f32 %v6163_v58, %v6162_v19  ;;  %v6197_v44 = vpop.f32.mrb[15].mxu1 }
 0x11f   : > { %v6198_v27 = vadd.f32 %v6197_v44, %v6196_v25 }
 0x120   : > { %v1209_v22 = vadd.f32 %v6195_v21, %v1153_v28  ;;  %v1156_v29 = vadd.f32 %v6164_v32, %v886_v48 }
 0x122   : > { %v1212_v55 = vadd.f32 %v6198_v27, %v1156_v29  ;;  %v6165_v30 = vpop.f32.mrb[16].mxu0 }
 0x123   : > { %v6166_v23 = vpop.f32.mrb[17].mxu0  ;;  %v6199_v33 = vpop.f32.mrb[16].mxu1 }
 0x124   : > { %v6167_v31 = vadd.f32 %v6166_v23, %v6165_v30  ;;  %v6168_v38 = vpop.f32.mrb[18].mxu0  ;;  %v6200_v50 = vpop.f32.mrb[17].mxu1 }
 0x125   : > { %v6169_v24 = vpop.f32.mrb[19].mxu0  ;;  %v6201_v26 = vadd.f32 %v6200_v50, %v6199_v33  ;;  %v6202_v57 = vpop.f32.mrb[18].mxu1 }
 0x126   : > { %v1161_v36 = vadd.f32 %v6167_v31, %v891_v4  ;;  %v6170_v39 = vadd.f32 %v6169_v24, %v6168_v38  ;;  %v6203_v40 = vpop.f32.mrb[19].mxu1 }
 0x127   : > { %v6204_v34 = vadd.f32 %v6203_v40, %v6202_v57 }
 0x128   : > { %v1164_v42 = vadd.f32 %v6170_v39, %v894_v5  ;;  %v1217_v62 = vadd.f32 %v6201_v26, %v1161_v36 }
 0x12a   : > { %v1220_v45 = vadd.f32 %v6204_v34, %v1164_v42  ;;  %v6171_v47 = vpop.f32.mrb[20].mxu0 }
 0x12b   : > { %v6172_v49 = vpop.f32.mrb[21].mxu0  ;;  %v6205_v48 = vpop.f32.mrb[20].mxu1 }
 0x12c   : > { %v6173_v51 = vadd.f32 %v6172_v49, %v6171_v47  ;;  %v6206_v53 = vpop.f32.mrb[21].mxu1  ;;  %v6174_v54 = vpop.f32.mrb[22].mxu0 }
 0x12d   : > { %v6207_v41 = vadd.f32 %v6206_v53, %v6205_v48  ;;  %v6208_v56 = vpop.f32.mrb[22].mxu1  ;;  %v6175_v59 = vpop.f32.mrb[23].mxu0 }
 0x12e   : > { %v1169_v60 = vadd.f32 %v6173_v51, %v899_v13  ;;  %v6209_v61 = vpop.f32.mrb[23].mxu1 }
 0x130   : > { %v1225_v63 = vadd.f32 %v6207_v41, %v1169_v60  ;;  %v8140_v41 = vld [vmem:[%s9018_s3] ss:$0 sm:$0xff]  ;;  %v8142_v60 = vpop.permute.xlu0 %2219 }
 0x13a   : > { %v6227_v37 = vpop.f32.mrb[24].mxu0 }
 0x13b   : > { %v6261_v0 = vpop.f32.mrb[24].mxu1  ;;  %v6228_v1 = vpop.f32.mrb[25].mxu0 }
 0x13c   : > { %v6229_v2 = vadd.f32 %v6228_v1, %v6227_v37  ;;  %v6262_v3 = vpop.f32.mrb[25].mxu1  ;;  %v6230_v4 = vpop.f32.mrb[26].mxu0 }
 0x13d   : > { %v6263_v52 = vadd.f32 %v6262_v3, %v6261_v0  ;;  %v6264_v5 = vpop.f32.mrb[26].mxu1  ;;  %v6231_v6 = vpop.f32.mrb[27].mxu0 }
 0x13e   : > { %v6232_v7 = vadd.f32 %v6231_v6, %v6230_v4  ;;  %v6265_v8 = vpop.f32.mrb[27].mxu1 }
 0x13f   : > { %v1671_v9 = vadd.f32 %v6263_v52, %v6229_v2  ;;  %v6266_v10 = vadd.f32 %v6265_v8, %v6264_v5 }
 0x141   : > { %v1692_v11 = vadd.f32 %v1671_v9, %v1209_v22  ;;  %v1674_v35 = vadd.f32 %v6266_v10, %v6232_v7 }
 0x142   : > { %v6233_v43 = vpop.f32.mrb[28].mxu0 }
 0x143   : > { %v1693_v12 = vadd.f32 %v1674_v35, %v1212_v55  ;;  %v6267_v46 = vpop.f32.mrb[28].mxu1  ;;  %v6234_v13 = vpop.f32.mrb[29].mxu0 }
 0x144   : > { %v6268_v14 = vpop.f32.mrb[29].mxu1  ;;  %v6235_v15 = vadd.f32 %v6234_v13, %v6233_v43  ;;  %v6236_v17 = vpop.f32.mrb[30].mxu0 }
 0x145   : > { %v6269_v16 = vadd.f32 %v6268_v14, %v6267_v46  ;;  %v6270_v18 = vpop.f32.mrb[30].mxu1  ;;  %v6237_v19 = vpop.f32.mrb[31].mxu0 }
 0x146   : > { %v6271_v21 = vpop.f32.mrb[31].mxu1  ;;  %v6238_v58 = vadd.f32 %v6237_v19, %v6236_v17  ;;  %v8147_v43 = vpop.permute.xlu0 %2224 }
 0x147   : > { %v1679_v25 = vadd.f32 %v6269_v16, %v6235_v15  ;;  %v6272_v28 = vadd.f32 %v6271_v21, %v6270_v18  ;;  %v8150_v17 = vpop.permute.xlu1 %2229  ;;  %v2331_v18 = vld [vmem:[#allocation2] sm:$0x8] }
 0x149   : > { %v1694_v32 = vadd.f32 %v1679_v25, %v1217_v62  ;;  %v1682_v44 = vadd.f32 %v6272_v28, %v6238_v58 }
 0x14a   : > { %v6239_v22 = vpop.f32.mrb[32].mxu0 }
 0x14b   : > { %v8133_v27 = vadd.f32 %v1682_v44, %v1220_v45  ;;  %v6273_v29 = vpop.f32.mrb[32].mxu1  ;;  %v6240_v55 = vpop.f32.mrb[33].mxu0 }
 0x14c   : > { %v6274_v30 = vpop.f32.mrb[33].mxu1  ;;  %v6241_v23 = vadd.f32 %v6240_v55, %v6239_v22  ;;  %v6242_v31 = vpop.f32.mrb[34].mxu0 }
 0x14d   : > { %v6275_v33 = vadd.f32 %v6274_v30, %v6273_v29  ;;  %v6276_v38 = vpop.f32.mrb[34].mxu1  ;;  %v6243_v50 = vpop.f32.mrb[35].mxu0 }
 0x14e   : > { %v6277_v24 = vpop.f32.mrb[35].mxu1 }
 0x14f   : > { %v1687_v26 = vadd.f32 %v6275_v33, %v6241_v23 }
 0x151   : > { %v8135_v57 = vadd.f32 %v1687_v26, %v1225_v63 }
 0x15a   : > { %v6295_v36 = vpop.f32.mrb[36].mxu0 }
 0x15b   : > { %v6329_v39 = vpop.f32.mrb[36].mxu1  ;;  %v6296_v40 = vpop.f32.mrb[37].mxu0 }
 0x15c   : > { %v6330_v34 = vpop.f32.mrb[37].mxu1  ;;  %v6297_v42 = vadd.f32 %v6296_v40, %v6295_v36  ;;  %v6298_v45 = vpop.f32.mrb[38].mxu0 }
 0x15d   : > { %v6331_v62 = vadd.f32 %v6330_v34, %v6329_v39  ;;  %v6332_v47 = vpop.f32.mrb[38].mxu1  ;;  %v6299_v49 = vpop.f32.mrb[39].mxu0 }
 0x15e   : > { %v6333_v48 = vpop.f32.mrb[39].mxu1  ;;  %v6300_v53 = vadd.f32 %v6299_v49, %v6298_v45  ;;  %v7331_v49 = vld [vmem:[%s9021_s6 + $0xd0] sm:$0xff]  }
 0x15f   : > { %v2174_v51 = vadd.f32 %v6331_v62, %v6297_v42  ;;  %v6334_v54 = vadd.f32 %v6333_v48, %v6332_v47 }
 0x161   : > { %v2195_v56 = vadd.f32 %v2174_v51, %v1692_v11  ;;  %v2177_v59 = vadd.f32 %v6334_v54, %v6300_v53 }
 0x162   : > { %v6301_v37 = vpop.f32.mrb[40].mxu0 }
 0x163   : > { %v2196_v61 = vadd.f32 %v2177_v59, %v1693_v12  ;;  %v2207_v63 = vadd.f32 %v8140_v41, %v2195_v56  ;;  %v6335_v0 = vpop.f32.mrb[40].mxu1  ;;  %v6302_v1 = vpop.f32.mrb[41].mxu0 }
 0x164   : > { %v6336_v2 = vpop.f32.mrb[41].mxu1  ;;  %v6303_v4 = vadd.f32 %v6302_v1, %v6301_v37  ;;  %v6304_v5 = vpop.f32.mrb[42].mxu0 }
 0x165   : > { %v2212_v3 = vmax.f32 %v2207_v63, 0.0  ;;  %v6337_v52 = vadd.f32 %v6336_v2, %v6335_v0  ;;  %v6338_v6 = vpop.f32.mrb[42].mxu1  ;;  %v2208_v7 = vadd.f32 %v8140_v41, %v2196_v61  ;;  %v6305_v8 = vpop.f32.mrb[43].mxu0 }
 0x166   : > { %v6339_v9 = vpop.f32.mrb[43].mxu1  ;;  %v6306_v12 = vadd.f32 %v6305_v8, %v6304_v5  ;;  %v8171_v56 = vpop.permute.xlu1 %2234 }
 0x167   : > { %v2242_v10 = vmul.f32 %v8142_v60, %v2212_v3  ;;  %v2182_v11 = vadd.f32 %v6337_v52, %v6303_v4  ;;  %v2213_v35 = vmax.f32 %v2208_v7, 0.0  ;;  %v6340_v46 = vadd.f32 %v6339_v9, %v6338_v6  ;;  %v8180_v9 = vpop.permute.xlu0 %2239 }
 0x169   : > { %v6049_v13 = vpack.c.bf16 %v2242_v10, %v2242_v10  ;;  %v2197_v14 = vadd.f32 %v2182_v11, %v1694_v32  ;;  %v2243_v15 = vmul.f32 %v8147_v43, %v2213_v35  ;;  %v2185_v16 = vadd.f32 %v6340_v46, %v6306_v12 }
 0x16a   : > { %v6307_v28 = vpop.f32.mrb[44].mxu0 }
 0x16b   : > { %v2274_v19 = vshll.u32 %v6049_v13, 16  ;;  %v2277_v21 = vshrl.u32 %v6049_v13, 16  ;;  %v8152_v25 = vpack.c.bf16 %v2243_v15, %v2242_v10  ;;  %v6050_v58 = vpack.c.bf16 %v2243_v15, %v2243_v15  ;;  %v6341_v44 = vpop.f32.mrb[44].mxu1  ;;  %v6308_v55 = vpop.f32.mrb[45].mxu0 }
 0x16c   : > { %v2198_v32 = vadd.f32 %v2185_v16, %v8133_v27  ;;  %v2209_v29 = vadd.f32 %v8140_v41, %v2197_v14  ;;  %v6342_v30 = vpop.f32.mrb[45].mxu1  ;;  %v6310_v50 = vpop.f32.mrb[46].mxu0  ;;  %v6309_v36 = vadd.f32 %v6308_v55, %v6307_v28 }
 0x16d   : > { %v2276_v23 = vrot.slane %v2274_v19, 5  ;;  %v2279_v33 = vrot.slane %v2277_v21, 4  ;;  %v2283_v31 = vshll.u32 %v6050_v58, 16  ;;  %v2287_v38 = vshrl.u32 %v6050_v58, 16  ;;  %v6344_v24 = vpop.f32.mrb[46].mxu1  ;;  %v6311_v34 = vpop.f32.mrb[47].mxu0 }
 0x16e   : > { %v2214_v26 = vmax.f32 %v2209_v29, 0.0  ;;  %v6343_v39 = vadd.f32 %v6342_v30, %v6341_v44  ;;  %v2210_v40 = vadd.f32 %v8140_v41, %v2198_v32  ;;  %v6345_v42 = vpop.f32.mrb[47].mxu1  ;;  %v7236_v19 = vld [vmem:[%s9019_s4 + $0xc0] sm:$0xff]   ;;  %v7238_v30 = vld [vmem:[%s9019_s4 + $0xc8] sm:$0xff]   ;;  %v2341_v50 = vld [vmem:[#allocation2 + $0x14] sm:$0x3] }
 0x16f   : > { %v2280_v62 = vor.u32 %v2279_v33, %v2276_v23  ;;  %v2332_v27 = vsel %vm8155_vm6, %v2276_v23, %v2331_v18  ;;  %v2285_v45 = vrot.slane %v2283_v31, 5  ;;  %v2289_v47 = vrot.slane %v2287_v38, 4  ;;  %v7333_v38 = vld [vmem:[%s9021_s6 + $0xd8] sm:$0xff]  }
 0x170   : > { %2333 = vst [vmem:[#allocation2] sm:$0x8] %v2332_v27  ;;  %v2244_v48 = vmul.f32 %v8150_v17, %v2214_v26  ;;  %v2190_v51 = vadd.f32 %v6343_v39, %v6309_v36  ;;  %v2215_v53 = vmax.f32 %v2210_v40, 0.0  ;;  %v7241_v26 = vld [vmem:[%s9019_s4 + $0xd0] sm:$0xff]  }
 0x171   : > { %v2281_v54 = vrot.slane %v2280_v62, 4  ;;  %v2290_v59 = vor.u32 %v2289_v47, %v2285_v45  ;;  %v7243_v62 = vld [vmem:[%s9019_s4 + $0xd8] sm:$0xff]   ;;  %v7244_v47 = vld [vmem:[%s9019_s4 + $0x80] sm:$0xff]  }
 0x172   : > { %v6051_v61 = vpack.c.bf16 %v2244_v48, %v2244_v48  ;;  %v2199_v63 = vadd.f32 %v2190_v51, %v8135_v57  ;;  %v2245_v37 = vmul.f32 %v8171_v56, %v2215_v53  ;;  %v7246_v53 = vld [vmem:[%s9019_s4 + $0xe0] sm:$0xff]  }
 0x173   : > { %v2286_v0 = vsel %vm8166_vm9, %v2281_v54, %v2285_v45  ;;  %v2291_v5 = vrot.slane %v2290_v59, 4 }
 0x174   : > { %2334 = vst [vmem:[#allocation2 + $0x4] sm:$0xf] %v2286_v0  ;;  %v2293_v1 = vshll.u32 %v6051_v61, 16  ;;  %v2297_v2 = vshrl.u32 %v6051_v61, 16  ;;  %v2211_v3 = vadd.f32 %v8140_v41, %v2199_v63  ;;  %v8178_v4 = vpack.c.bf16 %v2245_v37, %v2244_v48  ;;  %v7247_v61 = vld [vmem:[%s9019_s4 + $0x88] sm:$0xff]  }
 0x175   : > { %v6052_v52 = vpack.c.bf16 %v2245_v37, %v2245_v37  ;;  %v7248_v0 = vld [vmem:[%s9019_s4 + $0xe8] sm:$0xff]  }
 0x176   : > { %v2295_v6 = vrot.slane %v2293_v1, 5  ;;  %v2299_v7 = vrot.slane %v2297_v2, 4  ;;  %v2216_v8 = vmax.f32 %v2211_v3, 0.0  ;;  %v7250_v2 = vld [vmem:[%s9019_s4 + $0x90] sm:$0xff]  }
 0x177   : > { %v2303_v57 = vshll.u32 %v6052_v52, 16  ;;  %v2307_v10 = vshrl.u32 %v6052_v52, 16  ;;  %v2344_v16 = vld [vmem:[#allocation2] sm:$0xf] }
 0x178   : > { %v2296_v11 = vsel %vm8166_vm9, %v2291_v5, %v2295_v6  ;;  %v2300_v35 = vor.u32 %v2299_v7, %v2295_v6  ;;  %v2246_v12 = vmul.f32 %v8180_v9, %v2216_v8  ;;  %v7251_v5 = vld [vmem:[%s9019_s4 + $0xf0] sm:$0xff]   ;;  %v7252_v6 = vld [vmem:[%s9019_s4 + $0x98] sm:$0xff]  }
 0x179   : > { %2335 = vst [vmem:[#allocation2 + $0x8] sm:$0xf] %v2296_v11  ;;  %v2305_v46 = vrot.slane %v2303_v57, 5  ;;  %v2309_v41 = vrot.slane %v2307_v10, 4  ;;  %v2775_v10 = vld [vmem:[#allocation2] sm:$0x8] }
 0x17a   : > { %v2301_v13 = vrot.slane %v2300_v35, 4  ;;  %v8185_v14 = vpack.c.bf16 %v2246_v12, %v2246_v12  ;;  %v7253_v11 = vld [vmem:[%s9019_s4 + $0xf8] sm:$0xff]  }
 0x17b   : > { %v2310_v15 = vor.u32 %v2309_v41, %v2305_v46  ;;  %v8187_v18 = vld [vmem:[#allocation2 + $0x4] sm:$0xf] }
 0x17c   : > { %v2313_v21 = vshll.u32 %v8185_v14, 16  ;;  %v2317_v58 = vshrl.u32 %v8185_v14, 16  ;;  %v2306_v28 = vsel %vm8166_vm9, %v2301_v13, %v2305_v46  ;;  %v5615_v44 = vcombine.low %v2344_v16, %v8187_v18  ;;  %v8263_v7 = vld [vmem:[#allocation2 + $0x4] sm:$0xf] }
 0x17d   : > { %2336 = vst [vmem:[#allocation2 + $0xc] sm:$0xf] %v2306_v28  ;;  %v2311_v55 = vrot.slane %v2310_v15, 4  ;;  %v8279_v12 = vcombine.low %v2775_v10, %v8263_v7  ;;  %v7254_v46 = vld [vmem:[%s9019_s4 + $0xa0] sm:$0xff]   ;;  %v7281_v10 = vld [vmem:[%s9019_s4 + $0x1d0] sm:$0xff]  }
 0x17e   : > { %v2315_v32 = vrot.slane %v2313_v21, 5  ;;  %v2319_v29 = vrot.slane %v2317_v58, 4  ;;  %6590 = vmatmul.mubr.bf16.vlgmr.msra.gmra.mrb[48].mxu1 %v5615_v44  ;;  %v2399_v31 = vshll.u32 %v5615_v44, 16  ;;  %v2397_v34 = vshrl.u32 %v5615_v44, 16  ;;  %v7258_v21 = vld [vmem:[%s9019_s4 + $0xa8] sm:$0xff]  }
 0x17f   : > { %6630 = vmatpush3.bf16.msra.mxu1 %v7236_v19  ;;  %6593 = vmatprep.mubr.msk.bf16.mxu1 %vm7412_vm3, %v7411_v20  ;;  %v2813_v16 = vrot.slane %v8279_v12, 3  ;;  %v7257_v19 = vld [vmem:[%s9019_s4 + $0x140] sm:$0xff]  }
 0x180   : > { %v2320_v23 = vor.u32 %v2319_v29, %v2315_v32  ;;  %v2316_v33 = vsel %vm8166_vm9, %v2311_v55, %v2315_v32  ;;  %6631 = vmatprep.subr.bf16.mxu1 %v7411_v20  ;;  %v2401_v40 = vrot.slane %v2399_v31, 1  ;;  %v8265_v8 = vld [vmem:[#allocation2 + $0x8] sm:$0xf]  ;;  %v7260_v29 = vld [vmem:[%s9019_s4 + $0xb0] sm:$0xff]  }
 0x181   : > { %2337 = vst [vmem:[#allocation2 + $0x10] sm:$0xf] %v2316_v33  ;;  %v7259_v32 = vld [vmem:[%s9019_s4 + $0x148] sm:$0xff]   ;;  %v7263_v33 = vld [vmem:[%s9019_s4 + $0xb8] sm:$0xff]  }
 0x182   : > { %v2321_v24 = vrot.slane %v2320_v23, 4  ;;  %v2402_v27 = vor.u32 %v2401_v40, %v2397_v34  ;;  %v2636_v23 = vld [vmem:[#allocation2] sm:$0xe]  ;;  %v7268_v34 = vld [vmem:[%s9019_s4 + $0x108] sm:$0xff]  }
 0x183   : > { %6632 = vmatpush3.bf16.msra.mxu1 %v7238_v30  ;;  %v7262_v30 = vld [vmem:[%s9019_s4 + $0x150] sm:$0xff]   ;;  %v5651_v31 = vcombine.low %v2636_v23, %v8187_v18  ;;  %v7267_v40 = vld [vmem:[%s9019_s4 + $0x160] sm:$0xff]  }
 0x184   : > { %v2342_v36 = vsel %vm8205_vm12, %v2321_v24, %v2341_v50  ;;  %6633 = vmatprep.subr.bf16.mxu1 %v7411_v20  ;;  %v8215_v39 = vld [vmem:[#allocation2 + $0x8] sm:$0xff]  }
 0x185   : > { %2343 = vst [vmem:[#allocation2 + $0x14] sm:$0x3] %v2342_v36  ;;  %v2404_v42 = vshll.u32 %v8215_v39, 16  ;;  %v2408_v63 = vshrl.u32 %v8215_v39, 16  ;;  %v8254_v52 = vld [vmem:[#allocation2 + $0xc] sm:$0xf] }
 0x186   : > { %6594 = vmatmul.mubr.bf16.gmra.mrb[52].mxu1 %v8215_v39  ;;  %v8272_v57 = vcombine.low %v8265_v8, %v8254_v52  ;;  %v2659_v24 = vrot.slane %v8215_v39, 1  ;;  %v2658_v18 = vrot.slane %v5651_v31, 1  ;;  %v7266_v36 = vld [vmem:[%s9019_s4 + $0x100] sm:$0xff]   ;;  %v7289_v31 = vld [vmem:[%s9019_s4 + $0x1e8] sm:$0xff]  }
 0x187   : > { %6634 = vmatpush3.bf16.msra.mxu1 %v7241_v26  ;;  %6597 = vmatprep.mubr.msk.bf16.mxu1 %vm7412_vm3, %v7411_v20  ;;  %v2406_v45 = vrot.slane %v2404_v42, 1  ;;  %v7265_v26 = vld [vmem:[%s9019_s4 + $0x158] sm:$0xff]  }
 0x188   : > { %6635 = vmatprep.subr.bf16.mxu1 %v7411_v20  ;;  %v8228_v48 = vld [vmem:[#allocation2 + $0x10] ss:$0 sps:$4 sm:$0x77]   ;;  %v2814_v13 = vrot.slane %v8272_v57, 3  ;;  %v2660_v39 = vsel %vm2657_vm13, %v2658_v18, %v2659_v24 }
 0x189   : > { %v2407_v51 = vsel %vm495_vm0, %v2402_v27, %v2406_v45  ;;  %v2412_v54 = vshll.u32 %v8228_v48, 16  ;;  %v7245_v59 = vld [vmem:[#allocation2 + $0x10] ss:$0 sps:$4 sm:$0x33]   ;;  %v2410_v1 = vor.u32 %v2408_v63, %v2406_v45  ;;  %v2416_v35 = vshrl.u32 %v8228_v48, 16 }
 0x18a   : > { %6562 = vmatmul.mubr.bf16.vlgmr.msra.gmra.mrb[48].mxu0 %v2407_v51  ;;  %v8295_v58 = vld [vmem:[#allocation2 + $0x10] sm:$0xf]  ;;  %v2815_v28 = vsel %vm1355_vm1, %v2813_v16, %v2814_v13  ;;  %v2661_v42 = vrot.slane %v8228_v48, 1  ;;  %v7272_v48 = vld [vmem:[%s9019_s4 + $0x118] sm:$0xff]   ;;  %v2960_v63 = vshrl.u32 %v8272_v57, 16 }
 0x18b   : > { %6636 = vmatpush3.bf16.msra.mxu1 %v7243_v62  ;;  %6602 = vmatpush3.bf16.msra.mxu0 %v7244_v47  ;;  %v2414_v37 = vrot.slane %v2412_v54, 1  ;;  %v7269_v62 = vld [vmem:[%s9019_s4 + $0x168] sm:$0xff]   ;;  %v7270_v27 = vld [vmem:[%s9019_s4 + $0x110] sm:$0xff]   ;;  %v7273_v51 = vld [vmem:[%s9019_s4 + $0x178] sm:$0xff]  }
 0x18c   : > { %6637 = vmatprep.subr.bf16.mxu1 %v7411_v20  ;;  %6603 = vmatprep.subr.bf16.mxu0 %v7411_v20  ;;  %v2780_v15 = vld [vmem:[#allocation2 + $0x14] sm:$0x1]  ;;  %v2662_v45 = vsel %vm2657_vm13, %v2659_v24, %v2661_v42  ;;  %v7276_v54 = vld [vmem:[%s9019_s4 + $0x1c0] sm:$0xff]  }
 0x18d   : > { %6565 = vmatprep.mubr.msk.bf16.mxu0 %vm7412_vm3, %v7411_v20  ;;  %v2415_v3 = vsel %vm495_vm0, %v2410_v1, %v2414_v37  ;;  %v2418_v41 = vor.u32 %v2416_v35, %v2414_v37  ;;  %v5678_v44 = vcombine.low %v8295_v58, %v2780_v15  ;;  %v7271_v47 = vld [vmem:[%s9019_s4 + $0x170] sm:$0xff]   ;;  %v2963_v37 = vshll.u32 %v8272_v57, 16  ;;  %v7282_v35 = vld [vmem:[%s9019_s4 + $0x138] sm:$0xff]  }
 0x18e   : > { %6598 = vmatmul.mubr.bf16.gmra.mrb[56].mxu1 %v7245_v59  ;;  %v5728_v59 = vcombine.low %v8263_v7, %v8265_v8  ;;  %v2930_v1 = vld [vmem:[#allocation2 + $0x14] sm:$0x3] }
 0x18f   : > { %6638 = vmatpush3.bf16.msra.mxu1 %v7246_v53  ;;  %6645 = vmatprep.mubr.msk.bf16.mxu1 %vm7412_vm3, %v7411_v20  ;;  %v2816_v55 = vrot.slane %v5678_v44, 3  ;;  %v7274_v53 = vld [vmem:[%s9019_s4 + $0x120] sm:$0xff]   ;;  %v2965_v7 = vrot.slane %v2963_v37, 4  ;;  %v5703_v57 = vcombine.low %v8295_v58, %v2930_v1  ;;  %v7290_v24 = vld [vmem:[%s9019_s4 + $0x190] sm:$0xff]   ;;  %v7297_v37 = vld [vmem:[%s9019_s4 + $0x1a8] sm:$0xff]  }
 0x190   : > { %6604 = vmatpush3.bf16.msra.mxu0 %v7247_v61  ;;  %6639 = vmatprep.subr.bf16.mxu1 %v7411_v20  ;;  %v7277_v61 = vld [vmem:[%s9019_s4 + $0x128] sm:$0xff]   ;;  %v7287_v44 = vld [vmem:[%s9019_s4 + $0x1e0] sm:$0xff]  }
 0x191   : > { %6605 = vmatprep.subr.bf16.mxu0 %v7411_v20  ;;  %v2817_v50 = vsel %vm1355_vm1, %v2814_v13, %v2816_v55  ;;  %v2969_v13 = vshrl.u32 %v5703_v57, 16  ;;  %v2972_v15 = vshll.u32 %v5703_v57, 16 }
 0x192   : > { %6566 = vmatmul.mubr.bf16.gmra.mrb[52].mxu0 %v2415_v3  ;;  %v2952_v3 = vshrl.u32 %v8279_v12, 16 }
 0x193   : > { %6640 = vmatpush3.bf16.msra.mxu1 %v7248_v0  ;;  %6569 = vmatprep.mubr.msk.bf16.mxu0 %vm7412_vm3, %v7411_v20  ;;  %v7278_v0 = vld [vmem:[%s9019_s4 + $0x1c8] sm:$0xff]  }
 0x194   : > { %6606 = vmatpush3.bf16.msra.mxu0 %v7250_v2  ;;  %6641 = vmatprep.subr.bf16.mxu1 %v7411_v20  ;;  %v7279_v2 = vld [vmem:[%s9019_s4 + $0x130] sm:$0xff]  }
 0x195   : > { %6607 = vmatprep.subr.bf16.mxu0 %v7411_v20 }
 0x197   : > { %6642 = vmatpush3.bf16.msra.mxu1 %v7251_v5  ;;  %v2955_v5 = vshll.u32 %v8279_v12, 16  ;;  %v2954_v12 = vrot.slane %v2952_v3, 3  ;;  %v7298_v3 = vld [vmem:[%s9019_s4 + $0x1b0] sm:$0xff]  }
 0x198   : > { %6608 = vmatpush3.bf16.msra.mxu0 %v7252_v6  ;;  %6643 = vmatprep.subr.bf16.mxu1 %v7411_v20  ;;  %v2962_v6 = vrot.slane %v2960_v63, 3 }
 0x199   : > { %6609 = vmatprep.subr.bf16.mxu0 %v7411_v20 }
 0x19a   : > { %6570 = vmatmul.mubr.bf16.gmra.mrb[56].mxu0 %v2418_v41  ;;  %v2966_v41 = vor.u32 %v2965_v7, %v2962_v6  ;;  %v3221_v6 = vld [vmem:[#allocation2 + $0x4] sm:$0xc]  ;;  %v7300_v7 = vld [vmem:[%s9019_s4 + $0x1b8] sm:$0xff]  }
 0x19b   : > { %6644 = vmatpush3.bf16.msra.mxu1 %v7253_v11  ;;  %6617 = vmatprep.mubr.msk.bf16.mxu0 %vm7412_vm3, %v7411_v20  ;;  %v8406_v11 = vcombine.low %v8254_v52, %v8295_v58  ;;  %v7283_v52 = vld [vmem:[%s9019_s4 + $0x1d8] sm:$0xff]   ;;  %v2971_v58 = vrot.slane %v2969_v13, 3  ;;  %v5755_v57 = vcombine.low %v3221_v6, %v8265_v8 }
 0x19c   : > { %6610 = vmatpush3.bf16.msra.mxu0 %v7254_v46  ;;  %6685 = vmatprep.subr.bf16.mxu1 %v7411_v20  ;;  %v2957_v46 = vrot.slane %v2955_v5, 4 }
 0x19d   : > { %6611 = vmatprep.subr.bf16.mxu0 %v7411_v20 }
 0x19e   : > { %6646 = vmatmul.mubr.bf16.vlgmr.msra.gmra.mrb[60].mxu1 %v2815_v28  ;;  %v2958_v16 = vor.u32 %v2957_v46, %v2954_v12  ;;  %v2974_v28 = vrot.slane %v2972_v15, 4  ;;  %v3247_v12 = vrot.slane %v5755_v57, 2  ;;  %v7302_v46 = vld [vmem:[%s9019_s4 + $0x200] sm:$0xff]   ;;  %v7305_v15 = vld [vmem:[%s9019_s4 + $0x210] sm:$0xff]  }
 0x19f   : > { %6686 = vmatpush3.bf16.msra.mxu1 %v7257_v19  ;;  %6649 = vmatprep.mubr.msk.bf16.mxu1 %vm7412_vm3, %v7411_v20  ;;  %v7284_v19 = vld [vmem:[%s9019_s4 + $0x180] sm:$0xff]  }
 0x1a0   : > { %6612 = vmatpush3.bf16.msra.mxu0 %v7258_v21  ;;  %6687 = vmatprep.subr.bf16.mxu1 %v7411_v20  ;;  %v2967_v21 = vsel %vm1774_vm2, %v2958_v16, %v2966_v41  ;;  %v2975_v23 = vor.u32 %v2974_v28, %v2971_v58  ;;  %v7306_v16 = vld [vmem:[%s9019_s4 + $0x218] sm:$0xff]   ;;  %v7309_v58 = vld [vmem:[%s9019_s4 + $0x230] sm:$0xff]   ;;  %v3541_v28 = vld [vmem:[#allocation2 + $0x4] sm:$0x8] }
 0x1a1   : > { %6613 = vmatprep.subr.bf16.mxu0 %v7411_v20  ;;  %v7316_v57 = vld [vmem:[%s9021_s6 + $0x40] sm:$0xff]  }
 0x1a3   : > { %6688 = vmatpush3.bf16.msra.mxu1 %v7259_v32  ;;  %v5730_v32 = vcombine.low %v2930_v1, %v2930_v1 }
 0x1a4   : > { %6614 = vmatpush3.bf16.msra.mxu0 %v7260_v29  ;;  %6689 = vmatprep.subr.bf16.mxu1 %v7411_v20  ;;  %v7288_v29 = vld [vmem:[%s9019_s4 + $0x188] sm:$0xff]  }
 0x1a5   : > { %6615 = vmatprep.subr.bf16.mxu0 %v7411_v20 }
 0x1a6   : > { %6650 = vmatmul.mubr.bf16.gmra.mrb[64].mxu1 %v2817_v50 }
 0x1a7   : > { %6690 = vmatpush3.bf16.msra.mxu1 %v7262_v30  ;;  %6653 = vmatprep.mubr.msk.bf16.mxu1 %vm7412_vm3, %v7411_v20  ;;  %v8437_v30 = vld [vmem:[#allocation2 + $0xc] sm:$0xff]  }
 0x1a8   : > { %6616 = vmatpush3.bf16.msra.mxu0 %v7263_v33  ;;  %6691 = vmatprep.subr.bf16.mxu1 %v7411_v20  ;;  %v3364_v33 = vld [vmem:[#allocation2 + $0x4] sm:$0xc]  ;;  %v3415_v18 = vshll.u32 %v8437_v30, 16 }
 0x1a9   : > { %6657 = vmatprep.subr.bf16.mxu0 %v7411_v20 }
 0x1ab   : > { %6618 = vmatmul.mubr.bf16.vlgmr.msra.gmra.mrb[60].mxu0 %v2660_v39  ;;  %6692 = vmatpush3.bf16.msra.mxu1 %v7265_v26  ;;  %v3412_v26 = vshrl.u32 %v8437_v30, 16  ;;  %v7291_v39 = vld [vmem:[%s9019_s4 + $0x1f0] sm:$0xff]  }
 0x1ac   : > { %6658 = vmatpush3.bf16.msra.mxu0 %v7266_v36  ;;  %6693 = vmatprep.subr.bf16.mxu1 %v7411_v20  ;;  %v2976_v36 = vsel %vm1774_vm2, %v2966_v41, %v2975_v23  ;;  %v7304_v41 = vld [vmem:[#allocation2 + $0x14] ss:$0 sps:$4 sm:$0xff]  }
 0x1ad   : > { %6659 = vmatprep.subr.bf16.mxu0 %v7411_v20  ;;  %6621 = vmatprep.mubr.msk.bf16.mxu0 %vm7412_vm3, %v7411_v20  ;;  %v3250_v13 = vrot.slane %v7304_v41, 2 }
 0x1ae   : > { %6654 = vmatmul.mubr.bf16.gmra.mrb[68].mxu1 %v2816_v55  ;;  %v8432_v55 = vld [vmem:[#allocation2 + $0x8] sm:$0xf] }
 0x1af   : > { %6694 = vmatpush3.bf16.msra.mxu1 %v7267_v40  ;;  %6701 = vmatprep.mubr.msk.bf16.mxu1 %vm7412_vm3, %v7411_v20  ;;  %v5781_v50 = vcombine.low %v3364_v33, %v8432_v55 }
 0x1b0   : > { %6660 = vmatpush3.bf16.msra.mxu0 %v7268_v34  ;;  %6695 = vmatprep.subr.bf16.mxu1 %v7411_v20 }
 0x1b1   : > { %6661 = vmatprep.subr.bf16.mxu0 %v7411_v20  ;;  %v3404_v40 = vshrl.u32 %v5781_v50, 16  ;;  %v3407_v34 = vshll.u32 %v5781_v50, 16 }
 0x1b3   : > { %6622 = vmatmul.mubr.bf16.gmra.mrb[64].mxu0 %v2662_v45  ;;  %6696 = vmatpush3.bf16.msra.mxu1 %v7269_v62  ;;  %v3414_v62 = vrot.slane %v3412_v26, 2  ;;  %v8463_v45 = vld [vmem:[#allocation2 + $0x14] sm:$0x1f]  }
 0x1b4   : > { %6662 = vmatpush3.bf16.msra.mxu0 %v7270_v27  ;;  %6697 = vmatprep.subr.bf16.mxu1 %v7411_v20  ;;  %v3417_v27 = vrot.slane %v3415_v18, 3 }
 0x1b5   : > { %6663 = vmatprep.subr.bf16.mxu0 %v7411_v20  ;;  %6625 = vmatprep.mubr.msk.bf16.mxu0 %vm7412_vm3, %v7411_v20 }
 0x1b7   : > { %6698 = vmatpush3.bf16.msra.mxu1 %v7271_v47  ;;  %v7293_v47 = vld [vmem:[%s9019_s4 + $0x1f8] sm:$0xff]  }
 0x1b8   : > { %6664 = vmatpush3.bf16.msra.mxu0 %v7272_v48  ;;  %6699 = vmatprep.subr.bf16.mxu1 %v7411_v20  ;;  %v3406_v48 = vrot.slane %v3404_v40, 2 }
 0x1b9   : > { %6665 = vmatprep.subr.bf16.mxu0 %v7411_v20 }
 0x1bb   : > { %6626 = vmatmul.mubr.bf16.gmra.mrb[68].mxu0 %v2661_v42  ;;  %6700 = vmatpush3.bf16.msra.mxu1 %v7273_v51  ;;  %v7292_v42 = vld [vmem:[%s9019_s4 + $0x198] sm:$0xff]   ;;  %v3409_v51 = vrot.slane %v3407_v34, 3 }
 0x1bc   : > { %6666 = vmatpush3.bf16.msra.mxu0 %v7274_v53  ;;  %6741 = vmatprep.subr.bf16.mxu1 %v7411_v20  ;;  %v7294_v53 = vld [vmem:[%s9019_s4 + $0x1a0] sm:$0xff]  }
 0x1bd   : > { %6667 = vmatprep.subr.bf16.mxu0 %v7411_v20  ;;  %6673 = vmatprep.mubr.msk.bf16.mxu0 %vm7412_vm3, %v7411_v20  ;;  %v3410_v63 = vor.u32 %v3409_v51, %v3406_v48 }
 0x1be   : > { %6702 = vmatmul.mubr.bf16.vlgmr.msra.gmra.mrb[72].mxu1 %v5728_v59  ;;  %v3421_v59 = vshrl.u32 %v8463_v45, 16 }
 0x1bf   : > { %6742 = vmatpush3.bf16.msra.mxu1 %v7276_v54  ;;  %6705 = vmatprep.mubr.msk.bf16.mxu1 %vm7412_vm3, %v7411_v20  ;;  %v3418_v54 = vor.u32 %v3417_v27, %v3414_v62 }
 0x1c0   : > { %6668 = vmatpush3.bf16.msra.mxu0 %v7277_v61  ;;  %6743 = vmatprep.subr.bf16.mxu1 %v7411_v20  ;;  %v3424_v61 = vshll.u32 %v8463_v45, 16  ;;  %v3423_v1 = vrot.slane %v3421_v59, 2 }
 0x1c1   : > { %6669 = vmatprep.subr.bf16.mxu0 %v7411_v20 }
 0x1c3   : > { %6744 = vmatpush3.bf16.msra.mxu1 %v7278_v0  ;;  %v3419_v0 = vsel %vm3402_vm14, %v3410_v63, %v3418_v54  ;;  %v7313_v63 = vld [vmem:[%s9021_s6 + $0x8] sm:$0xff]  }
 0x1c4   : > { %6670 = vmatpush3.bf16.msra.mxu0 %v7279_v2  ;;  %6745 = vmatprep.subr.bf16.mxu1 %v7411_v20  ;;  %v3426_v2 = vrot.slane %v3424_v61, 3 }
 0x1c5   : > { %6671 = vmatprep.subr.bf16.mxu0 %v7411_v20 }
 0x1c6   : > { %6706 = vmatmul.mubr.bf16.gmra.mrb[76].mxu1 %v8406_v11  ;;  %v3427_v5 = vor.u32 %v3426_v2, %v3423_v1 }
 0x1c7   : > { %6746 = vmatpush3.bf16.msra.mxu1 %v7281_v10  ;;  %6709 = vmatprep.mubr.msk.bf16.mxu1 %vm7412_vm3, %v7411_v20 }
 0x1c8   : > { %6672 = vmatpush3.bf16.msra.mxu0 %v7282_v35  ;;  %6747 = vmatprep.subr.bf16.mxu1 %v7411_v20  ;;  %v3428_v10 = vsel %vm3402_vm14, %v3418_v54, %v3427_v5  ;;  %v3248_v35 = vrot.slane %v8406_v11, 2  ;;  %v7303_v11 = vld [vmem:[%s9019_s4 + $0x208] sm:$0xff]  }
 0x1c9   : > { %6713 = vmatprep.subr.bf16.mxu0 %v7411_v20 }
 0x1ca   : > { %v3249_v8 = vsel %vm3246_vm15, %v3247_v12, %v3248_v35 }
 0x1cb   : > { %6674 = vmatmul.mubr.bf16.vlgmr.msra.gmra.mrb[72].mxu0 %v2967_v21  ;;  %6748 = vmatpush3.bf16.msra.mxu1 %v7283_v52  ;;  %v3251_v52 = vsel %vm3246_vm15, %v3248_v35, %v3250_v13  ;;  %v7308_v21 = vld [vmem:[%s9019_s4 + $0x228] sm:$0xff]  }
 0x1cc   : > { %6714 = vmatpush3.bf16.msra.mxu0 %v7284_v19  ;;  %6749 = vmatprep.subr.bf16.mxu1 %v7411_v20  ;;  %v7307_v19 = vld [vmem:[%s9019_s4 + $0x220] sm:$0xff]  }
 0x1cd   : > { %6715 = vmatprep.subr.bf16.mxu0 %v7411_v20  ;;  %6677 = vmatprep.mubr.msk.bf16.mxu0 %vm7412_vm3, %v7411_v20 }
 0x1ce   : > { %6710 = vmatmul.mubr.bf16.gmra.mrb[80].mxu1 %v5730_v32  ;;  %v5808_v32 = vcombine.low %v3541_v28, %v8432_v55  ;;  %v7321_v28 = vld [vmem:[%s9021_s6 + $0x30] sm:$0xff]  }
 0x1cf   : > { %6750 = vmatpush3.bf16.msra.mxu1 %v7287_v44  ;;  %6757 = vmatprep.mubr.msk.bf16.mxu1 %vm7412_vm3, %v7411_v20  ;;  %v7310_v44 = vld [vmem:[%s9019_s4 + $0x238] sm:$0xff]  }
 0x1d0   : > { %6716 = vmatpush3.bf16.msra.mxu0 %v7288_v29  ;;  %6751 = vmatprep.subr.bf16.mxu1 %v7411_v20  ;;  %v3563_v29 = vrot.slane %v8437_v30, 3  ;;  %v7312_v30 = vld [vmem:[%s9021_s6] sm:$0xff]  }
 0x1d1   : > { %6717 = vmatprep.subr.bf16.mxu0 %v7411_v20 }
 0x1d3   : > { %6678 = vmatmul.mubr.bf16.gmra.mrb[76].mxu0 %v2976_v36  ;;  %6752 = vmatpush3.bf16.msra.mxu1 %v7289_v31  ;;  %v3565_v31 = vrot.slane %v8463_v45, 3 }
 0x1d4   : > { %6718 = vmatpush3.bf16.msra.mxu0 %v7290_v24  ;;  %6753 = vmatprep.subr.bf16.mxu1 %v7411_v20 }
 0x1d5   : > { %6719 = vmatprep.subr.bf16.mxu0 %v7411_v20  ;;  %6681 = vmatprep.mubr.msk.bf16.mxu0 %vm7412_vm3, %v7411_v20  ;;  %v3566_v50 = vsel %vm1355_vm1, %v3563_v29, %v3565_v31 }
 0x1d7   : > { %6754 = vmatpush3.bf16.msra.mxu1 %v7291_v39 }
 0x1d8   : > { %6720 = vmatpush3.bf16.msra.mxu0 %v7292_v42  ;;  %6755 = vmatprep.subr.bf16.mxu1 %v7411_v20 }
 0x1d9   : > { %6721 = vmatprep.subr.bf16.mxu0 %v7411_v20 }
 0x1db   : > { %6682 = vmatmul.mubr.bf16.gmra.mrb[80].mxu0 %v2975_v23  ;;  %6756 = vmatpush3.bf16.msra.mxu1 %v7293_v47  ;;  %v3562_v23 = vrot.slane %v5808_v32, 3 }
 0x1dc   : > { %6722 = vmatpush3.bf16.msra.mxu0 %v7294_v53  ;;  %6729 = vmatprep.mubr.msk.bf16.mxu0 %vm7412_vm3, %v7411_v20 }
 0x1dd   : > { %6723 = vmatprep.subr.bf16.mxu0 %v7411_v20  ;;  %6797 = vmatprep.subr.bf16.mxu1 %v7411_v20  ;;  %v3564_v33 = vsel %vm1355_vm1, %v3562_v23, %v3563_v29 }
 0x1de   : > { %6758 = vmatmul.mubr.bf16.vlgmr.msra.gmra.mrb[84].mxu1 %v3419_v0 }
 0x1df   : > { %6761 = vmatprep.mubr.msk.bf16.mxu1 %vm7412_vm3, %v7411_v20  ;;  %6798 = vmatpush3.bf16.msra.mxu1 %v7316_v57 }
 0x1e0   : > { %6724 = vmatpush3.bf16.msra.mxu0 %v7297_v37  ;;  %6799 = vmatprep.subr.bf16.mxu1 %v7411_v20 }
 0x1e1   : > { %6725 = vmatprep.subr.bf16.mxu0 %v7411_v20 }
 0x1e4   : > { %6726 = vmatpush3.bf16.msra.mxu0 %v7298_v3 }
 0x1e5   : > { %6727 = vmatprep.subr.bf16.mxu0 %v7411_v20 }
 0x1e6   : > { %6762 = vmatmul.mubr.bf16.gmra.mrb[88].mxu1 %v3428_v10 }
 0x1e7   : > { %6765 = vmatprep.mubr.msk.bf16.mxu1 %vm7412_vm3, %v7411_v20 }
 0x1e8   : > { %6728 = vmatpush3.bf16.msra.mxu0 %v7300_v7  ;;  %v7315_v7 = vld [vmem:[%s9021_s6 + $0x18] sm:$0xff]  }
 0x1e9   : > { %6769 = vmatprep.subr.bf16.mxu0 %v7411_v20 }
 0x1eb   : > { %6730 = vmatmul.mubr.bf16.vlgmr.msra.gmra.mrb[84].mxu0 %v3249_v8 }
 0x1ec   : > { %6770 = vmatpush3.bf16.msra.mxu0 %v7302_v46  ;;  %6733 = vmatprep.mubr.msk.bf16.mxu0 %vm7412_vm3, %v7411_v20 }
 0x1ed   : > { %6771 = vmatprep.subr.bf16.mxu0 %v7411_v20 }
 0x1ee   : > { %6766 = vmatmul.mubr.bf16.gmra.mrb[92].mxu1 %v3427_v5  ;;  %v7314_v5 = vld [vmem:[%s9021_s6 + $0x10] sm:$0xff]  }
 0x1ef   : > { %6813 = vmatprep.mubr.msk.bf16.mxu1 %vm7412_vm3, %v7411_v20 }
 0x1f0   : > { %6772 = vmatpush3.bf16.msra.mxu0 %v7303_v11  ;;  %v7317_v11 = vld [vmem:[%s9021_s6 + $0x20] sm:$0xff]  }
 0x1f1   : > { %6773 = vmatprep.subr.bf16.mxu0 %v7411_v20 }
 0x1f3   : > { %6734 = vmatmul.mubr.bf16.gmra.mrb[88].mxu0 %v3251_v52 }
 0x1f4   : > { %6774 = vmatpush3.bf16.msra.mxu0 %v7305_v15  ;;  %6737 = vmatprep.mubr.msk.bf16.mxu0 %vm7412_vm3, %v7411_v20 }
 0x1f5   : > { %6775 = vmatprep.subr.bf16.mxu0 %v7411_v20 }
 0x1f8   : > { %6776 = vmatpush3.bf16.msra.mxu0 %v7306_v16  ;;  %v7319_v16 = vld [vmem:[%s9021_s6 + $0x28] sm:$0xff]  }
 0x1f9   : > { %6777 = vmatprep.subr.bf16.mxu0 %v7411_v20 }
 0x1fb   : > { %6738 = vmatmul.mubr.bf16.gmra.mrb[92].mxu0 %v3250_v13  ;;  %v7318_v13 = vld [vmem:[%s9021_s6 + $0x48] sm:$0xff]  }
 0x1fc   : > { %6778 = vmatpush3.bf16.msra.mxu0 %v7307_v19  ;;  %6785 = vmatprep.mubr.msk.bf16.mxu0 %vm7412_vm3, %v7411_v20  ;;  %v7320_v19 = vld [vmem:[%s9021_s6 + $0x50] sm:$0xff]  }
 0x1fd   : > { %6779 = vmatprep.subr.bf16.mxu0 %v7411_v20  ;;  %6800 = vmatpush3.bf16.msra.mxu1 %v7318_v13 }
 0x1fe   : > { %6801 = vmatprep.subr.bf16.mxu1 %v7411_v20 }
 0x200   : > { %6780 = vmatpush3.bf16.msra.mxu0 %v7308_v21 }
 0x201   : > { %6781 = vmatprep.subr.bf16.mxu0 %v7411_v20  ;;  %6802 = vmatpush3.bf16.msra.mxu1 %v7320_v19 }
 0x202   : > { %6803 = vmatprep.subr.bf16.mxu1 %v7411_v20 }
 0x204   : > { %6782 = vmatpush3.bf16.msra.mxu0 %v7309_v58 }
 0x205   : > { %6783 = vmatprep.subr.bf16.mxu0 %v7411_v20 }
 0x208   : > { %6784 = vmatpush3.bf16.msra.mxu0 %v7310_v44  ;;  %v7322_v44 = vld [vmem:[%s9021_s6 + $0x58] sm:$0xff]  }
 0x209   : > { %6825 = vmatprep.subr.bf16.mxu0 %v7411_v20  ;;  %6804 = vmatpush3.bf16.msra.mxu1 %v7322_v44 }
 0x20a   : > { %6805 = vmatprep.subr.bf16.mxu1 %v7411_v20 }
 0x20b   : > { %6786 = vmatmul.mubr.bf16.vlgmr.msra.gmra.mrb[96].mxu0 %v3564_v33  ;;  %v7323_v33 = vld [vmem:[%s9021_s6 + $0x38] sm:$0xff]  }
 0x20c   : > { %6789 = vmatprep.mubr.msk.bf16.mxu0 %vm7412_vm3, %v7411_v20  ;;  %6826 = vmatpush3.bf16.msra.mxu0 %v7312_v30 }
 0x20d   : > { %6827 = vmatprep.subr.bf16.mxu0 %v7411_v20 }
 0x210   : > { %6828 = vmatpush3.bf16.msra.mxu0 %v7313_v63 }
 0x211   : > { %6829 = vmatprep.subr.bf16.mxu0 %v7411_v20 }
 0x213   : > { %6790 = vmatmul.mubr.bf16.gmra.mrb[100].mxu0 %v3566_v50 }
 0x214   : > { %6793 = vmatprep.mubr.msk.bf16.mxu0 %vm7412_vm3, %v7411_v20  ;;  %6830 = vmatpush3.bf16.msra.mxu0 %v7314_v5 }
 0x215   : > { %6831 = vmatprep.subr.bf16.mxu0 %v7411_v20 }
 0x218   : > { %6832 = vmatpush3.bf16.msra.mxu0 %v7315_v7 }
 0x219   : > { %6833 = vmatprep.subr.bf16.mxu0 %v7411_v20 }
 0x21b   : > { %6794 = vmatmul.mubr.bf16.gmra.mrb[104].mxu0 %v3565_v31  ;;  %v7324_v31 = vld [vmem:[%s9021_s6 + $0x60] sm:$0xff]  }
 0x21c   : > { %6841 = vmatprep.mubr.msk.bf16.mxu0 %vm7412_vm3, %v7411_v20  ;;  %6834 = vmatpush3.bf16.msra.mxu0 %v7317_v11 }
 0x21d   : > { %6835 = vmatprep.subr.bf16.mxu0 %v7411_v20  ;;  %6806 = vmatpush3.bf16.msra.mxu1 %v7324_v31 }
 0x21e   : > { %6807 = vmatprep.subr.bf16.mxu1 %v7411_v20 }
 0x220   : > { %6836 = vmatpush3.bf16.msra.mxu0 %v7319_v16 }
 0x221   : > { %6837 = vmatprep.subr.bf16.mxu0 %v7411_v20 }
 0x224   : > { %6838 = vmatpush3.bf16.msra.mxu0 %v7321_v28 }
 0x225   : > { %6839 = vmatprep.subr.bf16.mxu0 %v7411_v20 }
 0x228   : > { %6840 = vmatpush3.bf16.msra.mxu0 %v7323_v33 }
 0x229   : > { %6881 = vmatprep.subr.bf16.mxu0 %v7411_v20 }
 0x251   : > { %v2614_v55 = vpop.f32.mrb[48].mxu1 }
 0x252   : > { %v6591_v24 = vpop.f32.mrb[49].mxu1 }
 0x253   : > { %v2617_v26 = vpop.f32.mrb[50].mxu1 }
 0x254   : > { %v6592_v18 = vpop.f32.mrb[51].mxu1 }
 0x259   : > { %v2622_v36 = vpop.f32.mrb[52].mxu1 }
 0x25a   : > { %v6595_v39 = vpop.f32.mrb[53].mxu1 }
 0x25b   : > { %v2625_v40 = vpop.f32.mrb[54].mxu1 }
 0x25c   : > { %v6596_v34 = vpop.f32.mrb[55].mxu1 }
 0x25d   : > { %v2504_v42 = vpop.f32.mrb[48].mxu0 }
 0x25e   : > { %v2615_v62 = vadd.f32 %v2614_v55, %v2504_v42  ;;  %v6563_v27 = vpop.f32.mrb[49].mxu0 }
 0x25f   : > { %v2507_v45 = vpop.f32.mrb[50].mxu0  ;;  %v7329_v27 = vld [vmem:[%s9021_s6 + $0x70] sm:$0xff]  }
 0x260   : > { %v8556_v47 = vadd.f32 %v2617_v26, %v2507_v45  ;;  %v6564_v48 = vpop.f32.mrb[51].mxu0 }
 0x261   : > { %v2630_v51 = vpop.f32.mrb[56].mxu1 }
 0x262   : > { %v6599_v53 = vpop.f32.mrb[57].mxu1 }
 0x263   : > { %v2633_v54 = vpop.f32.mrb[58].mxu1  ;;  %v7332_v53 = vld [vmem:[%s9021_s6 + $0x78] sm:$0xff]  }
 0x264   : > { %v6600_v59 = vpop.f32.mrb[59].mxu1 }
 0x265   : > { %v2512_v61 = vpop.f32.mrb[52].mxu0 }
 0x266   : > { %v8561_v37 = vadd.f32 %v2622_v36, %v2512_v61  ;;  %v6567_v0 = vpop.f32.mrb[53].mxu0 }
 0x267   : > { %v2515_v1 = vpop.f32.mrb[54].mxu0 }
 0x268   : > { %v8563_v2 = vadd.f32 %v2625_v40, %v2515_v1  ;;  %v6568_v3 = vpop.f32.mrb[55].mxu0  ;;  %v7327_v40 = vld [vmem:[%s9021_s6 + $0x68] sm:$0xff]  }
 0x269   : > { %6808 = vmatpush3.bf16.msra.mxu1 %v7327_v40 }
 0x26a   : > { %6809 = vmatprep.subr.bf16.mxu1 %v7411_v20 }
 0x26d   : > { %v2520_v6 = vpop.f32.mrb[56].mxu0  ;;  %6810 = vmatpush3.bf16.msra.mxu1 %v7329_v27 }
 0x26e   : > { %v8576_v10 = vadd.f32 %v2630_v51, %v2520_v6  ;;  %v6571_v35 = vpop.f32.mrb[57].mxu0  ;;  %6811 = vmatprep.subr.bf16.mxu1 %v7411_v20 }
 0x26f   : > { %v2523_v12 = vpop.f32.mrb[58].mxu0 }
 0x270   : > { %v6572_v8 = vpop.f32.mrb[59].mxu0 }
 0x271   : > { %v2903_v46 = vpop.f32.mrb[60].mxu1  ;;  %6812 = vmatpush3.bf16.msra.mxu1 %v7332_v53 }
 0x272   : > { %v6647_v41 = vpop.f32.mrb[61].mxu1  ;;  %6853 = vmatprep.subr.bf16.mxu1 %v7411_v20 }
 0x273   : > { %v2906_v15 = vpop.f32.mrb[62].mxu1 }
 0x274   : > { %v6648_v52 = vpop.f32.mrb[63].mxu1 }
 0x279   : > { %v2911_v21 = vpop.f32.mrb[64].mxu1 }
 0x27a   : > { %v6651_v58 = vpop.f32.mrb[65].mxu1 }
 0x27b   : > { %v2914_v32 = vpop.f32.mrb[66].mxu1 }
 0x27c   : > { %v6652_v29 = vpop.f32.mrb[67].mxu1 }
 0x27e   : > { %v2748_v23 = vpop.f32.mrb[60].mxu0 }
 0x27f   : > { %v2770_v50 = vadd.f32 %v2748_v23, %v2615_v62  ;;  %v6619_v55 = vpop.f32.mrb[61].mxu0 }
 0x280   : > { %v2751_v30 = vpop.f32.mrb[62].mxu0 }
 0x281   : > { %v2771_v24 = vadd.f32 %v2751_v30, %v8556_v47  ;;  %v6620_v26 = vpop.f32.mrb[63].mxu0  ;;  %v2919_v18 = vpop.f32.mrb[68].mxu1  ;;  %v2925_v36 = vadd.f32 %v2903_v46, %v2770_v50 }
 0x282   : > { %v6655_v39 = vpop.f32.mrb[69].mxu1 }
 0x283   : > { %v2922_v34 = vpop.f32.mrb[70].mxu1  ;;  %v2926_v42 = vadd.f32 %v2906_v15, %v2771_v24 }
 0x284   : > { %v6656_v62 = vpop.f32.mrb[71].mxu1 }
 0x286   : > { %v2756_v45 = vpop.f32.mrb[64].mxu0 }
 0x287   : > { %v2772_v47 = vadd.f32 %v2756_v45, %v8561_v37  ;;  %v6623_v48 = vpop.f32.mrb[65].mxu0 }
 0x288   : > { %v2759_v51 = vpop.f32.mrb[66].mxu0 }
 0x289   : > { %v2773_v54 = vadd.f32 %v2759_v51, %v8563_v2  ;;  %v6624_v59 = vpop.f32.mrb[67].mxu0  ;;  %v2927_v61 = vadd.f32 %v2911_v21, %v2772_v47 }
 0x28b   : > { %v2928_v63 = vadd.f32 %v2914_v32, %v2773_v54 }
 0x28e   : > { %v2764_v0 = vpop.f32.mrb[68].mxu0 }
 0x28f   : > { %v2774_v37 = vadd.f32 %v2764_v0, %v8576_v10  ;;  %v6627_v1 = vpop.f32.mrb[69].mxu0 }
 0x290   : > { %v2767_v3 = vpop.f32.mrb[70].mxu0 }
 0x291   : > { %v6628_v5 = vpop.f32.mrb[71].mxu0  ;;  %v3194_v6 = vpop.f32.mrb[72].mxu1  ;;  %v2929_v7 = vadd.f32 %v2919_v18, %v2774_v37 }
 0x292   : > { %v6703_v57 = vpop.f32.mrb[73].mxu1 }
 0x293   : > { %v3197_v35 = vpop.f32.mrb[74].mxu1 }
 0x294   : > { %v6704_v12 = vpop.f32.mrb[75].mxu1 }
 0x299   : > { %v3202_v2 = vpop.f32.mrb[76].mxu1 }
 0x29a   : > { %v6707_v46 = vpop.f32.mrb[77].mxu1 }
 0x29b   : > { %v3205_v8 = vpop.f32.mrb[78].mxu1 }
 0x29c   : > { %v6708_v41 = vpop.f32.mrb[79].mxu1 }
 0x29e   : > { %v3062_v11 = vpop.f32.mrb[72].mxu0 }
 0x29f   : > { %v3084_v13 = vadd.f32 %v3062_v11, %v2925_v36  ;;  %v6675_v15 = vpop.f32.mrb[73].mxu0 }
 0x2a0   : > { %v3065_v52 = vpop.f32.mrb[74].mxu0 }
 0x2a1   : > { %v3085_v16 = vadd.f32 %v3065_v52, %v2926_v42  ;;  %v6676_v19 = vpop.f32.mrb[75].mxu0  ;;  %v3210_v21 = vpop.f32.mrb[80].mxu1  ;;  %v3216_v10 = vadd.f32 %v3194_v6, %v3084_v13 }
 0x2a2   : > { %v6711_v58 = vpop.f32.mrb[81].mxu1 }
 0x2a3   : > { %v3213_v28 = vpop.f32.mrb[82].mxu1  ;;  %v3217_v44 = vadd.f32 %v3197_v35, %v3085_v16 }
 0x2a4   : > { %v6712_v32 = vpop.f32.mrb[83].mxu1  ;;  %v5817_v28 = vld [vmem:[%s9020_s5] ss:$0 sm:$0xff] }
 0x2a6   : > { %v3070_v29 = vpop.f32.mrb[76].mxu0 }
 0x2a7   : > { %v3086_v23 = vadd.f32 %v3070_v29, %v2927_v61  ;;  %v6679_v33 = vpop.f32.mrb[77].mxu0 }
 0x2a8   : > { %v3073_v31 = vpop.f32.mrb[78].mxu0 }
 0x2a9   : > { %v3087_v50 = vadd.f32 %v3073_v31, %v2928_v63  ;;  %v6680_v55 = vpop.f32.mrb[79].mxu0  ;;  %v3218_v30 = vadd.f32 %v3202_v2, %v3086_v23 }
 0x2ab   : > { %v3219_v24 = vadd.f32 %v3205_v8, %v3087_v50 }
 0x2ae   : > { %v3078_v26 = vpop.f32.mrb[80].mxu0 }
 0x2af   : > { %v3088_v18 = vadd.f32 %v3078_v26, %v2929_v7  ;;  %v6683_v36 = vpop.f32.mrb[81].mxu0 }
 0x2b0   : > { %v3081_v39 = vpop.f32.mrb[82].mxu0 }
 0x2b1   : > { %v6684_v40 = vpop.f32.mrb[83].mxu0  ;;  %v3514_v34 = vpop.f32.mrb[84].mxu1  ;;  %v3220_v42 = vadd.f32 %v3210_v21, %v3088_v18 }
 0x2b2   : > { %v6759_v62 = vpop.f32.mrb[85].mxu1 }
 0x2b3   : > { %v3517_v27 = vpop.f32.mrb[86].mxu1 }
 0x2b4   : > { %v6760_v45 = vpop.f32.mrb[87].mxu1 }
 0x2b9   : > { %v3522_v47 = vpop.f32.mrb[88].mxu1 }
 0x2ba   : > { %v6763_v48 = vpop.f32.mrb[89].mxu1 }
 0x2bb   : > { %v3525_v51 = vpop.f32.mrb[90].mxu1  ;;  %v3779_v48 = vld [vmem:[#allocation3] sm:$0x8] }
 0x2bc   : > { %v6764_v53 = vpop.f32.mrb[91].mxu1 }
 0x2be   : > { %v3337_v54 = vpop.f32.mrb[84].mxu0 }
 0x2bf   : > { %v3359_v59 = vadd.f32 %v3337_v54, %v3216_v10  ;;  %v6731_v61 = vpop.f32.mrb[85].mxu0 }
 0x2c0   : > { %v3340_v63 = vpop.f32.mrb[86].mxu0 }
 0x2c1   : > { %v3360_v0 = vadd.f32 %v3340_v63, %v3217_v44  ;;  %v6732_v37 = vpop.f32.mrb[87].mxu0  ;;  %v3530_v1 = vpop.f32.mrb[92].mxu1  ;;  %v3536_v3 = vadd.f32 %v3514_v34, %v3359_v59 }
 0x2c2   : > { %v6767_v5 = vpop.f32.mrb[93].mxu1 }
 0x2c3   : > { %v3533_v6 = vpop.f32.mrb[94].mxu1  ;;  %v3537_v7 = vadd.f32 %v3517_v27, %v3360_v0 }
 0x2c4   : > { %v6768_v57 = vpop.f32.mrb[95].mxu1 }
 0x2c6   : > { %v3345_v35 = vpop.f32.mrb[88].mxu0 }
 0x2c7   : > { %v3361_v12 = vadd.f32 %v3345_v35, %v3218_v30  ;;  %v6735_v2 = vpop.f32.mrb[89].mxu0 }
 0x2c8   : > { %v3348_v46 = vpop.f32.mrb[90].mxu0 }
 0x2c9   : > { %v3362_v8 = vadd.f32 %v3348_v46, %v3219_v24  ;;  %v6736_v41 = vpop.f32.mrb[91].mxu0  ;;  %v3538_v11 = vadd.f32 %v3522_v47, %v3361_v12 }
 0x2cb   : > { %v3539_v13 = vadd.f32 %v3525_v51, %v3362_v8 }
 0x2ce   : > { %v3353_v15 = vpop.f32.mrb[92].mxu0 }
 0x2cf   : > { %v3363_v52 = vadd.f32 %v3353_v15, %v3220_v42  ;;  %v6739_v16 = vpop.f32.mrb[93].mxu0 }
 0x2d0   : > { %v3356_v19 = vpop.f32.mrb[94].mxu0 }
 0x2d1   : > { %v6740_v21 = vpop.f32.mrb[95].mxu0  ;;  %v3540_v10 = vadd.f32 %v3530_v1, %v3363_v52 }
 0x2de   : > { %v3652_v58 = vpop.f32.mrb[96].mxu0 }
 0x2df   : > { %v3674_v44 = vadd.f32 %v3652_v58, %v3536_v3  ;;  %v6787_v32 = vpop.f32.mrb[97].mxu0 }
 0x2e0   : > { %v3655_v29 = vpop.f32.mrb[98].mxu0 }
 0x2e1   : > { %v3686_v23 = vadd.f32 %v5817_v28, %v3674_v44  ;;  %v3675_v33 = vadd.f32 %v3655_v29, %v3537_v7  ;;  %v6788_v31 = vpop.f32.mrb[99].mxu0 }
 0x2e3   : > { %v3691_v50 = vmax.f32 %v3686_v23, 0.0  ;;  %v3687_v55 = vadd.f32 %v5817_v28, %v3675_v33 }
 0x2e5   : > { %v3696_v30 = vmul.f32 %v3691_v50, %v8142_v60  ;;  %v3692_v24 = vmax.f32 %v3687_v55, 0.0 }
 0x2e6   : > { %v3660_v26 = vpop.f32.mrb[100].mxu0 }
 0x2e7   : > { %v6054_v18 = vpack.c.bf16 %v3696_v30, %v3696_v30  ;;  %v3697_v36 = vmul.f32 %v3692_v24, %v8147_v43  ;;  %v3676_v39 = vadd.f32 %v3660_v26, %v3538_v11  ;;  %v6791_v40 = vpop.f32.mrb[101].mxu0  ;;  %v7326_v26 = vld [vmem:[%s9021_s6 + $0xc0] sm:$0xff]  }
 0x2e8   : > { %v3663_v34 = vpop.f32.mrb[102].mxu0 }
 0x2e9   : > { %v3725_v42 = vshll.u32 %v6054_v18, 16  ;;  %v3728_v62 = vshrl.u32 %v6054_v18, 16  ;;  %v6055_v27 = vpack.c.bf16 %v3697_v36, %v3697_v36  ;;  %v3688_v45 = vadd.f32 %v5817_v28, %v3676_v39  ;;  %v6792_v47 = vpop.f32.mrb[103].mxu0 }
 0x2ea   : > { %v3677_v51 = vadd.f32 %v3663_v34, %v3539_v13 }
 0x2eb   : > { %v3727_v53 = vrot.slane %v3725_v42, 5  ;;  %v3730_v54 = vrot.slane %v3728_v62, 4  ;;  %v3734_v59 = vshll.u32 %v6055_v27, 16  ;;  %v3738_v61 = vshrl.u32 %v6055_v27, 16 }
 0x2ec   : > { %v3693_v63 = vmax.f32 %v3688_v45, 0.0  ;;  %v3689_v0 = vadd.f32 %v5817_v28, %v3677_v51  ;;  %v7328_v51 = vld [vmem:[%s9021_s6 + $0xc8] sm:$0xff]  }
 0x2ed   : > { %v3731_v37 = vor.u32 %v3730_v54, %v3727_v53  ;;  %v3780_v1 = vsel %vm8155_vm6, %v3727_v53, %v3779_v48  ;;  %v3736_v3 = vrot.slane %v3734_v59, 5  ;;  %v3740_v5 = vrot.slane %v3738_v61, 4  ;;  %v3786_v53 = vld [vmem:[#allocation3 + $0x14] sm:$0x3] }
 0x2ee   : > { %3781 = vst [vmem:[#allocation3] sm:$0x8] %v3780_v1  ;;  %v3698_v6 = vmul.f32 %v3693_v63, %v8150_v17  ;;  %v3694_v7 = vmax.f32 %v3689_v0, 0.0  ;;  %v3668_v57 = vpop.f32.mrb[104].mxu0 }
 0x2ef   : > { %v3732_v35 = vrot.slane %v3731_v37, 4  ;;  %v3741_v12 = vor.u32 %v3740_v5, %v3736_v3  ;;  %v3678_v2 = vadd.f32 %v3668_v57, %v3540_v10  ;;  %v6795_v46 = vpop.f32.mrb[105].mxu0 }
 0x2f0   : > { %v6056_v8 = vpack.c.bf16 %v3698_v6, %v3698_v6  ;;  %v3699_v41 = vmul.f32 %v3694_v7, %v8171_v56  ;;  %v3671_v11 = vpop.f32.mrb[106].mxu0  ;;  %v7337_v46 = vld [vmem:[%s9021_s6 + $0x88] sm:$0xff]  }
 0x2f1   : > { %v3737_v13 = vsel %vm8166_vm9, %v3732_v35, %v3736_v3  ;;  %v3690_v22 = vadd.f32 %v5817_v28, %v3678_v2  ;;  %v6796_v15 = vpop.f32.mrb[107].mxu0  ;;  %v3742_v21 = vrot.slane %v3741_v12, 4  ;;  %v7334_v3 = vld [vmem:[%s9021_s6 + $0x80] sm:$0xff]   ;;  %v7338_v11 = vld [vmem:[%s9021_s6 + $0xe8] sm:$0xff]  }
 0x2f2   : > { %3782 = vst [vmem:[#allocation3 + $0x4] sm:$0xf] %v3737_v13  ;;  %v3744_v52 = vshll.u32 %v6056_v8, 16  ;;  %v3748_v16 = vshrl.u32 %v6056_v8, 16  ;;  %v6057_v19 = vpack.c.bf16 %v3699_v41, %v3699_v41  ;;  %v7336_v12 = vld [vmem:[%s9021_s6 + $0xe0] sm:$0xff]  }
 0x2f3   : > { %v3695_v58 = vmax.f32 %v3690_v22, 0.0  ;;  %v7340_v22 = vld [vmem:[%s9021_s6 + $0x90] sm:$0xff]  }
 0x2f4   : > { %v3746_v44 = vrot.slane %v3744_v52, 5  ;;  %v3750_v32 = vrot.slane %v3748_v16, 4  ;;  %v3754_v29 = vshll.u32 %v6057_v19, 16  ;;  %v3758_v10 = vshrl.u32 %v6057_v19, 16  ;;  %v7341_v16 = vld [vmem:[%s9021_s6 + $0xf0] sm:$0xff]   ;;  %v7342_v19 = vld [vmem:[%s9021_s6 + $0x98] sm:$0xff]  }
 0x2f5   : > { %v3700_v23 = vmul.f32 %v3695_v58, %v8180_v9  ;;  %v3789_v39 = vld [vmem:[#allocation3] sm:$0xf] }
 0x2f6   : > { %v3747_v33 = vsel %vm8166_vm9, %v3742_v21, %v3746_v44  ;;  %v3751_v31 = vor.u32 %v3750_v32, %v3746_v44  ;;  %v3756_v50 = vrot.slane %v3754_v29, 5  ;;  %v3760_v55 = vrot.slane %v3758_v10, 4  ;;  %v4219_v32 = vld [vmem:[#allocation3] sm:$0x8] }
 0x2f7   : > { %3783 = vst [vmem:[#allocation3 + $0x8] sm:$0xf] %v3747_v33  ;;  %v6058_v28 = vpack.c.bf16 %v3700_v23, %v3700_v23  ;;  %v7343_v29 = vld [vmem:[%s9021_s6 + $0xf8] sm:$0xff]   ;;  %v7344_v33 = vld [vmem:[%s9021_s6 + $0xa0] sm:$0xff]  }
 0x2f8   : > { %v3752_v30 = vrot.slane %v3751_v31, 4  ;;  %v3761_v24 = vor.u32 %v3760_v55, %v3756_v50 }
 0x2f9   : > { %v3764_v18 = vshll.u32 %v6058_v28, 16  ;;  %v3768_v36 = vshrl.u32 %v6058_v28, 16  ;;  %v8645_v40 = vld [vmem:[#allocation3 + $0x4] sm:$0xf] }
 0x2fa   : > { %v3757_v34 = vsel %vm8166_vm9, %v3752_v30, %v3756_v50  ;;  %v5839_v42 = vcombine.low %v3789_v39, %v8645_v40  ;;  %v3762_v62 = vrot.slane %v3761_v24, 4  ;;  %v8712_v21 = vld [vmem:[#allocation3 + $0x4] sm:$0xf]  ;;  %v7348_v24 = vld [vmem:[%s9021_s6 + $0xa8] sm:$0xff]  }
 0x2fb   : > { %3784 = vst [vmem:[#allocation3 + $0xc] sm:$0xf] %v3757_v34  ;;  %v3766_v27 = vrot.slane %v3764_v18, 5  ;;  %v3770_v45 = vrot.slane %v3768_v36, 4  ;;  %v8728_v23 = vcombine.low %v4219_v32, %v8712_v21  ;;  %v7347_v30 = vld [vmem:[%s9021_s6 + $0x140] sm:$0xff]   ;;  %v7349_v39 = vld [vmem:[%s9021_s6 + $0x148] sm:$0xff]  }
 0x2fc   : > { %6842 = vmatmul.mubr.bf16.vlgmr.msra.gmra.mrb[108].mxu0 %v5839_v42  ;;  %v3844_v54 = vshll.u32 %v5839_v42, 16  ;;  %v3842_v37 = vshrl.u32 %v5839_v42, 16  ;;  %v7350_v34 = vld [vmem:[%s9021_s6 + $0xb0] sm:$0xff]  }
 0x2fd   : > { %v3767_v47 = vsel %vm8166_vm9, %v3762_v62, %v3766_v27  ;;  %v3771_v48 = vor.u32 %v3770_v45, %v3766_v27  ;;  %6882 = vmatpush3.bf16.msra.mxu0 %v7326_v26  ;;  %6845 = vmatprep.mubr.msk.bf16.mxu0 %vm7412_vm3, %v7411_v20  ;;  %v4257_v28 = vrot.slane %v8728_v23, 3  ;;  %v7352_v62 = vld [vmem:[%s9021_s6 + $0x150] sm:$0xff]   ;;  %v4081_v27 = vld [vmem:[#allocation3] sm:$0xe] }
 0x2fe   : > { %3785 = vst [vmem:[#allocation3 + $0x10] sm:$0xf] %v3767_v47  ;;  %6883 = vmatprep.subr.bf16.mxu0 %v7411_v20  ;;  %v3846_v0 = vrot.slane %v3844_v54, 1  ;;  %v8714_v58 = vld [vmem:[#allocation3 + $0x8] sm:$0xf]  ;;  %v7353_v45 = vld [vmem:[%s9021_s6 + $0xb8] sm:$0xff]   ;;  %v5875_v47 = vcombine.low %v4081_v27, %v8645_v40 }
 0x2ff   : > { %v3772_v59 = vrot.slane %v3771_v48, 4  ;;  %v7356_v40 = vld [vmem:[%s9021_s6 + $0x100] sm:$0xff]  }
 0x300   : > { %v3847_v5 = vor.u32 %v3846_v0, %v3842_v37  ;;  %v4102_v54 = vrot.slane %v5875_v47, 1  ;;  %v7359_v0 = vld [vmem:[%s9021_s6 + $0x168] sm:$0xff]   ;;  %v7360_v37 = vld [vmem:[%s9021_s6 + $0x110] sm:$0xff]  }
 0x301   : > { %v3787_v61 = vsel %vm8205_vm12, %v3772_v59, %v3786_v53  ;;  %6884 = vmatpush3.bf16.msra.mxu0 %v7328_v51  ;;  %v7355_v53 = vld [vmem:[%s9021_s6 + $0x158] sm:$0xff]  }
 0x302   : > { %3788 = vst [vmem:[#allocation3 + $0x14] sm:$0x3] %v3787_v61  ;;  %6885 = vmatprep.subr.bf16.mxu0 %v7411_v20  ;;  %v8664_v63 = vld [vmem:[#allocation3 + $0x8] sm:$0xff]  }
 0x303   : > { %v3849_v1 = vshll.u32 %v8664_v63, 16  ;;  %v3853_v8 = vshrl.u32 %v8664_v63, 16  ;;  %v8703_v52 = vld [vmem:[#allocation3 + $0xc] sm:$0xf]  ;;  %v4103_v51 = vrot.slane %v8664_v63, 1  ;;  %v7357_v61 = vld [vmem:[%s9021_s6 + $0x160] sm:$0xff]  }
 0x304   : > { %6846 = vmatmul.mubr.bf16.gmra.mrb[112].mxu0 %v8664_v63  ;;  %v8721_v44 = vcombine.low %v8714_v58, %v8703_v52 }
 0x305   : > { %6886 = vmatpush3.bf16.msra.mxu0 %v7331_v49  ;;  %6849 = vmatprep.mubr.msk.bf16.mxu0 %vm7412_vm3, %v7411_v20  ;;  %v3851_v6 = vrot.slane %v3849_v1, 1  ;;  %v8677_v7 = vld [vmem:[#allocation3 + $0x10] ss:$0 sps:$4 sm:$0x77]   ;;  %v4104_v59 = vsel %vm2657_vm13, %v4102_v54, %v4103_v51 }
 0x306   : > { %6887 = vmatprep.subr.bf16.mxu0 %v7411_v20  ;;  %v3857_v35 = vshll.u32 %v8677_v7, 16  ;;  %v7335_v2 = vld [vmem:[#allocation3 + $0x10] ss:$0 sps:$4 sm:$0x33]   ;;  %v3861_v10 = vshrl.u32 %v8677_v7, 16  ;;  %v4258_v50 = vrot.slane %v8721_v44, 3 }
 0x307   : > { %v3852_v57 = vsel %vm495_vm0, %v3847_v5, %v3851_v6  ;;  %v3855_v13 = vor.u32 %v3853_v8, %v3851_v6  ;;  %v8744_v26 = vld [vmem:[#allocation3 + $0x10] sm:$0xf]  ;;  %v4105_v63 = vrot.slane %v8677_v7, 1  ;;  %v7363_v5 = vld [vmem:[%s9021_s6 + $0x178] sm:$0xff]   ;;  %v7364_v6 = vld [vmem:[%s9021_s6 + $0x120] sm:$0xff]  }
 0x308   : > { %6814 = vmatmul.mubr.bf16.vlgmr.msra.gmra.mrb[96].mxu1 %v3852_v57  ;;  %v3859_v41 = vrot.slane %v3857_v35, 1  ;;  %v4259_v18 = vsel %vm1355_vm1, %v4257_v28, %v4258_v50  ;;  %v7358_v49 = vld [vmem:[%s9021_s6 + $0x108] sm:$0xff]   ;;  %v7366_v7 = vld [vmem:[%s9021_s6 + $0x1c0] sm:$0xff]   ;;  %v5952_v57 = vcombine.low %v8712_v21, %v8714_v58  ;;  %v8855_v21 = vcombine.low %v8703_v52, %v8744_v26  ;;  %v7373_v52 = vld [vmem:[%s9021_s6 + $0x1d8] sm:$0xff]  }
 0x309   : > { %6888 = vmatpush3.bf16.msra.mxu0 %v7333_v38  ;;  %6854 = vmatpush3.bf16.msra.mxu1 %v7334_v3  ;;  %v4224_v55 = vld [vmem:[#allocation3 + $0x14] sm:$0x1]  ;;  %v4106_v1 = vsel %vm2657_vm13, %v4103_v51, %v4105_v63  ;;  %v7362_v3 = vld [vmem:[%s9021_s6 + $0x118] sm:$0xff]   ;;  %v7367_v35 = vld [vmem:[%s9021_s6 + $0x128] sm:$0xff]  }
 0x30a   : > { %6889 = vmatprep.subr.bf16.mxu0 %v7411_v20  ;;  %6855 = vmatprep.subr.bf16.mxu1 %v7411_v20  ;;  %v3860_v15 = vsel %vm495_vm0, %v3855_v13, %v3859_v41  ;;  %v3863_v31 = vor.u32 %v3861_v10, %v3859_v41  ;;  %v5902_v36 = vcombine.low %v8744_v26, %v4224_v55  ;;  %v7361_v38 = vld [vmem:[%s9021_s6 + $0x170] sm:$0xff]   ;;  %v4399_v13 = vshll.u32 %v8728_v23, 16 }
 0x30b   : > { %6817 = vmatprep.mubr.msk.bf16.mxu1 %vm7412_vm3, %v7411_v20  ;;  %v4374_v8 = vld [vmem:[#allocation3 + $0x14] sm:$0x3] }
 0x30c   : > { %6850 = vmatmul.mubr.bf16.gmra.mrb[116].mxu0 %v7335_v2  ;;  %v4260_v42 = vrot.slane %v5902_v36, 3  ;;  %v4407_v2 = vshll.u32 %v8721_v44, 16  ;;  %v7369_v41 = vld [vmem:[%s9021_s6 + $0x130] sm:$0xff]   ;;  %v8881_v36 = vld [vmem:[#allocation3 + $0x8] sm:$0xf] }
 0x30d   : > { %6890 = vmatpush3.bf16.msra.mxu0 %v7336_v12  ;;  %6897 = vmatprep.mubr.msk.bf16.mxu0 %vm7412_vm3, %v7411_v20  ;;  %v4404_v12 = vshrl.u32 %v8721_v44, 16  ;;  %v7372_v44 = vld [vmem:[%s9021_s6 + $0x138] sm:$0xff]  }
 0x30e   : > { %6856 = vmatpush3.bf16.msra.mxu1 %v7337_v46  ;;  %6891 = vmatprep.subr.bf16.mxu0 %v7411_v20  ;;  %v4261_v48 = vsel %vm1355_vm1, %v4258_v50, %v4260_v42  ;;  %v7368_v46 = vld [vmem:[%s9021_s6 + $0x1c8] sm:$0xff]   ;;  %v7374_v50 = vld [vmem:[%s9021_s6 + $0x180] sm:$0xff]  }
 0x30f   : > { %6857 = vmatprep.subr.bf16.mxu1 %v7411_v20 }
 0x310   : > { %6818 = vmatmul.mubr.bf16.gmra.mrb[100].mxu1 %v3860_v15  ;;  %v4409_v15 = vrot.slane %v4407_v2, 4 }
 0x311   : > { %6892 = vmatpush3.bf16.msra.mxu0 %v7338_v11  ;;  %6821 = vmatprep.mubr.msk.bf16.mxu1 %vm7412_vm3, %v7411_v20  ;;  %v4396_v11 = vshrl.u32 %v8728_v23, 16 }
 0x312   : > { %6858 = vmatpush3.bf16.msra.mxu1 %v7340_v22  ;;  %6893 = vmatprep.subr.bf16.mxu0 %v7411_v20  ;;  %v4406_v22 = vrot.slane %v4404_v12, 3 }
 0x313   : > { %6859 = vmatprep.subr.bf16.mxu1 %v7411_v20  ;;  %v4398_v32 = vrot.slane %v4396_v11, 3  ;;  %v7390_v11 = vld [vmem:[%s9021_s6 + $0x1b8] sm:$0xff]  }
 0x314   : > { %v4410_v10 = vor.u32 %v4409_v15, %v4406_v22  ;;  %v4691_v15 = vrot.slane %v8855_v21, 2 }
 0x315   : > { %6894 = vmatpush3.bf16.msra.mxu0 %v7341_v16  ;;  %v5927_v16 = vcombine.low %v8744_v26, %v4374_v8  ;;  %v5954_v26 = vcombine.low %v4374_v8, %v4374_v8 }
 0x316   : > { %6860 = vmatpush3.bf16.msra.mxu1 %v7342_v19  ;;  %6895 = vmatprep.subr.bf16.mxu0 %v7411_v20  ;;  %v7371_v19 = vld [vmem:[%s9021_s6 + $0x1d0] sm:$0xff]  }
 0x317   : > { %6861 = vmatprep.subr.bf16.mxu1 %v7411_v20  ;;  %v4413_v23 = vshrl.u32 %v5927_v16, 16 }
 0x318   : > { %6822 = vmatmul.mubr.bf16.gmra.mrb[104].mxu1 %v3863_v31 }
 0x319   : > { %6896 = vmatpush3.bf16.msra.mxu0 %v7343_v29  ;;  %6869 = vmatprep.mubr.msk.bf16.mxu1 %vm7412_vm3, %v7411_v20  ;;  %v4401_v29 = vrot.slane %v4399_v13, 4  ;;  %v4415_v28 = vrot.slane %v4413_v23, 3  ;;  %v7396_v23 = vld [vmem:[%s9021_s6 + $0x218] sm:$0xff]  }
 0x31a   : > { %6862 = vmatpush3.bf16.msra.mxu1 %v7344_v33  ;;  %6937 = vmatprep.subr.bf16.mxu0 %v7411_v20  ;;  %v4416_v33 = vshll.u32 %v5927_v16, 16 }
 0x31b   : > { %6863 = vmatprep.subr.bf16.mxu1 %v7411_v20  ;;  %v4402_v31 = vor.u32 %v4401_v29, %v4398_v32  ;;  %v7395_v29 = vld [vmem:[%s9021_s6 + $0x210] sm:$0xff]  }
 0x31c   : > { %6898 = vmatmul.mubr.bf16.vlgmr.msra.gmra.mrb[120].mxu0 %v4259_v18  ;;  %v7378_v18 = vld [vmem:[%s9021_s6 + $0x188] sm:$0xff]  }
 0x31d   : > { %6938 = vmatpush3.bf16.msra.mxu0 %v7347_v30  ;;  %6901 = vmatprep.mubr.msk.bf16.mxu0 %vm7412_vm3, %v7411_v20  ;;  %v4411_v55 = vsel %vm1774_vm2, %v4402_v31, %v4410_v10  ;;  %v4418_v30 = vrot.slane %v4416_v33, 4  ;;  %v7397_v33 = vld [vmem:[%s9021_s6 + $0x220] sm:$0xff]   ;;  %v7399_v31 = vld [vmem:[%s9021_s6 + $0x230] sm:$0xff]  }
 0x31e   : > { %6864 = vmatpush3.bf16.msra.mxu1 %v7348_v24  ;;  %6939 = vmatprep.subr.bf16.mxu0 %v7411_v20  ;;  %v7377_v24 = vld [vmem:[%s9021_s6 + $0x1e0] sm:$0xff]  }
 0x31f   : > { %6865 = vmatprep.subr.bf16.mxu1 %v7411_v20 }
 0x321   : > { %6940 = vmatpush3.bf16.msra.mxu0 %v7349_v39  ;;  %v8886_v39 = vld [vmem:[#allocation3 + $0xc] sm:$0xff]  }
 0x322   : > { %6866 = vmatpush3.bf16.msra.mxu1 %v7350_v34  ;;  %6941 = vmatprep.subr.bf16.mxu0 %v7411_v20  ;;  %v4419_v34 = vor.u32 %v4418_v30, %v4415_v28  ;;  %v4854_v47 = vshrl.u32 %v8886_v39, 16  ;;  %v5005_v30 = vrot.slane %v8886_v39, 3 }
 0x323   : > { %6867 = vmatprep.subr.bf16.mxu1 %v7411_v20 }
 0x324   : > { %6902 = vmatmul.mubr.bf16.gmra.mrb[124].mxu0 %v4261_v48  ;;  %v4857_v48 = vshll.u32 %v8886_v39, 16  ;;  %v4420_v51 = vsel %vm1774_vm2, %v4410_v10, %v4419_v34 }
 0x325   : > { %6942 = vmatpush3.bf16.msra.mxu0 %v7352_v62  ;;  %6905 = vmatprep.mubr.msk.bf16.mxu0 %vm7412_vm3, %v7411_v20  ;;  %v7379_v62 = vld [vmem:[%s9021_s6 + $0x1e8] sm:$0xff]  }
 0x326   : > { %6868 = vmatpush3.bf16.msra.mxu1 %v7353_v45  ;;  %6943 = vmatprep.subr.bf16.mxu0 %v7411_v20  ;;  %v7380_v45 = vld [vmem:[%s9021_s6 + $0x190] sm:$0xff]  }
 0x327   : > { %6909 = vmatprep.subr.bf16.mxu1 %v7411_v20 }
 0x329   : > { %6870 = vmatmul.mubr.bf16.vlgmr.msra.gmra.mrb[108].mxu1 %v4104_v59  ;;  %6944 = vmatpush3.bf16.msra.mxu0 %v7355_v53  ;;  %v7381_v53 = vld [vmem:[%s9021_s6 + $0x1f0] sm:$0xff]   ;;  %v7382_v59 = vld [vmem:[%s9021_s6 + $0x198] sm:$0xff]  }
 0x32a   : > { %6910 = vmatpush3.bf16.msra.mxu1 %v7356_v40  ;;  %6945 = vmatprep.subr.bf16.mxu0 %v7411_v20 }
 0x32b   : > { %6911 = vmatprep.subr.bf16.mxu1 %v7411_v20  ;;  %6873 = vmatprep.mubr.msk.bf16.mxu1 %vm7412_vm3, %v7411_v20 }
 0x32c   : > { %6906 = vmatmul.mubr.bf16.gmra.mrb[128].mxu0 %v4260_v42  ;;  %v4807_v42 = vld [vmem:[#allocation3 + $0x4] sm:$0xc] }
 0x32d   : > { %6946 = vmatpush3.bf16.msra.mxu0 %v7357_v61  ;;  %6953 = vmatprep.mubr.msk.bf16.mxu0 %vm7412_vm3, %v7411_v20  ;;  %v6005_v27 = vcombine.low %v4807_v42, %v8881_v36  ;;  %v4856_v61 = vrot.slane %v4854_v47, 2 }
 0x32e   : > { %6912 = vmatpush3.bf16.msra.mxu1 %v7358_v49  ;;  %6947 = vmatprep.subr.bf16.mxu0 %v7411_v20  ;;  %v4859_v49 = vrot.slane %v4857_v48, 3 }
 0x32f   : > { %6913 = vmatprep.subr.bf16.mxu1 %v7411_v20  ;;  %v4846_v54 = vshrl.u32 %v6005_v27, 16  ;;  %v4849_v40 = vshll.u32 %v6005_v27, 16 }
 0x331   : > { %6874 = vmatmul.mubr.bf16.gmra.mrb[112].mxu1 %v4106_v1  ;;  %6948 = vmatpush3.bf16.msra.mxu0 %v7359_v0  ;;  %v7383_v0 = vld [vmem:[%s9021_s6 + $0x1f8] sm:$0xff]   ;;  %v4851_v1 = vrot.slane %v4849_v40, 3 }
 0x332   : > { %6914 = vmatpush3.bf16.msra.mxu1 %v7360_v37  ;;  %6949 = vmatprep.subr.bf16.mxu0 %v7411_v20  ;;  %v4848_v37 = vrot.slane %v4846_v54, 2 }
 0x333   : > { %6915 = vmatprep.subr.bf16.mxu1 %v7411_v20  ;;  %6877 = vmatprep.mubr.msk.bf16.mxu1 %vm7412_vm3, %v7411_v20 }
 0x335   : > { %6950 = vmatpush3.bf16.msra.mxu0 %v7361_v38  ;;  %v7384_v38 = vld [vmem:[%s9021_s6 + $0x1a0] sm:$0xff]  }
 0x336   : > { %6916 = vmatpush3.bf16.msra.mxu1 %v7362_v3  ;;  %6951 = vmatprep.subr.bf16.mxu0 %v7411_v20  ;;  %v4860_v3 = vor.u32 %v4859_v49, %v4856_v61 }
 0x337   : > { %6917 = vmatprep.subr.bf16.mxu1 %v7411_v20 }
 0x339   : > { %6878 = vmatmul.mubr.bf16.gmra.mrb[116].mxu1 %v4105_v63  ;;  %6952 = vmatpush3.bf16.msra.mxu0 %v7363_v5  ;;  %v8912_v63 = vld [vmem:[#allocation3 + $0x14] sm:$0x1f]  }
 0x33a   : > { %6918 = vmatpush3.bf16.msra.mxu1 %v7364_v6  ;;  %6993 = vmatprep.subr.bf16.mxu0 %v7411_v20  ;;  %v4863_v5 = vshrl.u32 %v8912_v63, 16  ;;  %v4866_v6 = vshll.u32 %v8912_v63, 16 }
 0x33b   : > { %6919 = vmatprep.subr.bf16.mxu1 %v7411_v20  ;;  %6925 = vmatprep.mubr.msk.bf16.mxu1 %vm7412_vm3, %v7411_v20 }
 0x33c   : > { %6954 = vmatmul.mubr.bf16.vlgmr.msra.gmra.mrb[132].mxu0 %v5952_v57  ;;  %v7387_v57 = vld [vmem:[%s9021_s6 + $0x1a8] sm:$0xff]   ;;  %v4865_v12 = vrot.slane %v4863_v5, 2  ;;  %v4868_v2 = vrot.slane %v4866_v6, 3 }
 0x33d   : > { %6994 = vmatpush3.bf16.msra.mxu0 %v7366_v7  ;;  %6957 = vmatprep.mubr.msk.bf16.mxu0 %vm7412_vm3, %v7411_v20  ;;  %v4852_v7 = vor.u32 %v4851_v1, %v4848_v37 }
 0x33e   : > { %6920 = vmatpush3.bf16.msra.mxu1 %v7367_v35  ;;  %6995 = vmatprep.subr.bf16.mxu0 %v7411_v20  ;;  %v4869_v8 = vor.u32 %v4868_v2, %v4865_v12 }
 0x33f   : > { %6921 = vmatprep.subr.bf16.mxu1 %v7411_v20  ;;  %v4861_v35 = vsel %vm3402_vm14, %v4852_v7, %v4860_v3 }
 0x340   : > { %v4870_v22 = vsel %vm3402_vm14, %v4860_v3, %v4869_v8 }
 0x341   : > { %6996 = vmatpush3.bf16.msra.mxu0 %v7368_v46  ;;  %v7388_v46 = vld [vmem:[%s9021_s6 + $0x1b0] sm:$0xff]  }
 0x342   : > { %6922 = vmatpush3.bf16.msra.mxu1 %v7369_v41  ;;  %6997 = vmatprep.subr.bf16.mxu0 %v7411_v20  ;;  %v4665_v41 = vld [vmem:[#allocation3 + $0x4] sm:$0xc] }
 0x343   : > { %6923 = vmatprep.subr.bf16.mxu1 %v7411_v20  ;;  %v5979_v13 = vcombine.low %v4665_v41, %v8714_v58 }
 0x344   : > { %6958 = vmatmul.mubr.bf16.gmra.mrb[136].mxu0 %v8855_v21  ;;  %v7393_v21 = vld [vmem:[%s9021_s6 + $0x208] sm:$0xff]  }
 0x345   : > { %6998 = vmatpush3.bf16.msra.mxu0 %v7371_v19  ;;  %6961 = vmatprep.mubr.msk.bf16.mxu0 %vm7412_vm3, %v7411_v20  ;;  %v4690_v16 = vrot.slane %v5979_v13, 2  ;;  %v7392_v19 = vld [vmem:[%s9021_s6 + $0x200] sm:$0xff]  }
 0x346   : > { %6924 = vmatpush3.bf16.msra.mxu1 %v7372_v44  ;;  %6999 = vmatprep.subr.bf16.mxu0 %v7411_v20  ;;  %v7394_v44 = vld [vmem:[#allocation3 + $0x14] ss:$0 sps:$4 sm:$0xff]  }
 0x347   : > { %6965 = vmatprep.subr.bf16.mxu1 %v7411_v20  ;;  %v4692_v58 = vsel %vm3246_vm15, %v4690_v16, %v4691_v15  ;;  %v4693_v32 = vrot.slane %v7394_v44, 2 }
 0x349   : > { %6926 = vmatmul.mubr.bf16.vlgmr.msra.gmra.mrb[120].mxu1 %v4411_v55  ;;  %7000 = vmatpush3.bf16.msra.mxu0 %v7373_v52  ;;  %v4694_v10 = vsel %vm3246_vm15, %v4691_v15, %v4693_v32  ;;  %v7398_v52 = vld [vmem:[%s9021_s6 + $0x228] sm:$0xff]   ;;  %v7400_v55 = vld [vmem:[%s9021_s6 + $0x238] sm:$0xff]  }
 0x34a   : > { %6966 = vmatpush3.bf16.msra.mxu1 %v7374_v50  ;;  %7001 = vmatprep.subr.bf16.mxu0 %v7411_v20  ;;  %v4983_v50 = vld [vmem:[#allocation3 + $0x4] sm:$0x8] }
 0x34b   : > { %6967 = vmatprep.subr.bf16.mxu1 %v7411_v20  ;;  %6929 = vmatprep.mubr.msk.bf16.mxu1 %vm7412_vm3, %v7411_v20  ;;  %v6032_v28 = vcombine.low %v4983_v50, %v8881_v36 }
 0x34c   : > { %6962 = vmatmul.mubr.bf16.gmra.mrb[140].mxu0 %v5954_v26 }
 0x34d   : > { %7002 = vmatpush3.bf16.msra.mxu0 %v7377_v24  ;;  %7009 = vmatprep.mubr.msk.bf16.mxu0 %vm7412_vm3, %v7411_v20  ;;  %v5004_v24 = vrot.slane %v6032_v28, 3 }
 0x34e   : > { %6968 = vmatpush3.bf16.msra.mxu1 %v7378_v18  ;;  %7003 = vmatprep.subr.bf16.mxu0 %v7411_v20  ;;  %v5007_v18 = vrot.slane %v8912_v63, 3 }
 0x34f   : > { %6969 = vmatprep.subr.bf16.mxu1 %v7411_v20  ;;  %v5006_v26 = vsel %vm1355_vm1, %v5004_v24, %v5005_v30 }
 0x351   : > { %6930 = vmatmul.mubr.bf16.gmra.mrb[124].mxu1 %v4420_v51  ;;  %7004 = vmatpush3.bf16.msra.mxu0 %v7379_v62 }
 0x352   : > { %6970 = vmatpush3.bf16.msra.mxu1 %v7380_v45  ;;  %7005 = vmatprep.subr.bf16.mxu0 %v7411_v20 }
 0x353   : > { %6971 = vmatprep.subr.bf16.mxu1 %v7411_v20  ;;  %6933 = vmatprep.mubr.msk.bf16.mxu1 %vm7412_vm3, %v7411_v20 }
 0x355   : > { %7006 = vmatpush3.bf16.msra.mxu0 %v7381_v53 }
 0x356   : > { %6972 = vmatpush3.bf16.msra.mxu1 %v7382_v59  ;;  %7007 = vmatprep.subr.bf16.mxu0 %v7411_v20 }
 0x357   : > { %6973 = vmatprep.subr.bf16.mxu1 %v7411_v20 }
 0x359   : > { %6934 = vmatmul.mubr.bf16.gmra.mrb[128].mxu1 %v4419_v34  ;;  %7008 = vmatpush3.bf16.msra.mxu0 %v7383_v0  ;;  %v5008_v34 = vsel %vm1355_vm1, %v5005_v30, %v5007_v18 }
 0x35a   : > { %6974 = vmatpush3.bf16.msra.mxu1 %v7384_v38  ;;  %6981 = vmatprep.mubr.msk.bf16.mxu1 %vm7412_vm3, %v7411_v20 }
 0x35b   : > { %6975 = vmatprep.subr.bf16.mxu1 %v7411_v20 }
 0x35c   : > { %7010 = vmatmul.mubr.bf16.vlgmr.msra.gmra.mrb[144].mxu0 %v4861_v35 }
 0x35d   : > { %7013 = vmatprep.mubr.msk.bf16.mxu0 %vm7412_vm3, %v7411_v20 }
 0x35e   : > { %6976 = vmatpush3.bf16.msra.mxu1 %v7387_v57 }
 0x35f   : > { %6977 = vmatprep.subr.bf16.mxu1 %v7411_v20 }
 0x362   : > { %6978 = vmatpush3.bf16.msra.mxu1 %v7388_v46 }
 0x363   : > { %6979 = vmatprep.subr.bf16.mxu1 %v7411_v20 }
 0x364   : > { %7014 = vmatmul.mubr.bf16.gmra.mrb[148].mxu0 %v4870_v22 }
 0x365   : > { %7017 = vmatprep.mubr.msk.bf16.mxu0 %vm7412_vm3, %v7411_v20 }
 0x366   : > { %6980 = vmatpush3.bf16.msra.mxu1 %v7390_v11 }
 0x367   : > { %7021 = vmatprep.subr.bf16.mxu1 %v7411_v20 }
 0x369   : > { %6982 = vmatmul.mubr.bf16.vlgmr.msra.gmra.mrb[132].mxu1 %v4692_v58 }
 0x36a   : > { %7022 = vmatpush3.bf16.msra.mxu1 %v7392_v19  ;;  %6985 = vmatprep.mubr.msk.bf16.mxu1 %vm7412_vm3, %v7411_v20 }
 0x36b   : > { %7023 = vmatprep.subr.bf16.mxu1 %v7411_v20 }
 0x36c   : > { %7018 = vmatmul.mubr.bf16.gmra.mrb[152].mxu0 %v4869_v8 }
 0x36e   : > { %7024 = vmatpush3.bf16.msra.mxu1 %v7393_v21 }
 0x36f   : > { %7025 = vmatprep.subr.bf16.mxu1 %v7411_v20 }
 0x371   : > { %6986 = vmatmul.mubr.bf16.gmra.mrb[136].mxu1 %v4694_v10 }
 0x372   : > { %7026 = vmatpush3.bf16.msra.mxu1 %v7395_v29  ;;  %6989 = vmatprep.mubr.msk.bf16.mxu1 %vm7412_vm3, %v7411_v20 }
 0x373   : > { %7027 = vmatprep.subr.bf16.mxu1 %v7411_v20 }
 0x376   : > { %7028 = vmatpush3.bf16.msra.mxu1 %v7396_v23 }
 0x377   : > { %7029 = vmatprep.subr.bf16.mxu1 %v7411_v20 }
 0x379   : > { %6990 = vmatmul.mubr.bf16.gmra.mrb[140].mxu1 %v4693_v32 }
 0x37a   : > { %7030 = vmatpush3.bf16.msra.mxu1 %v7397_v33  ;;  %7037 = vmatprep.mubr.msk.bf16.mxu1 %vm7412_vm3, %v7411_v20 }
 0x37b   : > { %7031 = vmatprep.subr.bf16.mxu1 %v7411_v20 }
 0x37e   : > { %7032 = vmatpush3.bf16.msra.mxu1 %v7398_v52 }
 0x37f   : > { %7033 = vmatprep.subr.bf16.mxu1 %v7411_v20 }
 0x382   : > { %7034 = vmatpush3.bf16.msra.mxu1 %v7399_v31 }
 0x383   : > { %7035 = vmatprep.subr.bf16.mxu1 %v7411_v20 }
 0x386   : > { %7036 = vmatpush3.bf16.msra.mxu1 %v7400_v55 }
 0x389   : > { %7038 = vmatmul.mubr.bf16.vlgmr.msra.gmra.mrb[144].mxu1 %v5006_v26 }
 0x38a   : > { %7041 = vmatprep.mubr.msk.bf16.mxu1 %vm7412_vm3, %v7411_v20 }
 0x391   : > { %7042 = vmatmul.mubr.bf16.gmra.mrb[148].mxu1 %v5008_v34 }
 0x392   : > { %7045 = vmatprep.mubr.msk.bf16.mxu1 %vm7412_vm3, %v7411_v20 }
 0x399   : > { %7046 = vmatmul.mubr.bf16.gmra.mrb[152].mxu1 %v5007_v18 }
 0x3cf   : > { %v4059_v36 = vpop.f32.mrb[108].mxu0 }
 0x3d0   : > { %v6843_v42 = vpop.f32.mrb[109].mxu0 }
 0x3d1   : > { %v4062_v39 = vpop.f32.mrb[110].mxu0 }
 0x3d2   : > { %v6844_v62 = vpop.f32.mrb[111].mxu0 }
 0x3d7   : > { %v4067_v27 = vpop.f32.mrb[112].mxu0 }
 0x3d8   : > { %v6847_v45 = vpop.f32.mrb[113].mxu0 }
 0x3d9   : > { %v4070_v47 = vpop.f32.mrb[114].mxu0 }
 0x3da   : > { %v6848_v48 = vpop.f32.mrb[115].mxu0 }
 0x3db   : > { %v3949_v51 = vpop.f32.mrb[96].mxu1 }
 0x3dc   : > { %v4060_v53 = vadd.f32 %v4059_v36, %v3949_v51  ;;  %v6815_v54 = vpop.f32.mrb[97].mxu1 }
 0x3dd   : > { %v3952_v40 = vpop.f32.mrb[98].mxu1 }
 0x3de   : > { %v4063_v59 = vadd.f32 %v4062_v39, %v3952_v40  ;;  %v6816_v61 = vpop.f32.mrb[99].mxu1 }
 0x3df   : > { %v4075_v49 = vpop.f32.mrb[116].mxu0 }
 0x3e0   : > { %v6851_v63 = vpop.f32.mrb[117].mxu0 }
 0x3e1   : > { %v4078_v0 = vpop.f32.mrb[118].mxu0 }
 0x3e2   : > { %v6852_v37 = vpop.f32.mrb[119].mxu0 }
 0x3e3   : > { %v3957_v20 = vpop.f32.mrb[100].mxu1 }
 0x3e4   : > { %v4068_v1 = vadd.f32 %v4067_v27, %v3957_v20  ;;  %v6819_v38 = vpop.f32.mrb[101].mxu1 }
 0x3e5   : > { %v3960_v3 = vpop.f32.mrb[102].mxu1 }
 0x3e6   : > { %v4071_v5 = vadd.f32 %v4070_v47, %v3960_v3  ;;  %v6820_v6 = vpop.f32.mrb[103].mxu1 }
 0x3eb   : > { %v3965_v7 = vpop.f32.mrb[104].mxu1 }
 0x3ec   : > { %v4076_v57 = vadd.f32 %v4075_v49, %v3965_v7  ;;  %v6823_v35 = vpop.f32.mrb[105].mxu1 }
 0x3ed   : > { %v3968_v12 = vpop.f32.mrb[106].mxu1 }
 0x3ee   : > { %v6824_v46 = vpop.f32.mrb[107].mxu1 }
 0x3ef   : > { %v4347_v2 = vpop.f32.mrb[120].mxu0 }
 0x3f0   : > { %v6899_v8 = vpop.f32.mrb[121].mxu0 }
 0x3f1   : > { %v4350_v41 = vpop.f32.mrb[122].mxu0 }
 0x3f2   : > { %v6900_v11 = vpop.f32.mrb[123].mxu0 }
 0x3f7   : > { %v4355_v13 = vpop.f32.mrb[124].mxu0 }
 0x3f8   : > { %v6903_v22 = vpop.f32.mrb[125].mxu0 }
 0x3f9   : > { %v4358_v15 = vpop.f32.mrb[126].mxu0 }
 0x3fa   : > { %v6904_v16 = vpop.f32.mrb[127].mxu0 }
 0x3fc   : > { %v4192_v19 = vpop.f32.mrb[108].mxu1 }
 0x3fd   : > { %v4214_v58 = vadd.f32 %v4192_v19, %v4060_v53  ;;  %v6871_v44 = vpop.f32.mrb[109].mxu1 }
 0x3fe   : > { %v4195_v21 = vpop.f32.mrb[110].mxu1 }
 0x3ff   : > { %v4215_v32 = vadd.f32 %v4195_v21, %v4063_v59  ;;  %v6872_v29 = vpop.f32.mrb[111].mxu1  ;;  %v4363_v10 = vpop.f32.mrb[128].mxu0  ;;  %v4369_v23 = vadd.f32 %v4347_v2, %v4214_v58 }
 0x400   : > { %v6907_v33 = vpop.f32.mrb[129].mxu0 }
 0x401   : > { %v4366_v52 = vpop.f32.mrb[130].mxu0  ;;  %v4370_v31 = vadd.f32 %v4350_v41, %v4215_v32 }
 0x402   : > { %v6908_v50 = vpop.f32.mrb[131].mxu0 }
 0x404   : > { %v4200_v55 = vpop.f32.mrb[112].mxu1 }
 0x405   : > { %v4216_v28 = vadd.f32 %v4200_v55, %v4068_v1  ;;  %v6875_v30 = vpop.f32.mrb[113].mxu1 }
 0x406   : > { %v4203_v24 = vpop.f32.mrb[114].mxu1 }
 0x407   : > { %v4217_v26 = vadd.f32 %v4203_v24, %v4071_v5  ;;  %v6876_v18 = vpop.f32.mrb[115].mxu1  ;;  %v4371_v34 = vadd.f32 %v4355_v13, %v4216_v28 }
 0x409   : > { %v4372_v36 = vadd.f32 %v4358_v15, %v4217_v26 }
 0x40c   : > { %v4208_v42 = vpop.f32.mrb[116].mxu1 }
 0x40d   : > { %v4218_v39 = vadd.f32 %v4208_v42, %v4076_v57  ;;  %v6879_v62 = vpop.f32.mrb[117].mxu1 }
 0x40e   : > { %v4211_v27 = vpop.f32.mrb[118].mxu1 }
 0x40f   : > { %v6880_v45 = vpop.f32.mrb[119].mxu1  ;;  %v4638_v47 = vpop.f32.mrb[132].mxu0  ;;  %v4373_v48 = vadd.f32 %v4363_v10, %v4218_v39 }
 0x410   : > { %v6955_v51 = vpop.f32.mrb[133].mxu0 }
 0x411   : > { %v4641_v53 = vpop.f32.mrb[134].mxu0 }
 0x412   : > { %v6956_v54 = vpop.f32.mrb[135].mxu0 }
 0x417   : > { %v4646_v40 = vpop.f32.mrb[136].mxu0 }
 0x418   : > { %v6959_v59 = vpop.f32.mrb[137].mxu0 }
 0x419   : > { %v4649_v61 = vpop.f32.mrb[138].mxu0 }
 0x41a   : > { %v6960_v49 = vpop.f32.mrb[139].mxu0 }
 0x41c   : > { %v4506_v63 = vpop.f32.mrb[120].mxu1 }
 0x41d   : > { %v4528_v0 = vadd.f32 %v4506_v63, %v4369_v23  ;;  %v6927_v37 = vpop.f32.mrb[121].mxu1 }
 0x41e   : > { %v4509_v20 = vpop.f32.mrb[122].mxu1 }
 0x41f   : > { %v4529_v1 = vadd.f32 %v4509_v20, %v4370_v31  ;;  %v6928_v38 = vpop.f32.mrb[123].mxu1  ;;  %v4654_v3 = vpop.f32.mrb[140].mxu0  ;;  %v4660_v5 = vadd.f32 %v4638_v47, %v4528_v0 }
 0x420   : > { %v6963_v6 = vpop.f32.mrb[141].mxu0  ;;  %v6041_v38 = vld [vmem:[%s9022_s7] ss:$0 sm:$0xff] }
 0x421   : > { %v4657_v7 = vpop.f32.mrb[142].mxu0  ;;  %v4661_v57 = vadd.f32 %v4641_v53, %v4529_v1 }
 0x422   : > { %v6964_v35 = vpop.f32.mrb[143].mxu0 }
 0x424   : > { %v4514_v12 = vpop.f32.mrb[124].mxu1 }
 0x425   : > { %v4530_v2 = vadd.f32 %v4514_v12, %v4371_v34  ;;  %v6931_v46 = vpop.f32.mrb[125].mxu1 }
 0x426   : > { %v4517_v8 = vpop.f32.mrb[126].mxu1 }
 0x427   : > { %v4531_v41 = vadd.f32 %v4517_v8, %v4372_v36  ;;  %v6932_v11 = vpop.f32.mrb[127].mxu1  ;;  %v4662_v13 = vadd.f32 %v4646_v40, %v4530_v2  ;;  %v5134_v8 = vunpack.c.h.bf16 %v8152_v25 }
 0x429   : > { %v4663_v22 = vadd.f32 %v4649_v61, %v4531_v41 }
 0x42c   : > { %v4522_v15 = vpop.f32.mrb[128].mxu1 }
 0x42d   : > { %v4532_v16 = vadd.f32 %v4522_v15, %v4373_v48  ;;  %v6935_v19 = vpop.f32.mrb[129].mxu1 }
 0x42e   : > { %v4525_v58 = vpop.f32.mrb[130].mxu1  ;;  %v5135_v19 = vunpack.c.l.bf16 %v8178_v4 }
 0x42f   : > { %v6936_v44 = vpop.f32.mrb[131].mxu1  ;;  %v4956_v21 = vpop.f32.mrb[144].mxu0  ;;  %v4664_v32 = vadd.f32 %v4654_v3, %v4532_v16 }
 0x430   : > { %v7011_v29 = vpop.f32.mrb[145].mxu0 }
 0x431   : > { %v4959_v10 = vpop.f32.mrb[146].mxu0 }
 0x432   : > { %v7012_v23 = vpop.f32.mrb[147].mxu0 }
 0x437   : > { %v4964_v33 = vpop.f32.mrb[148].mxu0 }
 0x438   : > { %v7015_v52 = vpop.f32.mrb[149].mxu0 }
 0x439   : > { %v4967_v31 = vpop.f32.mrb[150].mxu0 }
 0x43a   : > { %v7016_v50 = vpop.f32.mrb[151].mxu0 }
 0x43c   : > { %v4780_v55 = vpop.f32.mrb[132].mxu1 }
 0x43d   : > { %v4802_v28 = vadd.f32 %v4780_v55, %v4660_v5  ;;  %v6983_v30 = vpop.f32.mrb[133].mxu1 }
 0x43e   : > { %v4783_v24 = vpop.f32.mrb[134].mxu1 }
 0x43f   : > { %v4803_v26 = vadd.f32 %v4783_v24, %v4661_v57  ;;  %v6984_v18 = vpop.f32.mrb[135].mxu1  ;;  %v4972_v34 = vpop.f32.mrb[152].mxu0  ;;  %v4978_v36 = vadd.f32 %v4956_v21, %v4802_v28  ;;  %v5133_v57 = vunpack.c.l.bf16 %v8152_v25  ;;  %v5136_v25 = vunpack.c.h.bf16 %v8178_v4 }
 0x440   : > { %v7019_v42 = vpop.f32.mrb[153].mxu0 }
 0x441   : > { %v4975_v39 = vpop.f32.mrb[154].mxu0  ;;  %v4979_v62 = vadd.f32 %v4959_v10, %v4803_v26 }
 0x442   : > { %v7020_v27 = vpop.f32.mrb[155].mxu0 }
 0x444   : > { %v4788_v45 = vpop.f32.mrb[136].mxu1 }
 0x445   : > { %v4804_v47 = vadd.f32 %v4788_v45, %v4662_v13  ;;  %v6987_v48 = vpop.f32.mrb[137].mxu1 }
 0x446   : > { %v4791_v51 = vpop.f32.mrb[138].mxu1 }
 0x447   : > { %v4805_v53 = vadd.f32 %v4791_v51, %v4663_v22  ;;  %v6988_v54 = vpop.f32.mrb[139].mxu1  ;;  %v4980_v40 = vadd.f32 %v4964_v33, %v4804_v47 }
 0x449   : > { %v4981_v59 = vadd.f32 %v4967_v31, %v4805_v53 }
 0x44c   : > { %v4796_v61 = vpop.f32.mrb[140].mxu1 }
 0x44d   : > { %v4806_v49 = vadd.f32 %v4796_v61, %v4664_v32  ;;  %v6991_v63 = vpop.f32.mrb[141].mxu1 }
 0x44e   : > { %v4799_v0 = vpop.f32.mrb[142].mxu1 }
 0x44f   : > { %v6992_v37 = vpop.f32.mrb[143].mxu1  ;;  %v4982_v20 = vadd.f32 %v4972_v34, %v4806_v49  ;;  %v5137_v34 = vunpack.c.l.bf16 %v8185_v14 }
 0x45c   : > { %v5094_v1 = vpop.f32.mrb[144].mxu1 }
 0x45d   : > { %v5116_v3 = vadd.f32 %v5094_v1, %v4978_v36  ;;  %v7039_v5 = vpop.f32.mrb[145].mxu1 }
 0x45e   : > { %v5097_v6 = vpop.f32.mrb[146].mxu1 }
 0x45f   : > { %v5128_v7 = vadd.f32 %v6041_v38, %v5116_v3  ;;  %v5117_v35 = vadd.f32 %v5097_v6, %v4979_v62  ;;  %v7040_v12 = vpop.f32.mrb[147].mxu1 }
 0x461   : > { %v5138_v2 = vadd.f32 %v5133_v57, %v5128_v7  ;;  %v5129_v46 = vadd.f32 %v6041_v38, %v5117_v35 }
 0x463   : > { %v5143_v41 = vmax.f32 %v5138_v2, 0.0  ;;  %v5139_v11 = vadd.f32 %v5134_v8, %v5129_v46 }
 0x464   : > { %v5102_v13 = vpop.f32.mrb[148].mxu1 }
 0x465   : > { %v5144_v22 = vmax.f32 %v5139_v11, 0.0  ;;  %v5118_v15 = vadd.f32 %v5102_v13, %v4980_v40  ;;  %v7043_v16 = vpop.f32.mrb[149].mxu1  ;;  %v5148_v44 = vmul.f32 %v5143_v41, %v8142_v60 }
 0x466   : > { %v5105_v58 = vpop.f32.mrb[150].mxu1 }
 0x467   : > { %v5149_v21 = vmul.f32 %v5144_v22, %v8147_v43  ;;  %v5130_v32 = vadd.f32 %v6041_v38, %v5118_v15  ;;  %v5119_v29 = vadd.f32 %v5105_v58, %v4981_v59  ;;  %v7044_v10 = vpop.f32.mrb[151].mxu1 }
 0x469   : > { %v6067_v23 = vpack.c.bf16 %v5149_v21, %v5148_v44  ;;  %v5140_v33 = vadd.f32 %v5135_v19, %v5130_v32  ;;  %v5131_v52 = vadd.f32 %v6041_v38, %v5119_v29 }
 0x46b   : > { %6068 = vst [vmem:[%s305_s23] sm:$0xff] %v6067_v23   ;;  %v5145_v31 = vmax.f32 %v5140_v33, 0.0  ;;  %v5141_v50 = vadd.f32 %v5136_v25, %v5131_v52 }
 0x46c   : > { %v5110_v55 = vpop.f32.mrb[152].mxu1 }
 0x46d   : > { %v5146_v28 = vmax.f32 %v5141_v50, 0.0  ;;  %v5120_v60 = vadd.f32 %v5110_v55, %v4982_v20  ;;  %v7047_v30 = vpop.f32.mrb[153].mxu1  ;;  %v5150_v24 = vmul.f32 %v5145_v31, %v8150_v17 }
 0x46e   : > { %v5113_v43 = vpop.f32.mrb[154].mxu1 }
 0x46f   : > { %v5151_v26 = vmul.f32 %v5146_v28, %v8171_v56  ;;  %v5132_v18 = vadd.f32 %v6041_v38, %v5120_v60  ;;  %v7048_v36 = vpop.f32.mrb[155].mxu1 }
 0x471   : > { %v6072_v4 = vpack.c.bf16 %v5151_v26, %v5150_v24  ;;  %v5142_v42 = vadd.f32 %v5137_v34, %v5132_v18 }
 0x473   : > { %6074 = vst [vmem:[%s305_s23 + $0x8] sm:$0xff] %v6072_v4   ;;  %v5147_v39 = vmax.f32 %v5142_v42, 0.0 }
 0x475   : > { %v5152_v62 = vmul.f32 %v5147_v39, %v8180_v9 }
 0x477   : > { %v6063_v27 = vpack.c.bf16 %v5152_v62, %v5152_v62 }
 0x479   : > { %5178 = vst [vmem:[%s305_s23 + $0x10] sm:$0x3] %v6063_v27 }
 0x47a PF: > { %s18_s27 = sadd.s32 1, %s7408_s27  }
 0x47b   : > { %p15_p4 = scmp.ge.s32.totalorder %s18_s27, 4  }
 0x47d   :  { %17 = sbr.rel (!%p15_p4) target bundleno = 1 (0x1), region = 101 }

// kernel: encoder_forward.3
= control target key start
LH: loop header
LB: loop body
LE: loop exit
PB: predicated region body
PF: predicated region fallthrough
CT: control target
= control target key end

     0   :  { %s10731_s27 = smov 0   ;;  %s13868_s0 = inlined_call_operand.vmem [shape: bf16[2,111,512], index: 0, kind: input, shape index: {}]   ;;  %s13869_s1 = inlined_call_operand.vmem [shape: f32[100,1], index: 1, kind: input, shape index: {}]   ;;  %s13870_s2 = inlined_call_operand.vmem [shape: bf16[4,512,128], index: 2, kind: input, shape index: {}]   ;;  %s13871_s3 = inlined_call_operand.vmem [shape: f32[1,128], index: 3, kind: input, shape index: {}]   ;;  %s13872_s4 = inlined_call_operand.vmem [shape: bf16[9,128,128], index: 4, kind: input, shape index: {}]   ;;  %s13873_s5 = inlined_call_operand.vmem [shape: f32[1,128], index: 5, kind: input, shape index: {}]   ;;  %s13874_s6 = inlined_call_operand.vmem [shape: bf16[9,128,128], index: 6, kind: input, shape index: {}]   ;;  %s13875_s7 = inlined_call_operand.vmem [shape: f32[1,128], index: 7, kind: input, shape index: {}]   ;;  %s13876_s8 = inlined_call_operand.vmem [shape: bf16[2,100,128], index: 8, kind: output, shape index: {}]  }
   0x1 LB: > { %s7752_s28 = sadd.s32 4294967295, %s10681_s27   ;;  %p7756_p0 = scmp.ge.s32.totalorder %s10681_s27, 1  ;;  %s10681_s27 = sphi %s10731_s27, %s18_s27  }
   0x2   : > { %p262_p1 = scmp.lt.s32.totalorder %s10681_s27, 3 }
   0x4   : > { %p263_p2 = pnand %p7756_p0, %p262_p1 }
   0x6   : > { %266 = sbr.rel (%p263_p2) target bundleno = 1456 (0x5b0), region = 52 }
   0xd   : > { %v10268_v0 = vld [vmem:[%s13870_s2 + $0x140] sm:$0xff]   ;;  %v10272_v4 = vld [vmem:[%s13870_s2 + $0x148] sm:$0xff]   ;;  %v10276_v8 = vld [vmem:[%s13870_s2 + $0x150] sm:$0xff]   ;;  %p296_p3 = scmp.lt.s32.totalorder %s7752_s28, 1  ;;  %vm583_vm0 = vsmask.f32 7424 }
   0xe   : > { %v10269_v1 = vld [vmem:[%s13870_s2 + $0x1c0] sm:$0xff]   ;;  %8727 = vmatprep.subr.bf16.mxu0 %v10268_v0  ;;  %v10273_v5 = vld [vmem:[%s13870_s2 + $0x1c8] sm:$0xff]   ;;  %v10277_v9 = vld [vmem:[%s13870_s2 + $0x1d0] sm:$0xff]   ;;  %vm1803_vm1 = vcmask 1046528   ;;  %vm2342_vm2 = vsmask.f32 6400 }
   0xf   : > { %v10270_v2 = vld [vmem:[%s13870_s2 + $0x100] sm:$0xff]   ;;  %8785 = vmatprep.subr.bf16.mxu1 %v10269_v1  ;;  %v10274_v6 = vld [vmem:[%s13870_s2 + $0x108] sm:$0xff]   ;;  %v10278_v10 = vld [vmem:[%s13870_s2 + $0x110] sm:$0xff]   ;;  %s13958_s28 = smov (!%p296_p3, %s7752_s28), 1  ;;  %vm10685_vm3 = vmmov 0   ;;  %vm3311_vm4 = vcmask 1043457  }
  0x10   : > { %v10271_v3 = vld [vmem:[%s13870_s2 + $0x180] sm:$0xff]   ;;  %8728 = vmatpush3.bf16.msra.mxu0 %v10270_v2  ;;  %v10275_v7 = vld [vmem:[%s13870_s2 + $0x188] sm:$0xff]   ;;  %v10279_v11 = vld [vmem:[%s13870_s2 + $0x190] sm:$0xff]   ;;  %s10253_s19 = smul.u32 224, %s13958_s28  ;;  %vm3312_vm5 = vsmask.f32 7942 }
  0x11   : > { %8786 = vmatpush3.bf16.msra.mxu1 %v10271_v3  ;;  %8729 = vmatprep.subr.bf16.mxu0 %v10272_v4  ;;  %v10280_v12 = vld [vmem:[%s13870_s2 + $0x158] sm:$0xff]   ;;  %v10284_v16 = vld [vmem:[%s13870_s2 + $0x160] sm:$0xff]   ;;  %v10288_v20 = vld [vmem:[%s13870_s2 + $0x168] sm:$0xff]   ;;  %vm3167_vm6 = vsmask.f32 1280  ;;  %vm3328_vm10 = vcmask 1043456  }
  0x12   : > { %8787 = vmatprep.subr.bf16.mxu1 %v10273_v5  ;;  %v10281_v13 = vld [vmem:[%s13870_s2 + $0x1d8] sm:$0xff]   ;;  %v10285_v17 = vld [vmem:[%s13870_s2 + $0x1e0] sm:$0xff]   ;;  %v10289_v21 = vld [vmem:[%s13870_s2 + $0x1e8] sm:$0xff]   ;;  %s10839_s10 = scalar_lea.vmem %s13868_s0, %s10253_s19  ;;  %vm3168_vm7 = vsmask.f32 5392  ;;  %vm5148_vm13 = vcmask 1044480  }
  0x13   : > { %v10282_v14 = vld [vmem:[%s13870_s2 + $0x118] sm:$0xff]   ;;  %v10286_v18 = vld [vmem:[%s13870_s2 + $0x120] sm:$0xff]   ;;  %v10290_v22 = vld [vmem:[%s13870_s2 + $0x128] sm:$0xff]   ;;  %vm3329_vm11 = vsmask.f32 3328  ;;  %vm4440_vm14 = vcmask 1045504  }
  0x14   : > { %8730 = vmatpush3.bf16.msra.mxu0 %v10274_v6  ;;  %v10283_v15 = vld [vmem:[%s13870_s2 + $0x198] sm:$0xff]   ;;  %v10287_v19 = vld [vmem:[%s13870_s2 + $0x1a0] sm:$0xff]   ;;  %v10291_v23 = vld [vmem:[%s13870_s2 + $0x1a8] sm:$0xff]   ;;  %vm4908_vm15 = vsmask.f32 5376  ;;  %s10254_s15 = smul.u32 52, %s13958_s28 }
  0x15   : > { %8788 = vmatpush3.bf16.msra.mxu1 %v10275_v7  ;;  %8731 = vmatprep.subr.bf16.mxu0 %v10276_v8  ;;  %v10292_v24 = vld [vmem:[%s13870_s2 + $0x170] sm:$0xff]   ;;  %v10296_v28 = vld [vmem:[%s13870_s2 + $0x178] sm:$0xff]   ;;  %v324_v32 = vld [vmem:[%s10839_s10 + $0x20] sm:$0xff] }
  0x16   : > { %8789 = vmatprep.subr.bf16.mxu1 %v10277_v9  ;;  %v10293_v25 = vld [vmem:[%s13870_s2 + $0x1f0] sm:$0xff]   ;;  %v10297_v29 = vld [vmem:[%s13870_s2 + $0x1f8] sm:$0xff]   ;;  %v325_v36 = vld [vmem:[%s10839_s10 + $0x28] sm:$0xff]  ;;  %s13816_s28 = scalar_lea.vmem %s13876_s8, %s10254_s15 }
  0x17   : > { %v10294_v26 = vld [vmem:[%s13870_s2 + $0x130] sm:$0xff]   ;;  %v10298_v30 = vld [vmem:[%s13870_s2 + $0x138] sm:$0xff]   ;;  %v10310_v56 = vld [vmem:[%s13870_s2 + $0x40] sm:$0xff]  }
  0x18   : > { %8732 = vmatpush3.bf16.msra.mxu0 %v10278_v10  ;;  %v10295_v27 = vld [vmem:[%s13870_s2 + $0x1b0] sm:$0xff]   ;;  %v10299_v31 = vld [vmem:[%s13870_s2 + $0x1b8] sm:$0xff]   ;;  %v10311_v57 = vld [vmem:[%s13870_s2 + $0xc0] sm:$0xff]  }
  0x19   : > { %8790 = vmatpush3.bf16.msra.mxu1 %v10279_v11  ;;  %8733 = vmatprep.subr.bf16.mxu0 %v10280_v12  ;;  %v10849_v33 = vld [vmem:[%s10839_s10 + $0x30] sm:$0xff]  ;;  %v10859_v37 = vld [vmem:[%s10839_s10 + $0x38] sm:$0xff]  ;;  %v10312_v1 = vld [vmem:[%s13870_s2] sm:$0xff]  }
  0x1a   : > { %8791 = vmatprep.subr.bf16.mxu1 %v10281_v13  ;;  %v10852_v34 = vld [vmem:[%s10839_s10 + $0x4] ss:$16 sps:$4 sm:$0xff]   ;;  %v10855_v35 = vcombine.high %v324_v32, %v10849_v33  ;;  %v10862_v38 = vcombine.low %v324_v32, %v10849_v33  ;;  %v10867_v41 = vld [vmem:[%s10839_s10 + $0xc] ss:$16 sps:$4 sm:$0xff]   ;;  %v10870_v42 = vcombine.high %v325_v36, %v10859_v37  ;;  %v10873_v43 = vld [vmem:[%s10839_s10] ss:$16 sps:$4 sm:$0xff]   ;;  %v10881_v47 = vcombine.low %v325_v36, %v10859_v37 }
  0x1b   : > { %v597_v39 = vshrl.u32 %v10852_v34, 16  ;;  %v599_v40 = vshll.u32 %v10852_v34, 16  ;;  %v10878_v46 = vld [vmem:[%s10839_s10 + $0x8] ss:$16 sps:$4 sm:$0xff]   ;;  %v621_v49 = vshrl.u32 %v10867_v41, 16  ;;  %v623_v50 = vshll.u32 %v10867_v41, 16  ;;  %vm12097_vm8 = vmand %vm3311_vm4, %vm3312_vm5 }
  0x1c   : > { %8734 = vmatpush3.bf16.msra.mxu0 %v10282_v14  ;;  %v604_v44 = vshll.u32 %v10855_v35, 16  ;;  %v592_v45 = vshll.u32 %v10862_v38, 16  ;;  %v628_v51 = vshll.u32 %v10870_v42, 16  ;;  %v585_v53 = vshrl.u32 %v10873_v43, 16  ;;  %v10313_v7 = vld [vmem:[%s13870_s2 + $0x80] sm:$0xff]   ;;  %v10906_v9 = vld [vmem:[%s10839_s10 + $0x50] sm:$0xff]  ;;  %vm12104_vm9 = vmor %vm3167_vm6, %vm3168_vm7 }
  0x1d   : > { %8792 = vmatpush3.bf16.msra.mxu1 %v10283_v15  ;;  %8735 = vmatprep.subr.bf16.mxu0 %v10284_v16  ;;  %v601_v48 = vrot.slane %v599_v40, 1  ;;  %v587_v54 = vshll.u32 %v10873_v43, 16  ;;  %v625_v59 = vrot.slane %v623_v50, 1  ;;  %v609_v61 = vshrl.u32 %v10878_v46, 16  ;;  %v328_v8 = vld [vmem:[%s10839_s10 + $0x40] sm:$0xff]  ;;  %v10914_v13 = vld [vmem:[%s10839_s10 + $0x48] sm:$0xff]  ;;  %vm12328_vm12 = vmand %vm3328_vm10, %vm3329_vm11 }
  0x1e   : > { %8793 = vmatprep.subr.bf16.mxu1 %v10285_v17  ;;  %v606_v52 = vrot.slane %v604_v44, 1  ;;  %v594_v55 = vrot.slane %v592_v45, 1  ;;  %v630_v60 = vrot.slane %v628_v51, 1  ;;  %v611_v63 = vshll.u32 %v10878_v46, 16  ;;  %v10917_v14 = vld [vmem:[%s10839_s10 + $0x58] sm:$0xff] }
  0x1f   : > { %v602_v58 = vor.u32 %v601_v48, %v597_v39  ;;  %v589_v62 = vrot.slane %v587_v54, 1  ;;  %v616_v0 = vshll.u32 %v10881_v47, 16  ;;  %v626_v3 = vor.u32 %v625_v59, %v621_v49  ;;  %v10321_v48 = vld [vmem:[%s13870_s2 + $0x88] sm:$0xff]  }
  0x20   : > { %8736 = vmatpush3.bf16.msra.mxu0 %v10286_v18  ;;  %v613_v5 = vrot.slane %v611_v63, 1  ;;  %v10910_v11 = vcombine.high %v328_v8, %v10906_v9  ;;  %v640_v12 = vshrl.u32 %v10855_v35, 16  ;;  %v656_v15 = vshrl.u32 %v10870_v42, 16  ;;  %v10978_v63 = vld [vmem:[%s10839_s10 + $0x78] sm:$0xff] }
  0x21   : > { %8794 = vmatpush3.bf16.msra.mxu1 %v10287_v19  ;;  %8737 = vmatprep.subr.bf16.mxu0 %v10288_v20  ;;  %v607_v2 = vsel %vm583_vm0, %v602_v58, %v606_v52  ;;  %v590_v4 = vor.u32 %v589_v62, %v585_v53  ;;  %v618_v6 = vrot.slane %v616_v0, 1  ;;  %v631_v10 = vsel %vm583_vm0, %v626_v3, %v630_v60  ;;  %v10316_v19 = vld [vmem:[%s13870_s2 + $0x48] sm:$0xff]   ;;  %v332_v58 = vld [vmem:[%s10839_s10 + $0x60] sm:$0xff] }
  0x22   : > { %8795 = vmatprep.subr.bf16.mxu1 %v10289_v21  ;;  %1056 = vmatprep.mubr.bf16.mxu0 %v607_v2  ;;  %v614_v17 = vor.u32 %v613_v5, %v609_v61  ;;  %v10923_v18 = vcombine.high %v10914_v13, %v10917_v14  ;;  %v10929_v20 = vcombine.low %v328_v8, %v10906_v9  ;;  %v648_v36 = vshrl.u32 %v10881_v47, 16  ;;  %v333_v62 = vld [vmem:[%s10839_s10 + $0x68] sm:$0xff] }
  0x23   : > { %1144 = vmatprep.mubr.bf16.mxu1 %v631_v10  ;;  %v595_v16 = vsel %vm583_vm0, %v590_v4, %v594_v55  ;;  %v642_v21 = vor.u32 %v640_v12, %v606_v52  ;;  %v10948_v39 = vcombine.low %v10849_v33, %v328_v8  ;;  %v10955_v49 = vcombine.high %v10849_v33, %v328_v8  ;;  %v10322_v52 = vld [vmem:[%s13870_s2 + $0x50] sm:$0xff]  }
  0x24   : > { %8738 = vmatpush3.bf16.msra.mxu0 %v10290_v22  ;;  %v644_v22 = vshll.u32 %v10910_v11, 16  ;;  %v650_v51 = vor.u32 %v648_v36, %v618_v6  ;;  %v672_v53 = vshrl.u32 %v10910_v11, 16  ;;  %v10964_v54 = vcombine.low %v10859_v37, %v10914_v13  ;;  %v10333_v36 = vld [vmem:[%s13870_s2 + $0x98] sm:$0xff]  }
  0x25   : > { %8796 = vmatpush3.bf16.msra.mxu1 %v10291_v23  ;;  %8739 = vmatprep.subr.bf16.mxu0 %v10292_v24  ;;  %v658_v23 = vor.u32 %v656_v15, %v630_v60  ;;  %v10317_v24 = vld [vmem:[%s13870_s2 + $0xc8] sm:$0xff]   ;;  %v688_v59 = vshrl.u32 %v10923_v18, 16  ;;  %v10974_v60 = vld [vmem:[%s10839_s10 + $0x70] sm:$0xff]  ;;  %v664_v0 = vshrl.u32 %v10929_v20, 16  ;;  %v10987_v4 = vcombine.high %v333_v62, %v10978_v63 }
  0x26   : > { %8797 = vmatprep.subr.bf16.mxu1 %v10293_v25  ;;  %v632_v25 = vshrl.u32 %v10862_v38, 16  ;;  %v10984_v3 = vcombine.high %v332_v58, %v10974_v60  ;;  %v10996_v8 = vcombine.low %v332_v58, %v10974_v60  ;;  %v10999_v12 = vcombine.low %v333_v62, %v10978_v63 }
  0x28   : > { %8740 = vmatpush3.bf16.msra.mxu0 %v10294_v26  ;;  %v10320_v26 = vld [vmem:[%s13870_s2 + $0x8] sm:$0xff]   ;;  %v634_v32 = vor.u32 %v632_v25, %v594_v55  ;;  %v676_v15 = vshll.u32 %v10984_v3, 16  ;;  %v11016_v25 = vcombine.high %v10906_v9, %v332_v58 }
  0x29   : > { %8798 = vmatpush3.bf16.msra.mxu1 %v10295_v27  ;;  %8741 = vmatprep.subr.bf16.mxu0 %v10296_v28  ;;  %v619_v27 = vsel %vm583_vm0, %v614_v17, %v618_v6  ;;  %v660_v28 = vshll.u32 %v10923_v18, 16  ;;  %v10326_v6 = vld [vmem:[%s13870_s2 + $0x10] sm:$0xff]  }
  0x2a   : > { %8799 = vmatprep.subr.bf16.mxu1 %v10297_v29  ;;  %v636_v29 = vshll.u32 %v10929_v20, 16 }
  0x2b   : > { %v662_v40 = vrot.slane %v660_v28, 1  ;;  %v11025_v28 = vcombine.low %v10917_v14, %v333_v62 }
  0x2c   : > { %8742 = vmatpush3.bf16.msra.mxu0 %v10298_v30  ;;  %v10944_v30 = vcombine.low %v10914_v13, %v10917_v14  ;;  %v638_v44 = vrot.slane %v636_v29, 1 }
  0x2d   : > { %8800 = vmatpush3.bf16.msra.mxu1 %v10299_v31  ;;  %8843 = vmatprep.subr.bf16.mxu0 %v10310_v56  ;;  %v646_v31 = vrot.slane %v644_v22, 1  ;;  %v663_v33 = vsel %vm583_vm0, %v658_v23, %v662_v40  ;;  %v690_v5 = vor.u32 %v688_v59, %v662_v40  ;;  %v684_v22 = vshll.u32 %v10999_v12, 16  ;;  %v10330_v23 = vld [vmem:[%s13870_s2 + $0x58] sm:$0xff]   ;;  %v10338_v59 = vld [vmem:[%s13870_s2 + $0x60] sm:$0xff]  }
  0x2e   : > { %8901 = vmatprep.subr.bf16.mxu1 %v10311_v57  ;;  %v652_v45 = vshll.u32 %v10944_v30, 16  ;;  %v639_v55 = vsel %vm583_vm0, %v634_v32, %v638_v44  ;;  %v10323_v57 = vld [vmem:[%s13870_s2 + $0xd0] sm:$0xff]   ;;  %v666_v10 = vor.u32 %v664_v0, %v638_v44  ;;  %v10332_v32 = vld [vmem:[%s13870_s2 + $0x18] sm:$0xff]   ;;  %v704_v44 = vshrl.u32 %v10984_v3, 16 }
  0x2f   : > { %1057 = vmatmul.mubr.bf16.vlgmr.msra.gmra.mrb[0].mxu0 %v595_v16  ;;  %v647_v50 = vsel %vm583_vm0, %v642_v21, %v646_v31  ;;  %v674_v61 = vor.u32 %v672_v53, %v646_v31  ;;  %v692_v16 = vshll.u32 %v10987_v4, 16  ;;  %v668_v21 = vshll.u32 %v10996_v8, 16 }
  0x30   : > { %8844 = vmatpush3.bf16.msra.mxu0 %v10312_v1  ;;  %1145 = vmatmul.mubr.bf16.vlgmr.msra.gmra.mrb[0].mxu1 %v619_v27  ;;  %v654_v56 = vrot.slane %v652_v45, 1  ;;  %v680_v1 = vshrl.u32 %v10944_v30, 16  ;;  %v11022_v27 = vcombine.low %v10906_v9, %v332_v58  ;;  %v686_v31 = vrot.slane %v684_v22, 1 }
  0x31   : > { %8845 = vmatprep.subr.bf16.mxu0 %v10316_v19  ;;  %8902 = vmatpush3.bf16.msra.mxu1 %v10313_v7  ;;  %v10327_v7 = vld [vmem:[%s13870_s2 + $0x90] sm:$0xff]   ;;  %v11005_v19 = vcombine.high %v10859_v37, %v10914_v13  ;;  %v11019_v37 = vcombine.high %v10917_v14, %v333_v62  ;;  %v678_v13 = vrot.slane %v676_v15, 1  ;;  %v670_v29 = vrot.slane %v668_v21, 1  ;;  %v336_v14 = vld [vmem:[%s10839_s10 + $0x80] sm:$0xff] }
  0x32   : > { %8903 = vmatprep.subr.bf16.mxu1 %v10317_v24  ;;  %1064 = vmatprep.mubr.bf16.mxu0 %v647_v50  ;;  %v655_v2 = vsel %vm583_vm0, %v650_v51, %v654_v56  ;;  %v682_v17 = vor.u32 %v680_v1, %v654_v56  ;;  %v10331_v24 = vld [vmem:[%s13870_s2 + $0xd8] sm:$0xff]   ;;  %v11040_v50 = vld [vmem:[%s10839_s10 + $0x90] sm:$0xff]  ;;  %v337_v51 = vld [vmem:[%s10839_s10 + $0x88] sm:$0xff]  ;;  %v720_v53 = vshrl.u32 %v10987_v4, 16  ;;  %v712_v58 = vshrl.u32 %v10999_v12, 16 }
  0x33   : > { %1152 = vmatprep.mubr.bf16.mxu1 %v663_v33  ;;  %v679_v9 = vsel %vm583_vm0, %v674_v61, %v678_v13  ;;  %v671_v45 = vsel %vm583_vm0, %v666_v10, %v670_v29  ;;  %v696_v33 = vshrl.u32 %v10996_v8, 16  ;;  %v706_v56 = vor.u32 %v704_v44, %v678_v13  ;;  %v10341_v21 = vld [vmem:[%s13870_s2 + $0xa0] sm:$0xff]   ;;  %v10346_v44 = vld [vmem:[%s13870_s2 + $0x68] sm:$0xff]  }
  0x34   : > { %8846 = vmatpush3.bf16.msra.mxu0 %v10320_v26  ;;  %v694_v26 = vrot.slane %v692_v16, 1  ;;  %v11059_v62 = vcombine.low %v336_v14, %v11040_v50  ;;  %v11070_v10 = vcombine.high %v10974_v60, %v336_v14  ;;  %v11081_v22 = vcombine.high %v10978_v63, %v337_v51 }
  0x35   : > { %8847 = vmatprep.subr.bf16.mxu0 %v10322_v52  ;;  %8904 = vmatpush3.bf16.msra.mxu1 %v10321_v48  ;;  %v687_v48 = vsel %vm583_vm0, %v682_v17, %v686_v31  ;;  %v11044_v52 = vld [vmem:[%s10839_s10 + $0x98] sm:$0xff]  ;;  %v698_v0 = vor.u32 %v696_v33, %v670_v29  ;;  %v10340_v17 = vld [vmem:[%s13870_s2 + $0x20] sm:$0xff]   ;;  %v11090_v29 = vld [vmem:[%s10839_s10 + $0xb0] sm:$0xff] }
  0x36   : > { %8905 = vmatprep.subr.bf16.mxu1 %v10323_v57  ;;  %v695_v40 = vsel %vm583_vm0, %v690_v5, %v694_v26  ;;  %v11052_v57 = vcombine.high %v337_v51, %v11044_v52  ;;  %v722_v61 = vor.u32 %v720_v53, %v694_v26  ;;  %v11062_v1 = vcombine.low %v337_v51, %v11044_v52  ;;  %v11087_v26 = vld [vmem:[%s10839_s10 + $0xa0] sm:$0xff]  ;;  %v10347_v53 = vld [vmem:[%s13870_s2 + $0xe8] sm:$0xff]  }
  0x37   : > { %1065 = vmatmul.mubr.bf16.gmra.mrb[4].mxu0 %v639_v55  ;;  %v11049_v55 = vcombine.high %v336_v14, %v11040_v50  ;;  %v700_v15 = vshll.u32 %v11059_v62, 16  ;;  %13898 = vst [vmem:[#allocation5_spill] sm:$0xff] %v11090_v29 }
  0x38   : > { %8848 = vmatpush3.bf16.msra.mxu0 %v10326_v6  ;;  %1153 = vmatmul.mubr.bf16.gmra.mrb[4].mxu1 %v655_v2  ;;  %13897 = vst [vmem:[#allocation4_spill] sm:$0xff] %v11062_v1  ;;  %v10339_v2 = vld [vmem:[%s13870_s2 + $0xe0] sm:$0xff]   ;;  %v724_v6 = vshll.u32 %v11052_v57, 16  ;;  %v716_v16 = vshll.u32 %v11062_v1, 16 }
  0x39   : > { %8906 = vmatpush3.bf16.msra.mxu1 %v10327_v7  ;;  %8849 = vmatprep.subr.bf16.mxu0 %v10330_v23  ;;  %v708_v5 = vshll.u32 %v11049_v55, 16  ;;  %v714_v7 = vor.u32 %v712_v58, %v686_v31  ;;  %v11084_v23 = vcombine.low %v10974_v60, %v336_v14  ;;  %v11093_v31 = vcombine.low %v10978_v63, %v337_v51  ;;  %v11104_v14 = vld [vmem:[%s10839_s10 + $0xb8] sm:$0xff] }
  0x3a   : > { %8907 = vmatprep.subr.bf16.mxu1 %v10331_v24  ;;  %1072 = vmatprep.mubr.bf16.mxu0 %v679_v9  ;;  %v726_v13 = vrot.slane %v724_v6, 1  ;;  %v11097_v9 = vcombine.high %v11087_v26, %v11090_v29  ;;  %v736_v60 = vshrl.u32 %v11049_v55, 16  ;;  %13899 = vst [vmem:[#allocation6_spill] sm:$0xff] %v11104_v14  ;;  %v752_v51 = vshrl.u32 %v11052_v57, 16 }
  0x3b   : > { %1160 = vmatprep.mubr.bf16.mxu1 %v695_v40  ;;  %v710_v24 = vrot.slane %v708_v5, 1  ;;  %v11101_v40 = vld [vmem:[%s10839_s10 + $0xa8] sm:$0xff]  ;;  %v11128_v6 = vcombine.low %v11087_v26, %v11090_v29 }
  0x3c   : > { %8850 = vmatpush3.bf16.msra.mxu0 %v10332_v32  ;;  %v702_v32 = vrot.slane %v700_v15, 1  ;;  %v728_v15 = vshrl.u32 %v11059_v62, 16 }
  0x3d   : > { %8908 = vmatpush3.bf16.msra.mxu1 %v10333_v36  ;;  %8851 = vmatprep.subr.bf16.mxu0 %v10338_v59  ;;  %v718_v36 = vrot.slane %v716_v16, 1  ;;  %v711_v63 = vsel %vm583_vm0, %v706_v56, %v710_v24  ;;  %v738_v59 = vor.u32 %v736_v60, %v710_v24  ;;  %v740_v56 = vshll.u32 %v11097_v9, 16  ;;  %v10349_v60 = vld [vmem:[%s13870_s2 + $0xa8] sm:$0xff]  }
  0x3e   : > { %8909 = vmatprep.subr.bf16.mxu1 %v10339_v2  ;;  %v703_v33 = vsel %vm583_vm0, %v698_v0, %v702_v32  ;;  %v754_v2 = vor.u32 %v752_v51, %v726_v13  ;;  %v744_v16 = vshrl.u32 %v11062_v1, 16  ;;  %v730_v24 = vor.u32 %v728_v15, %v702_v32  ;;  %v10354_v32 = vld [vmem:[%s13870_s2 + $0x70] sm:$0xff]  }
  0x3f   : > { %1073 = vmatmul.mubr.bf16.gmra.mrb[8].mxu0 %v671_v45  ;;  %v727_v45 = vsel %vm583_vm0, %v722_v61, %v726_v13  ;;  %v719_v58 = vsel %vm583_vm0, %v714_v7, %v718_v36  ;;  %v10348_v61 = vld [vmem:[%s13870_s2 + $0x28] sm:$0xff]   ;;  %v742_v0 = vrot.slane %v740_v56, 1  ;;  %v11133_v7 = vcombine.low %v11101_v40, %v11104_v14 }
  0x40   : > { %1161 = vmatmul.mubr.bf16.gmra.mrb[8].mxu1 %v687_v48  ;;  %8852 = vmatpush3.bf16.msra.mxu0 %v10340_v17  ;;  %v11113_v48 = vcombine.high %v11101_v40, %v11104_v14  ;;  %v11138_v17 = vcombine.high %v11040_v50, %v11087_v26  ;;  %v732_v13 = vshll.u32 %v11128_v6, 16  ;;  %v746_v51 = vor.u32 %v744_v16, %v718_v36  ;;  %v411_v56 = vld [vmem:[%s10839_s10 + $0xc8] sm:$0x77] }
  0x41   : > { %8910 = vmatpush3.bf16.msra.mxu1 %v10341_v21  ;;  %1080 = vmatprep.mubr.bf16.mxu0 %v711_v63  ;;  %13901 = vst [vmem:[#allocation8_spill] sm:$0xff] %v11133_v7  ;;  %v768_v63 = vshrl.u32 %v11097_v9, 16  ;;  %v7850_v14 = vcombine.high %v411_v56, %v411_v56 }
  0x42   : > { %13900 = vst [vmem:[#allocation7_spill] sm:$0xff] %v11113_v48  ;;  %1168 = vmatprep.mubr.bf16.mxu1 %v727_v45  ;;  %v756_v5 = vshll.u32 %v11113_v48, 16  ;;  %8853 = vmatprep.subr.bf16.mxu0 %v10346_v44  ;;  %v410_v44 = vld [vmem:[%s10839_s10 + $0xc0] sm:$0x77]  ;;  %v743_v45 = vsel %vm583_vm0, %v738_v59, %v742_v0  ;;  %v784_v16 = vshrl.u32 %v11113_v48, 16  ;;  %v776_v48 = vshrl.u32 %v11133_v7, 16 }
  0x43   : > { %8911 = vmatprep.subr.bf16.mxu1 %v10347_v53  ;;  %v748_v53 = vshll.u32 %v11133_v7, 16  ;;  %v770_v15 = vor.u32 %v768_v63, %v742_v0  ;;  %v11157_v29 = vcombine.low %v410_v44, %v410_v44  ;;  %v788_v0 = vshll.u32 %v7850_v14, 16 }
  0x44   : > { %v758_v21 = vrot.slane %v756_v5, 1  ;;  %8854 = vmatpush3.bf16.msra.mxu0 %v10348_v61  ;;  %v734_v5 = vrot.slane %v732_v13, 1  ;;  %v11164_v63 = vcombine.low %v411_v56, %v411_v56  ;;  %v801_v7 = vshrl.u32 %v7850_v14, 16 }
  0x45   : > { %8912 = vmatpush3.bf16.msra.mxu1 %v10349_v60  ;;  %v750_v36 = vrot.slane %v748_v53, 1  ;;  %8855 = vmatprep.subr.bf16.mxu0 %v10354_v32  ;;  %v760_v60 = vshrl.u32 %v11128_v6, 16  ;;  %v790_v32 = vrot.slane %v788_v0, 1  ;;  %v1814_v14 = vrot.slane %v11005_v19, 1 }
  0x46   : > { %v759_v61 = vsel %vm583_vm0, %v754_v2, %v758_v21  ;;  %v10356_v2 = vld [vmem:[%s13870_s2 + $0x30] sm:$0xff]   ;;  %v735_v13 = vsel %vm583_vm0, %v730_v24, %v734_v5  ;;  %v786_v53 = vor.u32 %v784_v16, %v758_v21  ;;  %v780_v1 = vshll.u32 %v11164_v63, 16  ;;  %v10358_v21 = vld [vmem:[%s13870_s2 + $0x78] sm:$0xff]  }
  0x47   : > { %1081 = vmatmul.mubr.bf16.gmra.mrb[12].mxu0 %v703_v33  ;;  %v7848_v33 = vcombine.high %v410_v44, %v410_v44  ;;  %v751_v44 = vsel %vm583_vm0, %v746_v51, %v750_v36  ;;  %v10357_v24 = vld [vmem:[%s13870_s2 + $0xb0] sm:$0xff]   ;;  %v1805_v51 = vrot.slane %v10948_v39, 1 }
  0x48   : > { %1169 = vmatmul.mubr.bf16.gmra.mrb[12].mxu1 %v719_v58  ;;  %1088 = vmatprep.mubr.bf16.mxu0 %v743_v45  ;;  %v10355_v58 = vld [vmem:[%s13870_s2 + $0xf0] sm:$0xff]   ;;  %v791_v16 = vsel %vm583_vm0, %v786_v53, %v790_v32  ;;  %v1818_v53 = vrot.slane %v11016_v25, 1 }
  0x49   : > { %1176 = vmatprep.mubr.bf16.mxu1 %v759_v61  ;;  %v772_v59 = vshll.u32 %v7848_v33, 16  ;;  %8913 = vmatprep.subr.bf16.mxu1 %v10355_v58  ;;  %v764_v61 = vshll.u32 %v11157_v29, 16  ;;  %v795_v0 = vshrl.u32 %v7848_v33, 16 }
  0x4a   : > { %8856 = vmatpush3.bf16.msra.mxu0 %v10356_v2  ;;  %v762_v2 = vor.u32 %v760_v60, %v734_v5  ;;  %8914 = vmatpush3.bf16.msra.mxu1 %v10357_v24  ;;  %v11189_v5 = vcombine.high %v11044_v52, %v11101_v40  ;;  %v10362_v60 = vld [vmem:[%s13870_s2 + $0x240] sm:$0xff]   ;;  %v1816_v24 = vrot.slane %v11022_v27, 1 }
  0x4b   : > { %v774_v45 = vrot.slane %v772_v59, 1  ;;  %v766_v58 = vrot.slane %v764_v61, 1  ;;  %8857 = vmatprep.subr.bf16.mxu0 %v10358_v21  ;;  %v778_v61 = vor.u32 %v776_v48, %v750_v36  ;;  %v792_v59 = vshrl.u32 %v11157_v29, 16 }
  0x4c   : > { %v11197_v48 = vcombine.low %v11040_v50, %v11087_v26  ;;  %v11201_v29 = vcombine.low %v11044_v52, %v11101_v40  ;;  %v10363_v50 = vld [vmem:[%s13870_s2 + $0x2c0] sm:$0xff]   ;;  %v1822_v26 = vrot.slane %v11019_v37, 1  ;;  %v803_v40 = vor.u32 %v801_v7, %v790_v32 }
  0x4d   : > { %v775_v56 = vsel %vm583_vm0, %v770_v15, %v774_v45  ;;  %v10359_v15 = vld [vmem:[%s13870_s2 + $0xf8] sm:$0xff]   ;;  %v767_v33 = vsel %vm583_vm0, %v762_v2, %v766_v58  ;;  %v797_v36 = vor.u32 %v795_v0, %v774_v45  ;;  %v13902_v45 = vrot.slane %v10955_v49, 1 }
  0x4e   : > { %8915 = vmatprep.subr.bf16.mxu1 %v10359_v15  ;;  %v1811_v21 = vrot.slane %v10964_v54, 1  ;;  %v1820_v2 = vrot.slane %v11025_v28, 1  ;;  %v11229_v7 = vsel %vm1803_vm1, %v1805_v51, %v1816_v24  ;;  %v1826_v32 = vrot.slane %v11070_v10, 1 }
  0x4f   : > { %1089 = vmatmul.mubr.bf16.gmra.mrb[16].mxu0 %v735_v13  ;;  %v782_v13 = vrot.slane %v780_v1, 1  ;;  %v10361_v1 = vld [vmem:[%s13870_s2 + $0xb8] sm:$0xff]   ;;  %v798_v0 = vshrl.u32 %v11164_v63, 16 }
  0x50   : > { %1096 = vmatprep.mubr.bf16.mxu0 %v775_v56  ;;  %1177 = vmatmul.mubr.bf16.gmra.mrb[16].mxu1 %v751_v44  ;;  %v10360_v56 = vld [vmem:[%s13870_s2 + $0x38] sm:$0xff]   ;;  %v11216_v44 = vsel %vm1803_vm1, %v13902_v45, %v1818_v53  ;;  %v11236_v15 = vsel %vm1803_vm1, %v1811_v21, %v1820_v2 }
  0x51   : > { %1184 = vmatprep.mubr.bf16.mxu1 %v791_v16  ;;  %8858 = vmatpush3.bf16.msra.mxu0 %v10360_v56  ;;  %v783_v52 = vsel %vm583_vm0, %v778_v61, %v782_v13  ;;  %v11223_v16 = vsel %vm1803_vm1, %v1814_v14, %v1822_v26  ;;  %v1830_v61 = vrot.slane %v11081_v22, 1  ;;  %v11240_v56 = vsel %vm1803_vm1, %v1818_v53, %v1826_v32 }
  0x52   : > { %8916 = vmatpush3.bf16.msra.mxu1 %v10361_v1  ;;  %8959 = vmatprep.subr.bf16.mxu0 %v10362_v60  ;;  %v1824_v1 = vrot.slane %v11084_v23, 1  ;;  %v1828_v60 = vrot.slane %v11093_v31, 1  ;;  %v13885_v53 = vrot.slane %v11189_v5, 1 }
  0x53   : > { %9017 = vmatprep.subr.bf16.mxu1 %v10363_v50  ;;  %v13886_v50 = vrot.slane %v11138_v17, 1 }
  0x54   : > { %v11248_v63 = vsel %vm1803_vm1, %v1816_v24, %v1824_v1  ;;  %v11252_v45 = vsel %vm1803_vm1, %v1820_v2, %v1828_v60  ;;  %v10364_v2 = vld [vmem:[%s13870_s2 + $0x200] sm:$0xff]  }
  0x57   : > { %1097 = vmatmul.mubr.bf16.gmra.mrb[20].mxu0 %v767_v33  ;;  %v794_v33 = vor.u32 %v792_v59, %v766_v58  ;;  %v11258_v58 = vsel %vm1803_vm1, %v1826_v32, %v13886_v50  ;;  %v13884_v59 = vrot.slane %v11197_v48, 1  ;;  %v10365_v32 = vld [vmem:[%s13870_s2 + $0x280] sm:$0xff]  }
  0x58   : > { %1104 = vmatprep.mubr.bf16.mxu0 %v797_v36  ;;  %1185 = vmatmul.mubr.bf16.gmra.mrb[20].mxu1 %v783_v52  ;;  %v11244_v36 = vsel %vm1803_vm1, %v1822_v26, %v1830_v61  ;;  %v800_v52 = vor.u32 %v798_v0, %v782_v13  ;;  %v11264_v26 = vsel %vm1803_vm1, %v1830_v61, %v13885_v53  ;;  %v13883_v13 = vrot.slane %v11201_v29, 1  ;;  %v10367_v0 = vld [vmem:[%s13870_s2 + $0x2c8] sm:$0xff]   ;;  %v10370_v61 = vld [vmem:[%s13870_s2 + $0x250] sm:$0xff]  }
  0x59   : > { %1192 = vmatprep.mubr.bf16.mxu1 %v803_v40  ;;  %v11271_v40 = vsel %vm1803_vm1, %v1824_v1, %v13884_v59  ;;  %v10374_v1 = vld [vmem:[%s13870_s2 + $0x258] sm:$0xff]  }
  0x5a   : > { %v11276_v24 = vsel %vm1803_vm1, %v1828_v60, %v13883_v13  ;;  %v10376_v60 = vld [vmem:[%s13870_s2 + $0x218] sm:$0xff]  }
  0x5f   : > { %1105 = vmatmul.mubr.bf16.gmra.mrb[24].mxu0 %v794_v33  ;;  %v10375_v33 = vld [vmem:[%s13870_s2 + $0x2d8] sm:$0xff]  }
  0x60   : > { %1462 = vmatprep.mubr.bf16.mxu0 %v10852_v34  ;;  %1193 = vmatmul.mubr.bf16.gmra.mrb[24].mxu1 %v800_v52  ;;  %v10366_v34 = vld [vmem:[%s13870_s2 + $0x248] sm:$0xff]   ;;  %v10378_v52 = vld [vmem:[%s13870_s2 + $0x260] sm:$0xff]  }
  0x61   : > { %1550 = vmatprep.mubr.bf16.mxu1 %v10867_v41  ;;  %v10368_v41 = vld [vmem:[%s13870_s2 + $0x208] sm:$0xff]  }
  0x67   : > { %1463 = vmatmul.mubr.bf16.vlgmr.msra.gmra.mrb[28].mxu0 %v10873_v43  ;;  %v10369_v43 = vld [vmem:[%s13870_s2 + $0x288] sm:$0xff]  }
  0x68   : > { %8960 = vmatpush3.bf16.msra.mxu0 %v10364_v2  ;;  %1470 = vmatprep.mubr.bf16.mxu0 %v10855_v35  ;;  %v10371_v35 = vld [vmem:[%s13870_s2 + $0x2d0] sm:$0xff]   ;;  %v10381_v2 = vld [vmem:[%s13870_s2 + $0x2a0] sm:$0xff]  }
  0x69   : > { %1551 = vmatmul.mubr.bf16.vlgmr.msra.gmra.mrb[28].mxu1 %v10878_v46  ;;  %8961 = vmatprep.subr.bf16.mxu0 %v10366_v34  ;;  %v10372_v46 = vld [vmem:[%s13870_s2 + $0x210] sm:$0xff]   ;;  %v2369_v34 = vshrl.u32 %v10955_v49, 16 }
  0x6a   : > { %9018 = vmatpush3.bf16.msra.mxu1 %v10365_v32  ;;  %1558 = vmatprep.mubr.bf16.mxu1 %v10870_v42  ;;  %v10373_v42 = vld [vmem:[%s13870_s2 + $0x290] sm:$0xff]   ;;  %v10383_v32 = vld [vmem:[%s13870_s2 + $0x2e8] sm:$0xff]  }
  0x6b   : > { %9019 = vmatprep.subr.bf16.mxu1 %v10367_v0  ;;  %v2372_v0 = vshll.u32 %v10955_v49, 16 }
  0x6c   : > { %8962 = vmatpush3.bf16.msra.mxu0 %v10368_v41  ;;  %v10384_v41 = vld [vmem:[%s13870_s2 + $0x228] sm:$0xff]  }
  0x6d   : > { %8963 = vmatprep.subr.bf16.mxu0 %v10370_v61  ;;  %v10385_v61 = vld [vmem:[%s13870_s2 + $0x2a8] sm:$0xff]  }
  0x6e   : > { %9020 = vmatpush3.bf16.msra.mxu1 %v10369_v43  ;;  %v10387_v43 = vld [vmem:[%s13870_s2 + $0x2f0] sm:$0xff]  }
  0x6f   : > { %1471 = vmatmul.mubr.bf16.gmra.mrb[32].mxu0 %v10862_v38  ;;  %9021 = vmatprep.subr.bf16.mxu1 %v10371_v35  ;;  %v10377_v38 = vld [vmem:[%s13870_s2 + $0x298] sm:$0xff]   ;;  %v2374_v35 = vrot.slane %v2372_v0, 2 }
  0x70   : > { %1478 = vmatprep.mubr.bf16.mxu0 %v10910_v11  ;;  %8964 = vmatpush3.bf16.msra.mxu0 %v10372_v46  ;;  %v10379_v11 = vld [vmem:[%s13870_s2 + $0x2e0] sm:$0xff]   ;;  %v2403_v46 = vshrl.u32 %v11005_v19, 16 }
  0x71   : > { %1559 = vmatmul.mubr.bf16.gmra.mrb[32].mxu1 %v10881_v47  ;;  %8965 = vmatprep.subr.bf16.mxu0 %v10374_v1  ;;  %v10380_v47 = vld [vmem:[%s13870_s2 + $0x220] sm:$0xff]   ;;  %v2406_v1 = vshll.u32 %v11005_v19, 16  ;;  %v13908_v19 = vld [vmem:[#allocation6_spill] sm:$0xff] }
  0x72   : > { %1566 = vmatprep.mubr.bf16.mxu1 %v10923_v18  ;;  %9022 = vmatpush3.bf16.msra.mxu1 %v10373_v42  ;;  %v10382_v18 = vld [vmem:[%s13870_s2 + $0x268] sm:$0xff]   ;;  %v10389_v42 = vld [vmem:[%s13870_s2 + $0x2b0] sm:$0xff]   ;;  %v2405_v0 = vrot.slane %v2403_v46, 1  ;;  %v13904_v46 = vld [vmem:[#allocation7_spill] sm:$0xff] }
  0x73   : > { %9023 = vmatprep.subr.bf16.mxu1 %v10375_v33  ;;  %v2352_v33 = vshrl.u32 %v10948_v39, 16 }
  0x74   : > { %8966 = vmatpush3.bf16.msra.mxu0 %v10376_v60  ;;  %v10395_v60 = vld [vmem:[%s13870_s2 + $0x2f8] sm:$0xff]  }
  0x75   : > { %8967 = vmatprep.subr.bf16.mxu0 %v10378_v52  ;;  %v2421_v52 = vshrl.u32 %v11016_v25, 16 }
  0x76   : > { %9024 = vmatpush3.bf16.msra.mxu1 %v10377_v38  ;;  %v10396_v38 = vld [vmem:[%s13870_s2 + $0x238] sm:$0xff]  }
  0x77   : > { %1479 = vmatmul.mubr.bf16.gmra.mrb[36].mxu0 %v10929_v20  ;;  %9025 = vmatprep.subr.bf16.mxu1 %v10379_v11  ;;  %v10386_v20 = vld [vmem:[%s13870_s2 + $0x270] sm:$0xff]   ;;  %v2424_v11 = vshll.u32 %v11016_v25, 16  ;;  %v2389_v25 = vshll.u32 %v10964_v54, 16 }
  0x78   : > { %1486 = vmatprep.mubr.bf16.mxu0 %v10984_v3  ;;  %8968 = vmatpush3.bf16.msra.mxu0 %v10380_v47  ;;  %v2371_v3 = vrot.slane %v2369_v34, 1  ;;  %v2355_v47 = vshll.u32 %v10948_v39, 16  ;;  %v1606_v34 = vld [vmem:[%s10839_s10 + $0x10] sm:$0xee] }
  0x79   : > { %1567 = vmatmul.mubr.bf16.gmra.mrb[36].mxu1 %v10944_v30  ;;  %8969 = vmatprep.subr.bf16.mxu0 %v10382_v18  ;;  %v10388_v30 = vld [vmem:[%s13870_s2 + $0x230] sm:$0xff]   ;;  %v2386_v18 = vshrl.u32 %v10964_v54, 16 }
  0x7a   : > { %1574 = vmatprep.mubr.bf16.mxu1 %v10987_v4  ;;  %9026 = vmatpush3.bf16.msra.mxu1 %v10381_v2  ;;  %v10394_v4 = vld [vmem:[%s13870_s2 + $0x278] sm:$0xff]   ;;  %v2423_v2 = vrot.slane %v2421_v52, 1  ;;  %v2357_v52 = vrot.slane %v2355_v47, 2 }
  0x7b   : > { %9027 = vmatprep.subr.bf16.mxu1 %v10383_v32  ;;  %v1607_v32 = vld [vmem:[%s10839_s10 + $0x18] sm:$0xee] }
  0x7c   : > { %8970 = vmatpush3.bf16.msra.mxu0 %v10384_v41  ;;  %v2439_v41 = vshrl.u32 %v11019_v37, 16 }
  0x7d   : > { %8971 = vmatprep.subr.bf16.mxu0 %v10386_v20  ;;  %v2408_v20 = vrot.slane %v2406_v1, 2  ;;  %v2388_v1 = vrot.slane %v2386_v18, 1 }
  0x7e   : > { %9028 = vmatpush3.bf16.msra.mxu1 %v10385_v61  ;;  %v2354_v61 = vrot.slane %v2352_v33, 1  ;;  %v2391_v33 = vrot.slane %v2389_v25, 2  ;;  %v2441_v13 = vrot.slane %v2439_v41, 1 }
  0x7f   : > { %1487 = vmatmul.mubr.bf16.gmra.mrb[40].mxu0 %v10996_v8  ;;  %9029 = vmatprep.subr.bf16.mxu1 %v10387_v43  ;;  %v10406_v8 = vld [vmem:[%s13870_s2 + $0x340] sm:$0xff]  }
  0x80   : > { %1494 = vmatprep.mubr.bf16.mxu0 %v11049_v55  ;;  %8972 = vmatpush3.bf16.msra.mxu0 %v10388_v30  ;;  %v10397_v55 = vld [vmem:[%s13870_s2 + $0x2b8] sm:$0xff]   ;;  %v13903_v43 = vld [vmem:[#allocation4_spill] sm:$0xff] }
  0x81   : > { %1575 = vmatmul.mubr.bf16.gmra.mrb[40].mxu1 %v10999_v12  ;;  %8973 = vmatprep.subr.bf16.mxu0 %v10394_v4  ;;  %v10407_v12 = vld [vmem:[%s13870_s2 + $0x3c0] sm:$0xff]   ;;  %v11411_v4 = vld [vmem:[%s10839_s10 + $0xc8] sm:$0x33] }
  0x82   : > { %1582 = vmatprep.mubr.bf16.mxu1 %v11052_v57  ;;  %9030 = vmatpush3.bf16.msra.mxu1 %v10389_v42  ;;  %v2426_v57 = vrot.slane %v2424_v11, 2  ;;  %v11408_v30 = vld [vmem:[%s10839_s10 + $0xc0] sm:$0x33] }
  0x83   : > { %9031 = vmatprep.subr.bf16.mxu1 %v10395_v60  ;;  %v10672_v42 = vld [vmem:[%s10839_s10 + $0x20] sm:$0xff]  ;;  %v7884_v47 = vcombine.high %v11408_v30, %v11408_v30 }
  0x84   : > { %8974 = vmatpush3.bf16.msra.mxu0 %v10396_v38  ;;  %v7984_v60 = vcombine.high %v1606_v34, %v10672_v42  ;;  %v11414_v38 = vor.u32 %v2426_v57, %v2423_v2  ;;  %v7983_v11 = vcombine.low %v1606_v34, %v10672_v42 }
  0x85   : > { %9075 = vmatprep.subr.bf16.mxu0 %v10406_v8  ;;  %v10673_v8 = vld [vmem:[%s10839_s10 + $0x28] sm:$0xff] }
  0x86   : > { %9032 = vmatpush3.bf16.msra.mxu1 %v10397_v55  ;;  %v11419_v55 = vcombine.low %v1607_v32, %v10673_v8  ;;  %v2364_v2 = vshll.u32 %v7984_v60, 16  ;;  %v2344_v41 = vshrl.u32 %v7983_v11, 16 }
  0x87   : > { %1495 = vmatmul.mubr.bf16.gmra.mrb[44].mxu0 %v11059_v62  ;;  %9133 = vmatprep.subr.bf16.mxu1 %v10407_v12  ;;  %v2442_v62 = vshll.u32 %v11019_v37, 16  ;;  %v2361_v12 = vshrl.u32 %v7984_v60, 16  ;;  %v7886_v37 = vcombine.high %v11411_v4, %v11411_v4 }
  0x88   : > { %1502 = vmatprep.mubr.bf16.mxu0 %v11097_v9  ;;  %v7986_v9 = vcombine.high %v1607_v32, %v10673_v8  ;;  %v1807_v32 = vrot.slane %v7984_v60, 1  ;;  %v1810_v42 = vrot.slane %v11419_v55, 1  ;;  %v2347_v8 = vshll.u32 %v7983_v11, 16  ;;  %v13905_v60 = vld [vmem:[#allocation8_spill] sm:$0xff] }
  0x89   : > { %1583 = vmatmul.mubr.bf16.gmra.mrb[44].mxu1 %v13903_v43  ;;  %v11421_v43 = vor.u32 %v2374_v35, %v2371_v3  ;;  %v2444_v25 = vrot.slane %v2442_v62, 2  ;;  %v1804_v35 = vrot.slane %v7983_v11, 1  ;;  %v11438_v53 = vrot.slane %v2361_v12, 1 }
  0x8a   : > { %1590 = vmatprep.mubr.bf16.mxu1 %v13904_v46  ;;  %v2395_v57 = vshrl.u32 %v7986_v9, 16  ;;  %v2398_v34 = vshll.u32 %v7986_v9, 16  ;;  %v1813_v3 = vrot.slane %v7986_v9, 1  ;;  %v11434_v46 = vor.u32 %v2408_v20, %v2405_v0 }
  0x8b   : > { %v11430_v18 = vsel %vm2342_vm2, %v11421_v43, %v11414_v38  ;;  %v11436_v59 = vor.u32 %v2444_v25, %v2441_v13  ;;  %v2412_v62 = vshrl.u32 %v11022_v27, 16  ;;  %v11442_v9 = vrot.slane %v2364_v2, 2  ;;  %v1628_v13 = vld [vmem:[%s10839_s10 + $0xc0] sm:$0xff]  ;;  %v11463_v2 = vld [vmem:[%s10839_s10 + $0xc8] sm:$0xff] }
  0x8c   : > { %v11444_v50 = vrot.slane %v2395_v57, 1  ;;  %v11454_v20 = vrot.slane %v2344_v41, 1  ;;  %v11456_v11 = vor.u32 %v2357_v52, %v2354_v61  ;;  %v7883_v12 = vcombine.low %v11408_v30, %v11408_v30 }
  0x8d   : > { %v11451_v0 = vsel %vm2342_vm2, %v11434_v46, %v11436_v59  ;;  %v11465_v57 = vrot.slane %v2347_v8, 2  ;;  %v13906_v25 = vrot.slane %v10955_v49, 1  ;;  %v1815_v61 = vsel %vm1803_vm1, %v1813_v3, %v1814_v14 }
  0x8e   : > { %v2414_v52 = vrot.slane %v2412_v62, 1  ;;  %v2415_v30 = vshll.u32 %v11022_v27, 16  ;;  %v2430_v49 = vshrl.u32 %v11025_v28, 16  ;;  %v11489_v14 = vcombine.high %v13908_v19, %v11463_v2 }
  0x8f   : > { %1503 = vmatmul.mubr.bf16.gmra.mrb[48].mxu0 %v11128_v6  ;;  %v11446_v6 = vrot.slane %v2398_v34, 2  ;;  %v11467_v34 = vor.u32 %v2391_v33, %v2388_v1  ;;  %v1812_v1 = vsel %vm1803_vm1, %v1810_v42, %v1811_v21  ;;  %v2433_v21 = vshll.u32 %v11025_v28, 16  ;;  %v10408_v28 = vld [vmem:[%s13870_s2 + $0x300] sm:$0xff]  }
  0x90   : > { %1510 = vmatprep.mubr.bf16.mxu0 %v7884_v47  ;;  %v7885_v47 = vcombine.low %v11411_v4, %v11411_v4  ;;  %v1806_v4 = vsel %vm1803_vm1, %v1804_v35, %v1805_v51  ;;  %v2417_v39 = vrot.slane %v2415_v30, 2  ;;  %v2432_v54 = vrot.slane %v2430_v49, 1 }
  0x91   : > { %1591 = vmatmul.mubr.bf16.gmra.mrb[48].mxu1 %v13905_v60  ;;  %v2457_v3 = vshrl.u32 %v11070_v10, 16  ;;  %v2460_v42 = vshll.u32 %v11070_v10, 16  ;;  %v2475_v8 = vshrl.u32 %v11081_v22, 16  ;;  %v2478_v62 = vshll.u32 %v11081_v22, 16  ;;  %v10412_v22 = vld [vmem:[%s13870_s2 + $0x348] sm:$0xff]  }
  0x92   : > { %1598 = vmatprep.mubr.bf16.mxu1 %v7886_v37  ;;  %v1809_v37 = vsel %vm1803_vm1, %v1807_v32, %v13906_v25  ;;  %v13907_v32 = vld [vmem:[#allocation5_spill] sm:$0xff]  ;;  %v2418_v35 = vor.u32 %v2417_v39, %v2414_v52  ;;  %v2435_v60 = vrot.slane %v2433_v21, 2  ;;  %v2469_v21 = vshll.u32 %v11093_v31, 16 }
  0x93   : > { %v11485_v41 = vcombine.high %v13907_v32, %v1628_v13  ;;  %v11493_v51 = vcombine.low %v13907_v32, %v1628_v13  ;;  %v2459_v25 = vrot.slane %v2457_v3, 1  ;;  %v2451_v13 = vshll.u32 %v11084_v23, 16 }
  0x94   : > { %v2462_v10 = vrot.slane %v2460_v42, 2  ;;  %v2477_v52 = vrot.slane %v2475_v8, 1  ;;  %v2480_v30 = vrot.slane %v2478_v62, 2  ;;  %v2493_v3 = vshrl.u32 %v11138_v17, 16  ;;  %v10413_v42 = vld [vmem:[%s13870_s2 + $0x3c8] sm:$0xff]  }
  0x95   : > { %v2453_v32 = vrot.slane %v2451_v13, 2 }
  0x96   : > { %v2463_v19 = vor.u32 %v2462_v10, %v2459_v25  ;;  %v2481_v39 = vor.u32 %v2480_v30, %v2477_v52  ;;  %v2495_v13 = vrot.slane %v2493_v3, 1  ;;  %v10416_v10 = vld [vmem:[%s13870_s2 + $0x308] sm:$0xff]  }
  0x97   : > { %1511 = vmatmul.mubr.bf16.gmra.mrb[52].mxu0 %v7883_v12  ;;  %v2448_v12 = vshrl.u32 %v11084_v23, 16  ;;  %v2466_v23 = vshrl.u32 %v11093_v31, 16 }
  0x98   : > { %2108 = vmatprep.mubr.bf16.mxu0 %v1809_v37  ;;  %v11507_v37 = vsel %vm2342_vm2, %v11456_v11, %v2418_v35  ;;  %v11528_v25 = vsel %vm2342_vm2, %v11414_v38, %v2463_v19  ;;  %v11532_v31 = vsel %vm2342_vm2, %v11436_v59, %v2481_v39  ;;  %v2511_v38 = vshrl.u32 %v11189_v5, 16  ;;  %v10417_v59 = vld [vmem:[%s13870_s2 + $0x388] sm:$0xff]  }
  0x99   : > { %1599 = vmatmul.mubr.bf16.gmra.mrb[52].mxu1 %v7885_v47  ;;  %v2436_v47 = vor.u32 %v2435_v60, %v2432_v54  ;;  %v2450_v49 = vrot.slane %v2448_v12, 1  ;;  %v2468_v62 = vrot.slane %v2466_v23, 1  ;;  %v2496_v60 = vshll.u32 %v11138_v17, 16 }
  0x9a   : > { %2196 = vmatprep.mubr.bf16.mxu1 %v1815_v61  ;;  %v10409_v61 = vld [vmem:[%s13870_s2 + $0x380] sm:$0xff]   ;;  %v2471_v12 = vrot.slane %v2469_v21, 2  ;;  %v2487_v23 = vshll.u32 %v11197_v48, 16  ;;  %v10418_v21 = vld [vmem:[%s13870_s2 + $0x350] sm:$0xff]  }
  0x9b   : > { %v11523_v54 = vsel %vm2342_vm2, %v11467_v34, %v2436_v47  ;;  %v2454_v8 = vor.u32 %v2453_v32, %v2450_v49  ;;  %v2498_v30 = vrot.slane %v2496_v60, 2  ;;  %v2514_v49 = vshll.u32 %v11189_v5, 16 }
  0x9c   : > { %v2484_v32 = vshrl.u32 %v11197_v48, 16  ;;  %v2513_v60 = vrot.slane %v2511_v38, 1  ;;  %v2489_v33 = vrot.slane %v2487_v23, 2  ;;  %v13913_v23 = vshll.u32 %v11419_v55, 16 }
  0x9d   : > { %v11538_v52 = vsel %vm2342_vm2, %v2418_v35, %v2454_v8  ;;  %v2502_v35 = vshrl.u32 %v11201_v29, 16  ;;  %v11558_v3 = vor.u32 %v2498_v30, %v2495_v13  ;;  %v13911_v13 = vshrl.u32 %v11419_v55, 16 }
  0x9e   : > { %13909 = vst [vmem:[#allocation4_spill] sm:$0xff] %v11538_v52  ;;  %v2486_v27 = vrot.slane %v2484_v32, 1  ;;  %v10674_v32 = vld [vmem:[%s10839_s10 + $0xb8] sm:$0xff] }
  0x9f   : > { %2109 = vmatmul.mubr.bf16.vlgmr.msra.gmra.mrb[56].mxu0 %v1806_v4  ;;  %v2472_v4 = vor.u32 %v2471_v12, %v2468_v62  ;;  %13910 = vst [vmem:[#allocation7_spill] sm:$0xff] %v11558_v3  ;;  %v2516_v62 = vrot.slane %v2514_v49, 2  ;;  %v2505_v12 = vshll.u32 %v11201_v29, 16  ;;  %v2504_v52 = vrot.slane %v2502_v35, 1 }
  0xa0   : > { %9076 = vmatpush3.bf16.msra.mxu0 %v10408_v28  ;;  %2116 = vmatprep.mubr.bf16.mxu0 %v11216_v44  ;;  %v11553_v28 = vld [vmem:[%s10839_s10 + $0xd0] sm:$0x77]  ;;  %v11556_v44 = vld [vmem:[%s10839_s10 + $0xd8] sm:$0x77]  ;;  %v11570_v30 = vrot.slane %v13911_v13, 1  ;;  %v11588_v35 = vrot.slane %v13913_v23, 2 }
  0xa1   : > { %2197 = vmatmul.mubr.bf16.vlgmr.msra.gmra.mrb[56].mxu1 %v1812_v1  ;;  %9077 = vmatprep.subr.bf16.mxu0 %v10412_v22  ;;  %v10419_v1 = vld [vmem:[%s13870_s2 + $0x3d0] sm:$0xff]   ;;  %v11566_v22 = vsel %vm2342_vm2, %v2436_v47, %v2472_v4  ;;  %v2507_v38 = vrot.slane %v2505_v12, 2  ;;  %v8008_v12 = vcombine.high %v11553_v28, %v11553_v28  ;;  %v10434_v13 = vld [vmem:[%s13870_s2 + $0x360] sm:$0xff]   ;;  %v2532_v23 = vshll.u32 %v11485_v41, 16 }
  0xa2   : > { %9134 = vmatpush3.bf16.msra.mxu1 %v10409_v61  ;;  %2204 = vmatprep.mubr.bf16.mxu1 %v11223_v16  ;;  %v11574_v61 = vsel %vm2342_vm2, %v2463_v19, %v11558_v3  ;;  %v11576_v16 = vor.u32 %v2516_v62, %v2513_v60  ;;  %v10422_v47 = vld [vmem:[%s13870_s2 + $0x310] sm:$0xff]   ;;  %v11590_v19 = vor.u32 %v2489_v33, %v2486_v27  ;;  %v10426_v60 = vld [vmem:[%s13870_s2 + $0x358] sm:$0xff]   ;;  %v11665_v62 = vld [vmem:[%s13870_s2 + $0x368] sm:$0xff]  }
  0xa3   : > { %9135 = vmatprep.subr.bf16.mxu1 %v10413_v42  ;;  %v11584_v42 = vcombine.low %v10674_v32, %v11463_v2  ;;  %v11604_v33 = vor.u32 %v2507_v38, %v2504_v52  ;;  %v10427_v27 = vld [vmem:[%s13870_s2 + $0x3d8] sm:$0xff]   ;;  %v8007_v52 = vcombine.low %v11553_v28, %v11553_v28  ;;  %v8009_v38 = vcombine.low %v11556_v44, %v11556_v44 }
  0xa4   : > { %13912 = vst [vmem:[#allocation8_spill] sm:$0xff] %v11576_v16  ;;  %9078 = vmatpush3.bf16.msra.mxu0 %v10416_v10  ;;  %13914 = vst [vmem:[#allocation5_spill] sm:$0xff] %v11590_v19  ;;  %v10423_v10 = vld [vmem:[%s13870_s2 + $0x390] sm:$0xff]   ;;  %v11602_v55 = vsel %vm2342_vm2, %v2481_v39, %v11576_v16  ;;  %v8010_v39 = vcombine.high %v11556_v44, %v11556_v44  ;;  %v2529_v28 = vshrl.u32 %v11485_v41, 16  ;;  %v11636_v2 = vld [vmem:[%s10839_s10 + $0xd8] sm:$0xff]  ;;  %v2547_v44 = vshrl.u32 %v11489_v14, 16 }
  0xa5   : > { %9079 = vmatprep.subr.bf16.mxu0 %v10418_v21  ;;  %13915 = vst [vmem:[#allocation6_spill] sm:$0xff] %v11602_v55  ;;  %13916 = vst [vmem:[#allocation9_spill] sm:$0xff] %v11604_v33  ;;  %v10428_v21 = vld [vmem:[%s13870_s2 + $0x318] sm:$0xff]   ;;  %v11630_v32 = vsel %vm2342_vm2, %v2472_v4, %v11604_v33  ;;  %v10435_v4 = vld [vmem:[%s13870_s2 + $0x3e0] sm:$0xff]   ;;  %v2538_v49 = vshrl.u32 %v11584_v42, 16  ;;  %v11658_v33 = vrot.slane %v8007_v52, 1 }
  0xa6   : > { %9136 = vmatpush3.bf16.msra.mxu1 %v10417_v59  ;;  %v11620_v59 = vsel %vm2342_vm2, %v2454_v8, %v11590_v19  ;;  %13918 = vst [vmem:[#allocation11_spill] sm:$0xff] %v11630_v32  ;;  %v2265_v8 = vld [vmem:[%s10839_s10 + $0xd0] sm:$0xff]  ;;  %v11667_v32 = vrot.slane %v8010_v39, 1  ;;  %v11682_v52 = vrot.slane %v2532_v23, 2  ;;  %v11684_v16 = vrot.slane %v2547_v44, 1  ;;  %v10444_v23 = vld [vmem:[%s13870_s2 + $0x328] sm:$0xff]  }
  0xa7   : > { %13917 = vst [vmem:[#allocation10_spill] sm:$0xff] %v11620_v59  ;;  %2117 = vmatmul.mubr.bf16.gmra.mrb[60].mxu0 %v11229_v7  ;;  %9137 = vmatprep.subr.bf16.mxu1 %v10419_v1  ;;  %v10429_v7 = vld [vmem:[%s13870_s2 + $0x398] sm:$0xff]   ;;  %v2550_v1 = vshll.u32 %v11489_v14, 16  ;;  %v11660_v19 = vcombine.high %v2265_v8, %v2265_v8  ;;  %v11696_v3 = vrot.slane %v2538_v49, 1  ;;  %v11698_v55 = vcombine.low %v2265_v8, %v2265_v8  ;;  %v307_v8 = vld [vmem:[%s13869_s1] sm:$0xff] }
  0xa8   : > { %2124 = vmatprep.mubr.bf16.mxu0 %v11240_v56  ;;  %9080 = vmatpush3.bf16.msra.mxu0 %v10422_v47  ;;  %v2520_v56 = vshrl.u32 %v11493_v51, 16  ;;  %v2523_v47 = vshll.u32 %v11493_v51, 16 }
  0xa9   : > { %2205 = vmatmul.mubr.bf16.gmra.mrb[60].mxu1 %v11236_v15  ;;  %9081 = vmatprep.subr.bf16.mxu0 %v10426_v60  ;;  %v10436_v15 = vld [vmem:[%s13870_s2 + $0x320] sm:$0xff]   ;;  %v11656_v60 = vrot.slane %v8008_v12, 1  ;;  %v11675_v12 = vcombine.high %v11636_v2, %v11636_v2  ;;  %v11686_v39 = vrot.slane %v2550_v1, 2  ;;  %v2565_v44 = vshrl.u32 %v11660_v19, 16  ;;  %v10450_v1 = vld [vmem:[%s13870_s2 + $0x370] sm:$0xff]  }
  0xaa   : > { %2212 = vmatprep.mubr.bf16.mxu1 %v11244_v36  ;;  %9138 = vmatpush3.bf16.msra.mxu1 %v10423_v10  ;;  %v11669_v36 = vrot.slane %v8009_v38, 1  ;;  %v11671_v10 = vrot.slane %v2529_v28, 1  ;;  %v2541_v38 = vshll.u32 %v11584_v42, 16  ;;  %v10443_v28 = vld [vmem:[%s13870_s2 + $0x3e8] sm:$0xff]   ;;  %v11692_v59 = vrot.slane %v2520_v56, 1 }
  0xab   : > { %9139 = vmatprep.subr.bf16.mxu1 %v10427_v27  ;;  %v11680_v27 = vld [vmem:[%s13870_s2 + $0x3a0] sm:$0xff]   ;;  %v2583_v49 = vshrl.u32 %v11675_v12, 16  ;;  %v2556_v56 = vshrl.u32 %v11698_v55, 16 }
  0xac   : > { %9082 = vmatpush3.bf16.msra.mxu0 %v10428_v21  ;;  %v11694_v21 = vrot.slane %v2523_v47, 2  ;;  %v309_v47 = vld [vmem:[%s13869_s1 + $0x10] sm:$0xff] }
  0xad   : > { %9083 = vmatprep.subr.bf16.mxu0 %v10434_v13  ;;  %v2568_v13 = vshll.u32 %v11660_v19, 16  ;;  %v10445_v19 = vld [vmem:[%s13870_s2 + $0x3a8] sm:$0xff]  }
  0xae   : > { %9140 = vmatpush3.bf16.msra.mxu1 %v10429_v7  ;;  %v11717_v7 = vrot.slane %v2541_v38, 2 }
  0xaf   : > { %2125 = vmatmul.mubr.bf16.gmra.mrb[64].mxu0 %v11248_v63  ;;  %9141 = vmatprep.subr.bf16.mxu1 %v10435_v4  ;;  %v2586_v63 = vshll.u32 %v11675_v12, 16  ;;  %v10683_v4 = vmov 0   ;;  %v10454_v12 = vld [vmem:[%s13870_s2 + $0x378] sm:$0xff]   ;;  %v11740_v38 = vrot.slane %v2568_v13, 2 }
  0xb0   : > { %2132 = vmatprep.mubr.bf16.mxu0 %v11258_v58  ;;  %9084 = vmatpush3.bf16.msra.mxu0 %v10436_v15  ;;  %13919 = vst [vmem:[#allocation12_spill] sm:$0xff] %v11717_v7  ;;  %3118 = vst [vmem:[#allocation2] sm:$0xf] %v10683_v4  ;;  %v10451_v58 = vld [vmem:[%s13870_s2 + $0x3f0] sm:$0xff]   ;;  %v11734_v15 = vrot.slane %v2565_v44, 1  ;;  %v11742_v7 = vrot.slane %v2583_v49, 1 }
  0xb1   : > { %3119 = vst [vmem:[#allocation2 + $0x4] sm:$0xf] %v10683_v4  ;;  %3120 = vst [vmem:[#allocation2 + $0x8] sm:$0xf] %v10683_v4  ;;  %2213 = vmatmul.mubr.bf16.gmra.mrb[64].mxu1 %v11252_v45  ;;  %9085 = vmatprep.subr.bf16.mxu0 %v11665_v62  ;;  %v10452_v45 = vld [vmem:[%s13870_s2 + $0x330] sm:$0xff]   ;;  %v2559_v62 = vshll.u32 %v11698_v55, 16 }
  0xb2   : > { %3121 = vst [vmem:[#allocation2 + $0xc] sm:$0xf] %v10683_v4  ;;  %3122 = vst [vmem:[#allocation2 + $0x10] sm:$0xf] %v10683_v4  ;;  %2220 = vmatprep.mubr.bf16.mxu1 %v11264_v26  ;;  %9142 = vmatpush3.bf16.msra.mxu1 %v11680_v27  ;;  %v8109_v26 = vcombine.low %v11636_v2, %v11636_v2  ;;  %v10453_v27 = vld [vmem:[%s13870_s2 + $0x3b0] sm:$0xff]   ;;  %v13920_v55 = vrot.slane %v11485_v41, 1 }
  0xb3   : > { %3123 = vst [vmem:[#allocation2 + $0x14] sm:$0xf] %v10683_v4  ;;  %3124 = vst [vmem:[#allocation2 + $0x18] sm:$0xf] %v10683_v4  ;;  %9143 = vmatprep.subr.bf16.mxu1 %v10443_v28  ;;  %10266 = vset.pattern.permute.xlu0 %v10683_v4  ;;  %v13921_v28 = vrot.slane %v11138_v17, 1  ;;  %v10455_v13 = vld [vmem:[%s13870_s2 + $0x3f8] sm:$0xff]  }
  0xb4   : > { %3125 = vst [vmem:[#allocation2 + $0x1c] sm:$0xf] %v10683_v4  ;;  %3126 = vst [vmem:[#allocation2 + $0x20] sm:$0xf] %v10683_v4  ;;  %9086 = vmatpush3.bf16.msra.mxu0 %v10444_v23  ;;  %3035 = vperm.xlu0 %10266, %v307_v8   ;;  %v11757_v49 = vrot.slane %v2586_v63, 2  ;;  %v11759_v2 = vrot.slane %v2556_v56, 1 }
  0xb5   : > { %3127 = vst [vmem:[#allocation2 + $0x24] sm:$0xf] %v10683_v4  ;;  %3128 = vst [vmem:[#allocation2 + $0x28] sm:$0xf] %v10683_v4  ;;  %v1843_v44 = vsel %vm1803_vm1, %v13921_v28, %v13920_v55  ;;  %9087 = vmatprep.subr.bf16.mxu0 %v10450_v1  ;;  %10267 = vset.pattern.permute.xlu1 %v10683_v4  ;;  %v10456_v23 = vld [vmem:[%s13870_s2 + $0x338] sm:$0xff]   ;;  %v308_v17 = vld [vmem:[%s13869_s1 + $0x8] sm:$0xff] }
  0xb6   : > { %3129 = vst [vmem:[#allocation2 + $0x2c] sm:$0xf] %v10683_v4  ;;  %3130 = vst [vmem:[#allocation2 + $0x30] sm:$0xf] %v10683_v4  ;;  %9144 = vmatpush3.bf16.msra.mxu1 %v10445_v19  ;;  %3045 = vperm.xlu1 %10267, %v309_v47   ;;  %v13922_v1 = vrot.slane %v11489_v14, 1  ;;  %v13923_v8 = vrot.slane %v11189_v5, 1 }
  0xb7   : > { %3131 = vst [vmem:[#allocation2 + $0x34] sm:$0xf] %v10683_v4  ;;  %3132 = vst [vmem:[#allocation2 + $0x38] sm:$0xf] %v10683_v4  ;;  %2133 = vmatmul.mubr.bf16.gmra.mrb[68].mxu0 %v11271_v40  ;;  %9145 = vmatprep.subr.bf16.mxu1 %v10451_v58  ;;  %v2574_v19 = vshrl.u32 %v8109_v26, 16  ;;  %v10457_v56 = vld [vmem:[%s13870_s2 + $0x3b8] sm:$0xff]  }
  0xb8   : > { %3133 = vst [vmem:[#allocation2 + $0x3c] sm:$0x1] %v10683_v4  ;;  %5371 = vst [vmem:[#allocation3] sm:$0xf] %v10683_v4  ;;  %v1847_v63 = vsel %vm1803_vm1, %v13923_v8, %v13922_v1  ;;  %2140 = vmatprep.mubr.bf16.mxu0 %v1843_v44  ;;  %9088 = vmatpush3.bf16.msra.mxu0 %v10452_v45  ;;  %v2577_v55 = vshll.u32 %v8109_v26, 16  ;;  %v310_v40 = vld [vmem:[%s13869_s1 + $0x18] sm:$0xff] }
  0xb9   : > { %5372 = vst [vmem:[#allocation3 + $0x4] sm:$0xf] %v10683_v4  ;;  %5373 = vst [vmem:[#allocation3 + $0x8] sm:$0xf] %v10683_v4  ;;  %2221 = vmatmul.mubr.bf16.gmra.mrb[68].mxu1 %v11276_v24  ;;  %9089 = vmatprep.subr.bf16.mxu0 %v10454_v12  ;;  %v311_v5 = vld [vmem:[%s13869_s1 + $0x20] sm:$0xff]  ;;  %v11785_v58 = vrot.slane %v2574_v19, 1 }
  0xba   : > { %5374 = vst [vmem:[#allocation3 + $0xc] sm:$0xf] %v10683_v4  ;;  %5375 = vst [vmem:[#allocation3 + $0x10] sm:$0xf] %v10683_v4  ;;  %2228 = vmatprep.mubr.bf16.mxu1 %v1847_v63  ;;  %9146 = vmatpush3.bf16.msra.mxu1 %v10453_v27  ;;  %v312_v47 = vld [vmem:[%s13869_s1 + $0x28] sm:$0xff]  ;;  %v13924_v45 = vrot.slane %v11493_v51, 1  ;;  %v2367_v51 = vor.u32 %v11442_v9, %v11438_v53  ;;  %v2350_v53 = vor.u32 %v11465_v57, %v11454_v20 }
  0xbb   : > { %5376 = vst [vmem:[#allocation3 + $0x14] sm:$0xf] %v10683_v4  ;;  %5377 = vst [vmem:[#allocation3 + $0x18] sm:$0xf] %v10683_v4  ;;  %9147 = vmatprep.subr.bf16.mxu1 %v10455_v13  ;;  %3040 = vperm.xlu0 %10266, %v308_v17   ;;  %v13926_v12 = vrot.slane %v11485_v41, 1  ;;  %v13927_v27 = vrot.slane %v11584_v42, 1  ;;  %v13929_v13 = vmov %v13922_v1 }
  0xbc   : > { %5378 = vst [vmem:[#allocation3 + $0x1c] sm:$0xf] %v10683_v4  ;;  %5379 = vst [vmem:[#allocation3 + $0x20] sm:$0xf] %v10683_v4  ;;  %9090 = vmatpush3.bf16.msra.mxu0 %v10456_v23  ;;  %3050 = vperm.xlu1 %10267, %v310_v40   ;;  %v13928_v28 = vrot.slane %v11201_v29, 1  ;;  %v1855_v23 = vsel %vm1803_vm1, %v13929_v13, %v11667_v32  ;;  %v11811_v41 = vrot.slane %v2577_v55, 2  ;;  %v13930_v1 = vmov %v13924_v45 }
  0xbd   : > { %5380 = vst [vmem:[#allocation3 + $0x24] sm:$0xf] %v10683_v4  ;;  %5381 = vst [vmem:[#allocation3 + $0x28] sm:$0xf] %v10683_v4  ;;  %v1851_v26 = vsel %vm1803_vm1, %v13926_v12, %v11656_v60  ;;  %v314_v29 = vld [vmem:[%s13869_s1 + $0x38] sm:$0xff]  ;;  %v315_v17 = vld [vmem:[%s13869_s1 + $0x40] sm:$0xff]  ;;  %v1849_v8 = vsel %vm1803_vm1, %v13930_v1, %v11658_v33  ;;  %v13931_v63 = vmov %v13927_v27  ;;  %v2401_v40 = vor.u32 %v11446_v6, %v11444_v50 }
  0xbe   : > { %5382 = vst [vmem:[#allocation3 + $0x2c] sm:$0xf] %v10683_v4  ;;  %5383 = vst [vmem:[#allocation3 + $0x30] sm:$0xf] %v10683_v4  ;;  %v1845_v44 = vsel %vm1803_vm1, %v13928_v28, %v13927_v27  ;;  %9148 = vmatpush3.bf16.msra.mxu1 %v10457_v56  ;;  %v316_v14 = vld [vmem:[%s13869_s1 + $0x48] sm:$0xff]  ;;  %v1853_v19 = vsel %vm1803_vm1, %v13931_v63, %v11669_v36  ;;  %v317_v56 = vld [vmem:[%s13869_s1 + $0x50] sm:$0xff]  ;;  %v2384_v50 = vor.u32 %v11588_v35, %v11570_v30 }
  0xbf   : > { %5384 = vst [vmem:[#allocation3 + $0x34] sm:$0xf] %v10683_v4  ;;  %5385 = vst [vmem:[#allocation3 + $0x38] sm:$0xf] %v10683_v4  ;;  %3055 = vperm.xlu0 %10266, %v311_v5   ;;  %v318_v55 = vld [vmem:[%s13869_s1 + $0x58] sm:$0xff]  ;;  %v2376_v5 = vsel %vm2342_vm2, %v2367_v51, %v11421_v43  ;;  %v2359_v9 = vsel %vm2342_vm2, %v2350_v53, %v11456_v11  ;;  %v13933_v6 = vld [vmem:[#allocation6_spill] sm:$0xff] }
  0xc0   : > { %5386 = vst [vmem:[#allocation3 + $0x3c] sm:$0x1] %v10683_v4  ;;  %v11773_v4 = vrot.slane %v2559_v62, 2  ;;  %v13925_v62 = vrot.slane %v11197_v48, 1  ;;  %v313_v48 = vld [vmem:[%s13869_s1 + $0x30] sm:$0xff]  ;;  %3060 = vperm.xlu1 %10267, %v312_v47   ;;  %v2393_v43 = vsel %vm2342_vm2, %v2384_v50, %v11467_v34  ;;  %v13934_v20 = vld [vmem:[#allocation7_spill] sm:$0xff] }
  0xc1   : > { %2229 = vmatmul.mubr.bf16.gmra.mrb[72].mxu1 %v1845_v44  ;;  %v319_v42 = vld [vmem:[%s13869_s1 + $0x60] sm:$0xf]  ;;  %v13935_v57 = vld [vmem:[#allocation10_spill] sm:$0xff] }
  0xc2   : > { %v1841_v24 = vsel %vm1803_vm1, %v13925_v62, %v13924_v45  ;;  %2236 = vmatprep.mubr.bf16.mxu1 %v1855_v23  ;;  %v13936_v34 = vld [vmem:[#allocation8_spill] sm:$0xff] }
  0xc3   : > { %2141 = vmatmul.mubr.bf16.gmra.mrb[72].mxu0 %v1841_v24  ;;  %3065 = vperm.xlu0 %10266, %v313_v48  }
  0xc4   : > { %2148 = vmatprep.mubr.bf16.mxu0 %v1851_v26  ;;  %3070 = vperm.xlu1 %10267, %v314_v29  }
  0xc7   : > { %3075 = vperm.xlu0 %10266, %v315_v17  }
  0xc8   : > { %3080 = vperm.xlu1 %10267, %v316_v14  }
  0xc9   : > { %2237 = vmatmul.mubr.bf16.gmra.mrb[76].mxu1 %v1853_v19 }
  0xca   : > { %2244 = vmatprep.mubr.bf16.mxu1 %v11667_v32  ;;  %v13940_v32 = vld [vmem:[#allocation9_spill] sm:$0xff] }
  0xcb   : > { %2149 = vmatmul.mubr.bf16.gmra.mrb[76].mxu0 %v1849_v8  ;;  %3085 = vperm.xlu0 %10266, %v317_v56  }
  0xcc   : > { %2156 = vmatprep.mubr.bf16.mxu0 %v11656_v60  ;;  %3090 = vperm.xlu1 %10267, %v318_v55   ;;  %v2410_v60 = vsel %vm2342_vm2, %v2401_v40, %v11434_v46  ;;  %v13932_v46 = vld [vmem:[#allocation4_spill] sm:$0xff] }
  0xcf   : > { %3095 = vperm.xlu0 %10266, %v319_v42  }
  0xd1   : > { %2245 = vmatmul.mubr.bf16.gmra.mrb[80].mxu1 %v11669_v36 }
  0xd2   : > { %2931 = vmatprep.mubr.bf16.mxu1 %v2410_v60 }
  0xd3   : > { %2157 = vmatmul.mubr.bf16.gmra.mrb[80].mxu0 %v11658_v33 }
  0xd4   : > { %2843 = vmatprep.mubr.bf16.mxu0 %v2376_v5 }
  0xd9   : > { %2932 = vmatmul.mubr.bf16.vlgmr.msra.gmra.mrb[84].mxu1 %v2393_v43 }
  0xda   : > { %2939 = vmatprep.mubr.bf16.mxu1 %v11451_v0  ;;  %v2553_v0 = vor.u32 %v11686_v39, %v11684_v16  ;;  %v13939_v16 = vld [vmem:[#allocation5_spill] sm:$0xff] }
  0xdb   : > { %2844 = vmatmul.mubr.bf16.vlgmr.msra.gmra.mrb[84].mxu0 %v2359_v9 }
  0xdc   : > { %2851 = vmatprep.mubr.bf16.mxu0 %v11430_v18  ;;  %v2535_v18 = vor.u32 %v11682_v52, %v11671_v10  ;;  %v2562_v10 = vor.u32 %v11773_v4, %v11759_v2 }
  0xde   : > { %v2536_v11 = vsel %vm2342_vm2, %v13934_v20, %v2535_v18 }
  0xe1   : > { %2940 = vmatmul.mubr.bf16.gmra.mrb[88].mxu1 %v11523_v54  ;;  %v2526_v54 = vor.u32 %v11694_v21, %v11692_v59 }
  0xe2   : > { %2947 = vmatprep.mubr.bf16.mxu1 %v11532_v31  ;;  %v2571_v31 = vor.u32 %v11740_v38, %v11734_v15 }
  0xe3   : > { %2852 = vmatmul.mubr.bf16.gmra.mrb[88].mxu0 %v11507_v37  ;;  %v2554_v37 = vsel %vm2342_vm2, %v13936_v34, %v2553_v0  ;;  %v2527_v35 = vsel %vm2342_vm2, %v13939_v16, %v2526_v54  ;;  %v2563_v52 = vsel %vm2342_vm2, %v2526_v54, %v2562_v10 }
  0xe4   : > { %2859 = vmatprep.mubr.bf16.mxu0 %v11528_v25  ;;  %v13937_v25 = vld [vmem:[#allocation11_spill] sm:$0xff]  ;;  %v2572_v33 = vsel %vm2342_vm2, %v2535_v18, %v2571_v31 }
  0xe9   : > { %2948 = vmatmul.mubr.bf16.gmra.mrb[92].mxu1 %v11566_v22  ;;  %v13938_v22 = vld [vmem:[#allocation12_spill] sm:$0xff] }
  0xea   : > { %2955 = vmatprep.mubr.bf16.mxu1 %v13933_v6  ;;  %v2544_v30 = vor.u32 %v13938_v22, %v11696_v3  ;;  %v2580_v3 = vor.u32 %v11811_v41, %v11785_v58 }
  0xeb   : > { %2860 = vmatmul.mubr.bf16.gmra.mrb[92].mxu0 %v13932_v46 }
  0xec   : > { %2867 = vmatprep.mubr.bf16.mxu0 %v11574_v61  ;;  %v2589_v61 = vor.u32 %v11757_v49, %v11742_v7  ;;  %v2545_v59 = vsel %vm2342_vm2, %v13940_v32, %v2544_v30  ;;  %v2581_v39 = vsel %vm2342_vm2, %v2544_v30, %v2580_v3 }
  0xee   : > { %v2590_v36 = vsel %vm2342_vm2, %v2553_v0, %v2589_v61 }
  0xf1   : > { %2956 = vmatmul.mubr.bf16.gmra.mrb[96].mxu1 %v13937_v25 }
  0xf2   : > { %2963 = vmatprep.mubr.bf16.mxu1 %v2554_v37 }
  0xf3   : > { %2868 = vmatmul.mubr.bf16.gmra.mrb[96].mxu0 %v13935_v57 }
  0xf4   : > { %2875 = vmatprep.mubr.bf16.mxu0 %v2536_v11 }
  0xf9   : > { %2964 = vmatmul.mubr.bf16.gmra.mrb[100].mxu1 %v2545_v59 }
  0xfa   : > { %2971 = vmatprep.mubr.bf16.mxu1 %v2590_v36 }
  0xfb   : > { %2876 = vmatmul.mubr.bf16.gmra.mrb[100].mxu0 %v2527_v35 }
  0xfc   : > { %2883 = vmatprep.mubr.bf16.mxu0 %v2572_v33 }
 0x101   : > { %2972 = vmatmul.mubr.bf16.gmra.mrb[104].mxu1 %v2581_v39 }
 0x102   : > { %v8743_v21 = vpop.f32.mrb[0].mxu0  ;;  %2979 = vmatprep.mubr.bf16.mxu1 %v2589_v61 }
 0x103   : > { %2884 = vmatmul.mubr.bf16.gmra.mrb[104].mxu0 %v2563_v52  ;;  %v8744_v7 = vpop.f32.mrb[1].mxu0  ;;  %v8801_v15 = vpop.f32.mrb[0].mxu1 }
 0x104   : > { %2891 = vmatprep.mubr.bf16.mxu0 %v2571_v31  ;;  %v8745_v38 = vadd.f32 %v8744_v7, %v8743_v21  ;;  %v8746_v49 = vpop.f32.mrb[2].mxu0  ;;  %v8802_v47 = vpop.f32.mrb[1].mxu1  ;;  %v13893_v21 = vmov 0.0  }
 0x105   : > { %v8747_v2 = vpop.f32.mrb[3].mxu0  ;;  %v8803_v4 = vadd.f32 %v8802_v47, %v8801_v15  ;;  %v8804_v45 = vpop.f32.mrb[2].mxu1  ;;  %9461 = vmatprep.subr.bf16.mxu0 %v13893_v21  ;;  %9505 = vmatprep.subr.bf16.mxu1 %v13893_v21 }
 0x106   : > { %v8748_v62 = vadd.f32 %v8747_v2, %v8746_v49  ;;  %v8805_v24 = vpop.f32.mrb[3].mxu1 }
 0x107   : > { %v11899_v58 = vadd.f32 %v8803_v4, %v8745_v38  ;;  %v8806_v12 = vadd.f32 %v8805_v24, %v8804_v45  ;;  %v10463_v4 = vld [vmem:[%s13872_s4 + $0x48] sm:$0xff]  }
 0x109   : > { %2980 = vmatmul.mubr.bf16.gmra.mrb[108].mxu1 %v2580_v3  ;;  %v11901_v26 = vadd.f32 %v8806_v12, %v8748_v62  ;;  %v10462_v3 = vld [vmem:[%s13872_s4 + $0x40] sm:$0xff]  }
 0x10a   : > { %v8749_v27 = vpop.f32.mrb[4].mxu0  ;;  %9462 = vmatpush3.bf16.msra.mxu0 %v10462_v3  ;;  %9521 = vmatprep.mubr.msk.bf16.mxu1 %vm10685_vm3, %v13893_v21 }
 0x10b   : > { %2892 = vmatmul.mubr.bf16.gmra.mrb[108].mxu0 %v2562_v10  ;;  %v8750_v28 = vpop.f32.mrb[5].mxu0  ;;  %v8807_v44 = vpop.f32.mrb[4].mxu1  ;;  %9463 = vmatprep.subr.bf16.mxu0 %v13893_v21 }
 0x10c   : > { %v8751_v48 = vadd.f32 %v8750_v28, %v8749_v27  ;;  %v8752_v13 = vpop.f32.mrb[6].mxu0  ;;  %v8808_v23 = vpop.f32.mrb[5].mxu1  ;;  %9477 = vmatprep.mubr.msk.bf16.mxu0 %vm10685_vm3, %v13893_v21 }
 0x10d   : > { %v8753_v41 = vpop.f32.mrb[7].mxu0  ;;  %v8809_v29 = vadd.f32 %v8808_v23, %v8807_v44  ;;  %v8810_v17 = vpop.f32.mrb[6].mxu1  ;;  %v10464_v44 = vld [vmem:[%s13872_s4] sm:$0xff]  }
 0x10e   : > { %v8754_v14 = vadd.f32 %v8753_v41, %v8752_v13  ;;  %v8811_v1 = vpop.f32.mrb[7].mxu1  ;;  %9464 = vmatpush3.bf16.msra.mxu0 %v10463_v4  ;;  %9506 = vmatpush3.bf16.msra.mxu1 %v10464_v44  ;;  %v10474_v44 = vld [vmem:[%s13872_s4 + $0x30] sm:$0xff]  }
 0x10f   : > { %v11903_v8 = vadd.f32 %v8809_v29, %v8751_v48  ;;  %v8812_v63 = vadd.f32 %v8811_v1, %v8810_v17  ;;  %9465 = vmatprep.subr.bf16.mxu0 %v13893_v21  ;;  %9507 = vmatprep.subr.bf16.mxu1 %v13893_v21 }
 0x111   : > { %v11905_v19 = vadd.f32 %v8812_v63, %v8754_v14  ;;  %v10466_v63 = vld [vmem:[%s13872_s4 + $0x8] sm:$0xff]  }
 0x112   : > { %v8755_v56 = vpop.f32.mrb[8].mxu0  ;;  %9508 = vmatpush3.bf16.msra.mxu1 %v10466_v63 }
 0x113   : > { %v8756_v55 = vpop.f32.mrb[9].mxu0  ;;  %v8813_v51 = vpop.f32.mrb[8].mxu1  ;;  %9509 = vmatprep.subr.bf16.mxu1 %v13893_v21 }
 0x114   : > { %v8757_v42 = vadd.f32 %v8756_v55, %v8755_v56  ;;  %v8758_v40 = vpop.f32.mrb[10].mxu0  ;;  %v8814_v5 = vpop.f32.mrb[9].mxu1 }
 0x115   : > { %v8759_v60 = vpop.f32.mrb[11].mxu0  ;;  %v8815_v53 = vadd.f32 %v8814_v5, %v8813_v51  ;;  %v8816_v50 = vpop.f32.mrb[10].mxu1 }
 0x116   : > { %v8760_v9 = vadd.f32 %v8759_v60, %v8758_v40  ;;  %v8817_v43 = vpop.f32.mrb[11].mxu1 }
 0x117   : > { %v11907_v46 = vadd.f32 %v8815_v53, %v8757_v42  ;;  %v8818_v18 = vadd.f32 %v8817_v43, %v8816_v50  ;;  %v10467_v50 = vld [vmem:[%s13872_s4 + $0x10] sm:$0xff]  }
 0x118   : > { %9510 = vmatpush3.bf16.msra.mxu1 %v10467_v50 }
 0x119   : > { %v11909_v6 = vadd.f32 %v8818_v18, %v8760_v9  ;;  %9511 = vmatprep.subr.bf16.mxu1 %v13893_v21 }
 0x11a   : > { %v8761_v0 = vpop.f32.mrb[12].mxu0 }
 0x11b   : > { %v8762_v20 = vpop.f32.mrb[13].mxu0  ;;  %v8819_v11 = vpop.f32.mrb[12].mxu1 }
 0x11c   : > { %v8763_v57 = vadd.f32 %v8762_v20, %v8761_v0  ;;  %v8764_v34 = vpop.f32.mrb[14].mxu0  ;;  %v8820_v37 = vpop.f32.mrb[13].mxu1  ;;  %v10469_v20 = vld [vmem:[%s13872_s4 + $0x18] sm:$0xff]  }
 0x11d   : > { %v8765_v54 = vpop.f32.mrb[15].mxu0  ;;  %v8821_v25 = vadd.f32 %v8820_v37, %v8819_v11  ;;  %v8822_v31 = vpop.f32.mrb[14].mxu1  ;;  %9512 = vmatpush3.bf16.msra.mxu1 %v10469_v20 }
 0x11e   : > { %v8766_v22 = vadd.f32 %v8765_v54, %v8764_v34  ;;  %v8823_v30 = vpop.f32.mrb[15].mxu1  ;;  %9513 = vmatprep.subr.bf16.mxu1 %v13893_v21 }
 0x11f   : > { %v11911_v61 = vadd.f32 %v8821_v25, %v8763_v57  ;;  %v8824_v16 = vadd.f32 %v8823_v30, %v8822_v31 }
 0x121   : > { %v11913_v35 = vadd.f32 %v8824_v16, %v8766_v22 }
 0x122   : > { %v8767_v33 = vpop.f32.mrb[16].mxu0 }
 0x123   : > { %v8768_v32 = vpop.f32.mrb[17].mxu0  ;;  %v8825_v59 = vpop.f32.mrb[16].mxu1 }
 0x124   : > { %v8769_v36 = vadd.f32 %v8768_v32, %v8767_v33  ;;  %v8770_v10 = vpop.f32.mrb[18].mxu0  ;;  %v8826_v52 = vpop.f32.mrb[17].mxu1  ;;  %v10470_v32 = vld [vmem:[%s13872_s4 + $0x20] sm:$0xff]  }
 0x125   : > { %v8771_v39 = vpop.f32.mrb[19].mxu0  ;;  %v8827_v7 = vadd.f32 %v8826_v52, %v8825_v59  ;;  %v8828_v15 = vpop.f32.mrb[18].mxu1  ;;  %v10465_v52 = vld [vmem:[%s13872_s4 + $0x50] sm:$0xff]   ;;  %9514 = vmatpush3.bf16.msra.mxu1 %v10470_v32 }
 0x126   : > { %v8772_v38 = vadd.f32 %v8771_v39, %v8770_v10  ;;  %v8829_v49 = vpop.f32.mrb[19].mxu1  ;;  %9515 = vmatprep.subr.bf16.mxu1 %v13893_v21  ;;  %9466 = vmatpush3.bf16.msra.mxu0 %v10465_v52 }
 0x127   : > { %v11921_v47 = vadd.f32 %v8827_v7, %v8769_v36  ;;  %v8830_v2 = vadd.f32 %v8829_v49, %v8828_v15  ;;  %v10472_v7 = vld [vmem:[%s13872_s4 + $0x28] sm:$0xff]   ;;  %9467 = vmatprep.subr.bf16.mxu0 %v13893_v21 }
 0x129   : > { %v11926_v45 = vadd.f32 %v8830_v2, %v8772_v38  ;;  %9516 = vmatpush3.bf16.msra.mxu1 %v10472_v7 }
 0x12a   : > { %v8773_v62 = vpop.f32.mrb[20].mxu0  ;;  %9517 = vmatprep.subr.bf16.mxu1 %v13893_v21 }
 0x12b   : > { %v8774_v24 = vpop.f32.mrb[21].mxu0  ;;  %v8831_v12 = vpop.f32.mrb[20].mxu1 }
 0x12c   : > { %v8775_v27 = vadd.f32 %v8774_v24, %v8773_v62  ;;  %v8776_v28 = vpop.f32.mrb[22].mxu0  ;;  %v8832_v48 = vpop.f32.mrb[21].mxu1  ;;  %v10468_v62 = vld [vmem:[%s13872_s4 + $0x58] sm:$0xff]  }
 0x12d   : > { %v8777_v13 = vpop.f32.mrb[23].mxu0  ;;  %v8833_v23 = vadd.f32 %v8832_v48, %v8831_v12  ;;  %v8834_v41 = vpop.f32.mrb[22].mxu1  ;;  %9468 = vmatpush3.bf16.msra.mxu0 %v10468_v62  ;;  %9518 = vmatpush3.bf16.msra.mxu1 %v10474_v44 }
 0x12e   : > { %v8778_v29 = vadd.f32 %v8777_v13, %v8776_v28  ;;  %v8835_v17 = vpop.f32.mrb[23].mxu1  ;;  %9469 = vmatprep.subr.bf16.mxu0 %v13893_v21  ;;  %9519 = vmatprep.subr.bf16.mxu1 %v13893_v21 }
 0x12f   : > { %v11933_v14 = vadd.f32 %v8833_v23, %v8775_v27  ;;  %v8836_v1 = vadd.f32 %v8835_v17, %v8834_v41  ;;  %v10471_v17 = vld [vmem:[%s13872_s4 + $0x60] sm:$0xff]  }
 0x131   : > { %v11938_v56 = vadd.f32 %v8836_v1, %v8778_v29  ;;  %v10475_v1 = vld [vmem:[%s13872_s4 + $0x38] sm:$0xff]   ;;  %9470 = vmatpush3.bf16.msra.mxu0 %v10471_v17 }
 0x132   : > { %v8779_v55 = vpop.f32.mrb[24].mxu0  ;;  %9520 = vmatpush3.bf16.msra.mxu1 %v10475_v1  ;;  %9471 = vmatprep.subr.bf16.mxu0 %v13893_v21 }
 0x133   : > { %v8780_v51 = vpop.f32.mrb[25].mxu0  ;;  %v8837_v42 = vpop.f32.mrb[24].mxu1  ;;  %9593 = vmatprep.subr.bf16.mxu1 %v13893_v21 }
 0x134   : > { %v8781_v40 = vadd.f32 %v8780_v51, %v8779_v55  ;;  %v8782_v5 = vpop.f32.mrb[26].mxu0  ;;  %v8838_v60 = vpop.f32.mrb[25].mxu1 }
 0x135   : > { %v8783_v53 = vpop.f32.mrb[27].mxu0  ;;  %v8839_v9 = vadd.f32 %v8838_v60, %v8837_v42  ;;  %v8840_v43 = vpop.f32.mrb[26].mxu1 }
 0x136   : > { %v8841_v18 = vpop.f32.mrb[27].mxu1 }
 0x137   : > { %v11944_v0 = vadd.f32 %v8839_v9, %v8781_v40  ;;  %v10473_v9 = vld [vmem:[%s13872_s4 + $0x68] sm:$0xff]  }
 0x138   : > { %9472 = vmatpush3.bf16.msra.mxu0 %v10473_v9 }
 0x139   : > { %9473 = vmatprep.subr.bf16.mxu0 %v13893_v21 }
 0x13a   : > { %v8859_v11 = vpop.f32.mrb[28].mxu0 }
 0x13b   : > { %v8860_v57 = vpop.f32.mrb[29].mxu0 }
 0x13c   : > { %v8917_v34 = vpop.f32.mrb[28].mxu1  ;;  %v8861_v37 = vadd.f32 %v8860_v57, %v8859_v11  ;;  %v8862_v54 = vpop.f32.mrb[30].mxu0 }
 0x13d   : > { %v8918_v25 = vpop.f32.mrb[29].mxu1  ;;  %v8863_v31 = vpop.f32.mrb[31].mxu0 }
 0x13e   : > { %v1465_v22 = vadd.f32 %v8861_v37, %v11899_v58  ;;  %v8919_v30 = vadd.f32 %v8918_v25, %v8917_v34  ;;  %v8920_v16 = vpop.f32.mrb[30].mxu1  ;;  %v8864_v33 = vadd.f32 %v8863_v31, %v8862_v54  ;;  %v10476_v34 = vld [vmem:[%s13872_s4 + $0x70] sm:$0xff]  }
 0x13f   : > { %v8921_v59 = vpop.f32.mrb[31].mxu1  ;;  %9474 = vmatpush3.bf16.msra.mxu0 %v10476_v34 }
 0x140   : > { %v11955_v36 = vadd.f32 %v8919_v30, %v1465_v22  ;;  %v1468_v10 = vadd.f32 %v8864_v33, %v11901_v26  ;;  %v8922_v3 = vadd.f32 %v8921_v59, %v8920_v16  ;;  %9475 = vmatprep.subr.bf16.mxu0 %v13893_v21  ;;  %v10478_v59 = vld [vmem:[%s13872_s4 + $0x78] sm:$0xff]  }
 0x142   : > { %v11962_v58 = vadd.f32 %v8922_v3, %v1468_v10  ;;  %v8865_v39 = vpop.f32.mrb[32].mxu0 }
 0x143   : > { %v8866_v15 = vpop.f32.mrb[33].mxu0  ;;  %9476 = vmatpush3.bf16.msra.mxu0 %v10478_v59 }
 0x144   : > { %v8923_v26 = vpop.f32.mrb[32].mxu1  ;;  %v8867_v38 = vadd.f32 %v8866_v15, %v8865_v39  ;;  %v8868_v49 = vpop.f32.mrb[34].mxu0  ;;  %9549 = vmatprep.subr.bf16.mxu0 %v13893_v21 }
 0x145   : > { %v8924_v2 = vpop.f32.mrb[33].mxu1  ;;  %v8869_v4 = vpop.f32.mrb[35].mxu0 }
 0x146   : > { %v1473_v24 = vadd.f32 %v8867_v38, %v11903_v8  ;;  %v8925_v12 = vadd.f32 %v8924_v2, %v8923_v26  ;;  %v8926_v27 = vpop.f32.mrb[34].mxu1  ;;  %v8870_v28 = vadd.f32 %v8869_v4, %v8868_v49 }
 0x147   : > { %v8927_v48 = vpop.f32.mrb[35].mxu1 }
 0x148   : > { %v11976_v13 = vadd.f32 %v8925_v12, %v1473_v24  ;;  %v1476_v23 = vadd.f32 %v8870_v28, %v11905_v19  ;;  %v8928_v41 = vadd.f32 %v8927_v48, %v8926_v27 }
 0x14a   : > { %v11981_v8 = vadd.f32 %v8928_v41, %v1476_v23  ;;  %v8871_v29 = vpop.f32.mrb[36].mxu0 }
 0x14b   : > { %v8872_v63 = vpop.f32.mrb[37].mxu0 }
 0x14c   : > { %v8929_v55 = vpop.f32.mrb[36].mxu1  ;;  %v8873_v19 = vadd.f32 %v8872_v63, %v8871_v29  ;;  %v8874_v51 = vpop.f32.mrb[38].mxu0 }
 0x14d   : > { %v8930_v42 = vpop.f32.mrb[37].mxu1  ;;  %v8875_v40 = vpop.f32.mrb[39].mxu0 }
 0x14e   : > { %v1481_v5 = vadd.f32 %v8873_v19, %v11907_v46  ;;  %v8931_v60 = vadd.f32 %v8930_v42, %v8929_v55  ;;  %v8932_v53 = vpop.f32.mrb[38].mxu1  ;;  %v8876_v50 = vadd.f32 %v8875_v40, %v8874_v51 }
 0x14f   : > { %v8933_v43 = vpop.f32.mrb[39].mxu1 }
 0x150   : > { %v11999_v18 = vadd.f32 %v8931_v60, %v1481_v5  ;;  %v1484_v20 = vadd.f32 %v8876_v50, %v11909_v6  ;;  %v8934_v46 = vadd.f32 %v8933_v43, %v8932_v53 }
 0x152   : > { %v12003_v11 = vadd.f32 %v8934_v46, %v1484_v20  ;;  %v8877_v57 = vpop.f32.mrb[40].mxu0 }
 0x153   : > { %v8878_v37 = vpop.f32.mrb[41].mxu0 }
 0x154   : > { %v8935_v54 = vpop.f32.mrb[40].mxu1  ;;  %v8879_v25 = vadd.f32 %v8878_v37, %v8877_v57  ;;  %v8880_v31 = vpop.f32.mrb[42].mxu0 }
 0x155   : > { %v8936_v22 = vpop.f32.mrb[41].mxu1  ;;  %v8881_v30 = vpop.f32.mrb[43].mxu0 }
 0x156   : > { %v1489_v6 = vadd.f32 %v8879_v25, %v11911_v61  ;;  %v8937_v16 = vadd.f32 %v8936_v22, %v8935_v54  ;;  %v8938_v33 = vpop.f32.mrb[42].mxu1  ;;  %v8882_v32 = vadd.f32 %v8881_v30, %v8880_v31 }
 0x157   : > { %v8939_v10 = vpop.f32.mrb[43].mxu1 }
 0x158   : > { %v12013_v3 = vadd.f32 %v8937_v16, %v1489_v6  ;;  %v1492_v52 = vadd.f32 %v8882_v32, %v11913_v35  ;;  %v8940_v39 = vadd.f32 %v8939_v10, %v8938_v33 }
 0x15a   : > { %v12017_v7 = vadd.f32 %v8940_v39, %v1492_v52  ;;  %v8883_v15 = vpop.f32.mrb[44].mxu0 }
 0x15b   : > { %v8884_v61 = vpop.f32.mrb[45].mxu0 }
 0x15c   : > { %v8941_v26 = vpop.f32.mrb[44].mxu1  ;;  %v8885_v38 = vadd.f32 %v8884_v61, %v8883_v15  ;;  %v8886_v49 = vpop.f32.mrb[46].mxu0 }
 0x15d   : > { %v8942_v2 = vpop.f32.mrb[45].mxu1  ;;  %v8887_v4 = vpop.f32.mrb[47].mxu0 }
 0x15e   : > { %v1497_v62 = vadd.f32 %v8885_v38, %v11921_v47  ;;  %v8943_v24 = vadd.f32 %v8942_v2, %v8941_v26  ;;  %v8944_v12 = vpop.f32.mrb[46].mxu1  ;;  %v8888_v27 = vadd.f32 %v8887_v4, %v8886_v49 }
 0x15f   : > { %v8945_v28 = vpop.f32.mrb[47].mxu1 }
 0x160   : > { %v12020_v35 = vadd.f32 %v8943_v24, %v1497_v62  ;;  %v1500_v44 = vadd.f32 %v8888_v27, %v11926_v45  ;;  %v8946_v48 = vadd.f32 %v8945_v28, %v8944_v12 }
 0x162   : > { %v12023_v23 = vadd.f32 %v8946_v48, %v1500_v44  ;;  %v8889_v41 = vpop.f32.mrb[48].mxu0 }
 0x163   : > { %v8890_v29 = vpop.f32.mrb[49].mxu0 }
 0x164   : > { %v8947_v17 = vpop.f32.mrb[48].mxu1  ;;  %v8891_v1 = vadd.f32 %v8890_v29, %v8889_v41  ;;  %v8892_v63 = vpop.f32.mrb[50].mxu0 }
 0x165   : > { %v8948_v55 = vpop.f32.mrb[49].mxu1  ;;  %v8893_v19 = vpop.f32.mrb[51].mxu0 }
 0x166   : > { %v1505_v47 = vadd.f32 %v8891_v1, %v11933_v14  ;;  %v8949_v51 = vadd.f32 %v8948_v55, %v8947_v17  ;;  %v8950_v42 = vpop.f32.mrb[50].mxu1  ;;  %v8894_v40 = vadd.f32 %v8893_v19, %v8892_v63 }
 0x167   : > { %v8951_v5 = vpop.f32.mrb[51].mxu1 }
 0x168   : > { %v12026_v60 = vadd.f32 %v8949_v51, %v1505_v47  ;;  %v1508_v45 = vadd.f32 %v8894_v40, %v11938_v56  ;;  %v8952_v53 = vadd.f32 %v8951_v5, %v8950_v42 }
 0x16a   : > { %v12029_v50 = vadd.f32 %v8952_v53, %v1508_v45  ;;  %v8895_v9 = vpop.f32.mrb[52].mxu0 }
 0x16b   : > { %v8896_v43 = vpop.f32.mrb[53].mxu0 }
 0x16c   : > { %v8953_v20 = vpop.f32.mrb[52].mxu1  ;;  %v8897_v46 = vadd.f32 %v8896_v43, %v8895_v9  ;;  %v8898_v57 = vpop.f32.mrb[54].mxu0 }
 0x16d   : > { %v8954_v34 = vpop.f32.mrb[53].mxu1  ;;  %v8899_v37 = vpop.f32.mrb[55].mxu0 }
 0x16e   : > { %v1513_v14 = vadd.f32 %v8897_v46, %v11944_v0  ;;  %v8955_v54 = vadd.f32 %v8954_v34, %v8953_v20  ;;  %v8956_v25 = vpop.f32.mrb[54].mxu1 }
 0x16f   : > { %v8957_v31 = vpop.f32.mrb[55].mxu1 }
 0x170   : > { %v12032_v22 = vadd.f32 %v8955_v54, %v1513_v14 }
 0x172   : > { %v8975_v30 = vpop.f32.mrb[56].mxu0 }
 0x173   : > { %v8976_v6 = vpop.f32.mrb[57].mxu0 }
 0x174   : > { %v9033_v56 = vpop.f32.mrb[56].mxu1  ;;  %v8977_v16 = vadd.f32 %v8976_v6, %v8975_v30  ;;  %v8978_v33 = vpop.f32.mrb[58].mxu0 }
 0x175   : > { %v9034_v32 = vpop.f32.mrb[57].mxu1  ;;  %v8979_v59 = vpop.f32.mrb[59].mxu0 }
 0x176   : > { %v9035_v10 = vadd.f32 %v9034_v32, %v9033_v56  ;;  %v9036_v52 = vpop.f32.mrb[58].mxu1  ;;  %v8980_v39 = vadd.f32 %v8979_v59, %v8978_v33 }
 0x177   : > { %v9037_v15 = vpop.f32.mrb[59].mxu1 }
 0x178   : > { %v2199_v61 = vadd.f32 %v9035_v10, %v8977_v16  ;;  %v9038_v26 = vadd.f32 %v9037_v15, %v9036_v52 }
 0x17a   : > { %v12035_v0 = vadd.f32 %v2199_v61, %v11955_v36  ;;  %v2202_v38 = vadd.f32 %v9038_v26, %v8980_v39  ;;  %v8981_v49 = vpop.f32.mrb[60].mxu0 }
 0x17b   : > { %v8982_v2 = vpop.f32.mrb[61].mxu0 }
 0x17c   : > { %v12038_v4 = vadd.f32 %v2202_v38, %v11962_v58  ;;  %v9039_v62 = vpop.f32.mrb[60].mxu1  ;;  %v8983_v24 = vadd.f32 %v8982_v2, %v8981_v49  ;;  %v8984_v12 = vpop.f32.mrb[62].mxu0 }
 0x17d   : > { %v9040_v27 = vpop.f32.mrb[61].mxu1  ;;  %v8985_v28 = vpop.f32.mrb[63].mxu0 }
 0x17e   : > { %v9041_v44 = vadd.f32 %v9040_v27, %v9039_v62  ;;  %v9042_v48 = vpop.f32.mrb[62].mxu1  ;;  %v8986_v41 = vadd.f32 %v8985_v28, %v8984_v12 }
 0x17f   : > { %v9043_v29 = vpop.f32.mrb[63].mxu1 }
 0x180   : > { %v2207_v17 = vadd.f32 %v9041_v44, %v8983_v24  ;;  %v9044_v1 = vadd.f32 %v9043_v29, %v9042_v48 }
 0x182   : > { %v12041_v36 = vadd.f32 %v2207_v17, %v11976_v13  ;;  %v2210_v63 = vadd.f32 %v9044_v1, %v8986_v41  ;;  %v8987_v55 = vpop.f32.mrb[64].mxu0 }
 0x183   : > { %v8988_v19 = vpop.f32.mrb[65].mxu0 }
 0x184   : > { %v12044_v58 = vadd.f32 %v2210_v63, %v11981_v8  ;;  %v9045_v47 = vpop.f32.mrb[64].mxu1  ;;  %v8989_v51 = vadd.f32 %v8988_v19, %v8987_v55  ;;  %v8990_v42 = vpop.f32.mrb[66].mxu0 }
 0x185   : > { %v9046_v40 = vpop.f32.mrb[65].mxu1  ;;  %v8991_v5 = vpop.f32.mrb[67].mxu0 }
 0x186   : > { %v9047_v45 = vadd.f32 %v9046_v40, %v9045_v47  ;;  %v9048_v53 = vpop.f32.mrb[66].mxu1  ;;  %v8992_v9 = vadd.f32 %v8991_v5, %v8990_v42 }
 0x187   : > { %v9049_v43 = vpop.f32.mrb[67].mxu1 }
 0x188   : > { %v2215_v20 = vadd.f32 %v9047_v45, %v8989_v51  ;;  %v9050_v46 = vadd.f32 %v9049_v43, %v9048_v53 }
 0x18a   : > { %v12047_v13 = vadd.f32 %v2215_v20, %v11999_v18  ;;  %v2218_v57 = vadd.f32 %v9050_v46, %v8992_v9  ;;  %v8993_v34 = vpop.f32.mrb[68].mxu0 }
 0x18b   : > { %v8994_v37 = vpop.f32.mrb[69].mxu0 }
 0x18c   : > { %v12050_v8 = vadd.f32 %v2218_v57, %v12003_v11  ;;  %v9051_v14 = vpop.f32.mrb[68].mxu1  ;;  %v8995_v54 = vadd.f32 %v8994_v37, %v8993_v34  ;;  %v8996_v25 = vpop.f32.mrb[70].mxu0 }
 0x18d   : > { %v9052_v31 = vpop.f32.mrb[69].mxu1  ;;  %v8997_v30 = vpop.f32.mrb[71].mxu0 }
 0x18e   : > { %v9053_v6 = vadd.f32 %v9052_v31, %v9051_v14  ;;  %v9054_v56 = vpop.f32.mrb[70].mxu1  ;;  %v8998_v16 = vadd.f32 %v8997_v30, %v8996_v25 }
 0x18f   : > { %v9055_v33 = vpop.f32.mrb[71].mxu1 }
 0x190   : > { %v2223_v32 = vadd.f32 %v9053_v6, %v8995_v54  ;;  %v9056_v59 = vadd.f32 %v9055_v33, %v9054_v56 }
 0x192   : > { %v12053_v18 = vadd.f32 %v2223_v32, %v12013_v3  ;;  %v2226_v10 = vadd.f32 %v9056_v59, %v8998_v16 }
 0x194   : > { %v12056_v11 = vadd.f32 %v2226_v10, %v12017_v7  ;;  %v9057_v15 = vpop.f32.mrb[72].mxu1 }
 0x195   : > { %v9058_v38 = vpop.f32.mrb[73].mxu1 }
 0x196   : > { %v8999_v52 = vpop.f32.mrb[72].mxu0  ;;  %v9059_v2 = vadd.f32 %v9058_v38, %v9057_v15  ;;  %v9060_v62 = vpop.f32.mrb[74].mxu1 }
 0x197   : > { %v9000_v39 = vpop.f32.mrb[73].mxu0  ;;  %v9061_v12 = vpop.f32.mrb[75].mxu1 }
 0x198   : > { %v9001_v61 = vadd.f32 %v9000_v39, %v8999_v52  ;;  %v9002_v26 = vpop.f32.mrb[74].mxu0  ;;  %v9062_v28 = vadd.f32 %v9061_v12, %v9060_v62 }
 0x199   : > { %v9003_v49 = vpop.f32.mrb[75].mxu0 }
 0x19a   : > { %v9004_v24 = vadd.f32 %v9003_v49, %v9002_v26  ;;  %v2231_v27 = vadd.f32 %v9059_v2, %v9001_v61  ;;  %v12076_v61 = vld [vmem:[%s13871_s3] ss:$0 sm:$0xff]  ;;  %v12079_v49 = vpop.permute.xlu0 %3035 }
 0x19c   : > { %v12059_v3 = vadd.f32 %v2231_v27, %v12020_v35  ;;  %v2234_v44 = vadd.f32 %v9062_v28, %v9004_v24  ;;  %v9063_v29 = vpop.f32.mrb[76].mxu1 }
 0x19d   : > { %v9064_v63 = vpop.f32.mrb[77].mxu1 }
 0x19e   : > { %v9005_v48 = vpop.f32.mrb[76].mxu0  ;;  %v12062_v7 = vadd.f32 %v2234_v44, %v12023_v23  ;;  %v9065_v19 = vadd.f32 %v9064_v63, %v9063_v29  ;;  %v9066_v47 = vpop.f32.mrb[78].mxu1 }
 0x19f   : > { %v9006_v41 = vpop.f32.mrb[77].mxu0  ;;  %v9067_v42 = vpop.f32.mrb[79].mxu1 }
 0x1a0   : > { %v9007_v17 = vadd.f32 %v9006_v41, %v9005_v48  ;;  %v9008_v1 = vpop.f32.mrb[78].mxu0  ;;  %v9068_v5 = vadd.f32 %v9067_v42, %v9066_v47  ;;  %v12085_v42 = vpop.permute.xlu0 %3040 }
 0x1a1   : > { %v9009_v55 = vpop.f32.mrb[79].mxu0 }
 0x1a2   : > { %v9010_v51 = vadd.f32 %v9009_v55, %v9008_v1  ;;  %v2239_v40 = vadd.f32 %v9065_v19, %v9007_v17 }
 0x1a4   : > { %v12065_v35 = vadd.f32 %v2239_v40, %v12026_v60  ;;  %v2242_v45 = vadd.f32 %v9068_v5, %v9010_v51  ;;  %v9069_v43 = vpop.f32.mrb[80].mxu1 }
 0x1a5   : > { %v9070_v57 = vpop.f32.mrb[81].mxu1 }
 0x1a6   : > { %v9011_v53 = vpop.f32.mrb[80].mxu0  ;;  %v12068_v23 = vadd.f32 %v2242_v45, %v12029_v50  ;;  %v9071_v37 = vadd.f32 %v9070_v57, %v9069_v43  ;;  %v9072_v14 = vpop.f32.mrb[82].mxu1 }
 0x1a7   : > { %v9012_v9 = vpop.f32.mrb[81].mxu0  ;;  %v9073_v54 = vpop.f32.mrb[83].mxu1 }
 0x1a8   : > { %v9013_v20 = vadd.f32 %v9012_v9, %v9011_v53  ;;  %v9014_v46 = vpop.f32.mrb[82].mxu0  ;;  %v12089_v9 = vpop.permute.xlu1 %3045 }
 0x1a9   : > { %v9015_v34 = vpop.f32.mrb[83].mxu0 }
 0x1aa   : > { %v2247_v25 = vadd.f32 %v9071_v37, %v9013_v20 }
 0x1ac   : > { %v12071_v30 = vadd.f32 %v2247_v25, %v12032_v22  ;;  %v9149_v6 = vpop.f32.mrb[84].mxu1 }
 0x1ad   : > { %v9150_v33 = vpop.f32.mrb[85].mxu1 }
 0x1ae   : > { %v9091_v31 = vpop.f32.mrb[84].mxu0  ;;  %v9151_v32 = vadd.f32 %v9150_v33, %v9149_v6  ;;  %v9152_v59 = vpop.f32.mrb[86].mxu1 }
 0x1af   : > { %v9092_v60 = vpop.f32.mrb[85].mxu0  ;;  %v9153_v52 = vpop.f32.mrb[87].mxu1 }
 0x1b0   : > { %v9093_v56 = vadd.f32 %v9092_v60, %v9091_v31  ;;  %v9094_v16 = vpop.f32.mrb[86].mxu0  ;;  %v9154_v15 = vadd.f32 %v9153_v52, %v9152_v59  ;;  %v3314_v59 = vld [vmem:[#allocation2 + $0x4] sm:$0xe] }
 0x1b1   : > { %v9095_v50 = vpop.f32.mrb[87].mxu0 }
 0x1b2   : > { %v9096_v10 = vadd.f32 %v9095_v50, %v9094_v16  ;;  %v2934_v39 = vadd.f32 %v9151_v32, %v9093_v56 }
 0x1b4   : > { %v2987_v22 = vadd.f32 %v2934_v39, %v12035_v0  ;;  %v2937_v26 = vadd.f32 %v9154_v15, %v9096_v10  ;;  %v9155_v12 = vpop.f32.mrb[88].mxu1 }
 0x1b5   : > { %v9156_v44 = vpop.f32.mrb[89].mxu1 }
 0x1b6   : > { %v9097_v38 = vpop.f32.mrb[88].mxu0  ;;  %v3007_v62 = vadd.f32 %v12076_v61, %v2987_v22  ;;  %v2988_v24 = vadd.f32 %v2937_v26, %v12038_v4  ;;  %v9157_v17 = vadd.f32 %v9156_v44, %v9155_v12  ;;  %v9158_v1 = vpop.f32.mrb[90].mxu1 }
 0x1b7   : > { %v9098_v2 = vpop.f32.mrb[89].mxu0  ;;  %v9159_v63 = vpop.f32.mrb[91].mxu1 }
 0x1b8   : > { %v9099_v27 = vadd.f32 %v9098_v2, %v9097_v38  ;;  %v9100_v28 = vpop.f32.mrb[90].mxu0  ;;  %v3020_v41 = vmax.f32 %v3007_v62, 0.0  ;;  %v3008_v29 = vadd.f32 %v12076_v61, %v2988_v24  ;;  %v9160_v51 = vadd.f32 %v9159_v63, %v9158_v1  ;;  %v10608_v62 = vld [vmem:[%s13874_s6 + $0xb8] sm:$0xff]  }
 0x1b9   : > { %v9101_v48 = vpop.f32.mrb[91].mxu0 }
 0x1ba   : > { %v9102_v0 = vadd.f32 %v9101_v48, %v9100_v28  ;;  %v3098_v55 = vmul.f32 %v12079_v49, %v3020_v41  ;;  %v3021_v19 = vmax.f32 %v3008_v29, 0.0  ;;  %v2942_v47 = vadd.f32 %v9157_v17, %v9099_v27  ;;  %v12111_v41 = vpop.permute.xlu1 %3050 }
 0x1bc   : > { %v8653_v4 = vpack.c.bf16 %v3098_v55, %v3098_v55  ;;  %v3099_v40 = vmul.f32 %v12085_v42, %v3021_v19  ;;  %v2989_v5 = vadd.f32 %v2942_v47, %v12041_v36  ;;  %v2945_v45 = vadd.f32 %v9160_v51, %v9102_v0  ;;  %v9161_v37 = vpop.f32.mrb[92].mxu1 }
 0x1bd   : > { %v9162_v36 = vpop.f32.mrb[93].mxu1 }
 0x1be   : > { %v9103_v53 = vpop.f32.mrb[92].mxu0  ;;  %v3171_v20 = vshrl.u32 %v8653_v4, 16  ;;  %v3174_v46 = vshll.u32 %v8653_v4, 16  ;;  %v8654_v57 = vpack.c.bf16 %v3099_v40, %v3099_v40  ;;  %v3009_v34 = vadd.f32 %v12076_v61, %v2989_v5  ;;  %v9164_v50 = vpop.f32.mrb[94].mxu1 }
 0x1bf   : > { %v9104_v43 = vpop.f32.mrb[93].mxu0  ;;  %v2990_v54 = vadd.f32 %v2945_v45, %v12044_v58  ;;  %v12093_v60 = vpack.c.bf16 %v3099_v40, %v3098_v55  ;;  %v9163_v52 = vadd.f32 %v9162_v36, %v9161_v37  ;;  %v9165_v15 = vpop.f32.mrb[95].mxu1 }
 0x1c0   : > { %v9106_v14 = vpop.f32.mrb[94].mxu0  ;;  %v9105_v25 = vadd.f32 %v9104_v43, %v9103_v53  ;;  %v3173_v6 = vrot.slane %v3171_v20, 6  ;;  %v3176_v56 = vrot.slane %v3174_v46, 7  ;;  %v3180_v16 = vshrl.u32 %v8654_v57, 16 }
 0x1c1   : > { %v9107_v31 = vpop.f32.mrb[95].mxu0  ;;  %v3183_v33 = vshll.u32 %v8654_v57, 16  ;;  %v3022_v10 = vmax.f32 %v3009_v34, 0.0  ;;  %v3010_v58 = vadd.f32 %v12076_v61, %v2990_v54  ;;  %v9166_v2 = vadd.f32 %v9165_v15, %v9164_v50  ;;  %v3334_v50 = vld [vmem:[#allocation2] sm:$0xf] }
 0x1c2   : > { %v9108_v39 = vadd.f32 %v9107_v31, %v9106_v14  ;;  %v3177_v22 = vor.u32 %v3176_v56, %v3173_v6  ;;  %v3182_v26 = vrot.slane %v3180_v16, 6  ;;  %v2950_v27 = vadd.f32 %v9163_v52, %v9105_v25 }
 0x1c3   : > { %v3185_v38 = vrot.slane %v3183_v33, 7  ;;  %v3100_v24 = vmul.f32 %v12089_v9, %v3022_v10  ;;  %v3023_v12 = vmax.f32 %v3010_v58, 0.0  ;;  %v12124_v58 = vpop.permute.xlu1 %3060 }
 0x1c4   : > { %v3178_v28 = vrot.slane %v3177_v22, 4  ;;  %v3315_v44 = vsel %vm12097_vm8, %v3177_v22, %v3314_v59  ;;  %v2953_v29 = vadd.f32 %v9166_v2, %v9108_v39  ;;  %v2991_v63 = vadd.f32 %v2950_v27, %v12047_v13  ;;  %v9167_v51 = vpop.f32.mrb[96].mxu1  ;;  %v12122_v59 = vpop.permute.xlu0 %3055  ;;  %v10484_v27 = vld [vmem:[%s13872_s4 + $0xc0] sm:$0xff]  }
 0x1c5   : > { %v3186_v48 = vor.u32 %v3185_v38, %v3182_v26  ;;  %3316 = vst [vmem:[#allocation2 + $0x4] sm:$0xe] %v3315_v44  ;;  %v8655_v1 = vpack.c.bf16 %v3100_v24, %v3100_v24  ;;  %v3101_v0 = vmul.f32 %v12111_v41, %v3023_v12  ;;  %v9168_v20 = vpop.f32.mrb[97].mxu1 }
 0x1c6   : > { %v9109_v17 = vpop.f32.mrb[96].mxu0  ;;  %v2992_v47 = vadd.f32 %v2953_v29, %v12050_v8  ;;  %v3011_v43 = vadd.f32 %v12076_v61, %v2991_v63  ;;  %v9169_v13 = vadd.f32 %v9168_v20, %v9167_v51  ;;  %v9170_v34 = vpop.f32.mrb[98].mxu1 }
 0x1c7   : > { %v9110_v55 = vpop.f32.mrb[97].mxu0  ;;  %v3187_v19 = vsel %vm12104_vm9, %v3178_v28, %v3186_v48  ;;  %v3190_v5 = vshrl.u32 %v8655_v1, 16  ;;  %v3193_v45 = vshll.u32 %v8655_v1, 16  ;;  %v8656_v53 = vpack.c.bf16 %v3101_v0, %v3101_v0  ;;  %v9171_v31 = vpop.f32.mrb[99].mxu1 }
 0x1c8   : > { %v9111_v4 = vadd.f32 %v9110_v55, %v9109_v17  ;;  %v9112_v40 = vpop.f32.mrb[98].mxu0  ;;  %3317 = vst [vmem:[#allocation2 + $0x8] sm:$0xf] %v3187_v19  ;;  %v3012_v57 = vadd.f32 %v12076_v61, %v2992_v47  ;;  %v12120_v14 = vpack.c.bf16 %v3101_v0, %v3100_v24  ;;  %v3024_v6 = vmax.f32 %v3011_v43, 0.0 }
 0x1c9   : > { %v9113_v46 = vpop.f32.mrb[99].mxu0  ;;  %v3192_v54 = vrot.slane %v3190_v5, 6  ;;  %v3195_v8 = vrot.slane %v3193_v45, 7  ;;  %v3200_v25 = vshrl.u32 %v8656_v53, 16  ;;  %v3203_v36 = vshll.u32 %v8656_v53, 16 }
 0x1ca   : > { %v9114_v37 = vadd.f32 %v9113_v46, %v9112_v40  ;;  %v3025_v56 = vmax.f32 %v3012_v57, 0.0  ;;  %v2958_v16 = vadd.f32 %v9169_v13, %v9111_v4  ;;  %v9172_v33 = vadd.f32 %v9171_v31, %v9170_v34 }
 0x1cb   : > { %v3188_v10 = vrot.slane %v3186_v48, 4  ;;  %v3196_v52 = vor.u32 %v3195_v8, %v3192_v54  ;;  %v3202_v39 = vrot.slane %v3200_v25, 6  ;;  %v3205_v15 = vrot.slane %v3203_v36, 7  ;;  %v12159_v54 = vpop.permute.xlu0 %3065 }
 0x1cc   : > { %v12127_v22 = vmul.f32 %v12122_v59, %v3024_v6  ;;  %v12130_v26 = vmul.f32 %v12124_v58, %v3025_v56  ;;  %v2993_v38 = vadd.f32 %v2958_v16, %v12053_v18  ;;  %v2961_v2 = vadd.f32 %v9172_v33, %v9114_v37  ;;  %v12133_v12 = vld [vmem:[#allocation2 + $0x4] sm:$0xf]  ;;  %v9173_v55 = vpop.f32.mrb[100].mxu1 }
 0x1cd   : > { %v3197_v28 = vsel %vm12104_vm9, %v3188_v10, %v3196_v52  ;;  %v3198_v44 = vrot.slane %v3196_v52, 4  ;;  %v3206_v48 = vor.u32 %v3205_v15, %v3202_v39  ;;  %v12141_v17 = vcombine.low %v3334_v50, %v12133_v12  ;;  %v9174_v4 = vpop.f32.mrb[101].mxu1  ;;  %v12164_v10 = vpop.permute.xlu1 %3070 }
 0x1ce   : > { %v9115_v24 = vpop.f32.mrb[100].mxu0  ;;  %3318 = vst [vmem:[#allocation2 + $0xc] sm:$0xf] %v3197_v28  ;;  %v8657_v18 = vpack.c.bf16 %v12127_v22, %v12127_v22  ;;  %v8658_v1 = vpack.c.bf16 %v12130_v26, %v12130_v26  ;;  %v3013_v0 = vadd.f32 %v12076_v61, %v2993_v38  ;;  %v2994_v63 = vadd.f32 %v2961_v2, %v12056_v11  ;;  %v9176_v20 = vpop.f32.mrb[102].mxu1  ;;  %v10486_v11 = vld [vmem:[%s13872_s4 + $0xc8] sm:$0xff]   ;;  %v10488_v38 = vld [vmem:[%s13872_s4 + $0xd0] sm:$0xff]  }
 0x1cf   : > { %v9116_v29 = vpop.f32.mrb[101].mxu0  ;;  %v3207_v47 = vsel %vm12104_vm9, %v3198_v44, %v3206_v48  ;;  %9522 = vmatmul.mubr.bf16.vlgmr.msra.gmra.mrb[112].mxu1 %v12141_v17  ;;  %v9175_v13 = vadd.f32 %v9174_v4, %v9173_v55  ;;  %v9177_v37 = vpop.f32.mrb[103].mxu1  ;;  %v3208_v50 = vrot.slane %v3206_v48, 4  ;;  %v3417_v55 = vshll.u32 %v12141_v17, 16 }
 0x1d0   : > { %v9118_v19 = vpop.f32.mrb[102].mxu0  ;;  %v9117_v51 = vadd.f32 %v9116_v29, %v9115_v24  ;;  %3319 = vst [vmem:[#allocation2 + $0x10] sm:$0xf] %v3207_v47  ;;  %v3210_v5 = vshrl.u32 %v8657_v18, 16  ;;  %v3213_v45 = vshll.u32 %v8657_v18, 16  ;;  %v3220_v53 = vshrl.u32 %v8658_v1, 16  ;;  %9525 = vmatprep.mubr.msk.bf16.mxu1 %vm10685_vm3, %v13893_v21  ;;  %9594 = vmatpush3.bf16.msra.mxu1 %v10484_v27 }
 0x1d1   : > { %v9119_v40 = vpop.f32.mrb[103].mxu0  ;;  %v3223_v43 = vshll.u32 %v8658_v1, 16  ;;  %v3026_v46 = vmax.f32 %v3013_v0, 0.0  ;;  %v3014_v57 = vadd.f32 %v12076_v61, %v2994_v63  ;;  %9595 = vmatprep.subr.bf16.mxu1 %v13893_v21  ;;  %v9178_v33 = vadd.f32 %v9177_v37, %v9176_v20  ;;  %v10490_v37 = vld [vmem:[%s13872_s4 + $0xd8] sm:$0xff]  }
 0x1d2   : > { %v9120_v34 = vadd.f32 %v9119_v40, %v9118_v19  ;;  %v3212_v8 = vrot.slane %v3210_v5, 6  ;;  %v3215_v25 = vrot.slane %v3213_v45, 7  ;;  %v3222_v36 = vrot.slane %v3220_v53, 6 }
 0x1d3   : > { %v3225_v31 = vrot.slane %v3223_v43, 7  ;;  %v12162_v6 = vmul.f32 %v12159_v54, %v3026_v46  ;;  %v3027_v56 = vmax.f32 %v3014_v57, 0.0  ;;  %v2966_v16 = vadd.f32 %v9175_v13, %v9117_v51 }
 0x1d4   : > { %v3216_v52 = vor.u32 %v3215_v25, %v3212_v8  ;;  %9596 = vmatpush3.bf16.msra.mxu1 %v10486_v11  ;;  %v2969_v28 = vadd.f32 %v9178_v33, %v9120_v34  ;;  %v9179_v1 = vpop.f32.mrb[104].mxu1 }
 0x1d5   : > { %v3226_v39 = vor.u32 %v3225_v31, %v3222_v36  ;;  %v8659_v2 = vpack.c.bf16 %v12162_v6, %v12162_v6  ;;  %v12172_v24 = vmul.f32 %v12164_v10, %v3027_v56  ;;  %v2995_v27 = vadd.f32 %v2966_v16, %v12059_v3  ;;  %v12175_v48 = vld [vmem:[#allocation2 + $0x8] sm:$0xff]   ;;  %9597 = vmatprep.subr.bf16.mxu1 %v13893_v21  ;;  %v9180_v4 = vpop.f32.mrb[105].mxu1  ;;  %v12195_v31 = vpop.permute.xlu0 %3075 }
 0x1d6   : > { %v9121_v15 = vpop.f32.mrb[104].mxu0  ;;  %v3217_v29 = vsel %vm12104_vm9, %v3208_v50, %v3216_v52  ;;  %v3218_v18 = vrot.slane %v3216_v52, 4  ;;  %v2996_v45 = vadd.f32 %v2969_v28, %v12062_v7  ;;  %v9181_v53 = vadd.f32 %v9180_v4, %v9179_v1  ;;  %v9182_v43 = vpop.f32.mrb[106].mxu1 }
 0x1d7   : > { %v9122_v44 = vpop.f32.mrb[105].mxu0  ;;  %3320 = vst [vmem:[#allocation2 + $0x14] sm:$0xf] %v3217_v29  ;;  %v3230_v19 = vshrl.u32 %v8659_v2, 16  ;;  %v3233_v47 = vshll.u32 %v8659_v2, 16  ;;  %v8660_v3 = vpack.c.bf16 %v12172_v24, %v12172_v24  ;;  %v3015_v51 = vadd.f32 %v12076_v61, %v2995_v27  ;;  %9526 = vmatmul.mubr.bf16.gmra.mrb[116].mxu1 %v12175_v48  ;;  %v9183_v34 = vpop.f32.mrb[107].mxu1 }
 0x1d8   : > { %v9123_v0 = vadd.f32 %v9122_v44, %v9121_v15  ;;  %v9124_v63 = vpop.f32.mrb[106].mxu0  ;;  %v3227_v5 = vsel %vm12104_vm9, %v3218_v18, %v3226_v39  ;;  %9529 = vmatprep.mubr.msk.bf16.mxu1 %vm10685_vm3, %v13893_v21  ;;  %9598 = vmatpush3.bf16.msra.mxu1 %v10488_v38  ;;  %v3016_v7 = vadd.f32 %v12076_v61, %v2996_v45  ;;  %v3228_v56 = vrot.slane %v3226_v39, 4  ;;  %v12201_v28 = vpop.permute.xlu1 %3080 }
 0x1d9   : > { %v9125_v40 = vpop.f32.mrb[107].mxu0  ;;  %3321 = vst [vmem:[#allocation2 + $0x18] sm:$0xf] %v3227_v5  ;;  %v3232_v11 = vrot.slane %v3230_v19, 6  ;;  %v3235_v46 = vrot.slane %v3233_v47, 7  ;;  %v3240_v57 = vshrl.u32 %v8660_v3, 16  ;;  %v9184_v36 = vadd.f32 %v9183_v34, %v9182_v43  ;;  %9599 = vmatprep.subr.bf16.mxu1 %v13893_v21 }
 0x1da   : > { %v9126_v20 = vadd.f32 %v9125_v40, %v9124_v63  ;;  %v3243_v13 = vshll.u32 %v8660_v3, 16  ;;  %v3028_v8 = vmax.f32 %v3015_v51, 0.0  ;;  %v2974_v25 = vadd.f32 %v9181_v53, %v9123_v0  ;;  %v10492_v0 = vld [vmem:[%s13872_s4 + $0xe0] sm:$0xff]  }
 0x1db   : > { %v3236_v16 = vor.u32 %v3235_v46, %v3232_v11  ;;  %v3242_v33 = vrot.slane %v3240_v57, 6  ;;  %v3029_v15 = vmax.f32 %v3016_v7, 0.0  ;;  %v3419_v1 = vrot.slane %v3417_v55, 1  ;;  %v12231_v7 = vpop.permute.xlu0 %3085 }
 0x1dc   : > { %v3245_v50 = vrot.slane %v3243_v13, 7  ;;  %v12198_v52 = vmul.f32 %v12195_v31, %v3028_v8  ;;  %v2997_v38 = vadd.f32 %v2974_v25, %v12065_v35  ;;  %v2977_v2 = vadd.f32 %v9184_v36, %v9126_v20  ;;  %9600 = vmatpush3.bf16.msra.mxu1 %v10490_v37  ;;  %v9185_v3 = vpop.f32.mrb[108].mxu1 }
 0x1dd   : > { %v3237_v44 = vsel %vm12104_vm9, %v3228_v56, %v3236_v16  ;;  %v3238_v29 = vrot.slane %v3236_v16, 4  ;;  %v12211_v63 = vmul.f32 %v12201_v28, %v3029_v15  ;;  %9601 = vmatprep.subr.bf16.mxu1 %v13893_v21  ;;  %v3415_v4 = vshrl.u32 %v12141_v17, 16  ;;  %v9186_v45 = vpop.f32.mrb[109].mxu1  ;;  %v10480_v17 = vld [vmem:[%s13872_s4 + $0x80] sm:$0xff]  }
 0x1de   : > { %v9127_v27 = vpop.f32.mrb[108].mxu0  ;;  %v3246_v18 = vor.u32 %v3245_v50, %v3242_v33  ;;  %3322 = vst [vmem:[#allocation2 + $0x1c] sm:$0xf] %v3237_v44  ;;  %v8661_v35 = vpack.c.bf16 %v12198_v52, %v12198_v52  ;;  %v3017_v19 = vadd.f32 %v12076_v61, %v2997_v38  ;;  %v2998_v47 = vadd.f32 %v2977_v2, %v12068_v23  ;;  %v12215_v51 = vld [vmem:[#allocation2 + $0x10] sm:$0xff]   ;;  %v9188_v37 = vpop.f32.mrb[110].mxu1  ;;  %v10494_v33 = vld [vmem:[%s13872_s4 + $0xe8] sm:$0xff]  }
 0x1df   : > { %v9128_v39 = vpop.f32.mrb[109].mxu0  ;;  %v3422_v40 = vshll.u32 %v12175_v48, 16  ;;  %v8662_v23 = vpack.c.bf16 %v12211_v63, %v12211_v63  ;;  %9530 = vmatmul.mubr.bf16.gmra.mrb[120].mxu1 %v12215_v51  ;;  %v3420_v57 = vor.u32 %v3419_v1, %v3415_v4  ;;  %v9187_v34 = vadd.f32 %v9186_v45, %v9185_v3  ;;  %v9189_v50 = vpop.f32.mrb[111].mxu1 }
 0x1e0   : > { %v3247_v55 = vsel %vm12104_vm9, %v3238_v29, %v3246_v18  ;;  %v9129_v5 = vadd.f32 %v9128_v39, %v9127_v27  ;;  %v9130_v53 = vpop.f32.mrb[110].mxu0  ;;  %v3250_v43 = vshrl.u32 %v8661_v35, 16  ;;  %v3253_v20 = vshll.u32 %v8661_v35, 16  ;;  %9533 = vmatprep.mubr.msk.bf16.mxu1 %vm10685_vm3, %v13893_v21  ;;  %9602 = vmatpush3.bf16.msra.mxu1 %v10492_v0  ;;  %v12241_v44 = vpop.permute.xlu1 %3090  ;;  %v10482_v35 = vld [vmem:[%s13872_s4 + $0x88] sm:$0xff]  }
 0x1e1   : > { %3323 = vst [vmem:[#allocation2 + $0x20] sm:$0xf] %v3247_v55  ;;  %v3030_v11 = vmax.f32 %v3017_v19, 0.0  ;;  %v3018_v46 = vadd.f32 %v12076_v61, %v2998_v47  ;;  %v3424_v13 = vrot.slane %v3422_v40, 1  ;;  %v9131_v8 = vpop.f32.mrb[111].mxu0  ;;  %v3260_v56 = vshrl.u32 %v8662_v23, 16  ;;  %9603 = vmatprep.subr.bf16.mxu1 %v13893_v21 }
 0x1e2   : > { %v3252_v25 = vrot.slane %v3250_v43, 6  ;;  %v3255_v36 = vrot.slane %v3253_v20, 7  ;;  %v3263_v16 = vshll.u32 %v8662_v23, 16  ;;  %v2982_v27 = vadd.f32 %v9187_v34, %v9129_v5 }
 0x1e3   : > { %v12238_v15 = vmul.f32 %v12231_v7, %v3030_v11  ;;  %v3031_v38 = vmax.f32 %v3018_v46, 0.0  ;;  %v3425_v2 = vsel %vm583_vm0, %v3420_v57, %v3424_v13  ;;  %v3248_v29 = vrot.slane %v3246_v18, 4 }
 0x1e4   : > { %v3256_v1 = vor.u32 %v3255_v36, %v3252_v25  ;;  %v3262_v39 = vrot.slane %v3260_v56, 6  ;;  %v3265_v0 = vrot.slane %v3263_v16, 7  ;;  %9478 = vmatmul.mubr.bf16.vlgmr.msra.gmra.mrb[112].mxu0 %v3425_v2  ;;  %v2999_v3 = vadd.f32 %v2982_v27, %v12071_v30  ;;  %9604 = vmatpush3.bf16.msra.mxu1 %v10494_v33  ;;  %v10497_v30 = vld [vmem:[%s13872_s4 + $0xf0] sm:$0xff]   ;;  %v10499_v56 = vld [vmem:[%s13872_s4 + $0xf8] sm:$0xff]   ;;  %v12282_v16 = vpop.permute.xlu0 %3095  ;;  %v3758_v27 = vld [vmem:[#allocation2] sm:$0xe] }
 0x1e5   : > { %v8663_v19 = vpack.c.bf16 %v12238_v15, %v12238_v15  ;;  %v12249_v47 = vmul.f32 %v12241_v44, %v3031_v38  ;;  %9550 = vmatpush3.bf16.msra.mxu0 %v10480_v17  ;;  %9481 = vmatprep.mubr.msk.bf16.mxu0 %vm10685_vm3, %v13893_v21  ;;  %v3430_v18 = vshll.u32 %v12215_v51, 16  ;;  %v12255_v55 = vld [vmem:[#allocation2 + $0x18] sm:$0xff]   ;;  %v3426_v45 = vshrl.u32 %v12175_v48, 16  ;;  %v10485_v17 = vld [vmem:[%s13872_s4 + $0x90] sm:$0xff]  }
 0x1e6   : > { %v3257_v4 = vsel %vm12104_vm9, %v3248_v29, %v3256_v1  ;;  %v3258_v40 = vrot.slane %v3256_v1, 4  ;;  %v3266_v5 = vor.u32 %v3265_v0, %v3262_v39  ;;  %9551 = vmatprep.subr.bf16.mxu0 %v13893_v21  ;;  %v3019_v23 = vadd.f32 %v12076_v61, %v2999_v3  ;;  %9605 = vmatprep.subr.bf16.mxu1 %v13893_v21  ;;  %v10489_v3 = vld [vmem:[%s13872_s4 + $0x98] sm:$0xff]  }
 0x1e7   : > { %3324 = vst [vmem:[#allocation2 + $0x24] sm:$0xf] %v3257_v4  ;;  %v3270_v53 = vshrl.u32 %v8663_v19, 16  ;;  %v3273_v43 = vshll.u32 %v8663_v19, 16  ;;  %v8664_v20 = vpack.c.bf16 %v12249_v47, %v12249_v47  ;;  %v3428_v46 = vor.u32 %v3426_v45, %v3424_v13  ;;  %9534 = vmatmul.mubr.bf16.gmra.mrb[124].mxu1 %v12255_v55 }
 0x1e8   : > { %v3267_v11 = vsel %vm12104_vm9, %v3258_v40, %v3266_v5  ;;  %v3432_v57 = vrot.slane %v3430_v18, 1  ;;  %v3438_v34 = vshll.u32 %v12255_v55, 16  ;;  %9537 = vmatprep.mubr.msk.bf16.mxu1 %vm10685_vm3, %v13893_v21  ;;  %v3032_v36 = vmax.f32 %v3019_v23, 0.0  ;;  %9606 = vmatpush3.bf16.msra.mxu1 %v10497_v30  ;;  %v12314_v23 = vld [vmem:[#allocation2 + $0x8] sm:$0xf] }
 0x1e9   : > { %3325 = vst [vmem:[#allocation2 + $0x28] sm:$0xf] %v3267_v11  ;;  %v3272_v37 = vrot.slane %v3270_v53, 6  ;;  %v3275_v8 = vrot.slane %v3273_v43, 7  ;;  %v3280_v25 = vshrl.u32 %v8664_v20, 16  ;;  %v3283_v61 = vshll.u32 %v8664_v20, 16  ;;  %9552 = vmatpush3.bf16.msra.mxu0 %v10482_v35  ;;  %9607 = vmatprep.subr.bf16.mxu1 %v13893_v21 }
 0x1ea   : > { %v3433_v13 = vsel %vm583_vm0, %v3428_v46, %v3432_v57  ;;  %9553 = vmatprep.subr.bf16.mxu0 %v13893_v21  ;;  %v3268_v33 = vrot.slane %v3266_v5, 4  ;;  %v3110_v29 = vmul.f32 %v12282_v16, %v3032_v36  ;;  %v3434_v1 = vshrl.u32 %v12215_v51, 16 }
 0x1eb   : > { %v3276_v50 = vor.u32 %v3275_v8, %v3272_v37  ;;  %v3282_v38 = vrot.slane %v3280_v25, 6  ;;  %v3285_v2 = vrot.slane %v3283_v61, 7  ;;  %v3440_v19 = vrot.slane %v3438_v34, 1  ;;  %v3331_v34 = vld [vmem:[#allocation2 + $0x34] sm:$0xf] }
 0x1ec   : > { %9482 = vmatmul.mubr.bf16.gmra.mrb[116].mxu0 %v3433_v13  ;;  %v12294_v18 = vpack.c.bf16 %v3110_v29, %v3110_v29  ;;  %9608 = vmatpush3.bf16.msra.mxu1 %v10499_v56  ;;  %v8213_v40 = vcombine.low %v3758_v27, %v12133_v12  ;;  %v3436_v45 = vor.u32 %v3434_v1, %v3432_v57  ;;  %v3780_v30 = vrot.slane %v12175_v48, 1  ;;  %v10493_v48 = vld [vmem:[%s13872_s4 + $0xa0] sm:$0xff]  }
 0x1ed   : > { %v3277_v39 = vsel %vm12104_vm9, %v3268_v33, %v3276_v50  ;;  %v3278_v0 = vrot.slane %v3276_v50, 4  ;;  %v3286_v35 = vor.u32 %v3285_v2, %v3282_v38  ;;  %9485 = vmatprep.mubr.msk.bf16.mxu0 %vm10685_vm3, %v13893_v21  ;;  %9554 = vmatpush3.bf16.msra.mxu0 %v10485_v17  ;;  %v3782_v46 = vrot.slane %v12215_v51, 1  ;;  %v10496_v33 = vld [vmem:[%s13872_s4 + $0xa8] sm:$0xff]   ;;  %v3948_v50 = vld [vmem:[#allocation2 + $0x4] sm:$0xe] }
 0x1ee   : > { %3326 = vst [vmem:[#allocation2 + $0x2c] sm:$0xf] %v3277_v39  ;;  %13945 = vst [vmem:[#allocation4_spill] sm:$0xff] %v12294_v18  ;;  %v12296_v4 = vld [vmem:[#allocation2 + $0x20] sm:$0xff]   ;;  %9555 = vmatprep.subr.bf16.mxu0 %v13893_v21  ;;  %9681 = vmatprep.subr.bf16.mxu1 %v13893_v21  ;;  %v3290_v53 = vshrl.u32 %v12294_v18, 16  ;;  %v3293_v43 = vshll.u32 %v12294_v18, 16  ;;  %v3441_v20 = vsel %vm583_vm0, %v3436_v45, %v3440_v19 }
 0x1ef   : > { %v3287_v5 = vsel %vm12104_vm9, %v3278_v0, %v3286_v35  ;;  %9538 = vmatmul.mubr.bf16.gmra.mrb[128].mxu1 %v12296_v4  ;;  %v3446_v12 = vshll.u32 %v12296_v4, 16  ;;  %v3779_v11 = vrot.slane %v8213_v40, 1  ;;  %v3784_v37 = vrot.slane %v12255_v55, 1 }
 0x1f0   : > { %3327 = vst [vmem:[#allocation2 + $0x30] sm:$0xf] %v3287_v5  ;;  %9541 = vmatprep.mubr.msk.bf16.mxu1 %vm10685_vm3, %v13893_v21  ;;  %v3292_v57 = vrot.slane %v3290_v53, 6  ;;  %v3295_v17 = vrot.slane %v3293_v43, 7  ;;  %v12323_v25 = vsel %vm1803_vm1, %v3780_v30, %v3782_v46  ;;  %v3786_v61 = vrot.slane %v12296_v4, 1  ;;  %v10500_v5 = vld [vmem:[%s13872_s4 + $0xb0] sm:$0xff]  }
 0x1f1   : > { %9556 = vmatpush3.bf16.msra.mxu0 %v10489_v3  ;;  %v12320_v8 = vsel %vm1803_vm1, %v3779_v11, %v3780_v30  ;;  %v3288_v36 = vrot.slane %v3286_v35, 4  ;;  %v3442_v56 = vshrl.u32 %v12255_v55, 16  ;;  %v12337_v38 = vsel %vm1803_vm1, %v3782_v46, %v3784_v37 }
 0x1f2   : > { %9557 = vmatprep.subr.bf16.mxu0 %v13893_v21  ;;  %v3296_v13 = vor.u32 %v3295_v17, %v3292_v57  ;;  %v3448_v2 = vrot.slane %v3446_v12, 1  ;;  %v12344_v29 = vsel %vm1803_vm1, %v3784_v37, %v3786_v61  ;;  %v12350_v1 = vcombine.low %v3948_v50, %v12314_v23  ;;  %v12389_v12 = vld [vmem:[#allocation2 + $0x1c] sm:$0xff]  }
 0x1f3   : > { %v3444_v0 = vor.u32 %v3442_v56, %v3440_v19  ;;  %v12357_v35 = vpack.c.bf16 %v12130_v26, %v12127_v22  ;;  %v12366_v19 = vld [vmem:[#allocation2 + $0xc] sm:$0xff]   ;;  %v12371_v22 = vpack.c.bf16 %v12172_v24, %v12162_v6  ;;  %v12374_v26 = vld [vmem:[#allocation2 + $0x14] sm:$0xff]   ;;  %v3450_v6 = vshrl.u32 %v12296_v4, 16 }
 0x1f4   : > { %9486 = vmatmul.mubr.bf16.gmra.mrb[120].mxu0 %v3441_v20  ;;  %v3297_v55 = vsel %vm12104_vm9, %v3288_v36, %v3296_v13  ;;  %v4202_v30 = vshrl.u32 %v12350_v1, 16  ;;  %v4205_v53 = vshll.u32 %v12350_v1, 16  ;;  %v10503_v20 = vld [vmem:[%s13872_s4 + $0xb8] sm:$0xff]   ;;  %v4210_v11 = vshrl.u32 %v12366_v19, 16 }
 0x1f5   : > { %9489 = vmatprep.mubr.msk.bf16.mxu0 %vm10685_vm3, %v13893_v21  ;;  %v12341_v27 = vld [vmem:[#allocation2 + $0x28] sm:$0xff]   ;;  %9558 = vmatpush3.bf16.msra.mxu0 %v10493_v48  ;;  %v3332_v39 = vsel %vm12328_vm12, %v3297_v55, %v3331_v34  ;;  %13948 = vst [vmem:[#allocation6_spill] sm:$0xff] %v12357_v35  ;;  %v3449_v3 = vsel %vm583_vm0, %v3444_v0, %v3448_v2  ;;  %13949 = vst [vmem:[#allocation7_spill] sm:$0xff] %v12371_v22  ;;  %v4213_v46 = vshll.u32 %v12366_v19, 16  ;;  %v13950_v35 = vmov 0.0  }
 0x1f6   : > { %9559 = vmatprep.subr.bf16.mxu0 %v13893_v21  ;;  %3333 = vst [vmem:[#allocation2 + $0x34] sm:$0xf] %v3332_v39  ;;  %v3454_v40 = vshll.u32 %v12341_v27, 16  ;;  %v13891_v45 = vrot.slane %v12341_v27, 1  ;;  %v12391_v48 = vld [vmem:[#allocation2 + $0x24] sm:$0xff]   ;;  %v4204_v17 = vrot.slane %v4202_v30, 1 }
 0x1f7   : > { %9542 = vmatmul.mubr.bf16.gmra.mrb[132].mxu1 %v12341_v27  ;;  %v10495_v57 = vld [vmem:[#allocation2 + $0x30] ss:$0 sps:$4 sm:$0x33]   ;;  %v4207_v34 = vrot.slane %v4205_v53, 2  ;;  %v4219_v37 = vshrl.u32 %v12374_v26, 16  ;;  %v4212_v4 = vrot.slane %v4210_v11, 1 }
 0x1f8   : > { %9545 = vmatprep.mubr.msk.bf16.mxu1 %vm10685_vm3, %v13893_v21  ;;  %v12381_v43 = vsel %vm1803_vm1, %v3786_v61, %v13891_v45  ;;  %v3456_v24 = vrot.slane %v3454_v40, 1  ;;  %v3452_v61 = vor.u32 %v3450_v6, %v3448_v2  ;;  %v12397_v36 = vld [vmem:[#allocation2 + $0x30] ss:$0 sps:$4 sm:$0x77]   ;;  %v4011_v13 = vrot.slane %v12350_v1, 1 }
 0x1f9   : > { %9560 = vmatpush3.bf16.msra.mxu0 %v10496_v33  ;;  %v4215_v56 = vrot.slane %v4213_v46, 2  ;;  %v4221_v33 = vrot.slane %v4219_v37, 1  ;;  %v4222_v50 = vshll.u32 %v12374_v26, 16  ;;  %v4012_v39 = vrot.slane %v12366_v19, 1  ;;  %v12405_v0 = vld [vmem:[#allocation2 + $0x2c] sm:$0xff]  }
 0x1fa   : > { %9561 = vmatprep.subr.bf16.mxu0 %v13893_v21  ;;  %v3457_v55 = vsel %vm583_vm0, %v3452_v61, %v3456_v24  ;;  %v4228_v2 = vshrl.u32 %v12389_v12, 16  ;;  %v4208_v1 = vor.u32 %v4207_v34, %v4204_v17  ;;  %v4237_v30 = vshrl.u32 %v12391_v48, 16  ;;  %v10510_v17 = vld [vmem:[%s13872_s4 + $0x140] sm:$0xff]  }
 0x1fb   : > { %v4216_v40 = vor.u32 %v4215_v56, %v4212_v4  ;;  %v3458_v53 = vshrl.u32 %v12341_v27, 16  ;;  %v3462_v6 = vshll.u32 %v12397_v36, 16  ;;  %v4240_v61 = vshll.u32 %v12391_v48, 16 }
 0x1fc   : > { %9490 = vmatmul.mubr.bf16.gmra.mrb[124].mxu0 %v3449_v3  ;;  %v4231_v3 = vshll.u32 %v12389_v12, 16  ;;  %v4230_v11 = vrot.slane %v4228_v2, 1  ;;  %v4239_v37 = vrot.slane %v4237_v30, 1  ;;  %v4246_v4 = vshrl.u32 %v12405_v0, 16 }
 0x1fd   : > { %9493 = vmatprep.mubr.msk.bf16.mxu0 %vm10685_vm3, %v13893_v21  ;;  %9562 = vmatpush3.bf16.msra.mxu0 %v10500_v5  ;;  %v4224_v5 = vrot.slane %v4222_v50, 2  ;;  %v4249_v56 = vshll.u32 %v12405_v0, 16  ;;  %v3460_v50 = vor.u32 %v3458_v53, %v3456_v24  ;;  %v4242_v2 = vrot.slane %v4240_v61, 2  ;;  %v10512_v24 = vld [vmem:[%s13872_s4 + $0x148] sm:$0xff]  }
 0x1fe   : > { %9563 = vmatprep.subr.bf16.mxu0 %v13893_v21  ;;  %v4233_v46 = vrot.slane %v4231_v3, 2  ;;  %v3464_v3 = vrot.slane %v3462_v6, 1  ;;  %v4014_v6 = vrot.slane %v12374_v26, 1  ;;  %v3466_v61 = vshrl.u32 %v12397_v36, 16 }
 0x1ff   : > { %9546 = vmatmul.mubr.bf16.gmra.mrb[136].mxu1 %v10495_v57  ;;  %v4225_v57 = vor.u32 %v4224_v5, %v4221_v33  ;;  %v4248_v5 = vrot.slane %v4246_v4, 1  ;;  %v4251_v30 = vrot.slane %v4249_v56, 2  ;;  %v4243_v45 = vor.u32 %v4242_v2, %v4239_v37  ;;  %v12465_v4 = vld [vmem:[#allocation2 + $0x10] sm:$0xff]   ;;  %v12467_v56 = vld [vmem:[#allocation2 + $0x18] sm:$0xff]   ;;  %v12473_v2 = vld [vmem:[#allocation2 + $0x28] sm:$0xff]  }
 0x200   : > { %9609 = vmatprep.mubr.msk.bf16.mxu1 %vm10685_vm3, %v13893_v21  ;;  %v4234_v34 = vor.u32 %v4233_v46, %v4230_v11  ;;  %v3465_v53 = vsel %vm583_vm0, %v3460_v50, %v3464_v3  ;;  %v10514_v46 = vld [vmem:[%s13872_s4 + $0x150] sm:$0xff]   ;;  %v4015_v37 = vsel %vm1803_vm1, %v4012_v39, %v4014_v6  ;;  %v3468_v50 = vor.u32 %v3466_v61, %v3464_v3  ;;  %v10518_v3 = vld [vmem:[%s13872_s4 + $0x160] sm:$0xff]  }
 0x201   : > { %9564 = vmatpush3.bf16.msra.mxu0 %v10503_v20  ;;  %v12414_v20 = vsel %vm2342_vm2, %v4208_v1, %v4216_v40  ;;  %v12426_v33 = vsel %vm2342_vm2, %v4216_v40, %v4225_v57 }
 0x202   : > { %9637 = vmatprep.subr.bf16.mxu0 %v13893_v21  ;;  %v12429_v1 = vsel %vm2342_vm2, %v4225_v57, %v4234_v34  ;;  %v12440_v40 = vsel %vm2342_vm2, %v4234_v34, %v4243_v45  ;;  %v12454_v57 = vld [vmem:[#allocation2 + $0xc] sm:$0xf]  ;;  %v10516_v34 = vld [vmem:[%s13872_s4 + $0x158] sm:$0xff]  }
 0x204   : > { %9494 = vmatmul.mubr.bf16.gmra.mrb[128].mxu0 %v3457_v55  ;;  %v4013_v55 = vsel %vm1803_vm1, %v4011_v13, %v4012_v39  ;;  %v12436_v13 = vor.u32 %v4251_v30, %v4248_v5  ;;  %v12475_v5 = vld [vmem:[#allocation2 + $0x30] sm:$0xff]   ;;  %v4016_v30 = vrot.slane %v12389_v12, 1 }
 0x205   : > { %9497 = vmatprep.mubr.msk.bf16.mxu0 %vm10685_vm3, %v13893_v21 }
 0x206   : > { %v12446_v11 = vsel %vm2342_vm2, %v4243_v45, %v12436_v13  ;;  %v12458_v45 = vld [vmem:[#allocation2 + $0x38] sm:$0x1f]  }
 0x207   : > { %9610 = vmatmul.mubr.bf16.vlgmr.msra.gmra.mrb[140].mxu1 %v4013_v55  ;;  %v12471_v55 = vld [vmem:[#allocation2 + $0x20] sm:$0xff]  }
 0x208   : > { %9613 = vmatprep.mubr.msk.bf16.mxu1 %vm10685_vm3, %v13893_v21  ;;  %9682 = vmatpush3.bf16.msra.mxu1 %v10510_v17  ;;  %v5127_v17 = vld [vmem:[#allocation2 + $0x8] sm:$0x8]  ;;  %v5154_v61 = vrot.slane %v12471_v55, 3 }
 0x209   : > { %9683 = vmatprep.subr.bf16.mxu1 %v13893_v21  ;;  %v8381_v39 = vcombine.low %v5127_v17, %v12454_v57  ;;  %v5156_v17 = vrot.slane %v12473_v2, 3 }
 0x20c   : > { %9498 = vmatmul.mubr.bf16.gmra.mrb[132].mxu0 %v3465_v53  ;;  %9684 = vmatpush3.bf16.msra.mxu1 %v10512_v24  ;;  %v5149_v24 = vrot.slane %v8381_v39, 3  ;;  %v5150_v53 = vrot.slane %v12465_v4, 3 }
 0x20d   : > { %9501 = vmatprep.mubr.msk.bf16.mxu0 %vm10685_vm3, %v13893_v21  ;;  %9685 = vmatprep.subr.bf16.mxu1 %v13893_v21 }
 0x20e   : > { %v12492_v18 = vsel %vm5148_vm13, %v5149_v24, %v5150_v53  ;;  %v13951_v24 = vrot.slane %v12458_v45, 3 }
 0x20f   : > { %9614 = vmatmul.mubr.bf16.gmra.mrb[144].mxu1 %v4015_v37  ;;  %v5152_v37 = vrot.slane %v12467_v56, 3 }
 0x210   : > { %9617 = vmatprep.mubr.msk.bf16.mxu1 %vm10685_vm3, %v13893_v21  ;;  %9686 = vmatpush3.bf16.msra.mxu1 %v10514_v46 }
 0x211   : > { %9687 = vmatprep.subr.bf16.mxu1 %v13893_v21  ;;  %v12495_v39 = vsel %vm5148_vm13, %v5150_v53, %v5152_v37  ;;  %v12498_v46 = vsel %vm5148_vm13, %v5152_v37, %v5154_v61  ;;  %v12518_v37 = vpack.c.bf16 %v12211_v63, %v12198_v52  ;;  %v10508_v52 = vld [vmem:[%s13872_s4 + $0x108] sm:$0xff]   ;;  %v10522_v63 = vld [vmem:[%s13872_s4 + $0x170] sm:$0xff]  }
 0x214   : > { %9502 = vmatmul.mubr.bf16.gmra.mrb[136].mxu0 %v3468_v50  ;;  %9688 = vmatpush3.bf16.msra.mxu1 %v10516_v34  ;;  %v5158_v50 = vrot.slane %v12475_v5, 3  ;;  %v4017_v34 = vsel %vm1803_vm1, %v4014_v6, %v4016_v30  ;;  %v10506_v6 = vld [vmem:[%s13872_s4 + $0x100] sm:$0xff]  }
 0x215   : > { %9565 = vmatprep.mubr.msk.bf16.mxu0 %vm10685_vm3, %v13893_v21  ;;  %9689 = vmatprep.subr.bf16.mxu1 %v13893_v21  ;;  %v12501_v21 = vsel %vm5148_vm13, %v5154_v61, %v5156_v17  ;;  %v12522_v61 = vpack.c.bf16 %v12249_v47, %v12238_v15  ;;  %v10511_v47 = vld [vmem:[%s13872_s4 + $0x110] sm:$0xff]  }
 0x216   : > { %v12504_v22 = vsel %vm5148_vm13, %v5156_v17, %v5158_v50  ;;  %v12514_v53 = vsel %vm5148_vm13, %v5158_v50, %v13951_v24  ;;  %v10520_v17 = vld [vmem:[%s13872_s4 + $0x168] sm:$0xff]   ;;  %v10515_v50 = vld [vmem:[%s13872_s4 + $0x118] sm:$0xff]  }
 0x217   : > { %9618 = vmatmul.mubr.bf16.gmra.mrb[148].mxu1 %v4017_v34 }
 0x218   : > { %9621 = vmatprep.mubr.msk.bf16.mxu1 %vm10685_vm3, %v13950_v35  ;;  %9690 = vmatpush3.bf16.msra.mxu1 %v10518_v3  ;;  %v4018_v3 = vrot.slane %v12391_v48, 1 }
 0x219   : > { %9691 = vmatprep.subr.bf16.mxu1 %v13950_v35 }
 0x21a   : > { %v4019_v15 = vsel %vm1803_vm1, %v4016_v30, %v4018_v3  ;;  %v4020_v30 = vrot.slane %v12405_v0, 1 }
 0x21c   : > { %9566 = vmatmul.mubr.bf16.vlgmr.msra.gmra.mrb[140].mxu0 %v12320_v8  ;;  %9692 = vmatpush3.bf16.msra.mxu1 %v10520_v17  ;;  %v10523_v8 = vld [vmem:[%s13872_s4 + $0x178] sm:$0xff]   ;;  %v4021_v34 = vsel %vm1803_vm1, %v4018_v3, %v4020_v30  ;;  %v10521_v17 = vld [vmem:[%s13872_s4 + $0x128] sm:$0xff]  }
 0x21d   : > { %9638 = vmatpush3.bf16.msra.mxu0 %v10506_v6  ;;  %9569 = vmatprep.mubr.msk.bf16.mxu0 %vm10685_vm3, %v13950_v35  ;;  %v10517_v6 = vld [vmem:[#allocation2 + $0x34] ss:$0 sps:$4 sm:$0x77]  }
 0x21e   : > { %9639 = vmatprep.subr.bf16.mxu0 %v13950_v35  ;;  %9693 = vmatprep.subr.bf16.mxu1 %v13950_v35  ;;  %v4022_v24 = vrot.slane %v10517_v6, 1 }
 0x21f   : > { %9622 = vmatmul.mubr.bf16.gmra.mrb[152].mxu1 %v4019_v15 }
 0x220   : > { %9625 = vmatprep.mubr.msk.bf16.mxu1 %vm10685_vm3, %v13950_v35  ;;  %9694 = vmatpush3.bf16.msra.mxu1 %v10522_v63  ;;  %v4023_v3 = vsel %vm1803_vm1, %v4020_v30, %v4022_v24  ;;  %v4419_v63 = vld [vmem:[#allocation2 + $0x4] sm:$0xc]  ;;  %v3790_v30 = vrot.slane %v12397_v36, 1  ;;  %v10532_v36 = vld [vmem:[%s13872_s4 + $0x1d0] sm:$0xff]  }
 0x221   : > { %9640 = vmatpush3.bf16.msra.mxu0 %v10508_v52  ;;  %9695 = vmatprep.subr.bf16.mxu1 %v13950_v35  ;;  %v10526_v52 = vld [vmem:[%s13872_s4 + $0x138] sm:$0xff]   ;;  %v8294_v15 = vcombine.low %v4419_v63, %v12314_v23 }
 0x222   : > { %9641 = vmatprep.subr.bf16.mxu0 %v13950_v35 }
 0x224   : > { %9570 = vmatmul.mubr.bf16.gmra.mrb[144].mxu0 %v12323_v25  ;;  %9696 = vmatpush3.bf16.msra.mxu1 %v10523_v8  ;;  %v10519_v25 = vld [vmem:[%s13872_s4 + $0x120] sm:$0xff]  }
 0x225   : > { %9573 = vmatprep.mubr.msk.bf16.mxu0 %vm10685_vm3, %v13950_v35  ;;  %9642 = vmatpush3.bf16.msra.mxu0 %v10511_v47  ;;  %v4441_v47 = vrot.slane %v8294_v15, 2  ;;  %v10529_v8 = vld [vmem:[%s13872_s4 + $0x1c0] sm:$0xff]   ;;  %v4450_v15 = vrot.slane %v12405_v0, 2 }
 0x226   : > { %9643 = vmatprep.subr.bf16.mxu0 %v13950_v35  ;;  %9769 = vmatprep.subr.bf16.mxu1 %v13950_v35  ;;  %v10537_v0 = vld [vmem:[%s13872_s4 + $0x1a0] sm:$0xff]  }
 0x227   : > { %9626 = vmatmul.mubr.bf16.gmra.mrb[156].mxu1 %v4021_v34  ;;  %v4444_v34 = vrot.slane %v12374_v26, 2  ;;  %v4446_v26 = vrot.slane %v12389_v12, 2  ;;  %v10538_v12 = vld [vmem:[%s13872_s4 + $0x1e8] sm:$0xff]  }
 0x228   : > { %9629 = vmatprep.mubr.msk.bf16.mxu1 %vm10685_vm3, %v13950_v35 }
 0x229   : > { %9644 = vmatpush3.bf16.msra.mxu0 %v10515_v50 }
 0x22a   : > { %9645 = vmatprep.subr.bf16.mxu0 %v13950_v35 }
 0x22c   : > { %9574 = vmatmul.mubr.bf16.gmra.mrb[148].mxu0 %v12337_v38  ;;  %v10524_v38 = vld [vmem:[%s13872_s4 + $0x130] sm:$0xff]  }
 0x22d   : > { %9577 = vmatprep.mubr.msk.bf16.mxu0 %vm10685_vm3, %v13950_v35  ;;  %9646 = vmatpush3.bf16.msra.mxu0 %v10519_v25  ;;  %v10536_v25 = vld [vmem:[%s13872_s4 + $0x1e0] sm:$0xff]  }
 0x22e   : > { %9647 = vmatprep.subr.bf16.mxu0 %v13950_v35 }
 0x22f   : > { %9630 = vmatmul.mubr.bf16.gmra.mrb[160].mxu1 %v4023_v3  ;;  %v4448_v3 = vrot.slane %v12391_v48, 2  ;;  %v10530_v48 = vld [vmem:[%s13872_s4 + $0x190] sm:$0xff]  }
 0x230   : > { %9633 = vmatprep.mubr.msk.bf16.mxu1 %vm10685_vm3, %v13950_v35 }
 0x231   : > { %9648 = vmatpush3.bf16.msra.mxu0 %v10521_v17  ;;  %v10527_v17 = vld [vmem:[%s13872_s4 + $0x180] sm:$0xff]   ;;  %v4449_v63 = vsel %vm4440_vm14, %v4446_v26, %v4448_v3 }
 0x232   : > { %9649 = vmatprep.subr.bf16.mxu0 %v13950_v35 }
 0x234   : > { %9578 = vmatmul.mubr.bf16.gmra.mrb[152].mxu0 %v12344_v29  ;;  %v4442_v29 = vrot.slane %v12366_v19, 2  ;;  %v10531_v19 = vld [vmem:[%s13872_s4 + $0x1c8] sm:$0xff]  }
 0x235   : > { %9581 = vmatprep.mubr.msk.bf16.mxu0 %vm10685_vm3, %v13950_v35  ;;  %9650 = vmatpush3.bf16.msra.mxu0 %v10524_v38  ;;  %v10528_v38 = vld [vmem:[%s13872_s4 + $0x188] sm:$0xff]  }
 0x236   : > { %9651 = vmatprep.subr.bf16.mxu0 %v13950_v35  ;;  %v4443_v23 = vsel %vm4440_vm14, %v4441_v47, %v4442_v29  ;;  %v4445_v6 = vsel %vm4440_vm14, %v4442_v29, %v4444_v34  ;;  %v10533_v29 = vld [vmem:[%s13872_s4 + $0x198] sm:$0xff]   ;;  %v4451_v47 = vsel %vm4440_vm14, %v4448_v3, %v4450_v15 }
 0x237   : > { %9634 = vmatmul.mubr.bf16.gmra.mrb[164].mxu1 %v4022_v24  ;;  %v4447_v24 = vsel %vm4440_vm14, %v4444_v34, %v4446_v26  ;;  %v4921_v34 = vshll.u32 %v12465_v4, 16 }
 0x238   : > { %9697 = vmatprep.mubr.msk.bf16.mxu1 %vm10685_vm3, %v13950_v35 }
 0x239   : > { %9652 = vmatpush3.bf16.msra.mxu0 %v10526_v52  ;;  %v10540_v52 = vld [vmem:[%s13872_s4 + $0x1f0] sm:$0xff]  }
 0x23a   : > { %9725 = vmatprep.subr.bf16.mxu0 %v13950_v35 }
 0x23c   : > { %9582 = vmatmul.mubr.bf16.gmra.mrb[156].mxu0 %v12381_v43  ;;  %v13952_v43 = vrot.slane %v12341_v27, 1  ;;  %v10534_v27 = vld [vmem:[%s13872_s4 + $0x1d8] sm:$0xff]  }
 0x23d   : > { %9585 = vmatprep.mubr.msk.bf16.mxu0 %vm10685_vm3, %v13950_v35 }
 0x23e   : > { %v3791_v50 = vsel %vm1803_vm1, %v13952_v43, %v3790_v30 }
 0x23f   : > { %9698 = vmatmul.mubr.bf16.vlgmr.msra.gmra.mrb[168].mxu1 %v4443_v23 }
 0x240   : > { %9701 = vmatprep.mubr.msk.bf16.mxu1 %vm10685_vm3, %v13950_v35  ;;  %9770 = vmatpush3.bf16.msra.mxu1 %v10529_v8  ;;  %v10535_v8 = vld [vmem:[#allocation2 + $0x34] ss:$0 sps:$4 sm:$0xff]  }
 0x241   : > { %9771 = vmatprep.subr.bf16.mxu1 %v13950_v35  ;;  %v4255_v26 = vshrl.u32 %v10535_v8, 16 }
 0x244   : > { %9586 = vmatmul.mubr.bf16.gmra.mrb[160].mxu0 %v3791_v50  ;;  %9772 = vmatpush3.bf16.msra.mxu1 %v10531_v19  ;;  %v4842_v19 = vld [vmem:[#allocation2 + $0x8] sm:$0xc]  ;;  %v4918_v50 = vshrl.u32 %v12465_v4, 16 }
 0x245   : > { %9589 = vmatprep.mubr.msk.bf16.mxu0 %vm10685_vm3, %v13950_v35  ;;  %9773 = vmatprep.subr.bf16.mxu1 %v13950_v35  ;;  %v8350_v43 = vcombine.low %v4842_v19, %v12454_v57  ;;  %v4258_v57 = vshll.u32 %v10535_v8, 16 }
 0x247   : > { %9702 = vmatmul.mubr.bf16.gmra.mrb[172].mxu1 %v4445_v6  ;;  %v4913_v6 = vshll.u32 %v8350_v43, 16 }
 0x248   : > { %9705 = vmatprep.mubr.msk.bf16.mxu1 %vm10685_vm3, %v13950_v35  ;;  %9774 = vmatpush3.bf16.msra.mxu1 %v10532_v36  ;;  %v4910_v36 = vshrl.u32 %v8350_v43, 16 }
 0x249   : > { %9775 = vmatprep.subr.bf16.mxu1 %v13950_v35  ;;  %v4915_v4 = vrot.slane %v4913_v6, 3 }
 0x24c   : > { %9590 = vmatmul.mubr.bf16.gmra.mrb[164].mxu0 %v3790_v30  ;;  %9776 = vmatpush3.bf16.msra.mxu1 %v10534_v27  ;;  %v10539_v30 = vld [vmem:[%s13872_s4 + $0x1a8] sm:$0xff]   ;;  %v10545_v27 = vld [vmem:[%s13872_s4 + $0x1b8] sm:$0xff]  }
 0x24d   : > { %9653 = vmatprep.mubr.msk.bf16.mxu0 %vm10685_vm3, %v13950_v35  ;;  %9777 = vmatprep.subr.bf16.mxu1 %v13950_v35 }
 0x24f   : > { %9706 = vmatmul.mubr.bf16.gmra.mrb[176].mxu1 %v4447_v24  ;;  %v4923_v24 = vrot.slane %v4921_v34, 3 }
 0x250   : > { %9709 = vmatprep.mubr.msk.bf16.mxu1 %vm10685_vm3, %v13950_v35  ;;  %9778 = vmatpush3.bf16.msra.mxu1 %v10536_v25  ;;  %v4920_v25 = vrot.slane %v4918_v50, 2 }
 0x251   : > { %9779 = vmatprep.subr.bf16.mxu1 %v13950_v35 }
 0x252   : > { %v4924_v3 = vor.u32 %v4923_v24, %v4920_v25  ;;  %v4954_v25 = vshrl.u32 %v12475_v5, 16  ;;  %v4957_v24 = vshll.u32 %v12475_v5, 16  ;;  %v10554_v5 = vld [vmem:[%s13872_s4 + $0x210] sm:$0xff]  }
 0x254   : > { %9654 = vmatmul.mubr.bf16.vlgmr.msra.gmra.mrb[168].mxu0 %v12414_v20  ;;  %9780 = vmatpush3.bf16.msra.mxu1 %v10538_v12  ;;  %v10541_v20 = vld [vmem:[%s13872_s4 + $0x1f8] sm:$0xff]   ;;  %v4260_v12 = vrot.slane %v4258_v57, 2 }
 0x255   : > { %9726 = vmatpush3.bf16.msra.mxu0 %v10527_v17  ;;  %9657 = vmatprep.mubr.msk.bf16.mxu0 %vm10685_vm3, %v13950_v35  ;;  %v4257_v17 = vrot.slane %v4255_v26, 1  ;;  %v10551_v26 = vld [vmem:[#allocation2 + $0x18] sm:$0xff]  }
 0x256   : > { %9727 = vmatprep.subr.bf16.mxu0 %v13950_v35  ;;  %9781 = vmatprep.subr.bf16.mxu1 %v13950_v35 }
 0x257   : > { %9710 = vmatmul.mubr.bf16.gmra.mrb[180].mxu1 %v4449_v63 }
 0x258   : > { %9713 = vmatprep.mubr.msk.bf16.mxu1 %vm10685_vm3, %v13950_v35  ;;  %9782 = vmatpush3.bf16.msra.mxu1 %v10540_v52  ;;  %v4930_v52 = vshll.u32 %v12467_v56, 16 }
 0x259   : > { %9728 = vmatpush3.bf16.msra.mxu0 %v10528_v38  ;;  %9783 = vmatprep.subr.bf16.mxu1 %v13950_v35  ;;  %v4927_v38 = vshrl.u32 %v12467_v56, 16 }
 0x25a   : > { %9729 = vmatprep.subr.bf16.mxu0 %v13950_v35 }
 0x25c   : > { %9658 = vmatmul.mubr.bf16.gmra.mrb[172].mxu0 %v12426_v33  ;;  %9784 = vmatpush3.bf16.msra.mxu1 %v10541_v20  ;;  %v4452_v33 = vrot.slane %v10535_v8, 2  ;;  %v4939_v8 = vshll.u32 %v12471_v55, 16 }
 0x25d   : > { %9661 = vmatprep.mubr.msk.bf16.mxu0 %vm10685_vm3, %v13950_v35  ;;  %9730 = vmatpush3.bf16.msra.mxu0 %v10530_v48  ;;  %v4261_v48 = vor.u32 %v4260_v12, %v4257_v17  ;;  %v4956_v12 = vrot.slane %v4954_v25, 2 }
 0x25e   : > { %9731 = vmatprep.subr.bf16.mxu0 %v13950_v35  ;;  %9857 = vmatprep.subr.bf16.mxu1 %v13950_v35  ;;  %v4453_v23 = vsel %vm4440_vm14, %v4450_v15, %v4452_v33  ;;  %v4929_v15 = vrot.slane %v4927_v38, 2 }
 0x25f   : > { %9714 = vmatmul.mubr.bf16.gmra.mrb[184].mxu1 %v4451_v47  ;;  %v4262_v47 = vsel %vm2342_vm2, %v12436_v13, %v4261_v48  ;;  %v4945_v13 = vshrl.u32 %v12473_v2, 16 }
 0x260   : > { %9717 = vmatprep.mubr.msk.bf16.mxu1 %vm10685_vm3, %v13950_v35 }
 0x261   : > { %9732 = vmatpush3.bf16.msra.mxu0 %v10533_v29  ;;  %v4932_v29 = vrot.slane %v4930_v52, 3  ;;  %v4947_v34 = vrot.slane %v4945_v13, 2  ;;  %v10555_v52 = vld [vmem:[#allocation2 + $0x20] sm:$0xff]  }
 0x262   : > { %9733 = vmatprep.subr.bf16.mxu0 %v13950_v35 }
 0x263   : > { %v4933_v56 = vor.u32 %v4932_v29, %v4929_v15  ;;  %v10557_v15 = vld [vmem:[%s13872_s4 + $0x218] sm:$0xff]   ;;  %v4678_v29 = vrot.slane %v10555_v52, 2 }
 0x264   : > { %9662 = vmatmul.mubr.bf16.gmra.mrb[176].mxu0 %v12429_v1  ;;  %v10542_v1 = vld [vmem:[%s13872_s4 + $0x1b0] sm:$0xff]  }
 0x265   : > { %9665 = vmatprep.mubr.msk.bf16.mxu0 %vm10685_vm3, %v13950_v35  ;;  %9734 = vmatpush3.bf16.msra.mxu0 %v10537_v0  ;;  %v4934_v0 = vsel %vm4908_vm15, %v4924_v3, %v4933_v56 }
 0x266   : > { %9735 = vmatprep.subr.bf16.mxu0 %v13950_v35 }
 0x267   : > { %9718 = vmatmul.mubr.bf16.gmra.mrb[188].mxu1 %v4453_v23  ;;  %v10548_v23 = vld [vmem:[#allocation2 + $0x10] sm:$0xff]  }
 0x268   : > { %9721 = vmatprep.mubr.msk.bf16.mxu1 %vm10685_vm3, %v13950_v35  ;;  %v4674_v43 = vrot.slane %v10548_v23, 2  ;;  %v10562_v23 = vld [vmem:[%s13872_s4 + $0x228] sm:$0xff]  }
 0x269   : > { %9736 = vmatpush3.bf16.msra.mxu0 %v10539_v30  ;;  %v4941_v30 = vrot.slane %v4939_v8, 3  ;;  %v10560_v8 = vld [vmem:[%s13872_s4 + $0x220] sm:$0xff]  }
 0x26a   : > { %9737 = vmatprep.subr.bf16.mxu0 %v13950_v35 }
 0x26c   : > { %9666 = vmatmul.mubr.bf16.gmra.mrb[180].mxu0 %v12440_v40  ;;  %v4912_v40 = vrot.slane %v4910_v36, 2 }
 0x26d   : > { %9669 = vmatprep.mubr.msk.bf16.mxu0 %vm10685_vm3, %v13950_v35  ;;  %9738 = vmatpush3.bf16.msra.mxu0 %v10542_v1  ;;  %v4948_v1 = vshll.u32 %v12473_v2, 16 }
 0x26e   : > { %9739 = vmatprep.subr.bf16.mxu0 %v13950_v35  ;;  %v4916_v63 = vor.u32 %v4915_v4, %v4912_v40  ;;  %v10552_v40 = vld [vmem:[%s13872_s4 + $0x208] sm:$0xff]   ;;  %v4676_v4 = vrot.slane %v10551_v26, 2 }
 0x26f   : > { %9722 = vmatmul.mubr.bf16.gmra.mrb[192].mxu1 %v4452_v33  ;;  %v4950_v36 = vrot.slane %v4948_v1, 3  ;;  %v10564_v1 = vld [vmem:[%s13872_s4 + $0x230] sm:$0xff]  }
 0x270   : > { %9785 = vmatprep.mubr.msk.bf16.mxu1 %vm10685_vm3, %v13950_v35  ;;  %v4925_v20 = vsel %vm4908_vm15, %v4916_v63, %v4924_v3  ;;  %v4959_v3 = vrot.slane %v4957_v24, 3  ;;  %v4677_v38 = vsel %vm4440_vm14, %v4674_v43, %v4676_v4  ;;  %v10563_v24 = vld [vmem:[#allocation2 + $0x38] ss:$0 sps:$4 sm:$0xff]  }
 0x271   : > { %9740 = vmatpush3.bf16.msra.mxu0 %v10545_v27  ;;  %v10549_v27 = vld [vmem:[%s13872_s4 + $0x200] sm:$0xff]   ;;  %v4951_v57 = vor.u32 %v4950_v36, %v4947_v34  ;;  %v10561_v34 = vld [vmem:[#allocation2 + $0x30] sm:$0xff]  }
 0x272   : > { %9813 = vmatprep.subr.bf16.mxu0 %v13950_v35  ;;  %v4960_v63 = vor.u32 %v4959_v3, %v4956_v12 }
 0x274   : > { %9670 = vmatmul.mubr.bf16.gmra.mrb[184].mxu0 %v12446_v11  ;;  %v4936_v11 = vshrl.u32 %v12471_v55, 16  ;;  %v10547_v55 = vld [vmem:[#allocation2 + $0x8] sm:$0xfc]  }
 0x275   : > { %9673 = vmatprep.mubr.msk.bf16.mxu0 %vm10685_vm3, %v13950_v35  ;;  %v4673_v6 = vrot.slane %v10547_v55, 2 }
 0x276   : > { %v4938_v33 = vrot.slane %v4936_v11, 2 }
 0x277   : > { %9786 = vmatmul.mubr.bf16.vlgmr.msra.gmra.mrb[196].mxu1 %v4925_v20  ;;  %v4675_v2 = vsel %vm4440_vm14, %v4673_v6, %v4674_v43  ;;  %v4966_v20 = vshll.u32 %v12458_v45, 16 }
 0x278   : > { %9789 = vmatprep.mubr.msk.bf16.mxu1 %vm10685_vm3, %v13950_v35  ;;  %v4942_v19 = vor.u32 %v4941_v30, %v4938_v33  ;;  %v10558_v33 = vld [vmem:[#allocation2 + $0x28] sm:$0xff]  }
 0x279   : > { %v4968_v11 = vrot.slane %v4966_v20, 3 }
 0x27a   : > { %v4943_v50 = vsel %vm4908_vm15, %v4933_v56, %v4942_v19  ;;  %v4952_v17 = vsel %vm4908_vm15, %v4942_v19, %v4951_v57  ;;  %v4680_v19 = vrot.slane %v10558_v33, 2 }
 0x27c   : > { %9674 = vmatmul.mubr.bf16.gmra.mrb[188].mxu0 %v4262_v47  ;;  %v4961_v47 = vsel %vm4908_vm15, %v4951_v57, %v4960_v63  ;;  %v4681_v43 = vsel %vm4440_vm14, %v4678_v29, %v4680_v19 }
 0x27d   : > { %9677 = vmatprep.mubr.msk.bf16.mxu0 %vm10685_vm3, %v13950_v35 }
 0x27f   : > { %9790 = vmatmul.mubr.bf16.gmra.mrb[200].mxu1 %v4934_v0  ;;  %v4679_v0 = vsel %vm4440_vm14, %v4676_v4, %v4678_v29 }
 0x280   : > { %9793 = vmatprep.mubr.msk.bf16.mxu1 %vm10685_vm3, %v13950_v35 }
 0x284   : > { %9678 = vmatmul.mubr.bf16.gmra.mrb[192].mxu0 %v4261_v48  ;;  %v4963_v48 = vshrl.u32 %v12458_v45, 16 }
 0x285   : > { %9741 = vmatprep.mubr.msk.bf16.mxu0 %vm10685_vm3, %v13950_v35 }
 0x286   : > { %v4965_v56 = vrot.slane %v4963_v48, 2 }
 0x287   : > { %9794 = vmatmul.mubr.bf16.gmra.mrb[204].mxu1 %v4943_v50 }
 0x288   : > { %9797 = vmatprep.mubr.msk.bf16.mxu1 %vm10685_vm3, %v13950_v35  ;;  %v4969_v30 = vor.u32 %v4968_v11, %v4965_v56 }
 0x28a   : > { %v4970_v13 = vsel %vm4908_vm15, %v4960_v63, %v4969_v30 }
 0x28c   : > { %9742 = vmatmul.mubr.bf16.vlgmr.msra.gmra.mrb[196].mxu0 %v4675_v2  ;;  %v4682_v2 = vrot.slane %v10561_v34, 2 }
 0x28d   : > { %9814 = vmatpush3.bf16.msra.mxu0 %v10549_v27  ;;  %9745 = vmatprep.mubr.msk.bf16.mxu0 %vm10685_vm3, %v13950_v35  ;;  %v10565_v27 = vld [vmem:[%s13872_s4 + $0x238] sm:$0xff]  }
 0x28e   : > { %9815 = vmatprep.subr.bf16.mxu0 %v13950_v35  ;;  %v4683_v57 = vsel %vm4440_vm14, %v4680_v19, %v4682_v2 }
 0x28f   : > { %9798 = vmatmul.mubr.bf16.gmra.mrb[208].mxu1 %v4952_v17  ;;  %v4684_v17 = vrot.slane %v10563_v24, 2 }
 0x290   : > { %9801 = vmatprep.mubr.msk.bf16.mxu1 %vm10685_vm3, %v13950_v35 }
 0x291   : > { %9816 = vmatpush3.bf16.msra.mxu0 %v10552_v40  ;;  %v4685_v12 = vsel %vm4440_vm14, %v4682_v2, %v4684_v17 }
 0x292   : > { %9817 = vmatprep.subr.bf16.mxu0 %v13950_v35 }
 0x294   : > { %9746 = vmatmul.mubr.bf16.gmra.mrb[200].mxu0 %v4677_v38 }
 0x295   : > { %9749 = vmatprep.mubr.msk.bf16.mxu0 %vm10685_vm3, %v13950_v35  ;;  %9818 = vmatpush3.bf16.msra.mxu0 %v10554_v5 }
 0x296   : > { %9819 = vmatprep.subr.bf16.mxu0 %v13950_v35 }
 0x297   : > { %9802 = vmatmul.mubr.bf16.gmra.mrb[212].mxu1 %v4961_v47 }
 0x298   : > { %9805 = vmatprep.mubr.msk.bf16.mxu1 %vm10685_vm3, %v13950_v35 }
 0x299   : > { %9820 = vmatpush3.bf16.msra.mxu0 %v10557_v15 }
 0x29a   : > { %9821 = vmatprep.subr.bf16.mxu0 %v13950_v35 }
 0x29c   : > { %9750 = vmatmul.mubr.bf16.gmra.mrb[204].mxu0 %v4679_v0 }
 0x29d   : > { %9753 = vmatprep.mubr.msk.bf16.mxu0 %vm10685_vm3, %v13950_v35  ;;  %9822 = vmatpush3.bf16.msra.mxu0 %v10560_v8 }
 0x29e   : > { %9823 = vmatprep.subr.bf16.mxu0 %v13950_v35 }
 0x29f   : > { %9806 = vmatmul.mubr.bf16.gmra.mrb[216].mxu1 %v4970_v13 }
 0x2a0   : > { %9809 = vmatprep.mubr.msk.bf16.mxu1 %vm10685_vm3, %v13950_v35 }
 0x2a1   : > { %9824 = vmatpush3.bf16.msra.mxu0 %v10562_v23 }
 0x2a2   : > { %v3704_v55 = vpop.f32.mrb[112].mxu1  ;;  %9825 = vmatprep.subr.bf16.mxu0 %v13950_v35 }
 0x2a3   : > { %v9523_v50 = vpop.f32.mrb[113].mxu1 }
 0x2a4   : > { %9754 = vmatmul.mubr.bf16.gmra.mrb[208].mxu0 %v4681_v43  ;;  %v3707_v36 = vpop.f32.mrb[114].mxu1 }
 0x2a5   : > { %9757 = vmatprep.mubr.msk.bf16.mxu0 %vm10685_vm3, %v13950_v35  ;;  %v9524_v6 = vpop.f32.mrb[115].mxu1  ;;  %9826 = vmatpush3.bf16.msra.mxu0 %v10564_v1 }
 0x2a6   : > { %9827 = vmatprep.subr.bf16.mxu0 %v13950_v35 }
 0x2a7   : > { %9810 = vmatmul.mubr.bf16.gmra.mrb[220].mxu1 %v4969_v30 }
 0x2a8   : > { %9873 = vmatprep.mubr.msk.bf16.mxu1 %vm10685_vm3, %v13950_v35 }
 0x2a9   : > { %9828 = vmatpush3.bf16.msra.mxu0 %v10565_v27 }
 0x2aa   : > { %v3712_v26 = vpop.f32.mrb[116].mxu1  ;;  %9901 = vmatprep.subr.bf16.mxu0 %v13950_v35 }
 0x2ab   : > { %v9527_v25 = vpop.f32.mrb[117].mxu1 }
 0x2ac   : > { %9758 = vmatmul.mubr.bf16.gmra.mrb[212].mxu0 %v4683_v57  ;;  %v3715_v40 = vpop.f32.mrb[118].mxu1 }
 0x2ad   : > { %9761 = vmatprep.mubr.msk.bf16.mxu0 %vm10685_vm3, %v13950_v35  ;;  %v9528_v4 = vpop.f32.mrb[119].mxu1 }
 0x2b2   : > { %v3720_v3 = vpop.f32.mrb[120].mxu1 }
 0x2b3   : > { %v9531_v5 = vpop.f32.mrb[121].mxu1 }
 0x2b4   : > { %9762 = vmatmul.mubr.bf16.gmra.mrb[216].mxu0 %v4685_v12  ;;  %v3723_v38 = vpop.f32.mrb[122].mxu1 }
 0x2b5   : > { %9765 = vmatprep.mubr.msk.bf16.mxu0 %vm10685_vm3, %v13950_v35  ;;  %v9532_v52 = vpop.f32.mrb[123].mxu1 }
 0x2b7   : > { %v3558_v63 = vpop.f32.mrb[112].mxu0 }
 0x2b8   : > { %v12796_v48 = vadd.f32 %v3704_v55, %v3558_v63  ;;  %v9479_v20 = vpop.f32.mrb[113].mxu0 }
 0x2b9   : > { %v3561_v15 = vpop.f32.mrb[114].mxu0 }
 0x2ba   : > { %v12798_v29 = vadd.f32 %v3707_v36, %v3561_v15  ;;  %v9480_v47 = vpop.f32.mrb[115].mxu0  ;;  %v3728_v56 = vpop.f32.mrb[124].mxu1 }
 0x2bb   : > { %v9535_v11 = vpop.f32.mrb[125].mxu1 }
 0x2bc   : > { %9766 = vmatmul.mubr.bf16.gmra.mrb[220].mxu0 %v4684_v17  ;;  %v3731_v8 = vpop.f32.mrb[126].mxu1 }
 0x2bd   : > { %9829 = vmatprep.mubr.msk.bf16.mxu0 %vm10685_vm3, %v13950_v35  ;;  %v9536_v0 = vpop.f32.mrb[127].mxu1 }
 0x2bf   : > { %v3566_v33 = vpop.f32.mrb[116].mxu0 }
 0x2c0   : > { %v12802_v30 = vadd.f32 %v3712_v26, %v3566_v33  ;;  %v9483_v23 = vpop.f32.mrb[117].mxu0 }
 0x2c1   : > { %v3569_v19 = vpop.f32.mrb[118].mxu0 }
 0x2c2   : > { %v12804_v13 = vadd.f32 %v3715_v40, %v3569_v19  ;;  %v9484_v1 = vpop.f32.mrb[119].mxu0  ;;  %v3736_v55 = vpop.f32.mrb[128].mxu1 }
 0x2c3   : > { %v9539_v43 = vpop.f32.mrb[129].mxu1 }
 0x2c4   : > { %9830 = vmatmul.mubr.bf16.vlgmr.msra.gmra.mrb[224].mxu0 %v12492_v18  ;;  %v3739_v50 = vpop.f32.mrb[130].mxu1 }
 0x2c5   : > { %9833 = vmatprep.mubr.msk.bf16.mxu0 %vm10685_vm3, %v13950_v35  ;;  %v9540_v34 = vpop.f32.mrb[131].mxu1 }
 0x2c7   : > { %v3574_v36 = vpop.f32.mrb[120].mxu0 }
 0x2c8   : > { %v12809_v6 = vadd.f32 %v3720_v3, %v3574_v36  ;;  %v9487_v27 = vpop.f32.mrb[121].mxu0 }
 0x2c9   : > { %v3577_v2 = vpop.f32.mrb[122].mxu0 }
 0x2ca   : > { %v12811_v26 = vadd.f32 %v3723_v38, %v3577_v2  ;;  %v9488_v57 = vpop.f32.mrb[123].mxu0  ;;  %v3744_v25 = vpop.f32.mrb[132].mxu1 }
 0x2cb   : > { %v9543_v24 = vpop.f32.mrb[133].mxu1 }
 0x2cc   : > { %9834 = vmatmul.mubr.bf16.gmra.mrb[228].mxu0 %v12495_v39  ;;  %v3747_v18 = vpop.f32.mrb[134].mxu1 }
 0x2cd   : > { %9837 = vmatprep.mubr.msk.bf16.mxu0 %vm10685_vm3, %v13950_v35  ;;  %v9544_v40 = vpop.f32.mrb[135].mxu1 }
 0x2cf   : > { %v3582_v4 = vpop.f32.mrb[124].mxu0 }
 0x2d0   : > { %v12816_v17 = vadd.f32 %v3728_v56, %v3582_v4  ;;  %v9491_v12 = vpop.f32.mrb[125].mxu0 }
 0x2d1   : > { %v3585_v3 = vpop.f32.mrb[126].mxu0 }
 0x2d2   : > { %v12818_v5 = vadd.f32 %v3731_v8, %v3585_v3  ;;  %v9492_v52 = vpop.f32.mrb[127].mxu0  ;;  %v3752_v38 = vpop.f32.mrb[136].mxu1 }
 0x2d3   : > { %v9547_v63 = vpop.f32.mrb[137].mxu1 }
 0x2d4   : > { %9838 = vmatmul.mubr.bf16.gmra.mrb[232].mxu0 %v12498_v46  ;;  %v3755_v39 = vpop.f32.mrb[138].mxu1 }
 0x2d5   : > { %9841 = vmatprep.mubr.msk.bf16.mxu0 %vm10685_vm3, %v13950_v35  ;;  %v9548_v20 = vpop.f32.mrb[139].mxu1 }
 0x2d7   : > { %v3590_v15 = vpop.f32.mrb[128].mxu0 }
 0x2d8   : > { %v12823_v47 = vadd.f32 %v3736_v55, %v3590_v15  ;;  %v9495_v11 = vpop.f32.mrb[129].mxu0 }
 0x2d9   : > { %v3593_v56 = vpop.f32.mrb[130].mxu0 }
 0x2da   : > { %v12825_v0 = vadd.f32 %v3739_v50, %v3593_v56  ;;  %v9496_v33 = vpop.f32.mrb[131].mxu0  ;;  %v4113_v8 = vpop.f32.mrb[140].mxu1 }
 0x2db   : > { %v9611_v23 = vpop.f32.mrb[141].mxu1 }
 0x2dc   : > { %9842 = vmatmul.mubr.bf16.gmra.mrb[236].mxu0 %v12501_v21  ;;  %v4116_v46 = vpop.f32.mrb[142].mxu1  ;;  %v13953_v23 = vrot.slane %v12458_v45, 3 }
 0x2dd   : > { %9845 = vmatprep.mubr.msk.bf16.mxu0 %vm10685_vm3, %v13950_v35  ;;  %v9612_v19 = vpop.f32.mrb[143].mxu1 }
 0x2df   : > { %v3598_v1 = vpop.f32.mrb[132].mxu0 }
 0x2e0   : > { %v12830_v43 = vadd.f32 %v3744_v25, %v3598_v1  ;;  %v9499_v34 = vpop.f32.mrb[133].mxu0 }
 0x2e1   : > { %v3601_v55 = vpop.f32.mrb[134].mxu0 }
 0x2e2   : > { %v12832_v36 = vadd.f32 %v3747_v18, %v3601_v55  ;;  %v9500_v27 = vpop.f32.mrb[135].mxu0  ;;  %v4121_v50 = vpop.f32.mrb[144].mxu1 }
 0x2e3   : > { %v9615_v2 = vpop.f32.mrb[145].mxu1 }
 0x2e4   : > { %9846 = vmatmul.mubr.bf16.gmra.mrb[240].mxu0 %v12504_v22  ;;  %v4124_v21 = vpop.f32.mrb[146].mxu1 }
 0x2e5   : > { %9849 = vmatprep.mubr.msk.bf16.mxu0 %vm10685_vm3, %v13950_v35  ;;  %v9616_v57 = vpop.f32.mrb[147].mxu1 }
 0x2e7   : > { %v3606_v24 = vpop.f32.mrb[136].mxu0 }
 0x2e8   : > { %v12837_v40 = vadd.f32 %v3752_v38, %v3606_v24  ;;  %v9503_v4 = vpop.f32.mrb[137].mxu0 }
 0x2e9   : > { %v3609_v25 = vpop.f32.mrb[138].mxu0 }
 0x2ea   : > { %v9504_v12 = vpop.f32.mrb[139].mxu0  ;;  %v4129_v3 = vpop.f32.mrb[148].mxu1 }
 0x2eb   : > { %v9619_v18 = vpop.f32.mrb[149].mxu1 }
 0x2ec   : > { %9850 = vmatmul.mubr.bf16.gmra.mrb[244].mxu0 %v12514_v53  ;;  %v4132_v22 = vpop.f32.mrb[150].mxu1 }
 0x2ed   : > { %9853 = vmatprep.mubr.msk.bf16.mxu0 %vm10685_vm3, %v13950_v35  ;;  %v9620_v52 = vpop.f32.mrb[151].mxu1 }
 0x2ef   : > { %v3881_v63 = vpop.f32.mrb[140].mxu0 }
 0x2f0   : > { %v3935_v39 = vadd.f32 %v3881_v63, %v12796_v48  ;;  %v9567_v20 = vpop.f32.mrb[141].mxu0 }
 0x2f1   : > { %v3884_v15 = vpop.f32.mrb[142].mxu0 }
 0x2f2   : > { %v3936_v38 = vadd.f32 %v3884_v15, %v12798_v29  ;;  %v9568_v11 = vpop.f32.mrb[143].mxu0  ;;  %v12844_v56 = vadd.f32 %v4113_v8, %v3935_v39  ;;  %v4137_v33 = vpop.f32.mrb[152].mxu1 }
 0x2f3   : > { %v9623_v53 = vpop.f32.mrb[153].mxu1 }
 0x2f4   : > { %9854 = vmatmul.mubr.bf16.gmra.mrb[248].mxu0 %v13953_v23  ;;  %v12848_v19 = vadd.f32 %v4116_v46, %v3936_v38  ;;  %v4140_v1 = vpop.f32.mrb[154].mxu1 }
 0x2f5   : > { %9917 = vmatprep.mubr.msk.bf16.mxu0 %vm10685_vm3, %v13950_v35  ;;  %v9624_v34 = vpop.f32.mrb[155].mxu1 }
 0x2f7   : > { %v3889_v48 = vpop.f32.mrb[144].mxu0 }
 0x2f8   : > { %v3937_v55 = vadd.f32 %v3889_v48, %v12802_v30  ;;  %v9571_v27 = vpop.f32.mrb[145].mxu0 }
 0x2f9   : > { %v3892_v29 = vpop.f32.mrb[146].mxu0 }
 0x2fa   : > { %v3938_v8 = vadd.f32 %v3892_v29, %v12804_v13  ;;  %v9572_v2 = vpop.f32.mrb[147].mxu0  ;;  %v12854_v57 = vadd.f32 %v4121_v50, %v3937_v55  ;;  %v4145_v45 = vpop.f32.mrb[156].mxu1 }
 0x2fb   : > { %v9627_v24 = vpop.f32.mrb[157].mxu1 }
 0x2fc   : > { %v12856_v4 = vadd.f32 %v4124_v21, %v3938_v8  ;;  %v4148_v46 = vpop.f32.mrb[158].mxu1 }
 0x2fd   : > { %v9628_v25 = vpop.f32.mrb[159].mxu1 }
 0x2ff   : > { %v3897_v12 = vpop.f32.mrb[148].mxu0 }
 0x300   : > { %v3939_v18 = vadd.f32 %v3897_v12, %v12809_v6  ;;  %v9575_v52 = vpop.f32.mrb[149].mxu0 }
 0x301   : > { %v3900_v63 = vpop.f32.mrb[150].mxu0 }
 0x302   : > { %v3940_v30 = vadd.f32 %v3900_v63, %v12811_v26  ;;  %v9576_v39 = vpop.f32.mrb[151].mxu0  ;;  %v12860_v20 = vadd.f32 %v4129_v3, %v3939_v18  ;;  %v4153_v13 = vpop.f32.mrb[160].mxu1  ;;  %v10567_v26 = vld [vmem:[%s13874_s6 + $0x40] sm:$0xff]  }
 0x303   : > { %v9631_v15 = vpop.f32.mrb[161].mxu1  ;;  %9858 = vmatpush3.bf16.msra.mxu1 %v10567_v26 }
 0x304   : > { %v12862_v50 = vadd.f32 %v4132_v22, %v3940_v30  ;;  %v4156_v38 = vpop.f32.mrb[162].mxu1  ;;  %9859 = vmatprep.subr.bf16.mxu1 %v13950_v35 }
 0x305   : > { %v9632_v11 = vpop.f32.mrb[163].mxu1 }
 0x307   : > { %v3905_v21 = vpop.f32.mrb[152].mxu0 }
 0x308   : > { %v3941_v23 = vadd.f32 %v3905_v21, %v12816_v17  ;;  %v9579_v53 = vpop.f32.mrb[153].mxu0 }
 0x309   : > { %v3908_v34 = vpop.f32.mrb[154].mxu0 }
 0x30a   : > { %v3942_v6 = vadd.f32 %v3908_v34, %v12818_v5  ;;  %v9580_v48 = vpop.f32.mrb[155].mxu0  ;;  %v12866_v55 = vadd.f32 %v4137_v33, %v3941_v23  ;;  %v4161_v3 = vpop.f32.mrb[164].mxu1  ;;  %v10568_v33 = vld [vmem:[%s13874_s6 + $0x48] sm:$0xff]  }
 0x30b   : > { %v9635_v27 = vpop.f32.mrb[165].mxu1  ;;  %9860 = vmatpush3.bf16.msra.mxu1 %v10568_v33 }
 0x30c   : > { %v12871_v22 = vadd.f32 %v4140_v1, %v3942_v6  ;;  %v4164_v29 = vpop.f32.mrb[166].mxu1  ;;  %v10569_v1 = vld [vmem:[%s13874_s6] sm:$0xff]   ;;  %9861 = vmatprep.subr.bf16.mxu1 %v13950_v35 }
 0x30d   : > { %v9636_v17 = vpop.f32.mrb[167].mxu1  ;;  %9902 = vmatpush3.bf16.msra.mxu0 %v10569_v1  ;;  %v10570_v1 = vld [vmem:[%s13874_s6 + $0x50] sm:$0xff]  }
 0x30e   : > { %9903 = vmatprep.subr.bf16.mxu0 %v13950_v35 }
 0x30f   : > { %v3913_v8 = vpop.f32.mrb[156].mxu0  ;;  %9862 = vmatpush3.bf16.msra.mxu1 %v10570_v1 }
 0x310   : > { %v3943_v2 = vadd.f32 %v3913_v8, %v12823_v47  ;;  %v9583_v5 = vpop.f32.mrb[157].mxu0  ;;  %9863 = vmatprep.subr.bf16.mxu1 %v13950_v35 }
 0x311   : > { %v3916_v24 = vpop.f32.mrb[158].mxu0 }
 0x312   : > { %v3944_v25 = vadd.f32 %v3916_v24, %v12825_v0  ;;  %v9584_v12 = vpop.f32.mrb[159].mxu0  ;;  %v12879_v18 = vadd.f32 %v4145_v45, %v3943_v2  ;;  %v4543_v52 = vpop.f32.mrb[168].mxu1 }
 0x313   : > { %v9699_v47 = vpop.f32.mrb[169].mxu1 }
 0x314   : > { %v12885_v63 = vadd.f32 %v4148_v46, %v3944_v25  ;;  %v4546_v30 = vpop.f32.mrb[170].mxu1 }
 0x315   : > { %v9700_v39 = vpop.f32.mrb[171].mxu1 }
 0x317   : > { %v3921_v0 = vpop.f32.mrb[160].mxu0 }
 0x318   : > { %v3945_v45 = vadd.f32 %v3921_v0, %v12830_v43  ;;  %v9587_v15 = vpop.f32.mrb[161].mxu0 }
 0x319   : > { %v3924_v11 = vpop.f32.mrb[162].mxu0 }
 0x31a   : > { %v3946_v21 = vadd.f32 %v3924_v11, %v12832_v36  ;;  %v9588_v23 = vpop.f32.mrb[163].mxu0  ;;  %v12890_v53 = vadd.f32 %v4153_v13, %v3945_v45  ;;  %v4551_v34 = vpop.f32.mrb[172].mxu1  ;;  %v10573_v45 = vld [vmem:[%s13874_s6 + $0x58] sm:$0xff]  }
 0x31b   : > { %v9703_v6 = vpop.f32.mrb[173].mxu1  ;;  %9864 = vmatpush3.bf16.msra.mxu1 %v10573_v45 }
 0x31c   : > { %v12892_v48 = vadd.f32 %v4156_v38, %v3946_v21  ;;  %v4554_v46 = vpop.f32.mrb[174].mxu1  ;;  %9865 = vmatprep.subr.bf16.mxu1 %v13950_v35 }
 0x31d   : > { %v9704_v26 = vpop.f32.mrb[175].mxu1 }
 0x31f   : > { %v3929_v27 = vpop.f32.mrb[164].mxu0 }
 0x320   : > { %v3947_v29 = vadd.f32 %v3929_v27, %v12837_v40  ;;  %v9591_v17 = vpop.f32.mrb[165].mxu0  ;;  %v10571_v40 = vld [vmem:[%s13874_s6 + $0x8] sm:$0xff]  }
 0x321   : > { %v3932_v8 = vpop.f32.mrb[166].mxu0  ;;  %9904 = vmatpush3.bf16.msra.mxu0 %v10571_v40  ;;  %v10574_v17 = vld [vmem:[%s13874_s6 + $0x18] sm:$0xff]  }
 0x322   : > { %v9592_v2 = vpop.f32.mrb[167].mxu0  ;;  %v12895_v43 = vadd.f32 %v4161_v3, %v3947_v29  ;;  %v4559_v5 = vpop.f32.mrb[176].mxu1  ;;  %9905 = vmatprep.subr.bf16.mxu0 %v13950_v35 }
 0x323   : > { %v9707_v33 = vpop.f32.mrb[177].mxu1 }
 0x324   : > { %v4562_v36 = vpop.f32.mrb[178].mxu1 }
 0x325   : > { %v9708_v24 = vpop.f32.mrb[179].mxu1 }
 0x327   : > { %v4352_v13 = vpop.f32.mrb[168].mxu0 }
 0x328   : > { %v4406_v25 = vadd.f32 %v4352_v13, %v12844_v56  ;;  %v9655_v12 = vpop.f32.mrb[169].mxu0  ;;  %v10572_v56 = vld [vmem:[%s13874_s6 + $0x10] sm:$0xff]  }
 0x329   : > { %v4355_v38 = vpop.f32.mrb[170].mxu0  ;;  %9906 = vmatpush3.bf16.msra.mxu0 %v10572_v56  ;;  %v10578_v56 = vld [vmem:[%s13874_s6 + $0x68] sm:$0xff]  }
 0x32a   : > { %v4407_v3 = vadd.f32 %v4355_v38, %v12848_v19  ;;  %v9656_v47 = vpop.f32.mrb[171].mxu0  ;;  %v12905_v39 = vadd.f32 %v4543_v52, %v4406_v25  ;;  %v12907_v0 = vpop.f32.mrb[180].mxu1  ;;  %9907 = vmatprep.subr.bf16.mxu0 %v13950_v35  ;;  %v10577_v38 = vld [vmem:[%s13874_s6 + $0x28] sm:$0xff]  }
 0x32b   : > { %v9711_v15 = vpop.f32.mrb[181].mxu1 }
 0x32c   : > { %v12915_v11 = vadd.f32 %v4546_v30, %v4407_v3  ;;  %v4570_v19 = vpop.f32.mrb[182].mxu1  ;;  %v10579_v15 = vld [vmem:[%s13874_s6 + $0x30] sm:$0xff]  }
 0x32d   : > { %v9712_v52 = vpop.f32.mrb[183].mxu1  ;;  %9908 = vmatpush3.bf16.msra.mxu0 %v10574_v17 }
 0x32e   : > { %9909 = vmatprep.subr.bf16.mxu0 %v13950_v35 }
 0x32f   : > { %v4360_v21 = vpop.f32.mrb[172].mxu0 }
 0x330   : > { %v4408_v23 = vadd.f32 %v4360_v21, %v12854_v57  ;;  %v9659_v6 = vpop.f32.mrb[173].mxu0  ;;  %v10575_v57 = vld [vmem:[%s13874_s6 + $0x20] sm:$0xff]  }
 0x331   : > { %v4363_v26 = vpop.f32.mrb[174].mxu0  ;;  %9910 = vmatpush3.bf16.msra.mxu0 %v10575_v57 }
 0x332   : > { %v4409_v30 = vadd.f32 %v4363_v26, %v12856_v4  ;;  %v9660_v27 = vpop.f32.mrb[175].mxu0  ;;  %v12923_v29 = vadd.f32 %v4551_v34, %v4408_v23  ;;  %v4575_v8 = vpop.f32.mrb[184].mxu1  ;;  %v10576_v4 = vld [vmem:[%s13874_s6 + $0x60] sm:$0xff]   ;;  %9911 = vmatprep.subr.bf16.mxu0 %v13950_v35 }
 0x333   : > { %v9715_v2 = vpop.f32.mrb[185].mxu1  ;;  %9866 = vmatpush3.bf16.msra.mxu1 %v10576_v4  ;;  %v10580_v27 = vld [vmem:[%s13874_s6 + $0x38] sm:$0xff]  }
 0x334   : > { %v12928_v33 = vadd.f32 %v4554_v46, %v4409_v30  ;;  %v4578_v24 = vpop.f32.mrb[186].mxu1  ;;  %9867 = vmatprep.subr.bf16.mxu1 %v13950_v35 }
 0x335   : > { %v9716_v34 = vpop.f32.mrb[187].mxu1  ;;  %9912 = vmatpush3.bf16.msra.mxu0 %v10577_v38 }
 0x336   : > { %9913 = vmatprep.subr.bf16.mxu0 %v13950_v35 }
 0x337   : > { %v4368_v13 = vpop.f32.mrb[176].mxu0  ;;  %9868 = vmatpush3.bf16.msra.mxu1 %v10578_v56 }
 0x338   : > { %v4410_v46 = vadd.f32 %v4368_v13, %v12860_v20  ;;  %v9663_v25 = vpop.f32.mrb[177].mxu0  ;;  %9869 = vmatprep.subr.bf16.mxu1 %v13950_v35 }
 0x339   : > { %v4371_v12 = vpop.f32.mrb[178].mxu0  ;;  %9914 = vmatpush3.bf16.msra.mxu0 %v10579_v15 }
 0x33a   : > { %v4411_v1 = vadd.f32 %v4371_v12, %v12862_v50  ;;  %v9664_v40 = vpop.f32.mrb[179].mxu0  ;;  %v12944_v3 = vadd.f32 %v4559_v5, %v4410_v46  ;;  %v4583_v47 = vpop.f32.mrb[188].mxu1  ;;  %9915 = vmatprep.subr.bf16.mxu0 %v13950_v35 }
 0x33b   : > { %v9719_v20 = vpop.f32.mrb[189].mxu1 }
 0x33c   : > { %v12949_v45 = vadd.f32 %v4562_v36, %v4411_v1  ;;  %v4586_v52 = vpop.f32.mrb[190].mxu1  ;;  %v10583_v1 = vld [vmem:[%s13874_s6 + $0x78] sm:$0xff]  }
 0x33d   : > { %v9720_v50 = vpop.f32.mrb[191].mxu1  ;;  %9916 = vmatpush3.bf16.msra.mxu0 %v10580_v27 }
 0x33e   : > { %9989 = vmatprep.subr.bf16.mxu0 %v13950_v35 }
 0x33f   : > { %v4376_v5 = vpop.f32.mrb[180].mxu0 }
 0x340   : > { %v4412_v21 = vadd.f32 %v4376_v5, %v12866_v55  ;;  %v9667_v23 = vpop.f32.mrb[181].mxu0  ;;  %v10581_v55 = vld [vmem:[%s13874_s6 + $0x70] sm:$0xff]  }
 0x341   : > { %v4379_v6 = vpop.f32.mrb[182].mxu0  ;;  %9870 = vmatpush3.bf16.msra.mxu1 %v10581_v55 }
 0x342   : > { %v4413_v36 = vadd.f32 %v4379_v6, %v12871_v22  ;;  %v9668_v26 = vpop.f32.mrb[183].mxu0  ;;  %v12960_v30 = vadd.f32 %v12907_v0, %v4412_v21  ;;  %v4591_v17 = vpop.f32.mrb[192].mxu1  ;;  %9871 = vmatprep.subr.bf16.mxu1 %v13950_v35 }
 0x343   : > { %v9723_v2 = vpop.f32.mrb[193].mxu1 }
 0x344   : > { %v12965_v57 = vadd.f32 %v4570_v19, %v4413_v36  ;;  %v4594_v4 = vpop.f32.mrb[194].mxu1 }
 0x345   : > { %v9724_v22 = vpop.f32.mrb[195].mxu1  ;;  %9872 = vmatpush3.bf16.msra.mxu1 %v10583_v1 }
 0x346   : > { %9945 = vmatprep.subr.bf16.mxu1 %v13950_v35 }
 0x347   : > { %v4384_v0 = vpop.f32.mrb[184].mxu0 }
 0x348   : > { %v4414_v34 = vadd.f32 %v4384_v0, %v12879_v18  ;;  %v9671_v13 = vpop.f32.mrb[185].mxu0 }
 0x349   : > { %v4387_v46 = vpop.f32.mrb[186].mxu0 }
 0x34a   : > { %v4415_v19 = vadd.f32 %v4387_v46, %v12885_v63  ;;  %v9672_v25 = vpop.f32.mrb[187].mxu0  ;;  %v12974_v12 = vadd.f32 %v4575_v8, %v4414_v34  ;;  %v5060_v38 = vpop.f32.mrb[196].mxu1 }
 0x34b   : > { %v9787_v40 = vpop.f32.mrb[197].mxu1 }
 0x34c   : > { %v12979_v56 = vadd.f32 %v4578_v24, %v4415_v19  ;;  %v5063_v20 = vpop.f32.mrb[198].mxu1 }
 0x34d   : > { %v9788_v15 = vpop.f32.mrb[199].mxu1 }
 0x34f   : > { %v4392_v18 = vpop.f32.mrb[188].mxu0 }
 0x350   : > { %v4416_v50 = vadd.f32 %v4392_v18, %v12890_v53  ;;  %v9675_v63 = vpop.f32.mrb[189].mxu0 }
 0x351   : > { %v4395_v5 = vpop.f32.mrb[190].mxu0 }
 0x352   : > { %v4417_v8 = vadd.f32 %v4395_v5, %v12892_v48  ;;  %v9676_v21 = vpop.f32.mrb[191].mxu0  ;;  %v12984_v23 = vadd.f32 %v4583_v47, %v4416_v50  ;;  %v5068_v6 = vpop.f32.mrb[200].mxu1 }
 0x353   : > { %v9791_v36 = vpop.f32.mrb[201].mxu1 }
 0x354   : > { %v12986_v26 = vadd.f32 %v4586_v52, %v4417_v8  ;;  %v5071_v24 = vpop.f32.mrb[202].mxu1 }
 0x355   : > { %v9792_v27 = vpop.f32.mrb[203].mxu1 }
 0x357   : > { %v4400_v2 = vpop.f32.mrb[192].mxu0 }
 0x358   : > { %v4418_v55 = vadd.f32 %v4400_v2, %v12895_v43  ;;  %v9679_v4 = vpop.f32.mrb[193].mxu0 }
 0x359   : > { %v4403_v22 = vpop.f32.mrb[194].mxu0 }
 0x35a   : > { %v9680_v0 = vpop.f32.mrb[195].mxu0  ;;  %v12989_v53 = vadd.f32 %v4591_v17, %v4418_v55  ;;  %v5076_v34 = vpop.f32.mrb[204].mxu1 }
 0x35b   : > { %v9795_v13 = vpop.f32.mrb[205].mxu1 }
 0x35c   : > { %v5079_v48 = vpop.f32.mrb[206].mxu1 }
 0x35d   : > { %v9796_v46 = vpop.f32.mrb[207].mxu1 }
 0x35f   : > { %v4775_v47 = vpop.f32.mrb[196].mxu0 }
 0x360   : > { %v4829_v19 = vadd.f32 %v4775_v47, %v12905_v39  ;;  %v9743_v25 = vpop.f32.mrb[197].mxu0 }
 0x361   : > { %v4778_v52 = vpop.f32.mrb[198].mxu0 }
 0x362   : > { %v4830_v1 = vadd.f32 %v4778_v52, %v12915_v11  ;;  %v9744_v40 = vpop.f32.mrb[199].mxu0  ;;  %v12993_v15 = vadd.f32 %v5060_v38, %v4829_v19  ;;  %v5084_v43 = vpop.f32.mrb[208].mxu1 }
 0x363   : > { %v9799_v18 = vpop.f32.mrb[209].mxu1 }
 0x364   : > { %v12995_v50 = vadd.f32 %v5063_v20, %v4830_v1  ;;  %v5087_v17 = vpop.f32.mrb[210].mxu1 }
 0x365   : > { %v9800_v63 = vpop.f32.mrb[211].mxu1 }
 0x367   : > { %v4783_v5 = vpop.f32.mrb[200].mxu0 }
 0x368   : > { %v4831_v8 = vadd.f32 %v4783_v5, %v12923_v29  ;;  %v9747_v21 = vpop.f32.mrb[201].mxu0 }
 0x369   : > { %v4786_v36 = vpop.f32.mrb[202].mxu0 }
 0x36a   : > { %v4832_v39 = vadd.f32 %v4786_v36, %v12928_v33  ;;  %v9748_v27 = vpop.f32.mrb[203].mxu0  ;;  %v12999_v2 = vadd.f32 %v5068_v6, %v4831_v8  ;;  %v5092_v11 = vpop.f32.mrb[212].mxu1 }
 0x36b   : > { %v9803_v55 = vpop.f32.mrb[213].mxu1 }
 0x36c   : > { %v13001_v38 = vadd.f32 %v5071_v24, %v4832_v39  ;;  %v5095_v4 = vpop.f32.mrb[214].mxu1 }
 0x36d   : > { %v9804_v22 = vpop.f32.mrb[215].mxu1 }
 0x36f   : > { %v4791_v20 = vpop.f32.mrb[204].mxu0 }
 0x370   : > { %v4833_v0 = vadd.f32 %v4791_v20, %v12944_v3  ;;  %v9751_v13 = vpop.f32.mrb[205].mxu0 }
 0x371   : > { %v4794_v46 = vpop.f32.mrb[206].mxu0 }
 0x372   : > { %v4834_v29 = vadd.f32 %v4794_v46, %v12949_v45  ;;  %v9752_v47 = vpop.f32.mrb[207].mxu0  ;;  %v13005_v19 = vadd.f32 %v5076_v34, %v4833_v0  ;;  %v5100_v33 = vpop.f32.mrb[216].mxu1 }
 0x373   : > { %v9807_v25 = vpop.f32.mrb[217].mxu1 }
 0x374   : > { %v13007_v6 = vadd.f32 %v5079_v48, %v4834_v29  ;;  %v5103_v52 = vpop.f32.mrb[218].mxu1 }
 0x375   : > { %v9808_v1 = vpop.f32.mrb[219].mxu1 }
 0x377   : > { %v4799_v24 = vpop.f32.mrb[208].mxu0 }
 0x378   : > { %v4835_v40 = vadd.f32 %v4799_v24, %v12960_v30  ;;  %v9755_v18 = vpop.f32.mrb[209].mxu0 }
 0x379   : > { %v4802_v63 = vpop.f32.mrb[210].mxu0 }
 0x37a   : > { %v4836_v3 = vadd.f32 %v4802_v63, %v12965_v57  ;;  %v9756_v5 = vpop.f32.mrb[211].mxu0  ;;  %v13011_v8 = vadd.f32 %v5084_v43, %v4835_v40  ;;  %v5108_v45 = vpop.f32.mrb[220].mxu1 }
 0x37b   : > { %v9811_v34 = vpop.f32.mrb[221].mxu1 }
 0x37c   : > { %v13013_v21 = vadd.f32 %v5087_v17, %v4836_v3  ;;  %v5111_v36 = vpop.f32.mrb[222].mxu1 }
 0x37d   : > { %v9812_v39 = vpop.f32.mrb[223].mxu1 }
 0x37f   : > { %v4807_v48 = vpop.f32.mrb[212].mxu0 }
 0x380   : > { %v4837_v27 = vadd.f32 %v4807_v48, %v12974_v12  ;;  %v9759_v55 = vpop.f32.mrb[213].mxu0 }
 0x381   : > { %v4810_v22 = vpop.f32.mrb[214].mxu0 }
 0x382   : > { %v4838_v30 = vadd.f32 %v4810_v22, %v12979_v56  ;;  %v9760_v20 = vpop.f32.mrb[215].mxu0  ;;  %v13017_v0 = vadd.f32 %v5092_v11, %v4837_v27 }
 0x384   : > { %v13019_v57 = vadd.f32 %v5095_v4, %v4838_v30 }
 0x387   : > { %v4815_v43 = vpop.f32.mrb[216].mxu0 }
 0x388   : > { %v4839_v13 = vadd.f32 %v4815_v43, %v12984_v23  ;;  %v9763_v17 = vpop.f32.mrb[217].mxu0  ;;  %v13033_v23 = vld [vmem:[%s13873_s5] ss:$0 sm:$0xff] }
 0x389   : > { %v4818_v46 = vpop.f32.mrb[218].mxu0 }
 0x38a   : > { %v4840_v29 = vadd.f32 %v4818_v46, %v12986_v26  ;;  %v9764_v47 = vpop.f32.mrb[219].mxu0  ;;  %v13023_v25 = vadd.f32 %v5100_v33, %v4839_v13 }
 0x38c   : > { %v13025_v12 = vadd.f32 %v5103_v52, %v4840_v29 }
 0x38f   : > { %v4823_v1 = vpop.f32.mrb[220].mxu0 }
 0x390   : > { %v4841_v56 = vadd.f32 %v4823_v1, %v12989_v53  ;;  %v9767_v24 = vpop.f32.mrb[221].mxu0 }
 0x391   : > { %v4826_v11 = vpop.f32.mrb[222].mxu0 }
 0x392   : > { %v13028_v40 = vadd.f32 %v5108_v45, %v4841_v56  ;;  %v9768_v4 = vpop.f32.mrb[223].mxu0  ;;  %v5561_v56 = vld [vmem:[#allocation3 + $0x4] sm:$0xe] }
 0x397   : > { %v5251_v18 = vpop.f32.mrb[224].mxu0 }
 0x398   : > { %v5305_v26 = vadd.f32 %v5251_v18, %v12993_v15  ;;  %v9831_v33 = vpop.f32.mrb[225].mxu0 }
 0x399   : > { %v5254_v63 = vpop.f32.mrb[226].mxu0 }
 0x39a   : > { %v5325_v52 = vadd.f32 %v13033_v23, %v5305_v26  ;;  %v5306_v3 = vadd.f32 %v5254_v63, %v12995_v50  ;;  %v9832_v53 = vpop.f32.mrb[227].mxu0 }
 0x39c   : > { %v5338_v5 = vmax.f32 %v5325_v52, 0.0  ;;  %v5326_v45 = vadd.f32 %v13033_v23, %v5306_v3 }
 0x39e   : > { %v5351_v34 = vmul.f32 %v5338_v5, %v12079_v49  ;;  %v5339_v36 = vmax.f32 %v5326_v45, 0.0 }
 0x39f   : > { %v5259_v39 = vpop.f32.mrb[228].mxu0 }
 0x3a0   : > { %v8666_v48 = vpack.c.bf16 %v5351_v34, %v5351_v34  ;;  %v5352_v27 = vmul.f32 %v5339_v36, %v12085_v42  ;;  %v5307_v55 = vadd.f32 %v5259_v39, %v12999_v2  ;;  %v9835_v15 = vpop.f32.mrb[229].mxu0 }
 0x3a1   : > { %v5262_v22 = vpop.f32.mrb[230].mxu0 }
 0x3a2   : > { %v5421_v30 = vshrl.u32 %v8666_v48, 16  ;;  %v5424_v20 = vshll.u32 %v8666_v48, 16  ;;  %v8667_v43 = vpack.c.bf16 %v5352_v27, %v5352_v27  ;;  %v5327_v50 = vadd.f32 %v13033_v23, %v5307_v55  ;;  %v9836_v13 = vpop.f32.mrb[231].mxu0 }
 0x3a3   : > { %v5308_v17 = vadd.f32 %v5262_v22, %v13001_v38 }
 0x3a4   : > { %v5423_v46 = vrot.slane %v5421_v30, 6  ;;  %v5426_v29 = vrot.slane %v5424_v20, 7  ;;  %v5430_v47 = vshrl.u32 %v8667_v43, 16  ;;  %v5433_v1 = vshll.u32 %v8667_v43, 16 }
 0x3a5   : > { %v5340_v24 = vmax.f32 %v5327_v50, 0.0  ;;  %v5328_v11 = vadd.f32 %v13033_v23, %v5308_v17 }
 0x3a6   : > { %v5427_v4 = vor.u32 %v5426_v29, %v5423_v46  ;;  %v5432_v2 = vrot.slane %v5430_v47, 6  ;;  %v5435_v18 = vrot.slane %v5433_v1, 7  ;;  %v5578_v29 = vld [vmem:[#allocation3] sm:$0xf] }
 0x3a7   : > { %v5353_v26 = vmul.f32 %v5340_v24, %v12089_v9  ;;  %v5341_v33 = vmax.f32 %v5328_v11, 0.0  ;;  %v5267_v63 = vpop.f32.mrb[232].mxu0 }
 0x3a8   : > { %v5428_v52 = vrot.slane %v5427_v4, 4  ;;  %v5562_v3 = vsel %vm12097_vm8, %v5427_v4, %v5561_v56  ;;  %v5436_v38 = vor.u32 %v5435_v18, %v5432_v2  ;;  %v5309_v53 = vadd.f32 %v5267_v63, %v13005_v19  ;;  %v9839_v5 = vpop.f32.mrb[233].mxu0 }
 0x3a9   : > { %5563 = vst [vmem:[#allocation3 + $0x4] sm:$0xe] %v5562_v3  ;;  %v8668_v45 = vpack.c.bf16 %v5353_v26, %v5353_v26  ;;  %v5354_v34 = vmul.f32 %v5341_v33, %v12111_v41  ;;  %v5270_v36 = vpop.f32.mrb[234].mxu0  ;;  %v10589_v33 = vld [vmem:[%s13874_s6 + $0xc0] sm:$0xff]  }
 0x3aa   : > { %v5437_v39 = vsel %vm12104_vm9, %v5428_v52, %v5436_v38  ;;  %v5329_v48 = vadd.f32 %v13033_v23, %v5309_v53  ;;  %v5310_v27 = vadd.f32 %v5270_v36, %v13007_v6  ;;  %v9840_v55 = vpop.f32.mrb[235].mxu0  ;;  %v5438_v47 = vrot.slane %v5436_v38, 4 }
 0x3ab   : > { %5564 = vst [vmem:[#allocation3 + $0x8] sm:$0xf] %v5437_v39  ;;  %v5440_v32 = vshrl.u32 %v8668_v45, 16  ;;  %v5443_v15 = vshll.u32 %v8668_v45, 16  ;;  %v8669_v22 = vpack.c.bf16 %v5354_v34, %v5354_v34 }
 0x3ac   : > { %v5342_v30 = vmax.f32 %v5329_v48, 0.0  ;;  %v5330_v19 = vadd.f32 %v13033_v23, %v5310_v27  ;;  %v10591_v27 = vld [vmem:[%s13874_s6 + $0xc8] sm:$0xff]  }
 0x3ad   : > { %v5442_v20 = vrot.slane %v5440_v32, 6  ;;  %v5445_v43 = vrot.slane %v5443_v15, 7  ;;  %v5450_v50 = vshrl.u32 %v8669_v22, 16  ;;  %v5453_v13 = vshll.u32 %v8669_v22, 16 }
 0x3ae   : > { %v5355_v17 = vmul.f32 %v5342_v30, %v12122_v59  ;;  %v5343_v46 = vmax.f32 %v5330_v19, 0.0 }
 0x3af   : > { %v5446_v1 = vor.u32 %v5445_v43, %v5442_v20  ;;  %v5452_v56 = vrot.slane %v5450_v50, 6  ;;  %v5455_v6 = vrot.slane %v5453_v13, 7  ;;  %v5275_v24 = vpop.f32.mrb[236].mxu0 }
 0x3b0   : > { %v8670_v11 = vpack.c.bf16 %v5355_v17, %v5355_v17  ;;  %v5356_v4 = vmul.f32 %v5343_v46, %v12124_v58  ;;  %v5311_v2 = vadd.f32 %v5275_v24, %v13011_v8  ;;  %v9843_v18 = vpop.f32.mrb[237].mxu0  ;;  %v13058_v26 = vld [vmem:[#allocation3 + $0x4] sm:$0xf] }
 0x3b1   : > { %v5447_v63 = vsel %vm12104_vm9, %v5438_v47, %v5446_v1  ;;  %v5448_v52 = vrot.slane %v5446_v1, 4  ;;  %v5456_v3 = vor.u32 %v5455_v6, %v5452_v56  ;;  %v5278_v38 = vpop.f32.mrb[238].mxu0  ;;  %v13066_v53 = vcombine.low %v5578_v29, %v13058_v26 }
 0x3b2   : > { %5565 = vst [vmem:[#allocation3 + $0xc] sm:$0xf] %v5447_v63  ;;  %v5460_v5 = vshrl.u32 %v8670_v11, 16  ;;  %v5463_v45 = vshll.u32 %v8670_v11, 16  ;;  %v8671_v8 = vpack.c.bf16 %v5356_v4, %v5356_v4  ;;  %v5331_v34 = vadd.f32 %v13033_v23, %v5311_v2  ;;  %v9844_v36 = vpop.f32.mrb[239].mxu0  ;;  %v10593_v11 = vld [vmem:[%s13874_s6 + $0xd0] sm:$0xff]  }
 0x3b3   : > { %v5457_v39 = vsel %vm12104_vm9, %v5448_v52, %v5456_v3  ;;  %v5312_v48 = vadd.f32 %v5278_v38, %v13013_v21  ;;  %9918 = vmatmul.mubr.bf16.vlgmr.msra.gmra.mrb[252].mxu0 %v13066_v53  ;;  %v5458_v30 = vrot.slane %v5456_v3, 4  ;;  %v5661_v13 = vshll.u32 %v13066_v53, 16 }
 0x3b4   : > { %5566 = vst [vmem:[#allocation3 + $0x10] sm:$0xf] %v5457_v39  ;;  %v5462_v55 = vrot.slane %v5460_v5, 6  ;;  %v5465_v32 = vrot.slane %v5463_v45, 7  ;;  %v5470_v15 = vshrl.u32 %v8671_v8, 16  ;;  %v5473_v22 = vshll.u32 %v8671_v8, 16  ;;  %9921 = vmatprep.mubr.msk.bf16.mxu0 %vm10685_vm3, %v13950_v35  ;;  %9990 = vmatpush3.bf16.msra.mxu0 %v10589_v33 }
 0x3b5   : > { %v5344_v19 = vmax.f32 %v5331_v34, 0.0  ;;  %v5332_v20 = vadd.f32 %v13033_v23, %v5312_v48  ;;  %9991 = vmatprep.subr.bf16.mxu0 %v13950_v35  ;;  %v5663_v38 = vrot.slane %v5661_v13, 1  ;;  %v5659_v48 = vshrl.u32 %v13066_v53, 16  ;;  %v10585_v53 = vld [vmem:[%s13874_s6 + $0x80] sm:$0xff]  }
 0x3b6   : > { %v5466_v21 = vor.u32 %v5465_v32, %v5462_v55  ;;  %v5472_v43 = vrot.slane %v5470_v15, 6  ;;  %v5475_v50 = vrot.slane %v5473_v22, 7 }
 0x3b7   : > { %v5357_v17 = vmul.f32 %v5344_v19, %v12159_v54  ;;  %v5345_v46 = vmax.f32 %v5332_v20, 0.0  ;;  %v5283_v29 = vpop.f32.mrb[240].mxu0  ;;  %v5664_v19 = vor.u32 %v5663_v38, %v5659_v48  ;;  %v10587_v38 = vld [vmem:[%s13874_s6 + $0x88] sm:$0xff]  }
 0x3b8   : > { %v5467_v47 = vsel %vm12104_vm9, %v5458_v30, %v5466_v21  ;;  %v5468_v1 = vrot.slane %v5466_v21, 4  ;;  %v5476_v56 = vor.u32 %v5475_v50, %v5472_v43  ;;  %v5313_v6 = vadd.f32 %v5283_v29, %v13017_v0  ;;  %v9847_v24 = vpop.f32.mrb[241].mxu0  ;;  %9992 = vmatpush3.bf16.msra.mxu0 %v10591_v27  ;;  %v10597_v21 = vld [vmem:[%s13874_s6 + $0xe0] sm:$0xff]  }
 0x3b9   : > { %5567 = vst [vmem:[#allocation3 + $0x14] sm:$0xf] %v5467_v47  ;;  %v8672_v4 = vpack.c.bf16 %v5357_v17, %v5357_v17  ;;  %v5358_v2 = vmul.f32 %v5345_v46, %v12164_v10  ;;  %v5286_v18 = vpop.f32.mrb[242].mxu0  ;;  %v13089_v33 = vld [vmem:[#allocation3 + $0x8] sm:$0xff]   ;;  %9993 = vmatprep.subr.bf16.mxu0 %v13950_v35 }
 0x3ba   : > { %v5477_v63 = vsel %vm12104_vm9, %v5468_v1, %v5476_v56  ;;  %v5333_v0 = vadd.f32 %v13033_v23, %v5313_v6  ;;  %v5314_v52 = vadd.f32 %v5286_v18, %v13019_v57  ;;  %v9848_v3 = vpop.f32.mrb[243].mxu0  ;;  %v5666_v34 = vshll.u32 %v13089_v33, 16  ;;  %v10595_v57 = vld [vmem:[%s13874_s6 + $0xd8] sm:$0xff]  }
 0x3bb   : > { %5568 = vst [vmem:[#allocation3 + $0x18] sm:$0xf] %v5477_v63  ;;  %v5480_v5 = vshrl.u32 %v8672_v4, 16  ;;  %v5483_v45 = vshll.u32 %v8672_v4, 16  ;;  %v8673_v8 = vpack.c.bf16 %v5358_v2, %v5358_v2  ;;  %9922 = vmatmul.mubr.bf16.gmra.mrb[0].mxu0 %v13089_v33  ;;  %v5478_v43 = vrot.slane %v5476_v56, 4 }
 0x3bc   : > { %v5346_v36 = vmax.f32 %v5333_v0, 0.0  ;;  %v5334_v39 = vadd.f32 %v13033_v23, %v5314_v52  ;;  %9925 = vmatprep.mubr.msk.bf16.mxu0 %vm10685_vm3, %v13950_v35  ;;  %9994 = vmatpush3.bf16.msra.mxu0 %v10593_v11  ;;  %v5668_v20 = vrot.slane %v5666_v34, 1 }
 0x3bd   : > { %v5482_v27 = vrot.slane %v5480_v5, 6  ;;  %v5485_v55 = vrot.slane %v5483_v45, 7  ;;  %v5490_v32 = vshrl.u32 %v8673_v8, 16  ;;  %v5493_v15 = vshll.u32 %v8673_v8, 16  ;;  %9995 = vmatprep.subr.bf16.mxu0 %v13950_v35 }
 0x3be   : > { %v5359_v22 = vmul.f32 %v5346_v36, %v12195_v31  ;;  %v5347_v30 = vmax.f32 %v5334_v39, 0.0  ;;  %v5669_v24 = vsel %vm583_vm0, %v5664_v19, %v5668_v20  ;;  %v5670_v8 = vshrl.u32 %v13089_v33, 16  ;;  %v10599_v36 = vld [vmem:[%s13874_s6 + $0xe8] sm:$0xff]  }
 0x3bf   : > { %v5486_v50 = vor.u32 %v5485_v55, %v5482_v27  ;;  %v5492_v13 = vrot.slane %v5490_v32, 6  ;;  %v5495_v17 = vrot.slane %v5493_v15, 7  ;;  %v5291_v46 = vpop.f32.mrb[244].mxu0  ;;  %9874 = vmatmul.mubr.bf16.vlgmr.msra.gmra.mrb[224].mxu1 %v5669_v24 }
 0x3c0   : > { %v8674_v29 = vpack.c.bf16 %v5359_v22, %v5359_v22  ;;  %v5360_v47 = vmul.f32 %v5347_v30, %v12201_v28  ;;  %v5315_v1 = vadd.f32 %v5291_v46, %v13023_v25  ;;  %v9851_v6 = vpop.f32.mrb[245].mxu0  ;;  %v13116_v11 = vld [vmem:[#allocation3 + $0x10] sm:$0xff]   ;;  %9996 = vmatpush3.bf16.msra.mxu0 %v10595_v57  ;;  %9946 = vmatpush3.bf16.msra.mxu1 %v10585_v53 }
 0x3c1   : > { %v5487_v4 = vsel %vm12104_vm9, %v5478_v43, %v5486_v50  ;;  %v5488_v2 = vrot.slane %v5486_v50, 4  ;;  %v5496_v56 = vor.u32 %v5495_v17, %v5492_v13  ;;  %v5294_v18 = vpop.f32.mrb[246].mxu0  ;;  %9997 = vmatprep.subr.bf16.mxu0 %v13950_v35  ;;  %9877 = vmatprep.mubr.msk.bf16.mxu1 %vm10685_vm3, %v13950_v35  ;;  %v5674_v34 = vshll.u32 %v13116_v11, 16  ;;  %v10590_v43 = vld [vmem:[%s13874_s6 + $0x90] sm:$0xff]  }
 0x3c2   : > { %5569 = vst [vmem:[#allocation3 + $0x1c] sm:$0xf] %v5487_v4  ;;  %v5500_v63 = vshrl.u32 %v8674_v29, 16  ;;  %v5503_v0 = vshll.u32 %v8674_v29, 16  ;;  %v8675_v52 = vpack.c.bf16 %v5360_v47, %v5360_v47  ;;  %v5335_v25 = vadd.f32 %v13033_v23, %v5315_v1  ;;  %v9852_v3 = vpop.f32.mrb[247].mxu0  ;;  %9947 = vmatprep.subr.bf16.mxu1 %v13950_v35  ;;  %v10602_v1 = vld [vmem:[%s13874_s6 + $0xf0] sm:$0xff]  }
 0x3c3   : > { %v5497_v5 = vsel %vm12104_vm9, %v5488_v2, %v5496_v56  ;;  %v5316_v45 = vadd.f32 %v5294_v18, %v13025_v12  ;;  %9926 = vmatmul.mubr.bf16.gmra.mrb[4].mxu0 %v13116_v11  ;;  %v5672_v32 = vor.u32 %v5670_v8, %v5668_v20  ;;  %v5676_v15 = vrot.slane %v5674_v34, 1  ;;  %v10594_v18 = vld [vmem:[%s13874_s6 + $0x98] sm:$0xff]  }
 0x3c4   : > { %5570 = vst [vmem:[#allocation3 + $0x20] sm:$0xf] %v5497_v5  ;;  %v5502_v39 = vrot.slane %v5500_v63, 6  ;;  %v5505_v48 = vrot.slane %v5503_v0, 7  ;;  %v5510_v57 = vshrl.u32 %v8675_v52, 16  ;;  %v5513_v27 = vshll.u32 %v8675_v52, 16  ;;  %9929 = vmatprep.mubr.msk.bf16.mxu0 %vm10685_vm3, %v13950_v35  ;;  %9998 = vmatpush3.bf16.msra.mxu0 %v10597_v21 }
 0x3c5   : > { %v5348_v12 = vmax.f32 %v5335_v25, 0.0  ;;  %v5336_v55 = vadd.f32 %v13033_v23, %v5316_v45  ;;  %9999 = vmatprep.subr.bf16.mxu0 %v13950_v35  ;;  %v5498_v22 = vrot.slane %v5496_v56, 4  ;;  %9948 = vmatpush3.bf16.msra.mxu1 %v10587_v38  ;;  %v5677_v17 = vsel %vm583_vm0, %v5672_v32, %v5676_v15  ;;  %v10604_v5 = vld [vmem:[%s13874_s6 + $0xf8] sm:$0xff]   ;;  %v13179_v32 = vld [vmem:[#allocation3 + $0x8] sm:$0xf] }
 0x3c6   : > { %v5506_v30 = vor.u32 %v5505_v48, %v5502_v39  ;;  %v5512_v19 = vrot.slane %v5510_v57, 6  ;;  %v5515_v53 = vrot.slane %v5513_v27, 7  ;;  %9949 = vmatprep.subr.bf16.mxu1 %v13950_v35  ;;  %v5678_v38 = vshrl.u32 %v13116_v11, 16 }
 0x3c7   : > { %v5361_v50 = vmul.f32 %v5348_v12, %v12231_v7  ;;  %v5349_v13 = vmax.f32 %v5336_v55, 0.0  ;;  %v5299_v21 = vpop.f32.mrb[248].mxu0  ;;  %9878 = vmatmul.mubr.bf16.gmra.mrb[228].mxu1 %v5677_v17  ;;  %v10598_v12 = vld [vmem:[%s13874_s6 + $0xa0] sm:$0xff]  }
 0x3c8   : > { %v5507_v20 = vsel %vm12104_vm9, %v5498_v22, %v5506_v30  ;;  %v5508_v46 = vrot.slane %v5506_v30, 4  ;;  %v5516_v29 = vor.u32 %v5515_v53, %v5512_v19  ;;  %v5317_v47 = vadd.f32 %v5299_v21, %v13028_v40  ;;  %10000 = vmatpush3.bf16.msra.mxu0 %v10599_v36  ;;  %v9855_v6 = vpop.f32.mrb[249].mxu0  ;;  %9881 = vmatprep.mubr.msk.bf16.mxu1 %vm10685_vm3, %v13950_v35  ;;  %v6192_v55 = vld [vmem:[#allocation3 + $0x4] sm:$0xe] }
 0x3c9   : > { %5571 = vst [vmem:[#allocation3 + $0x24] sm:$0xf] %v5507_v20  ;;  %v8676_v24 = vpack.c.bf16 %v5361_v50, %v5361_v50  ;;  %v5362_v4 = vmul.f32 %v5349_v13, %v12241_v44  ;;  %v13154_v2 = vld [vmem:[#allocation3 + $0x18] sm:$0xff]   ;;  %10001 = vmatprep.subr.bf16.mxu0 %v13950_v35  ;;  %9950 = vmatpush3.bf16.msra.mxu1 %v10590_v43  ;;  %v5302_v63 = vpop.f32.mrb[250].mxu0  ;;  %v10601_v20 = vld [vmem:[%s13874_s6 + $0xa8] sm:$0xff]  }
 0x3ca   : > { %v5517_v56 = vsel %vm12104_vm9, %v5508_v46, %v5516_v29  ;;  %v5337_v40 = vadd.f32 %v13033_v23, %v5317_v47  ;;  %v5682_v3 = vshll.u32 %v13154_v2, 16  ;;  %9951 = vmatprep.subr.bf16.mxu1 %v13950_v35  ;;  %v9856_v45 = vpop.f32.mrb[251].mxu0  ;;  %v5680_v57 = vor.u32 %v5678_v38, %v5676_v15 }
 0x3cb   : > { %5572 = vst [vmem:[#allocation3 + $0x28] sm:$0xf] %v5517_v56  ;;  %v5520_v0 = vshrl.u32 %v8676_v24, 16  ;;  %v5523_v52 = vshll.u32 %v8676_v24, 16  ;;  %v8677_v25 = vpack.c.bf16 %v5362_v4, %v5362_v4  ;;  %9930 = vmatmul.mubr.bf16.gmra.mrb[8].mxu0 %v13154_v2  ;;  %v5518_v22 = vrot.slane %v5516_v29, 4  ;;  %v13202_v4 = vld [vmem:[#allocation3 + $0xc] sm:$0xff]  }
 0x3cc   : > { %v5350_v23 = vmax.f32 %v5337_v40, 0.0  ;;  %9933 = vmatprep.mubr.msk.bf16.mxu0 %vm10685_vm3, %v13950_v35  ;;  %10002 = vmatpush3.bf16.msra.mxu0 %v10602_v1  ;;  %v5684_v27 = vrot.slane %v5682_v3, 1  ;;  %v13191_v46 = vcombine.low %v6192_v55, %v13179_v32  ;;  %v5686_v1 = vshrl.u32 %v13154_v2, 16 }
 0x3cd   : > { %v5522_v8 = vrot.slane %v5520_v0, 6  ;;  %v5525_v34 = vrot.slane %v5523_v52, 7  ;;  %v5530_v36 = vshrl.u32 %v8677_v25, 16  ;;  %v5533_v39 = vshll.u32 %v8677_v25, 16  ;;  %10003 = vmatprep.subr.bf16.mxu0 %v13950_v35  ;;  %9952 = vmatpush3.bf16.msra.mxu1 %v10594_v18  ;;  %v5575_v18 = vld [vmem:[#allocation3 + $0x34] sm:$0xf] }
 0x3ce   : > { %v5363_v48 = vmul.f32 %v5350_v23, %v12282_v16  ;;  %9953 = vmatprep.subr.bf16.mxu1 %v13950_v35  ;;  %v5685_v50 = vsel %vm583_vm0, %v5680_v57, %v5684_v27  ;;  %v5688_v63 = vor.u32 %v5686_v1, %v5684_v27  ;;  %v10605_v52 = vld [vmem:[%s13874_s6 + $0xb0] sm:$0xff]   ;;  %v6446_v25 = vshrl.u32 %v13191_v46, 16 }
 0x3cf   : > { %v5526_v30 = vor.u32 %v5525_v34, %v5522_v8  ;;  %v5532_v19 = vrot.slane %v5530_v36, 6  ;;  %v5535_v53 = vrot.slane %v5533_v39, 7  ;;  %9882 = vmatmul.mubr.bf16.gmra.mrb[232].mxu1 %v5685_v50  ;;  %v6449_v45 = vshll.u32 %v13191_v46, 16 }
 0x3d0   : > { %v8678_v43 = vpack.c.bf16 %v5363_v48, %v5363_v48  ;;  %v13183_v13 = vld [vmem:[#allocation3 + $0x20] sm:$0xff]   ;;  %10004 = vmatpush3.bf16.msra.mxu0 %v10604_v5  ;;  %9885 = vmatprep.mubr.msk.bf16.mxu1 %vm10685_vm3, %v13950_v35  ;;  %v13211_v5 = vld [vmem:[#allocation3 + $0x14] sm:$0xff]   ;;  %v6454_v8 = vshrl.u32 %v13202_v4, 16  ;;  %v6448_v36 = vrot.slane %v6446_v25, 1  ;;  %v6457_v39 = vshll.u32 %v13202_v4, 16 }
 0x3d1   : > { %v5527_v15 = vsel %vm12104_vm9, %v5518_v22, %v5526_v30  ;;  %v5528_v21 = vrot.slane %v5526_v30, 4  ;;  %v5536_v17 = vor.u32 %v5535_v53, %v5532_v19  ;;  %10077 = vmatprep.subr.bf16.mxu0 %v13950_v35  ;;  %v5690_v6 = vshll.u32 %v13183_v13, 16  ;;  %9954 = vmatpush3.bf16.msra.mxu1 %v10598_v12 }
 0x3d2   : > { %5573 = vst [vmem:[#allocation3 + $0x2c] sm:$0xf] %v5527_v15  ;;  %v5540_v29 = vshrl.u32 %v8678_v43, 16  ;;  %v5543_v47 = vshll.u32 %v8678_v43, 16  ;;  %9955 = vmatprep.subr.bf16.mxu1 %v13950_v35  ;;  %v6451_v27 = vrot.slane %v6449_v45, 2  ;;  %v6456_v12 = vrot.slane %v6454_v8, 1 }
 0x3d3   : > { %v5537_v24 = vsel %vm12104_vm9, %v5528_v21, %v5536_v17  ;;  %9934 = vmatmul.mubr.bf16.gmra.mrb[12].mxu0 %v13183_v13  ;;  %v5692_v0 = vrot.slane %v5690_v6, 1  ;;  %v5538_v3 = vrot.slane %v5536_v17, 4  ;;  %v6459_v55 = vrot.slane %v6457_v39, 2  ;;  %v13237_v21 = vld [vmem:[#allocation3 + $0x1c] sm:$0xff]  }
 0x3d4   : > { %5574 = vst [vmem:[#allocation3 + $0x30] sm:$0xf] %v5537_v24  ;;  %v5542_v56 = vrot.slane %v5540_v29, 6  ;;  %v5545_v40 = vrot.slane %v5543_v47, 7  ;;  %9937 = vmatprep.mubr.msk.bf16.mxu0 %vm10685_vm3, %v13950_v35  ;;  %v6463_v22 = vshrl.u32 %v13211_v5, 16  ;;  %v5694_v51 = vshrl.u32 %v13183_v13, 16 }
 0x3d5   : > { %v5693_v38 = vsel %vm583_vm0, %v5688_v63, %v5692_v0  ;;  %9956 = vmatpush3.bf16.msra.mxu1 %v10601_v20  ;;  %v6452_v53 = vor.u32 %v6451_v27, %v6448_v36  ;;  %v6460_v43 = vor.u32 %v6459_v55, %v6456_v12  ;;  %v6466_v17 = vshll.u32 %v13211_v5, 16  ;;  %v13246_v24 = vld [vmem:[#allocation3 + $0x24] sm:$0xff]  }
 0x3d6   : > { %v5546_v23 = vor.u32 %v5545_v40, %v5542_v56  ;;  %9957 = vmatprep.subr.bf16.mxu1 %v13950_v35  ;;  %v5696_v50 = vor.u32 %v5694_v51, %v5692_v0  ;;  %v6465_v29 = vrot.slane %v6463_v22, 1  ;;  %v6472_v63 = vshrl.u32 %v13237_v21, 16 }
 0x3d7   : > { %9886 = vmatmul.mubr.bf16.gmra.mrb[236].mxu1 %v5693_v38  ;;  %v13241_v20 = vsel %vm2342_vm2, %v6452_v53, %v6460_v43  ;;  %v6468_v56 = vrot.slane %v6466_v17, 2  ;;  %v6481_v45 = vshrl.u32 %v13246_v24, 16  ;;  %v6484_v8 = vshll.u32 %v13246_v24, 16 }
 0x3d8   : > { %v5547_v34 = vsel %vm12104_vm9, %v5538_v3, %v5546_v23  ;;  %9889 = vmatprep.mubr.msk.bf16.mxu1 %vm10685_vm3, %v13950_v35  ;;  %v6474_v25 = vrot.slane %v6472_v63, 1  ;;  %v6475_v3 = vshll.u32 %v13237_v21, 16  ;;  %v6256_v39 = vrot.slane %v13202_v4, 1  ;;  %v13293_v63 = vld [vmem:[#allocation3 + $0xc] sm:$0xf] }
 0x3d9   : > { %v5576_v48 = vsel %vm12328_vm12, %v5547_v34, %v5575_v18  ;;  %v13221_v57 = vld [vmem:[#allocation3 + $0x28] sm:$0xff]   ;;  %9958 = vmatpush3.bf16.msra.mxu1 %v10605_v52  ;;  %v6469_v0 = vor.u32 %v6468_v56, %v6465_v29  ;;  %v6486_v27 = vrot.slane %v6484_v8, 2  ;;  %v6255_v51 = vrot.slane %v13191_v46, 1  ;;  %v6002_v56 = vld [vmem:[#allocation3] sm:$0xe]  ;;  %v13307_v8 = vld [vmem:[#allocation3 + $0x18] sm:$0xff]  }
 0x3da   : > { %5577 = vst [vmem:[#allocation3 + $0x34] sm:$0xf] %v5576_v48  ;;  %v5698_v30 = vshll.u32 %v13221_v57, 16  ;;  %9959 = vmatprep.subr.bf16.mxu1 %v13950_v35  ;;  %v5702_v40 = vshrl.u32 %v13221_v57, 16  ;;  %v6477_v34 = vrot.slane %v6475_v3, 2  ;;  %v6483_v48 = vrot.slane %v6481_v45, 1 }
 0x3db   : > { %9938 = vmatmul.mubr.bf16.gmra.mrb[16].mxu0 %v13221_v57  ;;  %v13235_v19 = vld [vmem:[#allocation3 + $0x30] ss:$0 sps:$4 sm:$0x77]   ;;  %v13258_v38 = vsel %vm2342_vm2, %v6460_v43, %v6469_v0  ;;  %v10617_v46 = vld [vmem:[%s13874_s6 + $0x148] sm:$0xff]  }
 0x3dc   : > { %9941 = vmatprep.mubr.msk.bf16.mxu0 %vm10685_vm3, %v13950_v35  ;;  %v5700_v15 = vrot.slane %v5698_v30, 1  ;;  %v10600_v1 = vld [vmem:[#allocation3 + $0x30] ss:$0 sps:$4 sm:$0x33]   ;;  %v5706_v6 = vshll.u32 %v13235_v19, 16  ;;  %v6478_v12 = vor.u32 %v6477_v34, %v6474_v25  ;;  %v10615_v30 = vld [vmem:[%s13874_s6 + $0x140] sm:$0xff]   ;;  %v6487_v53 = vor.u32 %v6486_v27, %v6483_v48 }
 0x3dd   : > { %9960 = vmatpush3.bf16.msra.mxu1 %v10608_v62  ;;  %v13249_v18 = vld [vmem:[#allocation3 + $0x2c] sm:$0xff]   ;;  %v13300_v25 = vld [vmem:[#allocation3 + $0x38] sm:$0x1f]   ;;  %v7369_v3 = vld [vmem:[#allocation3 + $0x8] sm:$0x8]  ;;  %v6024_v27 = vrot.slane %v13089_v33, 1 }
 0x3de   : > { %v5701_v47 = vsel %vm583_vm0, %v5696_v50, %v5700_v15  ;;  %10033 = vmatprep.subr.bf16.mxu1 %v13950_v35  ;;  %v5704_v52 = vor.u32 %v5702_v40, %v5700_v15  ;;  %v5708_v23 = vrot.slane %v5706_v6, 1  ;;  %v6490_v36 = vshrl.u32 %v13249_v18, 16  ;;  %v13309_v34 = vld [vmem:[#allocation3 + $0x20] sm:$0xff]  }
 0x3df   : > { %9890 = vmatmul.mubr.bf16.gmra.mrb[240].mxu1 %v5701_v47  ;;  %v6493_v62 = vshll.u32 %v13249_v18, 16  ;;  %v13271_v50 = vsel %vm2342_vm2, %v6469_v0, %v6478_v12  ;;  %v6257_v15 = vsel %vm1803_vm1, %v6255_v51, %v6256_v39  ;;  %v13277_v17 = vsel %vm2342_vm2, %v6478_v12, %v6487_v53  ;;  %v10619_v0 = vld [vmem:[%s13874_s6 + $0x150] sm:$0xff]  }
 0x3e0   : > { %9893 = vmatprep.mubr.msk.bf16.mxu1 %vm10685_vm3, %v13950_v35  ;;  %v6492_v55 = vrot.slane %v6490_v36, 1  ;;  %v5709_v22 = vsel %vm583_vm0, %v5704_v52, %v5708_v23  ;;  %v6258_v6 = vrot.slane %v13211_v5, 1  ;;  %v8460_v52 = vcombine.low %v6002_v56, %v13058_v26  ;;  %v13312_v26 = vld [vmem:[#allocation3 + $0x28] sm:$0xff]  }
 0x3e1   : > { %v6495_v43 = vrot.slane %v6493_v62, 2  ;;  %v8628_v36 = vcombine.low %v7369_v3, %v13293_v63  ;;  %v13314_v48 = vld [vmem:[#allocation3 + $0x30] sm:$0xff]   ;;  %v6260_v12 = vrot.slane %v13237_v21, 1 }
 0x3e2   : > { %v6259_v45 = vsel %vm1803_vm1, %v6256_v39, %v6258_v6  ;;  %v10621_v39 = vld [vmem:[%s13874_s6 + $0x158] sm:$0xff]   ;;  %v6023_v62 = vrot.slane %v8460_v52, 1 }
 0x3e3   : > { %9942 = vmatmul.mubr.bf16.gmra.mrb[20].mxu0 %v10600_v1  ;;  %v13279_v29 = vor.u32 %v6495_v43, %v6492_v55  ;;  %v5710_v1 = vshrl.u32 %v13235_v19, 16  ;;  %v7401_v55 = vrot.slane %v13300_v25, 3  ;;  %v7390_v33 = vrot.slane %v8628_v36, 3  ;;  %v10613_v36 = vld [vmem:[%s13874_s6 + $0x108] sm:$0xff]  }
 0x3e4   : > { %10005 = vmatprep.mubr.msk.bf16.mxu0 %vm10685_vm3, %v13950_v35  ;;  %v7397_v43 = vrot.slane %v13312_v26, 3 }
 0x3e5   : > { %v13288_v47 = vsel %vm2342_vm2, %v6487_v53, %v13279_v29  ;;  %v5712_v40 = vor.u32 %v5710_v1, %v5708_v23  ;;  %v13305_v23 = vld [vmem:[#allocation3 + $0x10] sm:$0xff]   ;;  %v7395_v53 = vrot.slane %v13309_v34, 3  ;;  %v10623_v1 = vld [vmem:[%s13874_s6 + $0x160] sm:$0xff]  }
 0x3e6   : > { %v7391_v51 = vrot.slane %v13305_v23, 3 }
 0x3e7   : > { %9894 = vmatmul.mubr.bf16.gmra.mrb[244].mxu1 %v5709_v22  ;;  %v10611_v22 = vld [vmem:[%s13874_s6 + $0x100] sm:$0xff]   ;;  %v13348_v52 = vsel %vm5148_vm13, %v7395_v53, %v7397_v43 }
 0x3e8   : > { %9897 = vmatprep.mubr.msk.bf16.mxu1 %vm10685_vm3, %v13950_v35  ;;  %v13338_v56 = vsel %vm5148_vm13, %v7390_v33, %v7391_v51  ;;  %v10616_v33 = vld [vmem:[%s13874_s6 + $0x110] sm:$0xff]  }
 0x3eb   : > { %10006 = vmatmul.mubr.bf16.vlgmr.msra.gmra.mrb[24].mxu0 %v6257_v15  ;;  %v7399_v15 = vrot.slane %v13314_v48, 3 }
 0x3ec   : > { %10009 = vmatprep.mubr.msk.bf16.mxu0 %vm10685_vm3, %v13950_v35  ;;  %10078 = vmatpush3.bf16.msra.mxu0 %v10615_v30  ;;  %v7393_v30 = vrot.slane %v13307_v8, 3 }
 0x3ed   : > { %10079 = vmatprep.subr.bf16.mxu0 %v13950_v35  ;;  %v13351_v3 = vsel %vm5148_vm13, %v7397_v43, %v7399_v15  ;;  %v6264_v43 = vrot.slane %v13249_v18, 1 }
 0x3ef   : > { %9898 = vmatmul.mubr.bf16.gmra.mrb[248].mxu1 %v5712_v40  ;;  %v13341_v40 = vsel %vm5148_vm13, %v7391_v51, %v7393_v30  ;;  %v10627_v51 = vld [vmem:[%s13874_s6 + $0x170] sm:$0xff]  }
 0x3f0   : > { %10080 = vmatpush3.bf16.msra.mxu0 %v10617_v46  ;;  %9961 = vmatprep.mubr.msk.bf16.mxu1 %vm10685_vm3, %v13950_v35  ;;  %v6025_v46 = vsel %vm1803_vm1, %v6023_v62, %v6024_v27  ;;  %v6026_v62 = vrot.slane %v13116_v11, 1 }
 0x3f1   : > { %10081 = vmatprep.subr.bf16.mxu0 %v13950_v35 }
 0x3f2   : > { %v6027_v11 = vsel %vm1803_vm1, %v6024_v27, %v6026_v62  ;;  %v6028_v27 = vrot.slane %v13154_v2, 1 }
 0x3f3   : > { %10010 = vmatmul.mubr.bf16.gmra.mrb[28].mxu0 %v6259_v45  ;;  %v6261_v45 = vsel %vm1803_vm1, %v6258_v6, %v6260_v12  ;;  %v10625_v6 = vld [vmem:[%s13874_s6 + $0x168] sm:$0xff]  }
 0x3f4   : > { %10013 = vmatprep.mubr.msk.bf16.mxu0 %vm10685_vm3, %v13950_v35  ;;  %10082 = vmatpush3.bf16.msra.mxu0 %v10619_v0  ;;  %v13345_v0 = vsel %vm5148_vm13, %v7393_v30, %v7395_v53  ;;  %v10620_v53 = vld [vmem:[%s13874_s6 + $0x118] sm:$0xff]   ;;  %v6029_v2 = vsel %vm1803_vm1, %v6026_v62, %v6028_v27 }
 0x3f5   : > { %10083 = vmatprep.subr.bf16.mxu0 %v13950_v35 }
 0x3f7   : > { %9962 = vmatmul.mubr.bf16.vlgmr.msra.gmra.mrb[252].mxu1 %v6025_v46 }
 0x3f8   : > { %10084 = vmatpush3.bf16.msra.mxu0 %v10621_v39  ;;  %10034 = vmatpush3.bf16.msra.mxu1 %v10611_v22  ;;  %v13362_v39 = vsel %vm5148_vm13, %v7399_v15, %v7401_v55  ;;  %v6262_v22 = vrot.slane %v13246_v24, 1  ;;  %v10624_v15 = vld [vmem:[%s13874_s6 + $0x120] sm:$0xff]  }
 0x3f9   : > { %10085 = vmatprep.subr.bf16.mxu0 %v13950_v35  ;;  %9965 = vmatprep.mubr.msk.bf16.mxu1 %vm10685_vm3, %v13950_v35 }
 0x3fa   : > { %10035 = vmatprep.subr.bf16.mxu1 %v13950_v35  ;;  %v6263_v30 = vsel %vm1803_vm1, %v6260_v12, %v6262_v22  ;;  %v10628_v12 = vld [vmem:[%s13874_s6 + $0x178] sm:$0xff]   ;;  %v6265_v46 = vsel %vm1803_vm1, %v6262_v22, %v6264_v43 }
 0x3fb   : > { %10014 = vmatmul.mubr.bf16.gmra.mrb[32].mxu0 %v6261_v45  ;;  %v10626_v45 = vld [vmem:[%s13874_s6 + $0x128] sm:$0xff]  }
 0x3fc   : > { %10017 = vmatprep.mubr.msk.bf16.mxu0 %vm10685_vm3, %v13950_v35  ;;  %10086 = vmatpush3.bf16.msra.mxu0 %v10623_v1  ;;  %v10622_v1 = vld [vmem:[#allocation3 + $0x34] ss:$0 sps:$4 sm:$0x77]  }
 0x3fd   : > { %10087 = vmatprep.subr.bf16.mxu0 %v13950_v35  ;;  %10036 = vmatpush3.bf16.msra.mxu1 %v10613_v36  ;;  %v6030_v36 = vrot.slane %v13183_v13, 1  ;;  %v6266_v62 = vrot.slane %v10622_v1, 1  ;;  %v10631_v13 = vld [vmem:[%s13874_s6 + $0x138] sm:$0xff]   ;;  %v10632_v1 = vld [vmem:[%s13874_s6 + $0x180] sm:$0xff]  }
 0x3fe   : > { %10037 = vmatprep.subr.bf16.mxu1 %v13950_v35 }
 0x3ff   : > { %9966 = vmatmul.mubr.bf16.gmra.mrb[0].mxu1 %v6027_v11  ;;  %v6031_v22 = vsel %vm1803_vm1, %v6028_v27, %v6030_v36  ;;  %v6032_v11 = vrot.slane %v13221_v57, 1  ;;  %v6685_v27 = vrot.slane %v13202_v4, 2  ;;  %v6687_v4 = vrot.slane %v13211_v5, 2  ;;  %v10639_v5 = vld [vmem:[%s13874_s6 + $0x1d8] sm:$0xff]  }
 0x400   : > { %10088 = vmatpush3.bf16.msra.mxu0 %v10625_v6  ;;  %9969 = vmatprep.mubr.msk.bf16.mxu1 %vm10685_vm3, %v13950_v35  ;;  %v10629_v6 = vld [vmem:[%s13874_s6 + $0x130] sm:$0xff]  }
 0x401   : > { %10089 = vmatprep.subr.bf16.mxu0 %v13950_v35  ;;  %10038 = vmatpush3.bf16.msra.mxu1 %v10616_v33  ;;  %v6267_v33 = vsel %vm1803_vm1, %v6264_v43, %v6266_v62 }
 0x402   : > { %10039 = vmatprep.subr.bf16.mxu1 %v13950_v35 }
 0x403   : > { %10018 = vmatmul.mubr.bf16.gmra.mrb[36].mxu0 %v6263_v30  ;;  %v6663_v30 = vld [vmem:[#allocation3 + $0x4] sm:$0xc] }
 0x404   : > { %10021 = vmatprep.mubr.msk.bf16.mxu0 %vm10685_vm3, %v13950_v35  ;;  %10090 = vmatpush3.bf16.msra.mxu0 %v10627_v51  ;;  %v6033_v51 = vsel %vm1803_vm1, %v6030_v36, %v6032_v11  ;;  %v8541_v57 = vcombine.low %v6663_v30, %v13179_v32  ;;  %v10636_v32 = vld [vmem:[%s13874_s6 + $0x1c8] sm:$0xff]   ;;  %v10641_v36 = vld [vmem:[%s13874_s6 + $0x1e0] sm:$0xff]  }
 0x405   : > { %10091 = vmatprep.subr.bf16.mxu0 %v13950_v35  ;;  %10040 = vmatpush3.bf16.msra.mxu1 %v10620_v53  ;;  %v6034_v53 = vrot.slane %v13235_v19, 1  ;;  %v10637_v19 = vld [vmem:[%s13874_s6 + $0x1d0] sm:$0xff]  }
 0x406   : > { %10041 = vmatprep.subr.bf16.mxu1 %v13950_v35  ;;  %v6684_v43 = vrot.slane %v8541_v57, 2 }
 0x407   : > { %9970 = vmatmul.mubr.bf16.gmra.mrb[4].mxu1 %v6029_v2 }
 0x408   : > { %10092 = vmatpush3.bf16.msra.mxu0 %v10628_v12  ;;  %9973 = vmatprep.mubr.msk.bf16.mxu1 %vm10685_vm3, %v13950_v35  ;;  %v6035_v12 = vsel %vm1803_vm1, %v6032_v11, %v6034_v53  ;;  %v6686_v2 = vsel %vm4440_vm14, %v6684_v43, %v6685_v27  ;;  %v6693_v11 = vrot.slane %v13249_v18, 2  ;;  %v10644_v18 = vld [vmem:[%s13874_s6 + $0x1a8] sm:$0xff]  }
 0x409   : > { %10165 = vmatprep.subr.bf16.mxu0 %v13950_v35  ;;  %10042 = vmatpush3.bf16.msra.mxu1 %v10624_v15  ;;  %v10634_v15 = vld [vmem:[%s13874_s6 + $0x1c0] sm:$0xff]   ;;  %v7085_v43 = vld [vmem:[#allocation3 + $0x8] sm:$0xc] }
 0x40a   : > { %10043 = vmatprep.subr.bf16.mxu1 %v13950_v35 }
 0x40b   : > { %10022 = vmatmul.mubr.bf16.gmra.mrb[40].mxu0 %v6265_v46  ;;  %v6688_v46 = vsel %vm4440_vm14, %v6685_v27, %v6687_v4 }
 0x40c   : > { %10025 = vmatprep.mubr.msk.bf16.mxu0 %vm10685_vm3, %v13950_v35 }
 0x40d   : > { %10044 = vmatpush3.bf16.msra.mxu1 %v10626_v45  ;;  %v6689_v45 = vrot.slane %v13237_v21, 2  ;;  %v10643_v21 = vld [vmem:[%s13874_s6 + $0x1e8] sm:$0xff]  }
 0x40e   : > { %10045 = vmatprep.subr.bf16.mxu1 %v13950_v35 }
 0x40f   : > { %9974 = vmatmul.mubr.bf16.gmra.mrb[8].mxu1 %v6031_v22  ;;  %v10635_v22 = vld [vmem:[%s13874_s6 + $0x190] sm:$0xff]  }
 0x410   : > { %9977 = vmatprep.mubr.msk.bf16.mxu1 %vm10685_vm3, %v13950_v35 }
 0x411   : > { %10046 = vmatpush3.bf16.msra.mxu1 %v10629_v6  ;;  %v10633_v6 = vld [vmem:[%s13874_s6 + $0x188] sm:$0xff]  }
 0x412   : > { %10047 = vmatprep.subr.bf16.mxu1 %v13950_v35 }
 0x413   : > { %10026 = vmatmul.mubr.bf16.gmra.mrb[44].mxu0 %v6267_v33  ;;  %v10645_v33 = vld [vmem:[%s13874_s6 + $0x1f0] sm:$0xff]  }
 0x414   : > { %10029 = vmatprep.mubr.msk.bf16.mxu0 %vm10685_vm3, %v13950_v35 }
 0x415   : > { %10048 = vmatpush3.bf16.msra.mxu1 %v10631_v13 }
 0x416   : > { %10121 = vmatprep.subr.bf16.mxu1 %v13950_v35 }
 0x417   : > { %9978 = vmatmul.mubr.bf16.gmra.mrb[12].mxu1 %v6033_v51  ;;  %v10642_v51 = vld [vmem:[%s13874_s6 + $0x1a0] sm:$0xff]  }
 0x418   : > { %9981 = vmatprep.mubr.msk.bf16.mxu1 %vm10685_vm3, %v13950_v35 }
 0x41b   : > { %10030 = vmatmul.mubr.bf16.gmra.mrb[48].mxu0 %v6266_v62  ;;  %v6690_v62 = vsel %vm4440_vm14, %v6687_v4, %v6689_v45  ;;  %v7163_v4 = vshll.u32 %v13305_v23, 16 }
 0x41c   : > { %10093 = vmatprep.mubr.msk.bf16.mxu0 %vm10685_vm3, %v13950_v35 }
 0x41f   : > { %9982 = vmatmul.mubr.bf16.gmra.mrb[16].mxu1 %v6035_v12  ;;  %v10650_v12 = vld [vmem:[%s13874_s6 + $0x1b8] sm:$0xff]  }
 0x420   : > { %9985 = vmatprep.mubr.msk.bf16.mxu1 %vm10685_vm3, %v13950_v35 }
 0x423   : > { %10094 = vmatmul.mubr.bf16.vlgmr.msra.gmra.mrb[52].mxu0 %v6686_v2 }
 0x424   : > { %10097 = vmatprep.mubr.msk.bf16.mxu0 %vm10685_vm3, %v13950_v35  ;;  %10166 = vmatpush3.bf16.msra.mxu0 %v10634_v15 }
 0x425   : > { %10167 = vmatprep.subr.bf16.mxu0 %v13950_v35 }
 0x427   : > { %9986 = vmatmul.mubr.bf16.gmra.mrb[20].mxu1 %v6034_v53  ;;  %v10640_v53 = vld [vmem:[#allocation3 + $0x34] ss:$0 sps:$4 sm:$0xff]  }
 0x428   : > { %10168 = vmatpush3.bf16.msra.mxu0 %v10636_v32  ;;  %10049 = vmatprep.mubr.msk.bf16.mxu1 %vm10685_vm3, %v13950_v35  ;;  %v6695_v57 = vrot.slane %v10640_v53, 2  ;;  %v6499_v15 = vshrl.u32 %v10640_v53, 16  ;;  %v6502_v2 = vshll.u32 %v10640_v53, 16  ;;  %v7160_v32 = vshrl.u32 %v13305_v23, 16 }
 0x429   : > { %10169 = vmatprep.subr.bf16.mxu0 %v13950_v35 }
 0x42a   : > { %v6696_v27 = vsel %vm4440_vm14, %v6693_v11, %v6695_v57 }
 0x42b   : > { %10098 = vmatmul.mubr.bf16.gmra.mrb[56].mxu0 %v6688_v46  ;;  %v6504_v46 = vrot.slane %v6502_v2, 2  ;;  %v10656_v2 = vld [vmem:[#allocation3 + $0x18] sm:$0xff]  }
 0x42c   : > { %10101 = vmatprep.mubr.msk.bf16.mxu0 %vm10685_vm3, %v13950_v35  ;;  %10170 = vmatpush3.bf16.msra.mxu0 %v10637_v19  ;;  %v6501_v19 = vrot.slane %v6499_v15, 1 }
 0x42d   : > { %10171 = vmatprep.subr.bf16.mxu0 %v13950_v35 }
 0x42f   : > { %10050 = vmatmul.mubr.bf16.vlgmr.msra.gmra.mrb[24].mxu1 %v13241_v20  ;;  %v6691_v20 = vrot.slane %v13246_v24, 2  ;;  %v10638_v24 = vld [vmem:[%s13874_s6 + $0x198] sm:$0xff]  }
 0x430   : > { %10172 = vmatpush3.bf16.msra.mxu0 %v10639_v5  ;;  %10122 = vmatpush3.bf16.msra.mxu1 %v10632_v1 }
 0x431   : > { %10173 = vmatprep.subr.bf16.mxu0 %v13950_v35  ;;  %10053 = vmatprep.mubr.msk.bf16.mxu1 %vm10685_vm3, %v13950_v35  ;;  %v6692_v13 = vsel %vm4440_vm14, %v6689_v45, %v6691_v20  ;;  %v6694_v30 = vsel %vm4440_vm14, %v6691_v20, %v6693_v11  ;;  %v7162_v45 = vrot.slane %v7160_v32, 2  ;;  %v7172_v20 = vshll.u32 %v13307_v8, 16  ;;  %v10657_v32 = vld [vmem:[%s13874_s6 + $0x208] sm:$0xff]  }
 0x432   : > { %10123 = vmatprep.subr.bf16.mxu1 %v13950_v35  ;;  %v7178_v11 = vshrl.u32 %v13309_v34, 16 }
 0x433   : > { %10102 = vmatmul.mubr.bf16.gmra.mrb[60].mxu0 %v6690_v62 }
 0x434   : > { %10105 = vmatprep.mubr.msk.bf16.mxu0 %vm10685_vm3, %v13950_v35  ;;  %10174 = vmatpush3.bf16.msra.mxu0 %v10641_v36  ;;  %v7165_v36 = vrot.slane %v7163_v4, 3  ;;  %v7180_v53 = vrot.slane %v7178_v11, 2 }
 0x435   : > { %10175 = vmatprep.subr.bf16.mxu0 %v13950_v35  ;;  %10124 = vmatpush3.bf16.msra.mxu1 %v10633_v6 }
 0x436   : > { %10125 = vmatprep.subr.bf16.mxu1 %v13950_v35  ;;  %v7166_v6 = vor.u32 %v7165_v36, %v7162_v45  ;;  %v7199_v45 = vshll.u32 %v13314_v48, 16 }
 0x437   : > { %10054 = vmatmul.mubr.bf16.gmra.mrb[28].mxu1 %v13258_v38  ;;  %v10646_v38 = vld [vmem:[%s13874_s6 + $0x1f8] sm:$0xff]  }
 0x438   : > { %10176 = vmatpush3.bf16.msra.mxu0 %v10643_v21  ;;  %10057 = vmatprep.mubr.msk.bf16.mxu1 %vm10685_vm3, %v13950_v35  ;;  %v7169_v21 = vshrl.u32 %v13307_v8, 16  ;;  %v7181_v8 = vshll.u32 %v13309_v34, 16  ;;  %v10654_v34 = vld [vmem:[%s13874_s6 + $0x200] sm:$0xff]  }
 0x439   : > { %10177 = vmatprep.subr.bf16.mxu0 %v13950_v35  ;;  %10126 = vmatpush3.bf16.msra.mxu1 %v10635_v22 }
 0x43a   : > { %10127 = vmatprep.subr.bf16.mxu1 %v13950_v35 }
 0x43b   : > { %10106 = vmatmul.mubr.bf16.gmra.mrb[64].mxu0 %v6692_v13  ;;  %v7171_v13 = vrot.slane %v7169_v21, 2  ;;  %v10662_v21 = vld [vmem:[%s13874_s6 + $0x218] sm:$0xff]  }
 0x43c   : > { %10109 = vmatprep.mubr.msk.bf16.mxu0 %vm10685_vm3, %v13950_v35  ;;  %10178 = vmatpush3.bf16.msra.mxu0 %v10645_v33 }
 0x43d   : > { %10179 = vmatprep.subr.bf16.mxu0 %v13950_v35  ;;  %10128 = vmatpush3.bf16.msra.mxu1 %v10638_v24  ;;  %v7174_v24 = vrot.slane %v7172_v20, 3 }
 0x43e   : > { %10129 = vmatprep.subr.bf16.mxu1 %v13950_v35 }
 0x43f   : > { %10058 = vmatmul.mubr.bf16.gmra.mrb[32].mxu1 %v13271_v50  ;;  %v10647_v50 = vld [vmem:[%s13874_s6 + $0x1b0] sm:$0xff]  }
 0x440   : > { %10180 = vmatpush3.bf16.msra.mxu0 %v10646_v38  ;;  %10061 = vmatprep.mubr.msk.bf16.mxu1 %vm10685_vm3, %v13950_v35  ;;  %v7175_v38 = vor.u32 %v7174_v24, %v7171_v13  ;;  %v10663_v24 = vld [vmem:[#allocation3 + $0x28] sm:$0xff]  }
 0x441   : > { %10130 = vmatpush3.bf16.msra.mxu1 %v10642_v51  ;;  %v10653_v51 = vld [vmem:[#allocation3 + $0x10] sm:$0xff]  }
 0x442   : > { %10131 = vmatprep.subr.bf16.mxu1 %v13950_v35 }
 0x443   : > { %10110 = vmatmul.mubr.bf16.gmra.mrb[68].mxu0 %v6694_v30  ;;  %v10652_v30 = vld [vmem:[#allocation3 + $0x8] sm:$0xfc]  }
 0x444   : > { %10113 = vmatprep.mubr.msk.bf16.mxu0 %vm10685_vm3, %v13950_v35 }
 0x445   : > { %10132 = vmatpush3.bf16.msra.mxu1 %v10644_v18  ;;  %v7183_v18 = vrot.slane %v7181_v8, 3 }
 0x446   : > { %10133 = vmatprep.subr.bf16.mxu1 %v13950_v35 }
 0x447   : > { %10062 = vmatmul.mubr.bf16.gmra.mrb[36].mxu1 %v13277_v17  ;;  %v8597_v17 = vcombine.low %v7085_v43, %v13293_v63  ;;  %v6505_v63 = vor.u32 %v6504_v46, %v6501_v19  ;;  %v7190_v43 = vshll.u32 %v13312_v26, 16 }
 0x448   : > { %10065 = vmatprep.mubr.msk.bf16.mxu1 %vm10685_vm3, %v13950_v35 }
 0x449   : > { %10134 = vmatpush3.bf16.msra.mxu1 %v10647_v50  ;;  %v7152_v5 = vshrl.u32 %v8597_v17, 16  ;;  %v7155_v1 = vshll.u32 %v8597_v17, 16  ;;  %v6916_v50 = vrot.slane %v10652_v30, 2  ;;  %v7192_v19 = vrot.slane %v7190_v43, 3 }
 0x44a   : > { %10135 = vmatprep.subr.bf16.mxu1 %v13950_v35 }
 0x44b   : > { %10114 = vmatmul.mubr.bf16.gmra.mrb[72].mxu0 %v6696_v27  ;;  %v7154_v23 = vrot.slane %v7152_v5, 2  ;;  %v7157_v62 = vrot.slane %v7155_v1, 3  ;;  %v7184_v27 = vor.u32 %v7183_v18, %v7180_v53  ;;  %v10659_v5 = vld [vmem:[%s13874_s6 + $0x210] sm:$0xff]   ;;  %v7196_v1 = vshrl.u32 %v13314_v48, 16 }
 0x44c   : > { %10117 = vmatprep.mubr.msk.bf16.mxu0 %vm10685_vm3, %v13950_v35  ;;  %v10669_v53 = vld [vmem:[%s13874_s6 + $0x230] sm:$0xff]  }
 0x44d   : > { %10136 = vmatpush3.bf16.msra.mxu1 %v10650_v12  ;;  %v7158_v22 = vor.u32 %v7157_v62, %v7154_v23  ;;  %v7187_v12 = vshrl.u32 %v13312_v26, 16  ;;  %v7185_v17 = vsel %vm4908_vm15, %v7175_v38, %v7184_v27  ;;  %v6919_v26 = vrot.slane %v10656_v2, 2 }
 0x44e   : > { %10209 = vmatprep.subr.bf16.mxu1 %v13950_v35  ;;  %v7198_v62 = vrot.slane %v7196_v1, 2 }
 0x44f   : > { %10066 = vmatmul.mubr.bf16.gmra.mrb[40].mxu1 %v13288_v47  ;;  %v6506_v47 = vsel %vm2342_vm2, %v13279_v29, %v6505_v63  ;;  %v7167_v33 = vsel %vm4908_vm15, %v7158_v22, %v7166_v6  ;;  %v7176_v29 = vsel %vm4908_vm15, %v7166_v6, %v7175_v38  ;;  %v7189_v4 = vrot.slane %v7187_v12, 2 }
 0x450   : > { %10069 = vmatprep.mubr.msk.bf16.mxu1 %vm10685_vm3, %v13950_v35  ;;  %v7201_v6 = vrot.slane %v7199_v45, 3  ;;  %v7208_v22 = vshll.u32 %v13300_v25, 16 }
 0x451   : > { %v7193_v46 = vor.u32 %v7192_v19, %v7189_v4 }
 0x452   : > { %v7202_v20 = vor.u32 %v7201_v6, %v7198_v62  ;;  %v7210_v8 = vrot.slane %v7208_v22, 3 }
 0x453   : > { %10118 = vmatmul.mubr.bf16.gmra.mrb[76].mxu0 %v6695_v57  ;;  %v6917_v57 = vrot.slane %v10653_v51, 2  ;;  %v7194_v23 = vsel %vm4908_vm15, %v7184_v27, %v7193_v46  ;;  %v10667_v51 = vld [vmem:[%s13874_s6 + $0x228] sm:$0xff]  }
 0x454   : > { %10181 = vmatprep.mubr.msk.bf16.mxu0 %vm10685_vm3, %v13950_v35  ;;  %v7203_v38 = vsel %vm4908_vm15, %v7193_v46, %v7202_v20 }
 0x455   : > { %v6918_v15 = vsel %vm4440_vm14, %v6916_v50, %v6917_v57  ;;  %v6920_v36 = vsel %vm4440_vm14, %v6917_v57, %v6919_v26  ;;  %v10666_v57 = vld [vmem:[#allocation3 + $0x30] sm:$0xff]  }
 0x456   : > { %v6925_v27 = vrot.slane %v10666_v57, 2 }
 0x457   : > { %10070 = vmatmul.mubr.bf16.gmra.mrb[44].mxu1 %v6506_v47  ;;  %v7205_v47 = vshrl.u32 %v13300_v25, 16 }
 0x458   : > { %10073 = vmatprep.mubr.msk.bf16.mxu1 %vm10685_vm3, %v13950_v35 }
 0x459   : > { %v7207_v11 = vrot.slane %v7205_v47, 2 }
 0x45b   : > { %10182 = vmatmul.mubr.bf16.vlgmr.msra.gmra.mrb[80].mxu0 %v7167_v33  ;;  %v10665_v33 = vld [vmem:[%s13874_s6 + $0x220] sm:$0xff]   ;;  %v7211_v30 = vor.u32 %v7210_v8, %v7207_v11 }
 0x45c   : > { %10185 = vmatprep.mubr.msk.bf16.mxu0 %vm10685_vm3, %v13950_v35 }
 0x45d   : > { %v7212_v50 = vsel %vm4908_vm15, %v7202_v20, %v7211_v30 }
 0x45f   : > { %10074 = vmatmul.mubr.bf16.gmra.mrb[48].mxu1 %v6505_v63  ;;  %v10660_v63 = vld [vmem:[#allocation3 + $0x20] sm:$0xff]  }
 0x460   : > { %10137 = vmatprep.mubr.msk.bf16.mxu1 %vm10685_vm3, %v13950_v35  ;;  %v6921_v48 = vrot.slane %v10660_v63, 2 }
 0x462   : > { %v6922_v13 = vsel %vm4440_vm14, %v6919_v26, %v6921_v48 }
 0x463   : > { %10186 = vmatmul.mubr.bf16.gmra.mrb[84].mxu0 %v7176_v29  ;;  %v6923_v29 = vrot.slane %v10663_v24, 2 }
 0x464   : > { %10189 = vmatprep.mubr.msk.bf16.mxu0 %vm10685_vm3, %v13950_v35 }
 0x465   : > { %v6924_v18 = vsel %vm4440_vm14, %v6921_v48, %v6923_v29  ;;  %v6926_v2 = vsel %vm4440_vm14, %v6923_v29, %v6925_v27 }
 0x467   : > { %10138 = vmatmul.mubr.bf16.vlgmr.msra.gmra.mrb[52].mxu1 %v6918_v15 }
 0x468   : > { %10210 = vmatpush3.bf16.msra.mxu1 %v10654_v34  ;;  %10141 = vmatprep.mubr.msk.bf16.mxu1 %vm10685_vm3, %v13950_v35  ;;  %v10670_v34 = vld [vmem:[%s13874_s6 + $0x238] sm:$0xff]  }
 0x469   : > { %10211 = vmatprep.subr.bf16.mxu1 %v13950_v35 }
 0x46b   : > { %10190 = vmatmul.mubr.bf16.gmra.mrb[88].mxu0 %v7185_v17  ;;  %v10668_v17 = vld [vmem:[#allocation3 + $0x38] ss:$0 sps:$4 sm:$0xff]  }
 0x46c   : > { %10193 = vmatprep.mubr.msk.bf16.mxu0 %vm10685_vm3, %v13950_v35  ;;  %10212 = vmatpush3.bf16.msra.mxu1 %v10657_v32  ;;  %v6927_v4 = vrot.slane %v10668_v17, 2 }
 0x46d   : > { %10213 = vmatprep.subr.bf16.mxu1 %v13950_v35 }
 0x46f   : > { %10142 = vmatmul.mubr.bf16.gmra.mrb[56].mxu1 %v6920_v36 }
 0x470   : > { %10145 = vmatprep.mubr.msk.bf16.mxu1 %vm10685_vm3, %v13950_v35  ;;  %10214 = vmatpush3.bf16.msra.mxu1 %v10659_v5  ;;  %v6928_v5 = vsel %vm4440_vm14, %v6925_v27, %v6927_v4 }
 0x471   : > { %10215 = vmatprep.subr.bf16.mxu1 %v13950_v35 }
 0x473   : > { %10194 = vmatmul.mubr.bf16.gmra.mrb[92].mxu0 %v7194_v23 }
 0x474   : > { %10197 = vmatprep.mubr.msk.bf16.mxu0 %vm10685_vm3, %v13950_v35  ;;  %10216 = vmatpush3.bf16.msra.mxu1 %v10662_v21 }
 0x475   : > { %10217 = vmatprep.subr.bf16.mxu1 %v13950_v35 }
 0x477   : > { %10146 = vmatmul.mubr.bf16.gmra.mrb[60].mxu1 %v6922_v13 }
 0x478   : > { %10149 = vmatprep.mubr.msk.bf16.mxu1 %vm10685_vm3, %v13950_v35  ;;  %10218 = vmatpush3.bf16.msra.mxu1 %v10665_v33 }
 0x479   : > { %10219 = vmatprep.subr.bf16.mxu1 %v13950_v35 }
 0x47b   : > { %10198 = vmatmul.mubr.bf16.gmra.mrb[96].mxu0 %v7203_v38 }
 0x47c   : > { %10201 = vmatprep.mubr.msk.bf16.mxu0 %vm10685_vm3, %v13950_v35  ;;  %10220 = vmatpush3.bf16.msra.mxu1 %v10667_v51 }
 0x47d   : > { %10221 = vmatprep.subr.bf16.mxu1 %v13950_v35 }
 0x47f   : > { %10150 = vmatmul.mubr.bf16.gmra.mrb[64].mxu1 %v6924_v18 }
 0x480   : > { %10153 = vmatprep.mubr.msk.bf16.mxu1 %vm10685_vm3, %v13950_v35  ;;  %10222 = vmatpush3.bf16.msra.mxu1 %v10669_v53 }
 0x481   : > { %10223 = vmatprep.subr.bf16.mxu1 %v13950_v35 }
 0x483   : > { %10202 = vmatmul.mubr.bf16.gmra.mrb[100].mxu0 %v7212_v50 }
 0x484   : > { %10205 = vmatprep.mubr.msk.bf16.mxu0 %vm10685_vm3, %v13950_v35  ;;  %10224 = vmatpush3.bf16.msra.mxu1 %v10670_v34 }
 0x486   : > { %v5948_v12 = vpop.f32.mrb[252].mxu0 }
 0x487   : > { %v9919_v43 = vpop.f32.mrb[253].mxu0  ;;  %10154 = vmatmul.mubr.bf16.gmra.mrb[68].mxu1 %v6926_v2 }
 0x488   : > { %v5951_v15 = vpop.f32.mrb[254].mxu0  ;;  %10157 = vmatprep.mubr.msk.bf16.mxu1 %vm10685_vm3, %v13950_v35 }
 0x489   : > { %v9920_v32 = vpop.f32.mrb[255].mxu0 }
 0x48b   : > { %10206 = vmatmul.mubr.bf16.gmra.mrb[104].mxu0 %v7211_v30 }
 0x48e   : > { %v5956_v19 = vpop.f32.mrb[0].mxu0 }
 0x48f   : > { %v9923_v26 = vpop.f32.mrb[1].mxu0  ;;  %10158 = vmatmul.mubr.bf16.gmra.mrb[72].mxu1 %v6928_v5 }
 0x490   : > { %v5959_v46 = vpop.f32.mrb[2].mxu0  ;;  %10161 = vmatprep.mubr.msk.bf16.mxu1 %vm10685_vm3, %v13950_v35 }
 0x491   : > { %v9924_v1 = vpop.f32.mrb[3].mxu0 }
 0x492   : > { %v5802_v45 = vpop.f32.mrb[224].mxu1 }
 0x493   : > { %v13630_v36 = vadd.f32 %v5948_v12, %v5802_v45  ;;  %v9875_v63 = vpop.f32.mrb[225].mxu1 }
 0x494   : > { %v5805_v23 = vpop.f32.mrb[226].mxu1 }
 0x495   : > { %v13632_v6 = vadd.f32 %v5951_v15, %v5805_v23  ;;  %v9876_v21 = vpop.f32.mrb[227].mxu1 }
 0x496   : > { %v5964_v62 = vpop.f32.mrb[4].mxu0 }
 0x497   : > { %v9927_v48 = vpop.f32.mrb[5].mxu0  ;;  %10162 = vmatmul.mubr.bf16.gmra.mrb[76].mxu1 %v6927_v4 }
 0x498   : > { %v5967_v20 = vpop.f32.mrb[6].mxu0  ;;  %10225 = vmatprep.mubr.msk.bf16.mxu1 %vm10685_vm3, %v13950_v35 }
 0x499   : > { %v9928_v47 = vpop.f32.mrb[7].mxu0 }
 0x49a   : > { %v5810_v22 = vpop.f32.mrb[228].mxu1 }
 0x49b   : > { %v13636_v33 = vadd.f32 %v5956_v19, %v5810_v22  ;;  %v9879_v13 = vpop.f32.mrb[229].mxu1 }
 0x49c   : > { %v5813_v24 = vpop.f32.mrb[230].mxu1 }
 0x49d   : > { %v13638_v11 = vadd.f32 %v5959_v46, %v5813_v24  ;;  %v9880_v8 = vpop.f32.mrb[231].mxu1 }
 0x49e   : > { %v5972_v38 = vpop.f32.mrb[8].mxu0 }
 0x49f   : > { %v9931_v51 = vpop.f32.mrb[9].mxu0  ;;  %10226 = vmatmul.mubr.bf16.vlgmr.msra.gmra.mrb[80].mxu1 %v13338_v56 }
 0x4a0   : > { %v5975_v29 = vpop.f32.mrb[10].mxu0  ;;  %10229 = vmatprep.mubr.msk.bf16.mxu1 %vm10685_vm3, %v13950_v35 }
 0x4a1   : > { %v9932_v30 = vpop.f32.mrb[11].mxu0 }
 0x4a2   : > { %v5818_v53 = vpop.f32.mrb[232].mxu1 }
 0x4a3   : > { %v13643_v18 = vadd.f32 %v5964_v62, %v5818_v53  ;;  %v9883_v57 = vpop.f32.mrb[233].mxu1 }
 0x4a4   : > { %v5821_v50 = vpop.f32.mrb[234].mxu1 }
 0x4a5   : > { %v13645_v27 = vadd.f32 %v5967_v20, %v5821_v50  ;;  %v9884_v12 = vpop.f32.mrb[235].mxu1 }
 0x4a6   : > { %v5980_v34 = vpop.f32.mrb[12].mxu0 }
 0x4a7   : > { %v9935_v43 = vpop.f32.mrb[13].mxu0  ;;  %10230 = vmatmul.mubr.bf16.gmra.mrb[84].mxu1 %v13341_v40 }
 0x4a8   : > { %v5983_v15 = vpop.f32.mrb[14].mxu0  ;;  %10233 = vmatprep.mubr.msk.bf16.mxu1 %vm10685_vm3, %v13950_v35 }
 0x4a9   : > { %v9936_v2 = vpop.f32.mrb[15].mxu0 }
 0x4aa   : > { %v5826_v56 = vpop.f32.mrb[236].mxu1 }
 0x4ab   : > { %v13650_v17 = vadd.f32 %v5972_v38, %v5826_v56  ;;  %v9887_v32 = vpop.f32.mrb[237].mxu1 }
 0x4ac   : > { %v5829_v4 = vpop.f32.mrb[238].mxu1 }
 0x4ad   : > { %v13652_v26 = vadd.f32 %v5975_v29, %v5829_v4  ;;  %v9888_v46 = vpop.f32.mrb[239].mxu1 }
 0x4ae   : > { %v5988_v19 = vpop.f32.mrb[16].mxu0 }
 0x4af   : > { %v9939_v5 = vpop.f32.mrb[17].mxu0  ;;  %10234 = vmatmul.mubr.bf16.gmra.mrb[88].mxu1 %v13345_v0 }
 0x4b0   : > { %v5991_v1 = vpop.f32.mrb[18].mxu0  ;;  %10237 = vmatprep.mubr.msk.bf16.mxu1 %vm10685_vm3, %v13950_v35 }
 0x4b1   : > { %v9940_v45 = vpop.f32.mrb[19].mxu0 }
 0x4b2   : > { %v5834_v40 = vpop.f32.mrb[240].mxu1 }
 0x4b3   : > { %v13657_v63 = vadd.f32 %v5980_v34, %v5834_v40  ;;  %v9891_v23 = vpop.f32.mrb[241].mxu1 }
 0x4b4   : > { %v5837_v62 = vpop.f32.mrb[242].mxu1 }
 0x4b5   : > { %v13659_v48 = vadd.f32 %v5983_v15, %v5837_v62  ;;  %v9892_v20 = vpop.f32.mrb[243].mxu1 }
 0x4b6   : > { %v5996_v21 = vpop.f32.mrb[20].mxu0 }
 0x4b7   : > { %v9943_v47 = vpop.f32.mrb[21].mxu0  ;;  %10238 = vmatmul.mubr.bf16.gmra.mrb[92].mxu1 %v13348_v52 }
 0x4b8   : > { %v5999_v22 = vpop.f32.mrb[22].mxu0  ;;  %10241 = vmatprep.mubr.msk.bf16.mxu1 %vm10685_vm3, %v13950_v35 }
 0x4b9   : > { %v9944_v13 = vpop.f32.mrb[23].mxu0 }
 0x4ba   : > { %v5842_v0 = vpop.f32.mrb[244].mxu1 }
 0x4bb   : > { %v13664_v24 = vadd.f32 %v5988_v19, %v5842_v0  ;;  %v9895_v38 = vpop.f32.mrb[245].mxu1 }
 0x4bc   : > { %v5845_v8 = vpop.f32.mrb[246].mxu1 }
 0x4bd   : > { %v13666_v29 = vadd.f32 %v5991_v1, %v5845_v8  ;;  %v9896_v30 = vpop.f32.mrb[247].mxu1 }
 0x4be   : > { %v6357_v51 = vpop.f32.mrb[24].mxu0 }
 0x4bf   : > { %v10007_v53 = vpop.f32.mrb[25].mxu0  ;;  %10242 = vmatmul.mubr.bf16.gmra.mrb[96].mxu1 %v13351_v3 }
 0x4c0   : > { %v6360_v57 = vpop.f32.mrb[26].mxu0  ;;  %10245 = vmatprep.mubr.msk.bf16.mxu1 %vm10685_vm3, %v13950_v35 }
 0x4c1   : > { %v10008_v50 = vpop.f32.mrb[27].mxu0 }
 0x4c2   : > { %v5850_v52 = vpop.f32.mrb[248].mxu1 }
 0x4c3   : > { %v13671_v34 = vadd.f32 %v5996_v21, %v5850_v52  ;;  %v9899_v12 = vpop.f32.mrb[249].mxu1 }
 0x4c4   : > { %v5853_v43 = vpop.f32.mrb[250].mxu1 }
 0x4c5   : > { %v9900_v2 = vpop.f32.mrb[251].mxu1 }
 0x4c6   : > { %v6365_v15 = vpop.f32.mrb[28].mxu0 }
 0x4c7   : > { %v10011_v56 = vpop.f32.mrb[29].mxu0  ;;  %10246 = vmatmul.mubr.bf16.gmra.mrb[100].mxu1 %v13362_v39 }
 0x4c8   : > { %v6368_v32 = vpop.f32.mrb[30].mxu0  ;;  %10249 = vmatprep.mubr.msk.bf16.mxu1 %vm10685_vm3, %v13950_v35 }
 0x4c9   : > { %v10012_v4 = vpop.f32.mrb[31].mxu0 }
 0x4ca   : > { %v6125_v3 = vpop.f32.mrb[252].mxu1 }
 0x4cb   : > { %v6179_v19 = vadd.f32 %v6125_v3, %v13630_v36  ;;  %v9963_v46 = vpop.f32.mrb[253].mxu1 }
 0x4cc   : > { %v6128_v5 = vpop.f32.mrb[254].mxu1 }
 0x4cd   : > { %v6180_v45 = vadd.f32 %v6128_v5, %v13632_v6  ;;  %v9964_v40 = vpop.f32.mrb[255].mxu1  ;;  %v13678_v62 = vadd.f32 %v6357_v51, %v6179_v19 }
 0x4ce   : > { %v6373_v1 = vpop.f32.mrb[32].mxu0 }
 0x4cf   : > { %v10015_v23 = vpop.f32.mrb[33].mxu0  ;;  %10250 = vmatmul.mubr.bf16.gmra.mrb[104].mxu1 %v7401_v55  ;;  %v13682_v20 = vadd.f32 %v6360_v57, %v6180_v45 }
 0x4d0   : > { %v6376_v21 = vpop.f32.mrb[34].mxu0 }
 0x4d1   : > { %v10016_v39 = vpop.f32.mrb[35].mxu0 }
 0x4d2   : > { %v6133_v35 = vpop.f32.mrb[0].mxu1 }
 0x4d3   : > { %v6181_v47 = vadd.f32 %v6133_v35, %v13636_v33  ;;  %v9967_v36 = vpop.f32.mrb[1].mxu1 }
 0x4d4   : > { %v6136_v22 = vpop.f32.mrb[2].mxu1 }
 0x4d5   : > { %v6182_v0 = vadd.f32 %v6136_v22, %v13638_v11  ;;  %v9968_v6 = vpop.f32.mrb[3].mxu1  ;;  %v13686_v8 = vadd.f32 %v6365_v15, %v6181_v47 }
 0x4d6   : > { %v6381_v13 = vpop.f32.mrb[36].mxu0 }
 0x4d7   : > { %v10019_v38 = vpop.f32.mrb[37].mxu0  ;;  %v13688_v53 = vadd.f32 %v6368_v32, %v6182_v0 }
 0x4d8   : > { %v6384_v51 = vpop.f32.mrb[38].mxu0 }
 0x4d9   : > { %v10020_v30 = vpop.f32.mrb[39].mxu0 }
 0x4da   : > { %v6141_v25 = vpop.f32.mrb[4].mxu1 }
 0x4db   : > { %v6183_v55 = vadd.f32 %v6141_v25, %v13643_v18  ;;  %v9971_v57 = vpop.f32.mrb[5].mxu1 }
 0x4dc   : > { %v6144_v50 = vpop.f32.mrb[6].mxu1 }
 0x4dd   : > { %v6184_v33 = vadd.f32 %v6144_v50, %v13645_v27  ;;  %v9972_v12 = vpop.f32.mrb[7].mxu1  ;;  %v13692_v2 = vadd.f32 %v6373_v1, %v6183_v55 }
 0x4de   : > { %v6389_v52 = vpop.f32.mrb[40].mxu0 }
 0x4df   : > { %v10023_v43 = vpop.f32.mrb[41].mxu0  ;;  %v13694_v15 = vadd.f32 %v6376_v21, %v6184_v33 }
 0x4e0   : > { %v6392_v11 = vpop.f32.mrb[42].mxu0 }
 0x4e1   : > { %v10024_v56 = vpop.f32.mrb[43].mxu0 }
 0x4e2   : > { %v6149_v4 = vpop.f32.mrb[8].mxu1 }
 0x4e3   : > { %v6185_v32 = vadd.f32 %v6149_v4, %v13650_v17  ;;  %v9975_v3 = vpop.f32.mrb[9].mxu1 }
 0x4e4   : > { %v6152_v19 = vpop.f32.mrb[10].mxu1 }
 0x4e5   : > { %v6186_v18 = vadd.f32 %v6152_v19, %v13652_v26  ;;  %v9976_v5 = vpop.f32.mrb[11].mxu1  ;;  %v13698_v40 = vadd.f32 %v6381_v13, %v6185_v32 }
 0x4e6   : > { %v6397_v46 = vpop.f32.mrb[44].mxu0 }
 0x4e7   : > { %v10027_v45 = vpop.f32.mrb[45].mxu0  ;;  %v13700_v1 = vadd.f32 %v6384_v51, %v6186_v18 }
 0x4e8   : > { %v6400_v27 = vpop.f32.mrb[46].mxu0 }
 0x4e9   : > { %v10028_v23 = vpop.f32.mrb[47].mxu0 }
 0x4ea   : > { %v6157_v39 = vpop.f32.mrb[12].mxu1 }
 0x4eb   : > { %v6187_v21 = vadd.f32 %v6157_v39, %v13657_v63  ;;  %v9979_v35 = vpop.f32.mrb[13].mxu1 }
 0x4ec   : > { %v6160_v47 = vpop.f32.mrb[14].mxu1 }
 0x4ed   : > { %v6188_v17 = vadd.f32 %v6160_v47, %v13659_v48  ;;  %v9980_v22 = vpop.f32.mrb[15].mxu1  ;;  %v13704_v6 = vadd.f32 %v6389_v52, %v6187_v21 }
 0x4ee   : > { %v6405_v36 = vpop.f32.mrb[48].mxu0 }
 0x4ef   : > { %v10031_v0 = vpop.f32.mrb[49].mxu0  ;;  %v13706_v13 = vadd.f32 %v6392_v11, %v6188_v17 }
 0x4f0   : > { %v6408_v26 = vpop.f32.mrb[50].mxu0 }
 0x4f1   : > { %v10032_v38 = vpop.f32.mrb[51].mxu0 }
 0x4f2   : > { %v6165_v30 = vpop.f32.mrb[16].mxu1 }
 0x4f3   : > { %v6189_v51 = vadd.f32 %v6165_v30, %v13664_v24  ;;  %v9983_v25 = vpop.f32.mrb[17].mxu1 }
 0x4f4   : > { %v6168_v55 = vpop.f32.mrb[18].mxu1 }
 0x4f5   : > { %v6190_v63 = vadd.f32 %v6168_v55, %v13666_v29  ;;  %v9984_v50 = vpop.f32.mrb[19].mxu1  ;;  %v13710_v12 = vadd.f32 %v6397_v46, %v6189_v51 }
 0x4f6   : > { %v6786_v57 = vpop.f32.mrb[52].mxu0 }
 0x4f7   : > { %v10095_v33 = vpop.f32.mrb[53].mxu0  ;;  %v13712_v52 = vadd.f32 %v6400_v27, %v6190_v63 }
 0x4f8   : > { %v6789_v48 = vpop.f32.mrb[54].mxu0 }
 0x4f9   : > { %v10096_v43 = vpop.f32.mrb[55].mxu0 }
 0x4fa   : > { %v6173_v56 = vpop.f32.mrb[20].mxu1 }
 0x4fb   : > { %v6191_v11 = vadd.f32 %v6173_v56, %v13671_v34  ;;  %v9987_v4 = vpop.f32.mrb[21].mxu1 }
 0x4fc   : > { %v6176_v32 = vpop.f32.mrb[22].mxu1 }
 0x4fd   : > { %v9988_v24 = vpop.f32.mrb[23].mxu1  ;;  %v13715_v18 = vadd.f32 %v6405_v36, %v6191_v11 }
 0x4fe   : > { %v6794_v3 = vpop.f32.mrb[56].mxu0 }
 0x4ff   : > { %v10099_v19 = vpop.f32.mrb[57].mxu0 }
 0x500   : > { %v6797_v5 = vpop.f32.mrb[58].mxu0 }
 0x501   : > { %v10100_v29 = vpop.f32.mrb[59].mxu0 }
 0x502   : > { %v6596_v45 = vpop.f32.mrb[24].mxu1 }
 0x503   : > { %v6650_v46 = vadd.f32 %v6596_v45, %v13678_v62  ;;  %v10051_v23 = vpop.f32.mrb[25].mxu1 }
 0x504   : > { %v6599_v39 = vpop.f32.mrb[26].mxu1 }
 0x505   : > { %v6651_v27 = vadd.f32 %v6599_v39, %v13682_v20  ;;  %v10052_v35 = vpop.f32.mrb[27].mxu1  ;;  %v13719_v34 = vadd.f32 %v6786_v57, %v6650_v46 }
 0x506   : > { %v6802_v21 = vpop.f32.mrb[60].mxu0 }
 0x507   : > { %v10103_v47 = vpop.f32.mrb[61].mxu0  ;;  %v13721_v0 = vadd.f32 %v6789_v48, %v6651_v27 }
 0x508   : > { %v6805_v17 = vpop.f32.mrb[62].mxu0 }
 0x509   : > { %v10104_v22 = vpop.f32.mrb[63].mxu0 }
 0x50a   : > { %v6604_v36 = vpop.f32.mrb[28].mxu1 }
 0x50b   : > { %v6652_v26 = vadd.f32 %v6604_v36, %v13686_v8  ;;  %v10055_v38 = vpop.f32.mrb[29].mxu1 }
 0x50c   : > { %v6607_v30 = vpop.f32.mrb[30].mxu1 }
 0x50d   : > { %v6653_v62 = vadd.f32 %v6607_v30, %v13688_v53  ;;  %v10056_v25 = vpop.f32.mrb[31].mxu1  ;;  %v13725_v63 = vadd.f32 %v6794_v3, %v6652_v26 }
 0x50e   : > { %v6810_v51 = vpop.f32.mrb[64].mxu0 }
 0x50f   : > { %v10107_v55 = vpop.f32.mrb[65].mxu0  ;;  %v13727_v57 = vadd.f32 %v6797_v5, %v6653_v62 }
 0x510   : > { %v6813_v20 = vpop.f32.mrb[66].mxu0 }
 0x511   : > { %v10108_v50 = vpop.f32.mrb[67].mxu0 }
 0x512   : > { %v6612_v33 = vpop.f32.mrb[32].mxu1 }
 0x513   : > { %v6654_v48 = vadd.f32 %v6612_v33, %v13692_v2  ;;  %v10059_v43 = vpop.f32.mrb[33].mxu1 }
 0x514   : > { %v6615_v56 = vpop.f32.mrb[34].mxu1 }
 0x515   : > { %v6655_v8 = vadd.f32 %v6615_v56, %v13694_v15  ;;  %v10060_v4 = vpop.f32.mrb[35].mxu1  ;;  %v13731_v24 = vadd.f32 %v6802_v21, %v6654_v48 }
 0x516   : > { %v6818_v11 = vpop.f32.mrb[68].mxu0 }
 0x517   : > { %v10111_v32 = vpop.f32.mrb[69].mxu0  ;;  %v13733_v3 = vadd.f32 %v6805_v17, %v6655_v8 }
 0x518   : > { %v6821_v53 = vpop.f32.mrb[70].mxu0 }
 0x519   : > { %v10112_v19 = vpop.f32.mrb[71].mxu0 }
 0x51a   : > { %v6620_v29 = vpop.f32.mrb[36].mxu1 }
 0x51b   : > { %v6656_v5 = vadd.f32 %v6620_v29, %v13698_v40  ;;  %v10063_v45 = vpop.f32.mrb[37].mxu1 }
 0x51c   : > { %v6623_v46 = vpop.f32.mrb[38].mxu1 }
 0x51d   : > { %v6657_v2 = vadd.f32 %v6623_v46, %v13700_v1  ;;  %v10064_v39 = vpop.f32.mrb[39].mxu1  ;;  %v13737_v35 = vadd.f32 %v6810_v51, %v6656_v5 }
 0x51e   : > { %v6826_v23 = vpop.f32.mrb[72].mxu0 }
 0x51f   : > { %v10115_v27 = vpop.f32.mrb[73].mxu0  ;;  %v13739_v21 = vadd.f32 %v6813_v20, %v6657_v2 }
 0x520   : > { %v6829_v15 = vpop.f32.mrb[74].mxu0 }
 0x521   : > { %v10116_v47 = vpop.f32.mrb[75].mxu0 }
 0x522   : > { %v6628_v22 = vpop.f32.mrb[40].mxu1 }
 0x523   : > { %v6658_v17 = vadd.f32 %v6628_v22, %v13704_v6  ;;  %v10067_v36 = vpop.f32.mrb[41].mxu1 }
 0x524   : > { %v6631_v26 = vpop.f32.mrb[42].mxu1 }
 0x525   : > { %v6659_v40 = vadd.f32 %v6631_v26, %v13706_v13  ;;  %v10068_v30 = vpop.f32.mrb[43].mxu1  ;;  %v13743_v25 = vadd.f32 %v6818_v11, %v6658_v17 }
 0x526   : > { %v6834_v38 = vpop.f32.mrb[76].mxu0 }
 0x527   : > { %v10119_v62 = vpop.f32.mrb[77].mxu0  ;;  %v13745_v51 = vadd.f32 %v6821_v53, %v6659_v40 }
 0x528   : > { %v6837_v1 = vpop.f32.mrb[78].mxu0 }
 0x529   : > { %v10120_v55 = vpop.f32.mrb[79].mxu0 }
 0x52a   : > { %v6636_v50 = vpop.f32.mrb[44].mxu1 }
 0x52b   : > { %v6660_v20 = vadd.f32 %v6636_v50, %v13710_v12  ;;  %v10071_v33 = vpop.f32.mrb[45].mxu1 }
 0x52c   : > { %v6639_v48 = vpop.f32.mrb[46].mxu1 }
 0x52d   : > { %v6661_v6 = vadd.f32 %v6639_v48, %v13712_v52  ;;  %v10072_v56 = vpop.f32.mrb[47].mxu1  ;;  %v13749_v4 = vadd.f32 %v6826_v23, %v6660_v20 }
 0x52e   : > { %v7302_v43 = vpop.f32.mrb[80].mxu0 }
 0x52f   : > { %v10183_v8 = vpop.f32.mrb[81].mxu0  ;;  %v13751_v11 = vadd.f32 %v6829_v15, %v6661_v6 }
 0x530   : > { %v7305_v13 = vpop.f32.mrb[82].mxu0 }
 0x531   : > { %v10184_v32 = vpop.f32.mrb[83].mxu0 }
 0x532   : > { %v6644_v19 = vpop.f32.mrb[48].mxu1 }
 0x533   : > { %v6662_v53 = vadd.f32 %v6644_v19, %v13715_v18  ;;  %v10075_v29 = vpop.f32.mrb[49].mxu1 }
 0x534   : > { %v6647_v5 = vpop.f32.mrb[50].mxu1 }
 0x535   : > { %v10076_v12 = vpop.f32.mrb[51].mxu1  ;;  %v13754_v2 = vadd.f32 %v6834_v38, %v6662_v53 }
 0x536   : > { %v7310_v45 = vpop.f32.mrb[84].mxu0 }
 0x537   : > { %v10187_v46 = vpop.f32.mrb[85].mxu0 }
 0x538   : > { %v7313_v39 = vpop.f32.mrb[86].mxu0 }
 0x539   : > { %v10188_v52 = vpop.f32.mrb[87].mxu0 }
 0x53a   : > { %v7018_v27 = vpop.f32.mrb[52].mxu1 }
 0x53b   : > { %v7072_v23 = vadd.f32 %v7018_v27, %v13719_v34  ;;  %v10139_v47 = vpop.f32.mrb[53].mxu1 }
 0x53c   : > { %v7021_v22 = vpop.f32.mrb[54].mxu1 }
 0x53d   : > { %v7073_v15 = vadd.f32 %v7021_v22, %v13721_v0  ;;  %v10140_v36 = vpop.f32.mrb[55].mxu1  ;;  %v13758_v18 = vadd.f32 %v7302_v43, %v7072_v23 }
 0x53e   : > { %v7318_v17 = vpop.f32.mrb[88].mxu0 }
 0x53f   : > { %v10191_v26 = vpop.f32.mrb[89].mxu0  ;;  %v13760_v62 = vadd.f32 %v7305_v13, %v7073_v15 }
 0x540   : > { %v7321_v40 = vpop.f32.mrb[90].mxu0 }
 0x541   : > { %v10192_v30 = vpop.f32.mrb[91].mxu0 }
 0x542   : > { %v7026_v38 = vpop.f32.mrb[56].mxu1 }
 0x543   : > { %v7074_v1 = vadd.f32 %v7026_v38, %v13725_v63  ;;  %v10143_v55 = vpop.f32.mrb[57].mxu1 }
 0x544   : > { %v7029_v50 = vpop.f32.mrb[58].mxu1 }
 0x545   : > { %v7075_v34 = vadd.f32 %v7029_v50, %v13727_v57  ;;  %v10144_v33 = vpop.f32.mrb[59].mxu1  ;;  %v13764_v6 = vadd.f32 %v7310_v45, %v7074_v1 }
 0x546   : > { %v7326_v20 = vpop.f32.mrb[92].mxu0 }
 0x547   : > { %v10195_v48 = vpop.f32.mrb[93].mxu0  ;;  %v13766_v43 = vadd.f32 %v7313_v39, %v7075_v34 }
 0x548   : > { %v7329_v0 = vpop.f32.mrb[94].mxu0 }
 0x549   : > { %v10196_v56 = vpop.f32.mrb[95].mxu0 }
 0x54a   : > { %v7034_v8 = vpop.f32.mrb[60].mxu1 }
 0x54b   : > { %v7076_v13 = vadd.f32 %v7034_v8, %v13731_v24  ;;  %v10147_v32 = vpop.f32.mrb[61].mxu1 }
 0x54c   : > { %v7037_v19 = vpop.f32.mrb[62].mxu1 }
 0x54d   : > { %v7077_v63 = vadd.f32 %v7037_v19, %v13733_v3  ;;  %v10148_v29 = vpop.f32.mrb[63].mxu1  ;;  %v13770_v12 = vadd.f32 %v7318_v17, %v7076_v13 }
 0x54e   : > { %v7334_v53 = vpop.f32.mrb[96].mxu0 }
 0x54f   : > { %v10199_v5 = vpop.f32.mrb[97].mxu0  ;;  %v13772_v45 = vadd.f32 %v7321_v40, %v7077_v63 }
 0x550   : > { %v7337_v57 = vpop.f32.mrb[98].mxu0 }
 0x551   : > { %v10200_v46 = vpop.f32.mrb[99].mxu0 }
 0x552   : > { %v7042_v52 = vpop.f32.mrb[64].mxu1 }
 0x553   : > { %v7078_v39 = vadd.f32 %v7042_v52, %v13737_v35  ;;  %v10151_v27 = vpop.f32.mrb[65].mxu1 }
 0x554   : > { %v7045_v23 = vpop.f32.mrb[66].mxu1 }
 0x555   : > { %v7079_v24 = vadd.f32 %v7045_v23, %v13739_v21  ;;  %v10152_v22 = vpop.f32.mrb[67].mxu1  ;;  %v13776_v36 = vadd.f32 %v7326_v20, %v7078_v39 }
 0x556   : > { %v7342_v47 = vpop.f32.mrb[100].mxu0 }
 0x557   : > { %v10203_v15 = vpop.f32.mrb[101].mxu0  ;;  %v13778_v17 = vadd.f32 %v7329_v0, %v7079_v24 }
 0x558   : > { %v7345_v3 = vpop.f32.mrb[102].mxu0 }
 0x559   : > { %v10204_v26 = vpop.f32.mrb[103].mxu0 }
 0x55a   : > { %v7050_v30 = vpop.f32.mrb[68].mxu1 }
 0x55b   : > { %v7080_v40 = vadd.f32 %v7050_v30, %v13743_v25  ;;  %v10155_v38 = vpop.f32.mrb[69].mxu1 }
 0x55c   : > { %v7053_v1 = vpop.f32.mrb[70].mxu1 }
 0x55d   : > { %v7081_v35 = vadd.f32 %v7053_v1, %v13745_v51  ;;  %v10156_v50 = vpop.f32.mrb[71].mxu1  ;;  %v13782_v34 = vadd.f32 %v7334_v53, %v7080_v40 }
 0x55e   : > { %v7350_v55 = vpop.f32.mrb[104].mxu0 }
 0x55f   : > { %v10207_v21 = vpop.f32.mrb[105].mxu0  ;;  %v13784_v48 = vadd.f32 %v7337_v57, %v7081_v35 }
 0x560   : > { %v7353_v33 = vpop.f32.mrb[106].mxu0 }
 0x561   : > { %v10208_v20 = vpop.f32.mrb[107].mxu0 }
 0x562   : > { %v7058_v56 = vpop.f32.mrb[72].mxu1 }
 0x563   : > { %v7082_v0 = vadd.f32 %v7058_v56, %v13749_v4  ;;  %v10159_v8 = vpop.f32.mrb[73].mxu1  ;;  %v13798_v4 = vld [vmem:[%s13875_s7] ss:$0 sm:$0xff] }
 0x564   : > { %v7061_v13 = vpop.f32.mrb[74].mxu1 }
 0x565   : > { %v7083_v25 = vadd.f32 %v7061_v13, %v13751_v11  ;;  %v10160_v32 = vpop.f32.mrb[75].mxu1  ;;  %v13788_v19 = vadd.f32 %v7342_v47, %v7082_v0  ;;  %v7582_v0 = vunpack.c.h.bf16 %v12120_v14 }
 0x566   : > { %v13954_v32 = vld [vmem:[#allocation6_spill] sm:$0xff] }
 0x567   : > { %v13790_v63 = vadd.f32 %v7345_v3, %v7083_v25  ;;  %v7580_v3 = vunpack.c.h.bf16 %v12093_v60 }
 0x56a   : > { %v7066_v51 = vpop.f32.mrb[76].mxu1 }
 0x56b   : > { %v7084_v53 = vadd.f32 %v7066_v51, %v13754_v2  ;;  %v10163_v29 = vpop.f32.mrb[77].mxu1  ;;  %v7579_v2 = vunpack.c.l.bf16 %v12093_v60  ;;  %v7583_v51 = vunpack.c.l.bf16 %v13954_v32 }
 0x56c   : > { %v7069_v5 = vpop.f32.mrb[78].mxu1 }
 0x56d   : > { %v13793_v57 = vadd.f32 %v7350_v55, %v7084_v53  ;;  %v10164_v46 = vpop.f32.mrb[79].mxu1  ;;  %v7581_v55 = vunpack.c.l.bf16 %v12120_v14 }
 0x572   : > { %v7492_v52 = vpop.f32.mrb[80].mxu1 }
 0x573   : > { %v7546_v11 = vadd.f32 %v7492_v52, %v13758_v18  ;;  %v10227_v39 = vpop.f32.mrb[81].mxu1 }
 0x574   : > { %v7495_v27 = vpop.f32.mrb[82].mxu1 }
 0x575   : > { %v7566_v23 = vadd.f32 %v13798_v4, %v7546_v11  ;;  %v7547_v47 = vadd.f32 %v7495_v27, %v13760_v62  ;;  %v10228_v24 = vpop.f32.mrb[83].mxu1 }
 0x577   : > { %v7592_v22 = vadd.f32 %v7579_v2, %v7566_v23  ;;  %v7567_v15 = vadd.f32 %v13798_v4, %v7547_v47  ;;  %v7584_v23 = vunpack.c.h.bf16 %v13954_v32 }
 0x579   : > { %v7605_v26 = vmax.f32 %v7592_v22, 0.0  ;;  %v7593_v30 = vadd.f32 %v7580_v3, %v7567_v15  ;;  %v13955_v22 = vld [vmem:[#allocation7_spill] sm:$0xff] }
 0x57a   : > { %v7500_v40 = vpop.f32.mrb[84].mxu1  ;;  %v7585_v15 = vunpack.c.l.bf16 %v13955_v22 }
 0x57b   : > { %v7606_v38 = vmax.f32 %v7593_v30, 0.0  ;;  %v7548_v18 = vadd.f32 %v7500_v40, %v13764_v6  ;;  %v10231_v1 = vpop.f32.mrb[85].mxu1  ;;  %v7618_v50 = vmul.f32 %v7605_v26, %v12079_v49 }
 0x57c   : > { %v7503_v35 = vpop.f32.mrb[86].mxu1 }
 0x57d   : > { %v7619_v62 = vmul.f32 %v7606_v38, %v12085_v42  ;;  %v7568_v21 = vadd.f32 %v13798_v4, %v7548_v18  ;;  %v7549_v33 = vadd.f32 %v7503_v35, %v13766_v43  ;;  %v10232_v60 = vpop.f32.mrb[87].mxu1  ;;  %v7586_v35 = vunpack.c.h.bf16 %v13955_v22 }
 0x57f   : > { %v8695_v6 = vpack.c.bf16 %v7619_v62, %v7618_v50  ;;  %v7594_v20 = vadd.f32 %v7581_v55, %v7568_v21  ;;  %v7569_v56 = vadd.f32 %v13798_v4, %v7549_v33  ;;  %v7587_v33 = vunpack.c.l.bf16 %v12518_v37 }
 0x581   : > { %8696 = vst [vmem:[%s13816_s28] sm:$0xff] %v8695_v6   ;;  %v7607_v49 = vmax.f32 %v7594_v20, 0.0  ;;  %v7595_v42 = vadd.f32 %v7582_v0, %v7569_v56 }
 0x582   : > { %v7508_v8 = vpop.f32.mrb[88].mxu1 }
 0x583   : > { %v7608_v13 = vmax.f32 %v7595_v42, 0.0  ;;  %v7550_v43 = vadd.f32 %v7508_v8, %v13770_v12  ;;  %v10235_v25 = vpop.f32.mrb[89].mxu1  ;;  %v7620_v29 = vmul.f32 %v7607_v49, %v12089_v9 }
 0x584   : > { %v7511_v53 = vpop.f32.mrb[90].mxu1 }
 0x585   : > { %v7621_v5 = vmul.f32 %v7608_v13, %v12111_v41  ;;  %v7570_v46 = vadd.f32 %v13798_v4, %v7550_v43  ;;  %v7551_v14 = vadd.f32 %v7511_v53, %v13772_v45  ;;  %v10236_v52 = vpop.f32.mrb[91].mxu1  ;;  %v7588_v13 = vunpack.c.h.bf16 %v12518_v37 }
 0x587   : > { %v8700_v11 = vpack.c.bf16 %v7621_v5, %v7620_v29  ;;  %v7596_v39 = vadd.f32 %v7583_v51, %v7570_v46  ;;  %v7571_v27 = vadd.f32 %v13798_v4, %v7551_v14  ;;  %v7589_v51 = vunpack.c.l.bf16 %v12522_v61 }
 0x589   : > { %8722 = vst [vmem:[%s13816_s28 + $0x8] sm:$0xff] %v8700_v11   ;;  %v7609_v12 = vmax.f32 %v7596_v39, 0.0  ;;  %v7597_v2 = vadd.f32 %v7584_v23, %v7571_v27  ;;  %v7590_v39 = vunpack.c.h.bf16 %v12522_v61 }
 0x58a   : > { %v7516_v47 = vpop.f32.mrb[92].mxu1 }
 0x58b   : > { %v7610_v24 = vmax.f32 %v7597_v2, 0.0  ;;  %v7552_v9 = vadd.f32 %v7516_v47, %v13776_v36  ;;  %v10239_v41 = vpop.f32.mrb[93].mxu1  ;;  %v7622_v45 = vmul.f32 %v7609_v12, %v12122_v59 }
 0x58c   : > { %v7519_v3 = vpop.f32.mrb[94].mxu1 }
 0x58d   : > { %v7623_v26 = vmul.f32 %v7610_v24, %v12124_v58  ;;  %v7572_v30 = vadd.f32 %v13798_v4, %v7552_v9  ;;  %v7553_v40 = vadd.f32 %v7519_v3, %v13778_v17  ;;  %v10240_v38 = vpop.f32.mrb[95].mxu1  ;;  %v13956_v9 = vld [vmem:[#allocation4_spill] sm:$0xff] }
 0x58e   : > { %v7591_v41 = vunpack.c.l.bf16 %v13956_v9 }
 0x58f   : > { %v8705_v18 = vpack.c.bf16 %v7623_v26, %v7622_v45  ;;  %v7598_v1 = vadd.f32 %v7585_v15, %v7572_v30  ;;  %v7573_v55 = vadd.f32 %v13798_v4, %v7553_v40 }
 0x591   : > { %8723 = vst [vmem:[%s13816_s28 + $0x10] sm:$0xff] %v8705_v18   ;;  %v7611_v36 = vmax.f32 %v7598_v1, 0.0  ;;  %v7599_v50 = vadd.f32 %v7586_v35, %v7573_v55 }
 0x592   : > { %v7524_v62 = vpop.f32.mrb[96].mxu1 }
 0x593   : > { %v7612_v21 = vmax.f32 %v7599_v50, 0.0  ;;  %v7554_v59 = vadd.f32 %v7524_v62, %v13782_v34  ;;  %v10243_v58 = vpop.f32.mrb[97].mxu1  ;;  %v7624_v17 = vmul.f32 %v7611_v36, %v12159_v54 }
 0x594   : > { %v7527_v60 = vpop.f32.mrb[98].mxu1 }
 0x595   : > { %v7625_v6 = vmul.f32 %v7612_v21, %v12164_v10  ;;  %v7574_v20 = vadd.f32 %v13798_v4, %v7554_v59  ;;  %v7555_v56 = vadd.f32 %v7527_v60, %v13784_v48  ;;  %v10244_v0 = vpop.f32.mrb[99].mxu1 }
 0x597   : > { %v8710_v49 = vpack.c.bf16 %v7625_v6, %v7624_v17  ;;  %v7600_v42 = vadd.f32 %v7587_v33, %v7574_v20  ;;  %v7575_v8 = vadd.f32 %v13798_v4, %v7555_v56 }
 0x599   : > { %8724 = vst [vmem:[%s13816_s28 + $0x18] sm:$0xff] %v8710_v49   ;;  %v7613_v34 = vmax.f32 %v7600_v42, 0.0  ;;  %v7601_v43 = vadd.f32 %v7588_v13, %v7575_v8 }
 0x59a   : > { %v7532_v25 = vpop.f32.mrb[100].mxu1 }
 0x59b   : > { %v7614_v32 = vmax.f32 %v7601_v43, 0.0  ;;  %v7556_v54 = vadd.f32 %v7532_v25, %v13788_v19  ;;  %v10247_v10 = vpop.f32.mrb[101].mxu1  ;;  %v7626_v48 = vmul.f32 %v7613_v34, %v12195_v31 }
 0x59c   : > { %v7535_v53 = vpop.f32.mrb[102].mxu1 }
 0x59d   : > { %v7627_v29 = vmul.f32 %v7614_v32, %v12201_v28  ;;  %v7576_v5 = vadd.f32 %v13798_v4, %v7556_v54  ;;  %v7557_v37 = vadd.f32 %v7535_v53, %v13790_v63  ;;  %v10248_v46 = vpop.f32.mrb[103].mxu1 }
 0x59f   : > { %v8715_v14 = vpack.c.bf16 %v7627_v29, %v7626_v48  ;;  %v7602_v52 = vadd.f32 %v7589_v51, %v7576_v5  ;;  %v7577_v11 = vadd.f32 %v13798_v4, %v7557_v37 }
 0x5a1   : > { %8725 = vst [vmem:[%s13816_s28 + $0x20] sm:$0xff] %v8715_v14   ;;  %v7615_v19 = vmax.f32 %v7602_v52, 0.0  ;;  %v7603_v27 = vadd.f32 %v7590_v39, %v7577_v11 }
 0x5a2   : > { %v7540_v23 = vpop.f32.mrb[104].mxu1 }
 0x5a3   : > { %v7616_v31 = vmax.f32 %v7603_v27, 0.0  ;;  %v7558_v28 = vadd.f32 %v7540_v23, %v13793_v57  ;;  %v10251_v12 = vpop.f32.mrb[105].mxu1  ;;  %v7628_v63 = vmul.f32 %v7615_v19, %v12231_v7 }
 0x5a4   : > { %v7543_v2 = vpop.f32.mrb[106].mxu1 }
 0x5a5   : > { %v7629_v47 = vmul.f32 %v7616_v31, %v12241_v44  ;;  %v7578_v24 = vadd.f32 %v13798_v4, %v7558_v28  ;;  %v10252_v61 = vpop.f32.mrb[107].mxu1 }
 0x5a7   : > { %v8720_v22 = vpack.c.bf16 %v7629_v47, %v7628_v63  ;;  %v7604_v15 = vadd.f32 %v7591_v41, %v7578_v24 }
 0x5a9   : > { %8726 = vst [vmem:[%s13816_s28 + $0x28] sm:$0xff] %v8720_v22   ;;  %v7617_v3 = vmax.f32 %v7604_v15, 0.0 }
 0x5ab   : > { %v7630_v45 = vmul.f32 %v7617_v3, %v12282_v16 }
 0x5ad   : > { %v8691_v26 = vpack.c.bf16 %v7630_v45, %v7630_v45 }
 0x5af   : > { %7696 = vst [vmem:[%s13816_s28 + $0x30] sm:$0x3] %v8691_v26 }
 0x5b0 PF: > { %s18_s27 = sadd.s32 1, %s10681_s27  }
 0x5b1   : > { %p15_p4 = scmp.ge.s32.totalorder %s18_s27, 4  }
 0x5b3   :  { %17 = sbr.rel (!%p15_p4) target bundleno = 1 (0x1), region = 101 }

</bundles_post_ra>
